<compile_context>
chip_gen: v5e
topology: v5e:2x2
jax: 0.10.0
libtpu: 0.0.40
codegen_flags: <defaults>
</compile_context>

<pallas_src>
import functools

import numpy as np

import jax
import jax.numpy as jnp
from jax.experimental import pallas as pl
from jax.experimental.pallas import tpu as pltpu


# ----------------------------------------------------------------------------
# Fused Pallas kernel: Conv(5,2,2)s(2,1,1)p(0,1,1) -> Conv(3,2,2)s(2,1,1)
# p(0,1,1) -> Conv(3,1,1)s(2,1,1), each followed by BN(eval)+ReLU.
# One batch element per grid step.
# ----------------------------------------------------------------------------
def _fused_conv3d_kernel(x_ref, w1_ref, w2_ref, w3_ref, sh_ref, o_ref,
                         xp1, xp2, *, D, H, W, Cin, hid):
  # static layer geometry (kernel sizes / strides / padding fixed by module)
  Do1, Ho1, Wo1 = (D - 5) // 2 + 1, H + 1, W + 1
  Do2, Ho2, Wo2 = (Do1 - 3) // 2 + 1, Ho1 + 1, Wo1 + 1
  Do3, Ho3, Wo3 = (Do2 - 3) // 2 + 1, Ho2, Wo2
  N1, N2, N3 = Wo1 * hid, Wo2 * hid, Wo3 * hid
  Pg1, Pg2 = (D + 1) // 2, (Do1 + 1) // 2
  f32 = jnp.float32

  # --- re-zero only the H halo rows (interiors are fully overwritten below) --
  z1 = jnp.zeros((2, Pg1, W * Cin), xp1.dtype)
  xp1[:, :, 0, :] = z1
  xp1[:, :, H + 1, :] = z1
  z2 = jnp.zeros((2, Pg2, N1), xp2.dtype)
  xp2[:, :, 0, :] = z2
  xp2[:, :, Ho1 + 1, :] = z2

  # --- layer 1 input paste: depth de-interleaved, rows 1..H, lane offset 0 ---
  for d in range(D):
    xp1[d % 2, d // 2, 1:1 + H, :] = x_ref[0, d]

  # --- layer 1: tap-accumulated matmuls (kw + W-padding folded into weight) --
  acc1 = None
  for kd in range(5):
    for kh in range(2):
      slab = xp1[kd % 2, kd // 2:kd // 2 + Do1, kh:kh + Ho1, :]
      part = jnp.dot(slab.reshape(Do1 * Ho1, W * Cin), w1_ref[kd * 2 + kh],
                     preferred_element_type=f32)
      acc1 = part if acc1 is None else acc1 + part
  # folded-BN shift + ReLU (dropout/Identity are no-ops in eval)
  y1 = jnp.maximum(acc1 + sh_ref[0:1, 0:N1], 0.0).astype(xp2.dtype)

  # --- layer 2 input paste (depth de-interleaved, H halo rows stay zero) -----
  for d in range(Do1):
    xp2[d % 2, d // 2, 1:1 + Ho1, :] = y1[d * Ho1:(d + 1) * Ho1, :]

  # --- layer 2: tap-accumulated matmuls --------------------------------------
  acc2 = None
  for kd in range(3):
    for kh in range(2):
      slab = xp2[kd % 2, kd // 2:kd // 2 + Do2, kh:kh + Ho2, :]
      part = jnp.dot(slab.reshape(Do2 * Ho2, N1), w2_ref[kd * 2 + kh],
                     preferred_element_type=f32)
      acc2 = part if acc2 is None else acc2 + part
  y2 = jnp.maximum(acc2 + sh_ref[1:2, 0:N2], 0.0).astype(jnp.bfloat16)

  # --- layer 3: kernel (3,1,1), stride 2 in depth, no padding ----------------
  for do3 in range(Do3):
    acc3 = None
    for kd in range(3):
      d = 2 * do3 + kd
      part = jnp.dot(y2[d * Ho2:(d + 1) * Ho2, :], w3_ref[kd],
                     preferred_element_type=f32)
      acc3 = part if acc3 is None else acc3 + part
    y3 = jnp.maximum(acc3 + sh_ref[2:3, 0:N3], 0.0)
    o_ref[0, do3 * Ho3:(do3 + 1) * Ho3, :] = y3.astype(o_ref.dtype)


# ----------------------------------------------------------------------------
# Host-side weight preparation.
# ----------------------------------------------------------------------------
def _fold_bn(w, bn, eps):
  """Fold eval-mode BatchNorm into a (KD,KH,KW,Ci,Co) conv weight."""
  scale = bn['gamma'] / jnp.sqrt(bn['var'] + eps)
  shift = bn['beta'] - bn['mean'] * scale
  return (w * scale).astype(jnp.float32), shift.astype(jnp.float32)


def _block_diag_weight(wf, wi, wo, pad_left):
  """(KD,KH,KW,Ci,Co) folded weight -> (KD*KH, wi*Ci, wo*Co) block-diagonal.

  Row (i*Ci + ci), column (o*Co + co) holds wf[kd, kh, kw, ci, co] with
  kw = i - o + pad_left when that tap is in range; zero-padding contributions
  (i out of range) are simply omitted, so the activation buffers need no W
  halo and all pastes/loads stay lane-aligned.
  """
  KD, KH, KW, Ci, Co = wf.shape
  mask = np.zeros((KW, wi, wo), np.float32)
  for kw in range(KW):
    for o in range(wo):
      i = o + kw - pad_left
      if 0 <= i < wi:
        mask[kw, i, o] = 1.0
  bd = jnp.einsum('kio,dhkcf->dhicof', jnp.asarray(mask), wf)
  return bd.reshape(KD * KH, wi * Ci, wo * Co)


# ----------------------------------------------------------------------------
# Forward pass wrapper: NCDHW in / NCDHW out; the kernel runs channels-last
# with W and C merged on the lane axis.
# ----------------------------------------------------------------------------
def three_layer_conv3d_forward(x_ncdhw, params, *, eps=1e-5):
  N, Cin, D, H, W = x_ncdhw.shape
  hid = params['w1'].shape[-1]

  # static layer geometry (mirrors the kernel)
  Do1, Ho1, Wo1 = (D - 5) // 2 + 1, H + 1, W + 1
  Do2, Ho2, Wo2 = (Do1 - 3) // 2 + 1, Ho1 + 1, Wo1 + 1
  Do3, Ho3, Wo3 = (Do2 - 3) // 2 + 1, Ho2, Wo2
  N1, N2, N3 = Wo1 * hid, Wo2 * hid, Wo3 * hid
  Pg1, Pg2 = (D + 1) // 2, (Do1 + 1) // 2

  # BatchNorm (eval) folded into the conv weights + per-channel shifts.
  w1f, s1 = _fold_bn(params['w1'], params['bn1'], eps)
  w2f, s2 = _fold_bn(params['w2'], params['bn2'], eps)
  w3f, s3 = _fold_bn(params['w3'], params['bn3'], eps)

  # Block-diagonal weights (bf16 for native MXU rate, ~150 KB total).
  w1bd = _block_diag_weight(w1f, W, Wo1, 1).astype(jnp.bfloat16)
  w2bd = _block_diag_weight(w2f, Wo1, Wo2, 1).astype(jnp.bfloat16)
  w3bd = _block_diag_weight(w3f, Wo2, Wo3, 0).astype(jnp.bfloat16)

  # Per-output-lane BN shifts (tiled over w positions), applied in f32.
  sh_w = max(N1, N2, N3)
  shifts = jnp.zeros((3, sh_w), jnp.float32)
  shifts = shifts.at[0, :N1].set(jnp.tile(s1, Wo1))
  shifts = shifts.at[1, :N2].set(jnp.tile(s2, Wo2))
  shifts = shifts.at[2, :N3].set(jnp.tile(s3, Wo3))

  # NCDHW -> (N, D, H, W*C): channels minor on a 256-lane axis, bf16 DMA.
  x = jnp.transpose(x_ncdhw, (0, 2, 3, 4, 1)).reshape(N, D, H, W * Cin)
  x = x.astype(jnp.bfloat16)

  kernel = functools.partial(_fused_conv3d_kernel,
                             D=D, H=H, W=W, Cin=Cin, hid=hid)

  out = pl.pallas_call(
      kernel,
      out_shape=jax.ShapeDtypeStruct((N, Do3 * Ho3, N3), jnp.float32),
      grid_spec=pltpu.PrefetchScalarGridSpec(
          num_scalar_prefetch=0,
          grid=(N,),
          in_specs=[
              pl.BlockSpec((1, D, H, W * Cin), lambda n: (n, 0, 0, 0)),
              pl.BlockSpec((10, W * Cin, N1), lambda n: (0, 0, 0)),
              pl.BlockSpec((6, N1, N2), lambda n: (0, 0, 0)),
              pl.BlockSpec((3, N2, N3), lambda n: (0, 0, 0)),
              pl.BlockSpec((3, sh_w), lambda n: (0, 0)),
          ],
          out_specs=pl.BlockSpec((1, Do3 * Ho3, N3), lambda n: (n, 0, 0)),
          scratch_shapes=[
              # layer-1 padded input: depth de-interleaved, 2 H-halo rows
              pltpu.VMEM((2, Pg1, H + 2, W * Cin), jnp.bfloat16),
              # layer-2 padded input
              pltpu.VMEM((2, Pg2, Ho1 + 2, N1), jnp.bfloat16),
          ]),
      compiler_params=pltpu.CompilerParams(
          dimension_semantics=("parallel",)),
  )(x, w1bd, w2bd, w3bd, shifts)

  # (N, Do3*Ho3, Wo3*hid) -> NCDHW
  out = out.reshape(N, Do3, Ho3, Wo3, hid)
  return jnp.transpose(out, (0, 4, 1, 2, 3))


# ----------------------------------------------------------------------------
# Parameters (deterministic init, matching the shapes of the PyTorch module).
# ----------------------------------------------------------------------------
def init_three_layer_conv3d_params(hidden_size_3d, key):
  hid = hidden_size_3d // 16 + 1
  ks = jax.random.split(key, 15)

  def conv_w(k, kd, kh, kw, cin, cout):
    bound = 1.0 / float(np.sqrt(cin * kd * kh * kw))
    # stored as (KD, KH, KW, Cin, Cout) for the channels-last kernel
    return jax.random.uniform(k, (kd, kh, kw, cin, cout), jnp.float32,
                              -bound, bound)

  def bn_params(kg, kb, km, kv, c):
    return dict(
        gamma=jax.random.uniform(kg, (c,), jnp.float32, 0.5, 1.5),
        beta=0.1 * jax.random.normal(kb, (c,), jnp.float32),
        mean=0.1 * jax.random.normal(km, (c,), jnp.float32),
        var=jax.random.uniform(kv, (c,), jnp.float32, 0.5, 1.5),
    )

  return dict(
      w1=conv_w(ks[0], 5, 2, 2, hidden_size_3d, hid),
      bn1=bn_params(ks[1], ks[2], ks[3], ks[4], hid),
      w2=conv_w(ks[5], 3, 2, 2, hid, hid),
      bn2=bn_params(ks[6], ks[7], ks[8], ks[9], hid),
      w3=conv_w(ks[10], 3, 1, 1, hid, hid),
      bn3=bn_params(ks[11], ks[12], ks[13], ks[14], hid),
  )


# ----------------------------------------------------------------------------
# Pure-JAX reference (same math, no Pallas) for a correctness check.
# ----------------------------------------------------------------------------
def _reference_forward(x_ncdhw, params, *, eps=1e-5):
  def block(x, w, bn, pad_hw):
    w_oidhw = jnp.transpose(w, (4, 3, 0, 1, 2))
    y = jax.lax.conv_general_dilated(
        x, w_oidhw, window_strides=(2, 1, 1),
        padding=[(0, 0), (pad_hw, pad_hw), (pad_hw, pad_hw)],
        dimension_numbers=('NCDHW', 'OIDHW', 'NCDHW'),
        precision=jax.lax.Precision.HIGHEST)
    scale = bn['gamma'] / jnp.sqrt(bn['var'] + eps)
    shift = bn['beta'] - bn['mean'] * scale
    y = y * scale.reshape(1, -1, 1, 1, 1) + shift.reshape(1, -1, 1, 1, 1)
    return jnp.maximum(y, 0.0)

  x = block(x_ncdhw, params['w1'], params['bn1'], 1)
  x = block(x, params['w2'], params['bn2'], 1)
  x = block(x, params['w3'], params['bn3'], 0)
  return x


if __name__ == "__main__":
  key = jax.random.PRNGKey(0)
  k_param, k_x = jax.random.split(key)

  hidden_size_3d = 32           # -> hid = 32 // 16 + 1 = 3 output channels
  N, D, H, W = 2, 31, 8, 8      # D = config.n_frames = 31
  hid = hidden_size_3d // 16 + 1

  params = init_three_layer_conv3d_params(hidden_size_3d, k_param)
  x = jax.random.normal(k_x, (N, hidden_size_3d, D, H, W), jnp.float32)  # NCDHW

  out = jax.jit(three_layer_conv3d_forward)(x, params)
  out = jax.block_until_ready(out)

  ref = jax.block_until_ready(_reference_forward(x, params))
  assert out.shape == ref.shape == (N, hid, 2, 10, 10), (out.shape, ref.shape)
  # bf16 activations/weights with f32 accumulation vs. the f32 reference:
  # expected max deviation is ~1e-2; real indexing bugs give O(0.1+) errors.
  err = float(jnp.max(jnp.abs(out - ref)))
  assert err < 4e-2, err

  print("KERNEL_OK")
</pallas_src>

<mosaic_0001>
module attributes {stable_mosaic.version = 11 : i64} {
  func.func @_fused_conv3d_kernel(%arg0: i32, %arg1: memref<1x31x8x256xbf16, #tpu.memory_space<vmem>>, %arg2: memref<10x256x27xbf16, #tpu.memory_space<vmem>>, %arg3: memref<6x27x30xbf16, #tpu.memory_space<vmem>>, %arg4: memref<3x30x30xbf16, #tpu.memory_space<vmem>>, %arg5: memref<3x30xf32, #tpu.memory_space<vmem>>, %arg6: memref<1x20x30xf32, #tpu.memory_space<vmem>>, %arg7: memref<2x16x10x256xbf16, #tpu.memory_space<vmem>>, %arg8: memref<2x7x11x27xbf16, #tpu.memory_space<vmem>>) attributes {dimension_semantics = [#tpu.dimension_semantics<parallel>], iteration_bounds = array<i64: 2>, scalar_prefetch = 0 : i64, scratch_operands = 2 : i64, tpu.core_type = #tpu.core_type<tc>, window_params = [{transform_indices = @transform_0, window_bounds = array<i64: 1, 31, 8, 256>}, {pipeline_mode = #tpu.pipeline_mode<synchronous>, transform_indices = @transform_1, window_bounds = array<i64: 10, 256, 27>}, {pipeline_mode = #tpu.pipeline_mode<synchronous>, transform_indices = @transform_2, window_bounds = array<i64: 6, 27, 30>}, {pipeline_mode = #tpu.pipeline_mode<synchronous>, transform_indices = @transform_3, window_bounds = array<i64: 3, 30, 30>}, {pipeline_mode = #tpu.pipeline_mode<synchronous>, transform_indices = @transform_4, window_bounds = array<i64: 3, 30>}, {transform_indices = @transform_5, window_bounds = array<i64: 1, 20, 30>}]} {
    %cst = arith.constant 0.000000e+00 : bf16
    %0 = vector.broadcast %cst : bf16 to vector<2x16x256xbf16>
    %c0 = arith.constant 0 : index
    %c0_0 = arith.constant 0 : index
    %c0_1 = arith.constant 0 : index
    %c0_2 = arith.constant 0 : index
    %1 = vector.load %arg7[%c0, %c0_0, %c0_1, %c0_2] : memref<2x16x10x256xbf16, #tpu.memory_space<vmem>>, vector<2x16x1x256xbf16>
    %2 = vector.shape_cast %1 : vector<2x16x1x256xbf16> to vector<2x16x256xbf16>
    %3 = vector.shape_cast %0 : vector<2x16x256xbf16> to vector<2x16x1x256xbf16>
    tpu.vector_store %arg7[%c0, %c0_0, %c0_1, %c0_2], %3 {strides = array<i32>} : memref<2x16x10x256xbf16, #tpu.memory_space<vmem>>, vector<2x16x1x256xbf16>,
    %c0_3 = arith.constant 0 : index
    %c0_4 = arith.constant 0 : index
    %c9 = arith.constant 9 : index
    %c0_5 = arith.constant 0 : index
    %4 = vector.load %arg7[%c0_3, %c0_4, %c9, %c0_5] : memref<2x16x10x256xbf16, #tpu.memory_space<vmem>>, vector<2x16x1x256xbf16>
    %5 = vector.shape_cast %4 : vector<2x16x1x256xbf16> to vector<2x16x256xbf16>
    %6 = vector.shape_cast %0 : vector<2x16x256xbf16> to vector<2x16x1x256xbf16>
    tpu.vector_store %arg7[%c0_3, %c0_4, %c9, %c0_5], %6 {strides = array<i32>} : memref<2x16x10x256xbf16, #tpu.memory_space<vmem>>, vector<2x16x1x256xbf16>,
    %cst_6 = arith.constant 0.000000e+00 : bf16
    %7 = vector.broadcast %cst_6 : bf16 to vector<2x7x27xbf16>
    %c0_7 = arith.constant 0 : index
    %c0_8 = arith.constant 0 : index
    %c0_9 = arith.constant 0 : index
    %c0_10 = arith.constant 0 : index
    %8 = vector.load %arg8[%c0_7, %c0_8, %c0_9, %c0_10] : memref<2x7x11x27xbf16, #tpu.memory_space<vmem>>, vector<2x7x1x27xbf16>
    %9 = vector.shape_cast %8 : vector<2x7x1x27xbf16> to vector<2x7x27xbf16>
    %10 = vector.shape_cast %7 : vector<2x7x27xbf16> to vector<2x7x1x27xbf16>
    tpu.vector_store %arg8[%c0_7, %c0_8, %c0_9, %c0_10], %10 {strides = array<i32>} : memref<2x7x11x27xbf16, #tpu.memory_space<vmem>>, vector<2x7x1x27xbf16>,
    %c0_11 = arith.constant 0 : index
    %c0_12 = arith.constant 0 : index
    %c10 = arith.constant 10 : index
    %c0_13 = arith.constant 0 : index
    %11 = vector.load %arg8[%c0_11, %c0_12, %c10, %c0_13] : memref<2x7x11x27xbf16, #tpu.memory_space<vmem>>, vector<2x7x1x27xbf16>
    %12 = vector.shape_cast %11 : vector<2x7x1x27xbf16> to vector<2x7x27xbf16>
    %13 = vector.shape_cast %7 : vector<2x7x27xbf16> to vector<2x7x1x27xbf16>
    tpu.vector_store %arg8[%c0_11, %c0_12, %c10, %c0_13], %13 {strides = array<i32>} : memref<2x7x11x27xbf16, #tpu.memory_space<vmem>>, vector<2x7x1x27xbf16>,
    %c0_14 = arith.constant 0 : index
    %c0_15 = arith.constant 0 : index
    %c0_16 = arith.constant 0 : index
    %c0_17 = arith.constant 0 : index
    %14 = vector.load %arg1[%c0_14, %c0_15, %c0_16, %c0_17] : memref<1x31x8x256xbf16, #tpu.memory_space<vmem>>, vector<1x1x8x256xbf16>
    %15 = vector.shape_cast %14 : vector<1x1x8x256xbf16> to vector<8x256xbf16>
    %c0_18 = arith.constant 0 : index
    %c0_19 = arith.constant 0 : index
    %c1 = arith.constant 1 : index
    %c0_20 = arith.constant 0 : index
    %16 = vector.load %arg7[%c0_18, %c0_19, %c1, %c0_20] : memref<2x16x10x256xbf16, #tpu.memory_space<vmem>>, vector<1x1x8x256xbf16>
    %17 = vector.shape_cast %16 : vector<1x1x8x256xbf16> to vector<8x256xbf16>
    %18 = vector.shape_cast %15 : vector<8x256xbf16> to vector<1x1x8x256xbf16>
    tpu.vector_store %arg7[%c0_18, %c0_19, %c1, %c0_20], %18 {strides = array<i32>} : memref<2x16x10x256xbf16, #tpu.memory_space<vmem>>, vector<1x1x8x256xbf16>,
    %c0_21 = arith.constant 0 : index
    %c1_22 = arith.constant 1 : index
    %c0_23 = arith.constant 0 : index
    %c0_24 = arith.constant 0 : index
    %19 = vector.load %arg1[%c0_21, %c1_22, %c0_23, %c0_24] : memref<1x31x8x256xbf16, #tpu.memory_space<vmem>>, vector<1x1x8x256xbf16>
    %20 = vector.shape_cast %19 : vector<1x1x8x256xbf16> to vector<8x256xbf16>
    %c1_25 = arith.constant 1 : index
    %c0_26 = arith.constant 0 : index
    %c1_27 = arith.constant 1 : index
    %c0_28 = arith.constant 0 : index
    %21 = vector.load %arg7[%c1_25, %c0_26, %c1_27, %c0_28] : memref<2x16x10x256xbf16, #tpu.memory_space<vmem>>, vector<1x1x8x256xbf16>
    %22 = vector.shape_cast %21 : vector<1x1x8x256xbf16> to vector<8x256xbf16>
    %23 = vector.shape_cast %20 : vector<8x256xbf16> to vector<1x1x8x256xbf16>
    tpu.vector_store %arg7[%c1_25, %c0_26, %c1_27, %c0_28], %23 {strides = array<i32>} : memref<2x16x10x256xbf16, #tpu.memory_space<vmem>>, vector<1x1x8x256xbf16>,
    %c0_29 = arith.constant 0 : index
    %c2 = arith.constant 2 : index
    %c0_30 = arith.constant 0 : index
    %c0_31 = arith.constant 0 : index
    %24 = vector.load %arg1[%c0_29, %c2, %c0_30, %c0_31] : memref<1x31x8x256xbf16, #tpu.memory_space<vmem>>, vector<1x1x8x256xbf16>
    %25 = vector.shape_cast %24 : vector<1x1x8x256xbf16> to vector<8x256xbf16>
    %c0_32 = arith.constant 0 : index
    %c1_33 = arith.constant 1 : index
    %c1_34 = arith.constant 1 : index
    %c0_35 = arith.constant 0 : index
    %26 = vector.load %arg7[%c0_32, %c1_33, %c1_34, %c0_35] : memref<2x16x10x256xbf16, #tpu.memory_space<vmem>>, vector<1x1x8x256xbf16>
    %27 = vector.shape_cast %26 : vector<1x1x8x256xbf16> to vector<8x256xbf16>
    %28 = vector.shape_cast %25 : vector<8x256xbf16> to vector<1x1x8x256xbf16>
    tpu.vector_store %arg7[%c0_32, %c1_33, %c1_34, %c0_35], %28 {strides = array<i32>} : memref<2x16x10x256xbf16, #tpu.memory_space<vmem>>, vector<1x1x8x256xbf16>,
    %c0_36 = arith.constant 0 : index
    %c3 = arith.constant 3 : index
    %c0_37 = arith.constant 0 : index
    %c0_38 = arith.constant 0 : index
    %29 = vector.load %arg1[%c0_36, %c3, %c0_37, %c0_38] : memref<1x31x8x256xbf16, #tpu.memory_space<vmem>>, vector<1x1x8x256xbf16>
    %30 = vector.shape_cast %29 : vector<1x1x8x256xbf16> to vector<8x256xbf16>
    %c1_39 = arith.constant 1 : index
    %c1_40 = arith.constant 1 : index
    %c1_41 = arith.constant 1 : index
    %c0_42 = arith.constant 0 : index
    %31 = vector.load %arg7[%c1_39, %c1_40, %c1_41, %c0_42] : memref<2x16x10x256xbf16, #tpu.memory_space<vmem>>, vector<1x1x8x256xbf16>
    %32 = vector.shape_cast %31 : vector<1x1x8x256xbf16> to vector<8x256xbf16>
    %33 = vector.shape_cast %30 : vector<8x256xbf16> to vector<1x1x8x256xbf16>
    tpu.vector_store %arg7[%c1_39, %c1_40, %c1_41, %c0_42], %33 {strides = array<i32>} : memref<2x16x10x256xbf16, #tpu.memory_space<vmem>>, vector<1x1x8x256xbf16>,
    %c0_43 = arith.constant 0 : index
    %c4 = arith.constant 4 : index
    %c0_44 = arith.constant 0 : index
    %c0_45 = arith.constant 0 : index
    %34 = vector.load %arg1[%c0_43, %c4, %c0_44, %c0_45] : memref<1x31x8x256xbf16, #tpu.memory_space<vmem>>, vector<1x1x8x256xbf16>
    %35 = vector.shape_cast %34 : vector<1x1x8x256xbf16> to vector<8x256xbf16>
    %c0_46 = arith.constant 0 : index
    %c2_47 = arith.constant 2 : index
    %c1_48 = arith.constant 1 : index
    %c0_49 = arith.constant 0 : index
    %36 = vector.load %arg7[%c0_46, %c2_47, %c1_48, %c0_49] : memref<2x16x10x256xbf16, #tpu.memory_space<vmem>>, vector<1x1x8x256xbf16>
    %37 = vector.shape_cast %36 : vector<1x1x8x256xbf16> to vector<8x256xbf16>
    %38 = vector.shape_cast %35 : vector<8x256xbf16> to vector<1x1x8x256xbf16>
    tpu.vector_store %arg7[%c0_46, %c2_47, %c1_48, %c0_49], %38 {strides = array<i32>} : memref<2x16x10x256xbf16, #tpu.memory_space<vmem>>, vector<1x1x8x256xbf16>,
    %c0_50 = arith.constant 0 : index
    %c5 = arith.constant 5 : index
    %c0_51 = arith.constant 0 : index
    %c0_52 = arith.constant 0 : index
    %39 = vector.load %arg1[%c0_50, %c5, %c0_51, %c0_52] : memref<1x31x8x256xbf16, #tpu.memory_space<vmem>>, vector<1x1x8x256xbf16>
    %40 = vector.shape_cast %39 : vector<1x1x8x256xbf16> to vector<8x256xbf16>
    %c1_53 = arith.constant 1 : index
    %c2_54 = arith.constant 2 : index
    %c1_55 = arith.constant 1 : index
    %c0_56 = arith.constant 0 : index
    %41 = vector.load %arg7[%c1_53, %c2_54, %c1_55, %c0_56] : memref<2x16x10x256xbf16, #tpu.memory_space<vmem>>, vector<1x1x8x256xbf16>
    %42 = vector.shape_cast %41 : vector<1x1x8x256xbf16> to vector<8x256xbf16>
    %43 = vector.shape_cast %40 : vector<8x256xbf16> to vector<1x1x8x256xbf16>
    tpu.vector_store %arg7[%c1_53, %c2_54, %c1_55, %c0_56], %43 {strides = array<i32>} : memref<2x16x10x256xbf16, #tpu.memory_space<vmem>>, vector<1x1x8x256xbf16>,
    %c0_57 = arith.constant 0 : index
    %c6 = arith.constant 6 : index
    %c0_58 = arith.constant 0 : index
    %c0_59 = arith.constant 0 : index
    %44 = vector.load %arg1[%c0_57, %c6, %c0_58, %c0_59] : memref<1x31x8x256xbf16, #tpu.memory_space<vmem>>, vector<1x1x8x256xbf16>
    %45 = vector.shape_cast %44 : vector<1x1x8x256xbf16> to vector<8x256xbf16>
    %c0_60 = arith.constant 0 : index
    %c3_61 = arith.constant 3 : index
    %c1_62 = arith.constant 1 : index
    %c0_63 = arith.constant 0 : index
    %46 = vector.load %arg7[%c0_60, %c3_61, %c1_62, %c0_63] : memref<2x16x10x256xbf16, #tpu.memory_space<vmem>>, vector<1x1x8x256xbf16>
    %47 = vector.shape_cast %46 : vector<1x1x8x256xbf16> to vector<8x256xbf16>
    %48 = vector.shape_cast %45 : vector<8x256xbf16> to vector<1x1x8x256xbf16>
    tpu.vector_store %arg7[%c0_60, %c3_61, %c1_62, %c0_63], %48 {strides = array<i32>} : memref<2x16x10x256xbf16, #tpu.memory_space<vmem>>, vector<1x1x8x256xbf16>,
    %c0_64 = arith.constant 0 : index
    %c7 = arith.constant 7 : index
    %c0_65 = arith.constant 0 : index
    %c0_66 = arith.constant 0 : index
    %49 = vector.load %arg1[%c0_64, %c7, %c0_65, %c0_66] : memref<1x31x8x256xbf16, #tpu.memory_space<vmem>>, vector<1x1x8x256xbf16>
    %50 = vector.shape_cast %49 : vector<1x1x8x256xbf16> to vector<8x256xbf16>
    %c1_67 = arith.constant 1 : index
    %c3_68 = arith.constant 3 : index
    %c1_69 = arith.constant 1 : index
    %c0_70 = arith.constant 0 : index
    %51 = vector.load %arg7[%c1_67, %c3_68, %c1_69, %c0_70] : memref<2x16x10x256xbf16, #tpu.memory_space<vmem>>, vector<1x1x8x256xbf16>
    %52 = vector.shape_cast %51 : vector<1x1x8x256xbf16> to vector<8x256xbf16>
    %53 = vector.shape_cast %50 : vector<8x256xbf16> to vector<1x1x8x256xbf16>
    tpu.vector_store %arg7[%c1_67, %c3_68, %c1_69, %c0_70], %53 {strides = array<i32>} : memref<2x16x10x256xbf16, #tpu.memory_space<vmem>>, vector<1x1x8x256xbf16>,
    %c0_71 = arith.constant 0 : index
    %c8 = arith.constant 8 : index
    %c0_72 = arith.constant 0 : index
    %c0_73 = arith.constant 0 : index
    %54 = vector.load %arg1[%c0_71, %c8, %c0_72, %c0_73] : memref<1x31x8x256xbf16, #tpu.memory_space<vmem>>, vector<1x1x8x256xbf16>
    %55 = vector.shape_cast %54 : vector<1x1x8x256xbf16> to vector<8x256xbf16>
    %c0_74 = arith.constant 0 : index
    %c4_75 = arith.constant 4 : index
    %c1_76 = arith.constant 1 : index
    %c0_77 = arith.constant 0 : index
    %56 = vector.load %arg7[%c0_74, %c4_75, %c1_76, %c0_77] : memref<2x16x10x256xbf16, #tpu.memory_space<vmem>>, vector<1x1x8x256xbf16>
    %57 = vector.shape_cast %56 : vector<1x1x8x256xbf16> to vector<8x256xbf16>
    %58 = vector.shape_cast %55 : vector<8x256xbf16> to vector<1x1x8x256xbf16>
    tpu.vector_store %arg7[%c0_74, %c4_75, %c1_76, %c0_77], %58 {strides = array<i32>} : memref<2x16x10x256xbf16, #tpu.memory_space<vmem>>, vector<1x1x8x256xbf16>,
    %c0_78 = arith.constant 0 : index
    %c9_79 = arith.constant 9 : index
    %c0_80 = arith.constant 0 : index
    %c0_81 = arith.constant 0 : index
    %59 = vector.load %arg1[%c0_78, %c9_79, %c0_80, %c0_81] : memref<1x31x8x256xbf16, #tpu.memory_space<vmem>>, vector<1x1x8x256xbf16>
    %60 = vector.shape_cast %59 : vector<1x1x8x256xbf16> to vector<8x256xbf16>
    %c1_82 = arith.constant 1 : index
    %c4_83 = arith.constant 4 : index
    %c1_84 = arith.constant 1 : index
    %c0_85 = arith.constant 0 : index
    %61 = vector.load %arg7[%c1_82, %c4_83, %c1_84, %c0_85] : memref<2x16x10x256xbf16, #tpu.memory_space<vmem>>, vector<1x1x8x256xbf16>
    %62 = vector.shape_cast %61 : vector<1x1x8x256xbf16> to vector<8x256xbf16>
    %63 = vector.shape_cast %60 : vector<8x256xbf16> to vector<1x1x8x256xbf16>
    tpu.vector_store %arg7[%c1_82, %c4_83, %c1_84, %c0_85], %63 {strides = array<i32>} : memref<2x16x10x256xbf16, #tpu.memory_space<vmem>>, vector<1x1x8x256xbf16>,
    %c0_86 = arith.constant 0 : index
    %c10_87 = arith.constant 10 : index
    %c0_88 = arith.constant 0 : index
    %c0_89 = arith.constant 0 : index
    %64 = vector.load %arg1[%c0_86, %c10_87, %c0_88, %c0_89] : memref<1x31x8x256xbf16, #tpu.memory_space<vmem>>, vector<1x1x8x256xbf16>
    %65 = vector.shape_cast %64 : vector<1x1x8x256xbf16> to vector<8x256xbf16>
    %c0_90 = arith.constant 0 : index
    %c5_91 = arith.constant 5 : index
    %c1_92 = arith.constant 1 : index
    %c0_93 = arith.constant 0 : index
    %66 = vector.load %arg7[%c0_90, %c5_91, %c1_92, %c0_93] : memref<2x16x10x256xbf16, #tpu.memory_space<vmem>>, vector<1x1x8x256xbf16>
    %67 = vector.shape_cast %66 : vector<1x1x8x256xbf16> to vector<8x256xbf16>
    %68 = vector.shape_cast %65 : vector<8x256xbf16> to vector<1x1x8x256xbf16>
    tpu.vector_store %arg7[%c0_90, %c5_91, %c1_92, %c0_93], %68 {strides = array<i32>} : memref<2x16x10x256xbf16, #tpu.memory_space<vmem>>, vector<1x1x8x256xbf16>,
    %c0_94 = arith.constant 0 : index
    %c11 = arith.constant 11 : index
    %c0_95 = arith.constant 0 : index
    %c0_96 = arith.constant 0 : index
    %69 = vector.load %arg1[%c0_94, %c11, %c0_95, %c0_96] : memref<1x31x8x256xbf16, #tpu.memory_space<vmem>>, vector<1x1x8x256xbf16>
    %70 = vector.shape_cast %69 : vector<1x1x8x256xbf16> to vector<8x256xbf16>
    %c1_97 = arith.constant 1 : index
    %c5_98 = arith.constant 5 : index
    %c1_99 = arith.constant 1 : index
    %c0_100 = arith.constant 0 : index
    %71 = vector.load %arg7[%c1_97, %c5_98, %c1_99, %c0_100] : memref<2x16x10x256xbf16, #tpu.memory_space<vmem>>, vector<1x1x8x256xbf16>
    %72 = vector.shape_cast %71 : vector<1x1x8x256xbf16> to vector<8x256xbf16>
    %73 = vector.shape_cast %70 : vector<8x256xbf16> to vector<1x1x8x256xbf16>
    tpu.vector_store %arg7[%c1_97, %c5_98, %c1_99, %c0_100], %73 {strides = array<i32>} : memref<2x16x10x256xbf16, #tpu.memory_space<vmem>>, vector<1x1x8x256xbf16>,
    %c0_101 = arith.constant 0 : index
    %c12 = arith.constant 12 : index
    %c0_102 = arith.constant 0 : index
    %c0_103 = arith.constant 0 : index
    %74 = vector.load %arg1[%c0_101, %c12, %c0_102, %c0_103] : memref<1x31x8x256xbf16, #tpu.memory_space<vmem>>, vector<1x1x8x256xbf16>
    %75 = vector.shape_cast %74 : vector<1x1x8x256xbf16> to vector<8x256xbf16>
    %c0_104 = arith.constant 0 : index
    %c6_105 = arith.constant 6 : index
    %c1_106 = arith.constant 1 : index
    %c0_107 = arith.constant 0 : index
    %76 = vector.load %arg7[%c0_104, %c6_105, %c1_106, %c0_107] : memref<2x16x10x256xbf16, #tpu.memory_space<vmem>>, vector<1x1x8x256xbf16>
    %77 = vector.shape_cast %76 : vector<1x1x8x256xbf16> to vector<8x256xbf16>
    %78 = vector.shape_cast %75 : vector<8x256xbf16> to vector<1x1x8x256xbf16>
    tpu.vector_store %arg7[%c0_104, %c6_105, %c1_106, %c0_107], %78 {strides = array<i32>} : memref<2x16x10x256xbf16, #tpu.memory_space<vmem>>, vector<1x1x8x256xbf16>,
    %c0_108 = arith.constant 0 : index
    %c13 = arith.constant 13 : index
    %c0_109 = arith.constant 0 : index
    %c0_110 = arith.constant 0 : index
    %79 = vector.load %arg1[%c0_108, %c13, %c0_109, %c0_110] : memref<1x31x8x256xbf16, #tpu.memory_space<vmem>>, vector<1x1x8x256xbf16>
    %80 = vector.shape_cast %79 : vector<1x1x8x256xbf16> to vector<8x256xbf16>
    %c1_111 = arith.constant 1 : index
    %c6_112 = arith.constant 6 : index
    %c1_113 = arith.constant 1 : index
    %c0_114 = arith.constant 0 : index
    %81 = vector.load %arg7[%c1_111, %c6_112, %c1_113, %c0_114] : memref<2x16x10x256xbf16, #tpu.memory_space<vmem>>, vector<1x1x8x256xbf16>
    %82 = vector.shape_cast %81 : vector<1x1x8x256xbf16> to vector<8x256xbf16>
    %83 = vector.shape_cast %80 : vector<8x256xbf16> to vector<1x1x8x256xbf16>
    tpu.vector_store %arg7[%c1_111, %c6_112, %c1_113, %c0_114], %83 {strides = array<i32>} : memref<2x16x10x256xbf16, #tpu.memory_space<vmem>>, vector<1x1x8x256xbf16>,
    %c0_115 = arith.constant 0 : index
    %c14 = arith.constant 14 : index
    %c0_116 = arith.constant 0 : index
    %c0_117 = arith.constant 0 : index
    %84 = vector.load %arg1[%c0_115, %c14, %c0_116, %c0_117] : memref<1x31x8x256xbf16, #tpu.memory_space<vmem>>, vector<1x1x8x256xbf16>
    %85 = vector.shape_cast %84 : vector<1x1x8x256xbf16> to vector<8x256xbf16>
    %c0_118 = arith.constant 0 : index
    %c7_119 = arith.constant 7 : index
    %c1_120 = arith.constant 1 : index
    %c0_121 = arith.constant 0 : index
    %86 = vector.load %arg7[%c0_118, %c7_119, %c1_120, %c0_121] : memref<2x16x10x256xbf16, #tpu.memory_space<vmem>>, vector<1x1x8x256xbf16>
    %87 = vector.shape_cast %86 : vector<1x1x8x256xbf16> to vector<8x256xbf16>
    %88 = vector.shape_cast %85 : vector<8x256xbf16> to vector<1x1x8x256xbf16>
    tpu.vector_store %arg7[%c0_118, %c7_119, %c1_120, %c0_121], %88 {strides = array<i32>} : memref<2x16x10x256xbf16, #tpu.memory_space<vmem>>, vector<1x1x8x256xbf16>,
    %c0_122 = arith.constant 0 : index
    %c15 = arith.constant 15 : index
    %c0_123 = arith.constant 0 : index
    %c0_124 = arith.constant 0 : index
    %89 = vector.load %arg1[%c0_122, %c15, %c0_123, %c0_124] : memref<1x31x8x256xbf16, #tpu.memory_space<vmem>>, vector<1x1x8x256xbf16>
    %90 = vector.shape_cast %89 : vector<1x1x8x256xbf16> to vector<8x256xbf16>
    %c1_125 = arith.constant 1 : index
    %c7_126 = arith.constant 7 : index
    %c1_127 = arith.constant 1 : index
    %c0_128 = arith.constant 0 : index
    %91 = vector.load %arg7[%c1_125, %c7_126, %c1_127, %c0_128] : memref<2x16x10x256xbf16, #tpu.memory_space<vmem>>, vector<1x1x8x256xbf16>
    %92 = vector.shape_cast %91 : vector<1x1x8x256xbf16> to vector<8x256xbf16>
    %93 = vector.shape_cast %90 : vector<8x256xbf16> to vector<1x1x8x256xbf16>
    tpu.vector_store %arg7[%c1_125, %c7_126, %c1_127, %c0_128], %93 {strides = array<i32>} : memref<2x16x10x256xbf16, #tpu.memory_space<vmem>>, vector<1x1x8x256xbf16>,
    %c0_129 = arith.constant 0 : index
    %c16 = arith.constant 16 : index
    %c0_130 = arith.constant 0 : index
    %c0_131 = arith.constant 0 : index
    %94 = vector.load %arg1[%c0_129, %c16, %c0_130, %c0_131] : memref<1x31x8x256xbf16, #tpu.memory_space<vmem>>, vector<1x1x8x256xbf16>
    %95 = vector.shape_cast %94 : vector<1x1x8x256xbf16> to vector<8x256xbf16>
    %c0_132 = arith.constant 0 : index
    %c8_133 = arith.constant 8 : index
    %c1_134 = arith.constant 1 : index
    %c0_135 = arith.constant 0 : index
    %96 = vector.load %arg7[%c0_132, %c8_133, %c1_134, %c0_135] : memref<2x16x10x256xbf16, #tpu.memory_space<vmem>>, vector<1x1x8x256xbf16>
    %97 = vector.shape_cast %96 : vector<1x1x8x256xbf16> to vector<8x256xbf16>
    %98 = vector.shape_cast %95 : vector<8x256xbf16> to vector<1x1x8x256xbf16>
    tpu.vector_store %arg7[%c0_132, %c8_133, %c1_134, %c0_135], %98 {strides = array<i32>} : memref<2x16x10x256xbf16, #tpu.memory_space<vmem>>, vector<1x1x8x256xbf16>,
    %c0_136 = arith.constant 0 : index
    %c17 = arith.constant 17 : index
    %c0_137 = arith.constant 0 : index
    %c0_138 = arith.constant 0 : index
    %99 = vector.load %arg1[%c0_136, %c17, %c0_137, %c0_138] : memref<1x31x8x256xbf16, #tpu.memory_space<vmem>>, vector<1x1x8x256xbf16>
    %100 = vector.shape_cast %99 : vector<1x1x8x256xbf16> to vector<8x256xbf16>
    %c1_139 = arith.constant 1 : index
    %c8_140 = arith.constant 8 : index
    %c1_141 = arith.constant 1 : index
    %c0_142 = arith.constant 0 : index
    %101 = vector.load %arg7[%c1_139, %c8_140, %c1_141, %c0_142] : memref<2x16x10x256xbf16, #tpu.memory_space<vmem>>, vector<1x1x8x256xbf16>
    %102 = vector.shape_cast %101 : vector<1x1x8x256xbf16> to vector<8x256xbf16>
    %103 = vector.shape_cast %100 : vector<8x256xbf16> to vector<1x1x8x256xbf16>
    tpu.vector_store %arg7[%c1_139, %c8_140, %c1_141, %c0_142], %103 {strides = array<i32>} : memref<2x16x10x256xbf16, #tpu.memory_space<vmem>>, vector<1x1x8x256xbf16>,
    %c0_143 = arith.constant 0 : index
    %c18 = arith.constant 18 : index
    %c0_144 = arith.constant 0 : index
    %c0_145 = arith.constant 0 : index
    %104 = vector.load %arg1[%c0_143, %c18, %c0_144, %c0_145] : memref<1x31x8x256xbf16, #tpu.memory_space<vmem>>, vector<1x1x8x256xbf16>
    %105 = vector.shape_cast %104 : vector<1x1x8x256xbf16> to vector<8x256xbf16>
    %c0_146 = arith.constant 0 : index
    %c9_147 = arith.constant 9 : index
    %c1_148 = arith.constant 1 : index
    %c0_149 = arith.constant 0 : index
    %106 = vector.load %arg7[%c0_146, %c9_147, %c1_148, %c0_149] : memref<2x16x10x256xbf16, #tpu.memory_space<vmem>>, vector<1x1x8x256xbf16>
    %107 = vector.shape_cast %106 : vector<1x1x8x256xbf16> to vector<8x256xbf16>
    %108 = vector.shape_cast %105 : vector<8x256xbf16> to vector<1x1x8x256xbf16>
    tpu.vector_store %arg7[%c0_146, %c9_147, %c1_148, %c0_149], %108 {strides = array<i32>} : memref<2x16x10x256xbf16, #tpu.memory_space<vmem>>, vector<1x1x8x256xbf16>,
    %c0_150 = arith.constant 0 : index
    %c19 = arith.constant 19 : index
    %c0_151 = arith.constant 0 : index
    %c0_152 = arith.constant 0 : index
    %109 = vector.load %arg1[%c0_150, %c19, %c0_151, %c0_152] : memref<1x31x8x256xbf16, #tpu.memory_space<vmem>>, vector<1x1x8x256xbf16>
    %110 = vector.shape_cast %109 : vector<1x1x8x256xbf16> to vector<8x256xbf16>
    %c1_153 = arith.constant 1 : index
    %c9_154 = arith.constant 9 : index
    %c1_155 = arith.constant 1 : index
    %c0_156 = arith.constant 0 : index
    %111 = vector.load %arg7[%c1_153, %c9_154, %c1_155, %c0_156] : memref<2x16x10x256xbf16, #tpu.memory_space<vmem>>, vector<1x1x8x256xbf16>
    %112 = vector.shape_cast %111 : vector<1x1x8x256xbf16> to vector<8x256xbf16>
    %113 = vector.shape_cast %110 : vector<8x256xbf16> to vector<1x1x8x256xbf16>
    tpu.vector_store %arg7[%c1_153, %c9_154, %c1_155, %c0_156], %113 {strides = array<i32>} : memref<2x16x10x256xbf16, #tpu.memory_space<vmem>>, vector<1x1x8x256xbf16>,
    %c0_157 = arith.constant 0 : index
    %c20 = arith.constant 20 : index
    %c0_158 = arith.constant 0 : index
    %c0_159 = arith.constant 0 : index
    %114 = vector.load %arg1[%c0_157, %c20, %c0_158, %c0_159] : memref<1x31x8x256xbf16, #tpu.memory_space<vmem>>, vector<1x1x8x256xbf16>
    %115 = vector.shape_cast %114 : vector<1x1x8x256xbf16> to vector<8x256xbf16>
    %c0_160 = arith.constant 0 : index
    %c10_161 = arith.constant 10 : index
    %c1_162 = arith.constant 1 : index
    %c0_163 = arith.constant 0 : index
    %116 = vector.load %arg7[%c0_160, %c10_161, %c1_162, %c0_163] : memref<2x16x10x256xbf16, #tpu.memory_space<vmem>>, vector<1x1x8x256xbf16>
    %117 = vector.shape_cast %116 : vector<1x1x8x256xbf16> to vector<8x256xbf16>
    %118 = vector.shape_cast %115 : vector<8x256xbf16> to vector<1x1x8x256xbf16>
    tpu.vector_store %arg7[%c0_160, %c10_161, %c1_162, %c0_163], %118 {strides = array<i32>} : memref<2x16x10x256xbf16, #tpu.memory_space<vmem>>, vector<1x1x8x256xbf16>,
    %c0_164 = arith.constant 0 : index
    %c21 = arith.constant 21 : index
    %c0_165 = arith.constant 0 : index
    %c0_166 = arith.constant 0 : index
    %119 = vector.load %arg1[%c0_164, %c21, %c0_165, %c0_166] : memref<1x31x8x256xbf16, #tpu.memory_space<vmem>>, vector<1x1x8x256xbf16>
    %120 = vector.shape_cast %119 : vector<1x1x8x256xbf16> to vector<8x256xbf16>
    %c1_167 = arith.constant 1 : index
    %c10_168 = arith.constant 10 : index
    %c1_169 = arith.constant 1 : index
    %c0_170 = arith.constant 0 : index
    %121 = vector.load %arg7[%c1_167, %c10_168, %c1_169, %c0_170] : memref<2x16x10x256xbf16, #tpu.memory_space<vmem>>, vector<1x1x8x256xbf16>
    %122 = vector.shape_cast %121 : vector<1x1x8x256xbf16> to vector<8x256xbf16>
    %123 = vector.shape_cast %120 : vector<8x256xbf16> to vector<1x1x8x256xbf16>
    tpu.vector_store %arg7[%c1_167, %c10_168, %c1_169, %c0_170], %123 {strides = array<i32>} : memref<2x16x10x256xbf16, #tpu.memory_space<vmem>>, vector<1x1x8x256xbf16>,
    %c0_171 = arith.constant 0 : index
    %c22 = arith.constant 22 : index
    %c0_172 = arith.constant 0 : index
    %c0_173 = arith.constant 0 : index
    %124 = vector.load %arg1[%c0_171, %c22, %c0_172, %c0_173] : memref<1x31x8x256xbf16, #tpu.memory_space<vmem>>, vector<1x1x8x256xbf16>
    %125 = vector.shape_cast %124 : vector<1x1x8x256xbf16> to vector<8x256xbf16>
    %c0_174 = arith.constant 0 : index
    %c11_175 = arith.constant 11 : index
    %c1_176 = arith.constant 1 : index
    %c0_177 = arith.constant 0 : index
    %126 = vector.load %arg7[%c0_174, %c11_175, %c1_176, %c0_177] : memref<2x16x10x256xbf16, #tpu.memory_space<vmem>>, vector<1x1x8x256xbf16>
    %127 = vector.shape_cast %126 : vector<1x1x8x256xbf16> to vector<8x256xbf16>
    %128 = vector.shape_cast %125 : vector<8x256xbf16> to vector<1x1x8x256xbf16>
    tpu.vector_store %arg7[%c0_174, %c11_175, %c1_176, %c0_177], %128 {strides = array<i32>} : memref<2x16x10x256xbf16, #tpu.memory_space<vmem>>, vector<1x1x8x256xbf16>,
    %c0_178 = arith.constant 0 : index
    %c23 = arith.constant 23 : index
    %c0_179 = arith.constant 0 : index
    %c0_180 = arith.constant 0 : index
    %129 = vector.load %arg1[%c0_178, %c23, %c0_179, %c0_180] : memref<1x31x8x256xbf16, #tpu.memory_space<vmem>>, vector<1x1x8x256xbf16>
    %130 = vector.shape_cast %129 : vector<1x1x8x256xbf16> to vector<8x256xbf16>
    %c1_181 = arith.constant 1 : index
    %c11_182 = arith.constant 11 : index
    %c1_183 = arith.constant 1 : index
    %c0_184 = arith.constant 0 : index
    %131 = vector.load %arg7[%c1_181, %c11_182, %c1_183, %c0_184] : memref<2x16x10x256xbf16, #tpu.memory_space<vmem>>, vector<1x1x8x256xbf16>
    %132 = vector.shape_cast %131 : vector<1x1x8x256xbf16> to vector<8x256xbf16>
    %133 = vector.shape_cast %130 : vector<8x256xbf16> to vector<1x1x8x256xbf16>
    tpu.vector_store %arg7[%c1_181, %c11_182, %c1_183, %c0_184], %133 {strides = array<i32>} : memref<2x16x10x256xbf16, #tpu.memory_space<vmem>>, vector<1x1x8x256xbf16>,
    %c0_185 = arith.constant 0 : index
    %c24 = arith.constant 24 : index
    %c0_186 = arith.constant 0 : index
    %c0_187 = arith.constant 0 : index
    %134 = vector.load %arg1[%c0_185, %c24, %c0_186, %c0_187] : memref<1x31x8x256xbf16, #tpu.memory_space<vmem>>, vector<1x1x8x256xbf16>
    %135 = vector.shape_cast %134 : vector<1x1x8x256xbf16> to vector<8x256xbf16>
    %c0_188 = arith.constant 0 : index
    %c12_189 = arith.constant 12 : index
    %c1_190 = arith.constant 1 : index
    %c0_191 = arith.constant 0 : index
    %136 = vector.load %arg7[%c0_188, %c12_189, %c1_190, %c0_191] : memref<2x16x10x256xbf16, #tpu.memory_space<vmem>>, vector<1x1x8x256xbf16>
    %137 = vector.shape_cast %136 : vector<1x1x8x256xbf16> to vector<8x256xbf16>
    %138 = vector.shape_cast %135 : vector<8x256xbf16> to vector<1x1x8x256xbf16>
    tpu.vector_store %arg7[%c0_188, %c12_189, %c1_190, %c0_191], %138 {strides = array<i32>} : memref<2x16x10x256xbf16, #tpu.memory_space<vmem>>, vector<1x1x8x256xbf16>,
    %c0_192 = arith.constant 0 : index
    %c25 = arith.constant 25 : index
    %c0_193 = arith.constant 0 : index
    %c0_194 = arith.constant 0 : index
    %139 = vector.load %arg1[%c0_192, %c25, %c0_193, %c0_194] : memref<1x31x8x256xbf16, #tpu.memory_space<vmem>>, vector<1x1x8x256xbf16>
    %140 = vector.shape_cast %139 : vector<1x1x8x256xbf16> to vector<8x256xbf16>
    %c1_195 = arith.constant 1 : index
    %c12_196 = arith.constant 12 : index
    %c1_197 = arith.constant 1 : index
    %c0_198 = arith.constant 0 : index
    %141 = vector.load %arg7[%c1_195, %c12_196, %c1_197, %c0_198] : memref<2x16x10x256xbf16, #tpu.memory_space<vmem>>, vector<1x1x8x256xbf16>
    %142 = vector.shape_cast %141 : vector<1x1x8x256xbf16> to vector<8x256xbf16>
    %143 = vector.shape_cast %140 : vector<8x256xbf16> to vector<1x1x8x256xbf16>
    tpu.vector_store %arg7[%c1_195, %c12_196, %c1_197, %c0_198], %143 {strides = array<i32>} : memref<2x16x10x256xbf16, #tpu.memory_space<vmem>>, vector<1x1x8x256xbf16>,
    %c0_199 = arith.constant 0 : index
    %c26 = arith.constant 26 : index
    %c0_200 = arith.constant 0 : index
    %c0_201 = arith.constant 0 : index
    %144 = vector.load %arg1[%c0_199, %c26, %c0_200, %c0_201] : memref<1x31x8x256xbf16, #tpu.memory_space<vmem>>, vector<1x1x8x256xbf16>
    %145 = vector.shape_cast %144 : vector<1x1x8x256xbf16> to vector<8x256xbf16>
    %c0_202 = arith.constant 0 : index
    %c13_203 = arith.constant 13 : index
    %c1_204 = arith.constant 1 : index
    %c0_205 = arith.constant 0 : index
    %146 = vector.load %arg7[%c0_202, %c13_203, %c1_204, %c0_205] : memref<2x16x10x256xbf16, #tpu.memory_space<vmem>>, vector<1x1x8x256xbf16>
    %147 = vector.shape_cast %146 : vector<1x1x8x256xbf16> to vector<8x256xbf16>
    %148 = vector.shape_cast %145 : vector<8x256xbf16> to vector<1x1x8x256xbf16>
    tpu.vector_store %arg7[%c0_202, %c13_203, %c1_204, %c0_205], %148 {strides = array<i32>} : memref<2x16x10x256xbf16, #tpu.memory_space<vmem>>, vector<1x1x8x256xbf16>,
    %c0_206 = arith.constant 0 : index
    %c27 = arith.constant 27 : index
    %c0_207 = arith.constant 0 : index
    %c0_208 = arith.constant 0 : index
    %149 = vector.load %arg1[%c0_206, %c27, %c0_207, %c0_208] : memref<1x31x8x256xbf16, #tpu.memory_space<vmem>>, vector<1x1x8x256xbf16>
    %150 = vector.shape_cast %149 : vector<1x1x8x256xbf16> to vector<8x256xbf16>
    %c1_209 = arith.constant 1 : index
    %c13_210 = arith.constant 13 : index
    %c1_211 = arith.constant 1 : index
    %c0_212 = arith.constant 0 : index
    %151 = vector.load %arg7[%c1_209, %c13_210, %c1_211, %c0_212] : memref<2x16x10x256xbf16, #tpu.memory_space<vmem>>, vector<1x1x8x256xbf16>
    %152 = vector.shape_cast %151 : vector<1x1x8x256xbf16> to vector<8x256xbf16>
    %153 = vector.shape_cast %150 : vector<8x256xbf16> to vector<1x1x8x256xbf16>
    tpu.vector_store %arg7[%c1_209, %c13_210, %c1_211, %c0_212], %153 {strides = array<i32>} : memref<2x16x10x256xbf16, #tpu.memory_space<vmem>>, vector<1x1x8x256xbf16>,
    %c0_213 = arith.constant 0 : index
    %c28 = arith.constant 28 : index
    %c0_214 = arith.constant 0 : index
    %c0_215 = arith.constant 0 : index
    %154 = vector.load %arg1[%c0_213, %c28, %c0_214, %c0_215] : memref<1x31x8x256xbf16, #tpu.memory_space<vmem>>, vector<1x1x8x256xbf16>
    %155 = vector.shape_cast %154 : vector<1x1x8x256xbf16> to vector<8x256xbf16>
    %c0_216 = arith.constant 0 : index
    %c14_217 = arith.constant 14 : index
    %c1_218 = arith.constant 1 : index
    %c0_219 = arith.constant 0 : index
    %156 = vector.load %arg7[%c0_216, %c14_217, %c1_218, %c0_219] : memref<2x16x10x256xbf16, #tpu.memory_space<vmem>>, vector<1x1x8x256xbf16>
    %157 = vector.shape_cast %156 : vector<1x1x8x256xbf16> to vector<8x256xbf16>
    %158 = vector.shape_cast %155 : vector<8x256xbf16> to vector<1x1x8x256xbf16>
    tpu.vector_store %arg7[%c0_216, %c14_217, %c1_218, %c0_219], %158 {strides = array<i32>} : memref<2x16x10x256xbf16, #tpu.memory_space<vmem>>, vector<1x1x8x256xbf16>,
    %c0_220 = arith.constant 0 : index
    %c29 = arith.constant 29 : index
    %c0_221 = arith.constant 0 : index
    %c0_222 = arith.constant 0 : index
    %159 = vector.load %arg1[%c0_220, %c29, %c0_221, %c0_222] : memref<1x31x8x256xbf16, #tpu.memory_space<vmem>>, vector<1x1x8x256xbf16>
    %160 = vector.shape_cast %159 : vector<1x1x8x256xbf16> to vector<8x256xbf16>
    %c1_223 = arith.constant 1 : index
    %c14_224 = arith.constant 14 : index
    %c1_225 = arith.constant 1 : index
    %c0_226 = arith.constant 0 : index
    %161 = vector.load %arg7[%c1_223, %c14_224, %c1_225, %c0_226] : memref<2x16x10x256xbf16, #tpu.memory_space<vmem>>, vector<1x1x8x256xbf16>
    %162 = vector.shape_cast %161 : vector<1x1x8x256xbf16> to vector<8x256xbf16>
    %163 = vector.shape_cast %160 : vector<8x256xbf16> to vector<1x1x8x256xbf16>
    tpu.vector_store %arg7[%c1_223, %c14_224, %c1_225, %c0_226], %163 {strides = array<i32>} : memref<2x16x10x256xbf16, #tpu.memory_space<vmem>>, vector<1x1x8x256xbf16>,
    %c0_227 = arith.constant 0 : index
    %c30 = arith.constant 30 : index
    %c0_228 = arith.constant 0 : index
    %c0_229 = arith.constant 0 : index
    %164 = vector.load %arg1[%c0_227, %c30, %c0_228, %c0_229] : memref<1x31x8x256xbf16, #tpu.memory_space<vmem>>, vector<1x1x8x256xbf16>
    %165 = vector.shape_cast %164 : vector<1x1x8x256xbf16> to vector<8x256xbf16>
    %c0_230 = arith.constant 0 : index
    %c15_231 = arith.constant 15 : index
    %c1_232 = arith.constant 1 : index
    %c0_233 = arith.constant 0 : index
    %166 = vector.load %arg7[%c0_230, %c15_231, %c1_232, %c0_233] : memref<2x16x10x256xbf16, #tpu.memory_space<vmem>>, vector<1x1x8x256xbf16>
    %167 = vector.shape_cast %166 : vector<1x1x8x256xbf16> to vector<8x256xbf16>
    %168 = vector.shape_cast %165 : vector<8x256xbf16> to vector<1x1x8x256xbf16>
    tpu.vector_store %arg7[%c0_230, %c15_231, %c1_232, %c0_233], %168 {strides = array<i32>} : memref<2x16x10x256xbf16, #tpu.memory_space<vmem>>, vector<1x1x8x256xbf16>,
    %c0_234 = arith.constant 0 : index
    %c0_235 = arith.constant 0 : index
    %c0_236 = arith.constant 0 : index
    %c0_237 = arith.constant 0 : index
    %169 = vector.load %arg7[%c0_234, %c0_235, %c0_236, %c0_237] : memref<2x16x10x256xbf16, #tpu.memory_space<vmem>>, vector<1x14x9x256xbf16>
    %170 = vector.shape_cast %169 : vector<1x14x9x256xbf16> to vector<14x9x256xbf16>
    %171 = vector.shape_cast %170 : vector<14x9x256xbf16> to vector<126x256xbf16>
    %c0_238 = arith.constant 0 : index
    %c0_239 = arith.constant 0 : index
    %c0_240 = arith.constant 0 : index
    %172 = vector.load %arg2[%c0_238, %c0_239, %c0_240] : memref<10x256x27xbf16, #tpu.memory_space<vmem>>, vector<1x256x27xbf16>
    %173 = vector.shape_cast %172 : vector<1x256x27xbf16> to vector<256x27xbf16>
    %cst_241 = arith.constant dense<0.000000e+00> : vector<126x27xf32>
    %174 = tpu.matmul %171, %173, %cst_241 {dimension_numbers = #tpu.dot_dimension_numbers<[1], [0], [0], [1], [0, 0, 1, 1], [], []>} : vector<126x256xbf16>, vector<256x27xbf16>, vector<126x27xf32> -> vector<126x27xf32>
    %c0_242 = arith.constant 0 : index
    %c0_243 = arith.constant 0 : index
    %c1_244 = arith.constant 1 : index
    %c0_245 = arith.constant 0 : index
    %175 = vector.load %arg7[%c0_242, %c0_243, %c1_244, %c0_245] : memref<2x16x10x256xbf16, #tpu.memory_space<vmem>>, vector<1x14x9x256xbf16>
    %176 = vector.shape_cast %175 : vector<1x14x9x256xbf16> to vector<14x9x256xbf16>
    %177 = vector.shape_cast %176 : vector<14x9x256xbf16> to vector<126x256xbf16>
    %c1_246 = arith.constant 1 : index
    %c0_247 = arith.constant 0 : index
    %c0_248 = arith.constant 0 : index
    %178 = vector.load %arg2[%c1_246, %c0_247, %c0_248] : memref<10x256x27xbf16, #tpu.memory_space<vmem>>, vector<1x256x27xbf16>
    %179 = vector.shape_cast %178 : vector<1x256x27xbf16> to vector<256x27xbf16>
    %cst_249 = arith.constant dense<0.000000e+00> : vector<126x27xf32>
    %180 = tpu.matmul %177, %179, %cst_249 {dimension_numbers = #tpu.dot_dimension_numbers<[1], [0], [0], [1], [0, 0, 1, 1], [], []>} : vector<126x256xbf16>, vector<256x27xbf16>, vector<126x27xf32> -> vector<126x27xf32>
    %181 = arith.addf %174, %180 : vector<126x27xf32>
    %c1_250 = arith.constant 1 : index
    %c0_251 = arith.constant 0 : index
    %c0_252 = arith.constant 0 : index
    %c0_253 = arith.constant 0 : index
    %182 = vector.load %arg7[%c1_250, %c0_251, %c0_252, %c0_253] : memref<2x16x10x256xbf16, #tpu.memory_space<vmem>>, vector<1x14x9x256xbf16>
    %183 = vector.shape_cast %182 : vector<1x14x9x256xbf16> to vector<14x9x256xbf16>
    %184 = vector.shape_cast %183 : vector<14x9x256xbf16> to vector<126x256xbf16>
    %c2_254 = arith.constant 2 : index
    %c0_255 = arith.constant 0 : index
    %c0_256 = arith.constant 0 : index
    %185 = vector.load %arg2[%c2_254, %c0_255, %c0_256] : memref<10x256x27xbf16, #tpu.memory_space<vmem>>, vector<1x256x27xbf16>
    %186 = vector.shape_cast %185 : vector<1x256x27xbf16> to vector<256x27xbf16>
    %cst_257 = arith.constant dense<0.000000e+00> : vector<126x27xf32>
    %187 = tpu.matmul %184, %186, %cst_257 {dimension_numbers = #tpu.dot_dimension_numbers<[1], [0], [0], [1], [0, 0, 1, 1], [], []>} : vector<126x256xbf16>, vector<256x27xbf16>, vector<126x27xf32> -> vector<126x27xf32>
    %188 = arith.addf %181, %187 : vector<126x27xf32>
    %c1_258 = arith.constant 1 : index
    %c0_259 = arith.constant 0 : index
    %c1_260 = arith.constant 1 : index
    %c0_261 = arith.constant 0 : index
    %189 = vector.load %arg7[%c1_258, %c0_259, %c1_260, %c0_261] : memref<2x16x10x256xbf16, #tpu.memory_space<vmem>>, vector<1x14x9x256xbf16>
    %190 = vector.shape_cast %189 : vector<1x14x9x256xbf16> to vector<14x9x256xbf16>
    %191 = vector.shape_cast %190 : vector<14x9x256xbf16> to vector<126x256xbf16>
    %c3_262 = arith.constant 3 : index
    %c0_263 = arith.constant 0 : index
    %c0_264 = arith.constant 0 : index
    %192 = vector.load %arg2[%c3_262, %c0_263, %c0_264] : memref<10x256x27xbf16, #tpu.memory_space<vmem>>, vector<1x256x27xbf16>
    %193 = vector.shape_cast %192 : vector<1x256x27xbf16> to vector<256x27xbf16>
    %cst_265 = arith.constant dense<0.000000e+00> : vector<126x27xf32>
    %194 = tpu.matmul %191, %193, %cst_265 {dimension_numbers = #tpu.dot_dimension_numbers<[1], [0], [0], [1], [0, 0, 1, 1], [], []>} : vector<126x256xbf16>, vector<256x27xbf16>, vector<126x27xf32> -> vector<126x27xf32>
    %195 = arith.addf %188, %194 : vector<126x27xf32>
    %c0_266 = arith.constant 0 : index
    %c1_267 = arith.constant 1 : index
    %c0_268 = arith.constant 0 : index
    %c0_269 = arith.constant 0 : index
    %196 = vector.load %arg7[%c0_266, %c1_267, %c0_268, %c0_269] : memref<2x16x10x256xbf16, #tpu.memory_space<vmem>>, vector<1x14x9x256xbf16>
    %197 = vector.shape_cast %196 : vector<1x14x9x256xbf16> to vector<14x9x256xbf16>
    %198 = vector.shape_cast %197 : vector<14x9x256xbf16> to vector<126x256xbf16>
    %c4_270 = arith.constant 4 : index
    %c0_271 = arith.constant 0 : index
    %c0_272 = arith.constant 0 : index
    %199 = vector.load %arg2[%c4_270, %c0_271, %c0_272] : memref<10x256x27xbf16, #tpu.memory_space<vmem>>, vector<1x256x27xbf16>
    %200 = vector.shape_cast %199 : vector<1x256x27xbf16> to vector<256x27xbf16>
    %cst_273 = arith.constant dense<0.000000e+00> : vector<126x27xf32>
    %201 = tpu.matmul %198, %200, %cst_273 {dimension_numbers = #tpu.dot_dimension_numbers<[1], [0], [0], [1], [0, 0, 1, 1], [], []>} : vector<126x256xbf16>, vector<256x27xbf16>, vector<126x27xf32> -> vector<126x27xf32>
    %202 = arith.addf %195, %201 : vector<126x27xf32>
    %c0_274 = arith.constant 0 : index
    %c1_275 = arith.constant 1 : index
    %c1_276 = arith.constant 1 : index
    %c0_277 = arith.constant 0 : index
    %203 = vector.load %arg7[%c0_274, %c1_275, %c1_276, %c0_277] : memref<2x16x10x256xbf16, #tpu.memory_space<vmem>>, vector<1x14x9x256xbf16>
    %204 = vector.shape_cast %203 : vector<1x14x9x256xbf16> to vector<14x9x256xbf16>
    %205 = vector.shape_cast %204 : vector<14x9x256xbf16> to vector<126x256xbf16>
    %c5_278 = arith.constant 5 : index
    %c0_279 = arith.constant 0 : index
    %c0_280 = arith.constant 0 : index
    %206 = vector.load %arg2[%c5_278, %c0_279, %c0_280] : memref<10x256x27xbf16, #tpu.memory_space<vmem>>, vector<1x256x27xbf16>
    %207 = vector.shape_cast %206 : vector<1x256x27xbf16> to vector<256x27xbf16>
    %cst_281 = arith.constant dense<0.000000e+00> : vector<126x27xf32>
    %208 = tpu.matmul %205, %207, %cst_281 {dimension_numbers = #tpu.dot_dimension_numbers<[1], [0], [0], [1], [0, 0, 1, 1], [], []>} : vector<126x256xbf16>, vector<256x27xbf16>, vector<126x27xf32> -> vector<126x27xf32>
    %209 = arith.addf %202, %208 : vector<126x27xf32>
    %c1_282 = arith.constant 1 : index
    %c1_283 = arith.constant 1 : index
    %c0_284 = arith.constant 0 : index
    %c0_285 = arith.constant 0 : index
    %210 = vector.load %arg7[%c1_282, %c1_283, %c0_284, %c0_285] : memref<2x16x10x256xbf16, #tpu.memory_space<vmem>>, vector<1x14x9x256xbf16>
    %211 = vector.shape_cast %210 : vector<1x14x9x256xbf16> to vector<14x9x256xbf16>
    %212 = vector.shape_cast %211 : vector<14x9x256xbf16> to vector<126x256xbf16>
    %c6_286 = arith.constant 6 : index
    %c0_287 = arith.constant 0 : index
    %c0_288 = arith.constant 0 : index
    %213 = vector.load %arg2[%c6_286, %c0_287, %c0_288] : memref<10x256x27xbf16, #tpu.memory_space<vmem>>, vector<1x256x27xbf16>
    %214 = vector.shape_cast %213 : vector<1x256x27xbf16> to vector<256x27xbf16>
    %cst_289 = arith.constant dense<0.000000e+00> : vector<126x27xf32>
    %215 = tpu.matmul %212, %214, %cst_289 {dimension_numbers = #tpu.dot_dimension_numbers<[1], [0], [0], [1], [0, 0, 1, 1], [], []>} : vector<126x256xbf16>, vector<256x27xbf16>, vector<126x27xf32> -> vector<126x27xf32>
    %216 = arith.addf %209, %215 : vector<126x27xf32>
    %c1_290 = arith.constant 1 : index
    %c1_291 = arith.constant 1 : index
    %c1_292 = arith.constant 1 : index
    %c0_293 = arith.constant 0 : index
    %217 = vector.load %arg7[%c1_290, %c1_291, %c1_292, %c0_293] : memref<2x16x10x256xbf16, #tpu.memory_space<vmem>>, vector<1x14x9x256xbf16>
    %218 = vector.shape_cast %217 : vector<1x14x9x256xbf16> to vector<14x9x256xbf16>
    %219 = vector.shape_cast %218 : vector<14x9x256xbf16> to vector<126x256xbf16>
    %c7_294 = arith.constant 7 : index
    %c0_295 = arith.constant 0 : index
    %c0_296 = arith.constant 0 : index
    %220 = vector.load %arg2[%c7_294, %c0_295, %c0_296] : memref<10x256x27xbf16, #tpu.memory_space<vmem>>, vector<1x256x27xbf16>
    %221 = vector.shape_cast %220 : vector<1x256x27xbf16> to vector<256x27xbf16>
    %cst_297 = arith.constant dense<0.000000e+00> : vector<126x27xf32>
    %222 = tpu.matmul %219, %221, %cst_297 {dimension_numbers = #tpu.dot_dimension_numbers<[1], [0], [0], [1], [0, 0, 1, 1], [], []>} : vector<126x256xbf16>, vector<256x27xbf16>, vector<126x27xf32> -> vector<126x27xf32>
    %223 = arith.addf %216, %222 : vector<126x27xf32>
    %c0_298 = arith.constant 0 : index
    %c2_299 = arith.constant 2 : index
    %c0_300 = arith.constant 0 : index
    %c0_301 = arith.constant 0 : index
    %224 = vector.load %arg7[%c0_298, %c2_299, %c0_300, %c0_301] : memref<2x16x10x256xbf16, #tpu.memory_space<vmem>>, vector<1x14x9x256xbf16>
    %225 = vector.shape_cast %224 : vector<1x14x9x256xbf16> to vector<14x9x256xbf16>
    %226 = vector.shape_cast %225 : vector<14x9x256xbf16> to vector<126x256xbf16>
    %c8_302 = arith.constant 8 : index
    %c0_303 = arith.constant 0 : index
    %c0_304 = arith.constant 0 : index
    %227 = vector.load %arg2[%c8_302, %c0_303, %c0_304] : memref<10x256x27xbf16, #tpu.memory_space<vmem>>, vector<1x256x27xbf16>
    %228 = vector.shape_cast %227 : vector<1x256x27xbf16> to vector<256x27xbf16>
    %cst_305 = arith.constant dense<0.000000e+00> : vector<126x27xf32>
    %229 = tpu.matmul %226, %228, %cst_305 {dimension_numbers = #tpu.dot_dimension_numbers<[1], [0], [0], [1], [0, 0, 1, 1], [], []>} : vector<126x256xbf16>, vector<256x27xbf16>, vector<126x27xf32> -> vector<126x27xf32>
    %230 = arith.addf %223, %229 : vector<126x27xf32>
    %c0_306 = arith.constant 0 : index
    %c2_307 = arith.constant 2 : index
    %c1_308 = arith.constant 1 : index
    %c0_309 = arith.constant 0 : index
    %231 = vector.load %arg7[%c0_306, %c2_307, %c1_308, %c0_309] : memref<2x16x10x256xbf16, #tpu.memory_space<vmem>>, vector<1x14x9x256xbf16>
    %232 = vector.shape_cast %231 : vector<1x14x9x256xbf16> to vector<14x9x256xbf16>
    %233 = vector.shape_cast %232 : vector<14x9x256xbf16> to vector<126x256xbf16>
    %c9_310 = arith.constant 9 : index
    %c0_311 = arith.constant 0 : index
    %c0_312 = arith.constant 0 : index
    %234 = vector.load %arg2[%c9_310, %c0_311, %c0_312] : memref<10x256x27xbf16, #tpu.memory_space<vmem>>, vector<1x256x27xbf16>
    %235 = vector.shape_cast %234 : vector<1x256x27xbf16> to vector<256x27xbf16>
    %cst_313 = arith.constant dense<0.000000e+00> : vector<126x27xf32>
    %236 = tpu.matmul %233, %235, %cst_313 {dimension_numbers = #tpu.dot_dimension_numbers<[1], [0], [0], [1], [0, 0, 1, 1], [], []>} : vector<126x256xbf16>, vector<256x27xbf16>, vector<126x27xf32> -> vector<126x27xf32>
    %237 = arith.addf %230, %236 : vector<126x27xf32>
    %c0_314 = arith.constant 0 : index
    %c0_315 = arith.constant 0 : index
    %238 = vector.load %arg5[%c0_314, %c0_315] : memref<3x30xf32, #tpu.memory_space<vmem>>, vector<1x27xf32>
    %239 = vector.broadcast %238 : vector<1x27xf32> to vector<126x27xf32>
    %240 = arith.addf %237, %239 : vector<126x27xf32>
    %cst_316 = arith.constant 0.000000e+00 : f32
    %241 = vector.broadcast %cst_316 : f32 to vector<126x27xf32>
    %242 = arith.maximumf %240, %241 : vector<126x27xf32>
    %243 = arith.truncf %242 : vector<126x27xf32> to vector<126x27xbf16>
    %244 = vector.extract_strided_slice %243 {offsets = [0, 0], sizes = [9, 27], strides = [1, 1]} : vector<126x27xbf16> to vector<9x27xbf16>
    %c0_317 = arith.constant 0 : index
    %c0_318 = arith.constant 0 : index
    %c1_319 = arith.constant 1 : index
    %c0_320 = arith.constant 0 : index
    %245 = vector.load %arg8[%c0_317, %c0_318, %c1_319, %c0_320] : memref<2x7x11x27xbf16, #tpu.memory_space<vmem>>, vector<1x1x9x27xbf16>
    %246 = vector.shape_cast %245 : vector<1x1x9x27xbf16> to vector<9x27xbf16>
    %247 = vector.shape_cast %244 : vector<9x27xbf16> to vector<1x1x9x27xbf16>
    tpu.vector_store %arg8[%c0_317, %c0_318, %c1_319, %c0_320], %247 {strides = array<i32>} : memref<2x7x11x27xbf16, #tpu.memory_space<vmem>>, vector<1x1x9x27xbf16>,
    %248 = vector.extract_strided_slice %243 {offsets = [9, 0], sizes = [9, 27], strides = [1, 1]} : vector<126x27xbf16> to vector<9x27xbf16>
    %c1_321 = arith.constant 1 : index
    %c0_322 = arith.constant 0 : index
    %c1_323 = arith.constant 1 : index
    %c0_324 = arith.constant 0 : index
    %249 = vector.load %arg8[%c1_321, %c0_322, %c1_323, %c0_324] : memref<2x7x11x27xbf16, #tpu.memory_space<vmem>>, vector<1x1x9x27xbf16>
    %250 = vector.shape_cast %249 : vector<1x1x9x27xbf16> to vector<9x27xbf16>
    %251 = vector.shape_cast %248 : vector<9x27xbf16> to vector<1x1x9x27xbf16>
    tpu.vector_store %arg8[%c1_321, %c0_322, %c1_323, %c0_324], %251 {strides = array<i32>} : memref<2x7x11x27xbf16, #tpu.memory_space<vmem>>, vector<1x1x9x27xbf16>,
    %252 = vector.extract_strided_slice %243 {offsets = [18, 0], sizes = [9, 27], strides = [1, 1]} : vector<126x27xbf16> to vector<9x27xbf16>
    %c0_325 = arith.constant 0 : index
    %c1_326 = arith.constant 1 : index
    %c1_327 = arith.constant 1 : index
    %c0_328 = arith.constant 0 : index
    %253 = vector.load %arg8[%c0_325, %c1_326, %c1_327, %c0_328] : memref<2x7x11x27xbf16, #tpu.memory_space<vmem>>, vector<1x1x9x27xbf16>
    %254 = vector.shape_cast %253 : vector<1x1x9x27xbf16> to vector<9x27xbf16>
    %255 = vector.shape_cast %252 : vector<9x27xbf16> to vector<1x1x9x27xbf16>
    tpu.vector_store %arg8[%c0_325, %c1_326, %c1_327, %c0_328], %255 {strides = array<i32>} : memref<2x7x11x27xbf16, #tpu.memory_space<vmem>>, vector<1x1x9x27xbf16>,
    %256 = vector.extract_strided_slice %243 {offsets = [27, 0], sizes = [9, 27], strides = [1, 1]} : vector<126x27xbf16> to vector<9x27xbf16>
    %c1_329 = arith.constant 1 : index
    %c1_330 = arith.constant 1 : index
    %c1_331 = arith.constant 1 : index
    %c0_332 = arith.constant 0 : index
    %257 = vector.load %arg8[%c1_329, %c1_330, %c1_331, %c0_332] : memref<2x7x11x27xbf16, #tpu.memory_space<vmem>>, vector<1x1x9x27xbf16>
    %258 = vector.shape_cast %257 : vector<1x1x9x27xbf16> to vector<9x27xbf16>
    %259 = vector.shape_cast %256 : vector<9x27xbf16> to vector<1x1x9x27xbf16>
    tpu.vector_store %arg8[%c1_329, %c1_330, %c1_331, %c0_332], %259 {strides = array<i32>} : memref<2x7x11x27xbf16, #tpu.memory_space<vmem>>, vector<1x1x9x27xbf16>,
    %260 = vector.extract_strided_slice %243 {offsets = [36, 0], sizes = [9, 27], strides = [1, 1]} : vector<126x27xbf16> to vector<9x27xbf16>
    %c0_333 = arith.constant 0 : index
    %c2_334 = arith.constant 2 : index
    %c1_335 = arith.constant 1 : index
    %c0_336 = arith.constant 0 : index
    %261 = vector.load %arg8[%c0_333, %c2_334, %c1_335, %c0_336] : memref<2x7x11x27xbf16, #tpu.memory_space<vmem>>, vector<1x1x9x27xbf16>
    %262 = vector.shape_cast %261 : vector<1x1x9x27xbf16> to vector<9x27xbf16>
    %263 = vector.shape_cast %260 : vector<9x27xbf16> to vector<1x1x9x27xbf16>
    tpu.vector_store %arg8[%c0_333, %c2_334, %c1_335, %c0_336], %263 {strides = array<i32>} : memref<2x7x11x27xbf16, #tpu.memory_space<vmem>>, vector<1x1x9x27xbf16>,
    %264 = vector.extract_strided_slice %243 {offsets = [45, 0], sizes = [9, 27], strides = [1, 1]} : vector<126x27xbf16> to vector<9x27xbf16>
    %c1_337 = arith.constant 1 : index
    %c2_338 = arith.constant 2 : index
    %c1_339 = arith.constant 1 : index
    %c0_340 = arith.constant 0 : index
    %265 = vector.load %arg8[%c1_337, %c2_338, %c1_339, %c0_340] : memref<2x7x11x27xbf16, #tpu.memory_space<vmem>>, vector<1x1x9x27xbf16>
    %266 = vector.shape_cast %265 : vector<1x1x9x27xbf16> to vector<9x27xbf16>
    %267 = vector.shape_cast %264 : vector<9x27xbf16> to vector<1x1x9x27xbf16>
    tpu.vector_store %arg8[%c1_337, %c2_338, %c1_339, %c0_340], %267 {strides = array<i32>} : memref<2x7x11x27xbf16, #tpu.memory_space<vmem>>, vector<1x1x9x27xbf16>,
    %268 = vector.extract_strided_slice %243 {offsets = [54, 0], sizes = [9, 27], strides = [1, 1]} : vector<126x27xbf16> to vector<9x27xbf16>
    %c0_341 = arith.constant 0 : index
    %c3_342 = arith.constant 3 : index
    %c1_343 = arith.constant 1 : index
    %c0_344 = arith.constant 0 : index
    %269 = vector.load %arg8[%c0_341, %c3_342, %c1_343, %c0_344] : memref<2x7x11x27xbf16, #tpu.memory_space<vmem>>, vector<1x1x9x27xbf16>
    %270 = vector.shape_cast %269 : vector<1x1x9x27xbf16> to vector<9x27xbf16>
    %271 = vector.shape_cast %268 : vector<9x27xbf16> to vector<1x1x9x27xbf16>
    tpu.vector_store %arg8[%c0_341, %c3_342, %c1_343, %c0_344], %271 {strides = array<i32>} : memref<2x7x11x27xbf16, #tpu.memory_space<vmem>>, vector<1x1x9x27xbf16>,
    %272 = vector.extract_strided_slice %243 {offsets = [63, 0], sizes = [9, 27], strides = [1, 1]} : vector<126x27xbf16> to vector<9x27xbf16>
    %c1_345 = arith.constant 1 : index
    %c3_346 = arith.constant 3 : index
    %c1_347 = arith.constant 1 : index
    %c0_348 = arith.constant 0 : index
    %273 = vector.load %arg8[%c1_345, %c3_346, %c1_347, %c0_348] : memref<2x7x11x27xbf16, #tpu.memory_space<vmem>>, vector<1x1x9x27xbf16>
    %274 = vector.shape_cast %273 : vector<1x1x9x27xbf16> to vector<9x27xbf16>
    %275 = vector.shape_cast %272 : vector<9x27xbf16> to vector<1x1x9x27xbf16>
    tpu.vector_store %arg8[%c1_345, %c3_346, %c1_347, %c0_348], %275 {strides = array<i32>} : memref<2x7x11x27xbf16, #tpu.memory_space<vmem>>, vector<1x1x9x27xbf16>,
    %276 = vector.extract_strided_slice %243 {offsets = [72, 0], sizes = [9, 27], strides = [1, 1]} : vector<126x27xbf16> to vector<9x27xbf16>
    %c0_349 = arith.constant 0 : index
    %c4_350 = arith.constant 4 : index
    %c1_351 = arith.constant 1 : index
    %c0_352 = arith.constant 0 : index
    %277 = vector.load %arg8[%c0_349, %c4_350, %c1_351, %c0_352] : memref<2x7x11x27xbf16, #tpu.memory_space<vmem>>, vector<1x1x9x27xbf16>
    %278 = vector.shape_cast %277 : vector<1x1x9x27xbf16> to vector<9x27xbf16>
    %279 = vector.shape_cast %276 : vector<9x27xbf16> to vector<1x1x9x27xbf16>
    tpu.vector_store %arg8[%c0_349, %c4_350, %c1_351, %c0_352], %279 {strides = array<i32>} : memref<2x7x11x27xbf16, #tpu.memory_space<vmem>>, vector<1x1x9x27xbf16>,
    %280 = vector.extract_strided_slice %243 {offsets = [81, 0], sizes = [9, 27], strides = [1, 1]} : vector<126x27xbf16> to vector<9x27xbf16>
    %c1_353 = arith.constant 1 : index
    %c4_354 = arith.constant 4 : index
    %c1_355 = arith.constant 1 : index
    %c0_356 = arith.constant 0 : index
    %281 = vector.load %arg8[%c1_353, %c4_354, %c1_355, %c0_356] : memref<2x7x11x27xbf16, #tpu.memory_space<vmem>>, vector<1x1x9x27xbf16>
    %282 = vector.shape_cast %281 : vector<1x1x9x27xbf16> to vector<9x27xbf16>
    %283 = vector.shape_cast %280 : vector<9x27xbf16> to vector<1x1x9x27xbf16>
    tpu.vector_store %arg8[%c1_353, %c4_354, %c1_355, %c0_356], %283 {strides = array<i32>} : memref<2x7x11x27xbf16, #tpu.memory_space<vmem>>, vector<1x1x9x27xbf16>,
    %284 = vector.extract_strided_slice %243 {offsets = [90, 0], sizes = [9, 27], strides = [1, 1]} : vector<126x27xbf16> to vector<9x27xbf16>
    %c0_357 = arith.constant 0 : index
    %c5_358 = arith.constant 5 : index
    %c1_359 = arith.constant 1 : index
    %c0_360 = arith.constant 0 : index
    %285 = vector.load %arg8[%c0_357, %c5_358, %c1_359, %c0_360] : memref<2x7x11x27xbf16, #tpu.memory_space<vmem>>, vector<1x1x9x27xbf16>
    %286 = vector.shape_cast %285 : vector<1x1x9x27xbf16> to vector<9x27xbf16>
    %287 = vector.shape_cast %284 : vector<9x27xbf16> to vector<1x1x9x27xbf16>
    tpu.vector_store %arg8[%c0_357, %c5_358, %c1_359, %c0_360], %287 {strides = array<i32>} : memref<2x7x11x27xbf16, #tpu.memory_space<vmem>>, vector<1x1x9x27xbf16>,
    %288 = vector.extract_strided_slice %243 {offsets = [99, 0], sizes = [9, 27], strides = [1, 1]} : vector<126x27xbf16> to vector<9x27xbf16>
    %c1_361 = arith.constant 1 : index
    %c5_362 = arith.constant 5 : index
    %c1_363 = arith.constant 1 : index
    %c0_364 = arith.constant 0 : index
    %289 = vector.load %arg8[%c1_361, %c5_362, %c1_363, %c0_364] : memref<2x7x11x27xbf16, #tpu.memory_space<vmem>>, vector<1x1x9x27xbf16>
    %290 = vector.shape_cast %289 : vector<1x1x9x27xbf16> to vector<9x27xbf16>
    %291 = vector.shape_cast %288 : vector<9x27xbf16> to vector<1x1x9x27xbf16>
    tpu.vector_store %arg8[%c1_361, %c5_362, %c1_363, %c0_364], %291 {strides = array<i32>} : memref<2x7x11x27xbf16, #tpu.memory_space<vmem>>, vector<1x1x9x27xbf16>,
    %292 = vector.extract_strided_slice %243 {offsets = [108, 0], sizes = [9, 27], strides = [1, 1]} : vector<126x27xbf16> to vector<9x27xbf16>
    %c0_365 = arith.constant 0 : index
    %c6_366 = arith.constant 6 : index
    %c1_367 = arith.constant 1 : index
    %c0_368 = arith.constant 0 : index
    %293 = vector.load %arg8[%c0_365, %c6_366, %c1_367, %c0_368] : memref<2x7x11x27xbf16, #tpu.memory_space<vmem>>, vector<1x1x9x27xbf16>
    %294 = vector.shape_cast %293 : vector<1x1x9x27xbf16> to vector<9x27xbf16>
    %295 = vector.shape_cast %292 : vector<9x27xbf16> to vector<1x1x9x27xbf16>
    tpu.vector_store %arg8[%c0_365, %c6_366, %c1_367, %c0_368], %295 {strides = array<i32>} : memref<2x7x11x27xbf16, #tpu.memory_space<vmem>>, vector<1x1x9x27xbf16>,
    %296 = vector.extract_strided_slice %243 {offsets = [117, 0], sizes = [9, 27], strides = [1, 1]} : vector<126x27xbf16> to vector<9x27xbf16>
    %c1_369 = arith.constant 1 : index
    %c6_370 = arith.constant 6 : index
    %c1_371 = arith.constant 1 : index
    %c0_372 = arith.constant 0 : index
    %297 = vector.load %arg8[%c1_369, %c6_370, %c1_371, %c0_372] : memref<2x7x11x27xbf16, #tpu.memory_space<vmem>>, vector<1x1x9x27xbf16>
    %298 = vector.shape_cast %297 : vector<1x1x9x27xbf16> to vector<9x27xbf16>
    %299 = vector.shape_cast %296 : vector<9x27xbf16> to vector<1x1x9x27xbf16>
    tpu.vector_store %arg8[%c1_369, %c6_370, %c1_371, %c0_372], %299 {strides = array<i32>} : memref<2x7x11x27xbf16, #tpu.memory_space<vmem>>, vector<1x1x9x27xbf16>,
    %c0_373 = arith.constant 0 : index
    %c0_374 = arith.constant 0 : index
    %c0_375 = arith.constant 0 : index
    %c0_376 = arith.constant 0 : index
    %300 = vector.load %arg8[%c0_373, %c0_374, %c0_375, %c0_376] : memref<2x7x11x27xbf16, #tpu.memory_space<vmem>>, vector<1x6x10x27xbf16>
    %301 = vector.shape_cast %300 : vector<1x6x10x27xbf16> to vector<6x10x27xbf16>
    %302 = vector.shape_cast %301 : vector<6x10x27xbf16> to vector<60x27xbf16>
    %c0_377 = arith.constant 0 : index
    %c0_378 = arith.constant 0 : index
    %c0_379 = arith.constant 0 : index
    %303 = vector.load %arg3[%c0_377, %c0_378, %c0_379] : memref<6x27x30xbf16, #tpu.memory_space<vmem>>, vector<1x27x30xbf16>
    %304 = vector.shape_cast %303 : vector<1x27x30xbf16> to vector<27x30xbf16>
    %cst_380 = arith.constant dense<0.000000e+00> : vector<60x30xf32>
    %305 = tpu.matmul %302, %304, %cst_380 {dimension_numbers = #tpu.dot_dimension_numbers<[1], [0], [0], [1], [0, 0, 1, 1], [], []>} : vector<60x27xbf16>, vector<27x30xbf16>, vector<60x30xf32> -> vector<60x30xf32>
    %c0_381 = arith.constant 0 : index
    %c0_382 = arith.constant 0 : index
    %c1_383 = arith.constant 1 : index
    %c0_384 = arith.constant 0 : index
    %306 = vector.load %arg8[%c0_381, %c0_382, %c1_383, %c0_384] : memref<2x7x11x27xbf16, #tpu.memory_space<vmem>>, vector<1x6x10x27xbf16>
    %307 = vector.shape_cast %306 : vector<1x6x10x27xbf16> to vector<6x10x27xbf16>
    %308 = vector.shape_cast %307 : vector<6x10x27xbf16> to vector<60x27xbf16>
    %c1_385 = arith.constant 1 : index
    %c0_386 = arith.constant 0 : index
    %c0_387 = arith.constant 0 : index
    %309 = vector.load %arg3[%c1_385, %c0_386, %c0_387] : memref<6x27x30xbf16, #tpu.memory_space<vmem>>, vector<1x27x30xbf16>
    %310 = vector.shape_cast %309 : vector<1x27x30xbf16> to vector<27x30xbf16>
    %cst_388 = arith.constant dense<0.000000e+00> : vector<60x30xf32>
    %311 = tpu.matmul %308, %310, %cst_388 {dimension_numbers = #tpu.dot_dimension_numbers<[1], [0], [0], [1], [0, 0, 1, 1], [], []>} : vector<60x27xbf16>, vector<27x30xbf16>, vector<60x30xf32> -> vector<60x30xf32>
    %312 = arith.addf %305, %311 : vector<60x30xf32>
    %c1_389 = arith.constant 1 : index
    %c0_390 = arith.constant 0 : index
    %c0_391 = arith.constant 0 : index
    %c0_392 = arith.constant 0 : index
    %313 = vector.load %arg8[%c1_389, %c0_390, %c0_391, %c0_392] : memref<2x7x11x27xbf16, #tpu.memory_space<vmem>>, vector<1x6x10x27xbf16>
    %314 = vector.shape_cast %313 : vector<1x6x10x27xbf16> to vector<6x10x27xbf16>
    %315 = vector.shape_cast %314 : vector<6x10x27xbf16> to vector<60x27xbf16>
    %c2_393 = arith.constant 2 : index
    %c0_394 = arith.constant 0 : index
    %c0_395 = arith.constant 0 : index
    %316 = vector.load %arg3[%c2_393, %c0_394, %c0_395] : memref<6x27x30xbf16, #tpu.memory_space<vmem>>, vector<1x27x30xbf16>
    %317 = vector.shape_cast %316 : vector<1x27x30xbf16> to vector<27x30xbf16>
    %cst_396 = arith.constant dense<0.000000e+00> : vector<60x30xf32>
    %318 = tpu.matmul %315, %317, %cst_396 {dimension_numbers = #tpu.dot_dimension_numbers<[1], [0], [0], [1], [0, 0, 1, 1], [], []>} : vector<60x27xbf16>, vector<27x30xbf16>, vector<60x30xf32> -> vector<60x30xf32>
    %319 = arith.addf %312, %318 : vector<60x30xf32>
    %c1_397 = arith.constant 1 : index
    %c0_398 = arith.constant 0 : index
    %c1_399 = arith.constant 1 : index
    %c0_400 = arith.constant 0 : index
    %320 = vector.load %arg8[%c1_397, %c0_398, %c1_399, %c0_400] : memref<2x7x11x27xbf16, #tpu.memory_space<vmem>>, vector<1x6x10x27xbf16>
    %321 = vector.shape_cast %320 : vector<1x6x10x27xbf16> to vector<6x10x27xbf16>
    %322 = vector.shape_cast %321 : vector<6x10x27xbf16> to vector<60x27xbf16>
    %c3_401 = arith.constant 3 : index
    %c0_402 = arith.constant 0 : index
    %c0_403 = arith.constant 0 : index
    %323 = vector.load %arg3[%c3_401, %c0_402, %c0_403] : memref<6x27x30xbf16, #tpu.memory_space<vmem>>, vector<1x27x30xbf16>
    %324 = vector.shape_cast %323 : vector<1x27x30xbf16> to vector<27x30xbf16>
    %cst_404 = arith.constant dense<0.000000e+00> : vector<60x30xf32>
    %325 = tpu.matmul %322, %324, %cst_404 {dimension_numbers = #tpu.dot_dimension_numbers<[1], [0], [0], [1], [0, 0, 1, 1], [], []>} : vector<60x27xbf16>, vector<27x30xbf16>, vector<60x30xf32> -> vector<60x30xf32>
    %326 = arith.addf %319, %325 : vector<60x30xf32>
    %c0_405 = arith.constant 0 : index
    %c1_406 = arith.constant 1 : index
    %c0_407 = arith.constant 0 : index
    %c0_408 = arith.constant 0 : index
    %327 = vector.load %arg8[%c0_405, %c1_406, %c0_407, %c0_408] : memref<2x7x11x27xbf16, #tpu.memory_space<vmem>>, vector<1x6x10x27xbf16>
    %328 = vector.shape_cast %327 : vector<1x6x10x27xbf16> to vector<6x10x27xbf16>
    %329 = vector.shape_cast %328 : vector<6x10x27xbf16> to vector<60x27xbf16>
    %c4_409 = arith.constant 4 : index
    %c0_410 = arith.constant 0 : index
    %c0_411 = arith.constant 0 : index
    %330 = vector.load %arg3[%c4_409, %c0_410, %c0_411] : memref<6x27x30xbf16, #tpu.memory_space<vmem>>, vector<1x27x30xbf16>
    %331 = vector.shape_cast %330 : vector<1x27x30xbf16> to vector<27x30xbf16>
    %cst_412 = arith.constant dense<0.000000e+00> : vector<60x30xf32>
    %332 = tpu.matmul %329, %331, %cst_412 {dimension_numbers = #tpu.dot_dimension_numbers<[1], [0], [0], [1], [0, 0, 1, 1], [], []>} : vector<60x27xbf16>, vector<27x30xbf16>, vector<60x30xf32> -> vector<60x30xf32>
    %333 = arith.addf %326, %332 : vector<60x30xf32>
    %c0_413 = arith.constant 0 : index
    %c1_414 = arith.constant 1 : index
    %c1_415 = arith.constant 1 : index
    %c0_416 = arith.constant 0 : index
    %334 = vector.load %arg8[%c0_413, %c1_414, %c1_415, %c0_416] : memref<2x7x11x27xbf16, #tpu.memory_space<vmem>>, vector<1x6x10x27xbf16>
    %335 = vector.shape_cast %334 : vector<1x6x10x27xbf16> to vector<6x10x27xbf16>
    %336 = vector.shape_cast %335 : vector<6x10x27xbf16> to vector<60x27xbf16>
    %c5_417 = arith.constant 5 : index
    %c0_418 = arith.constant 0 : index
    %c0_419 = arith.constant 0 : index
    %337 = vector.load %arg3[%c5_417, %c0_418, %c0_419] : memref<6x27x30xbf16, #tpu.memory_space<vmem>>, vector<1x27x30xbf16>
    %338 = vector.shape_cast %337 : vector<1x27x30xbf16> to vector<27x30xbf16>
    %cst_420 = arith.constant dense<0.000000e+00> : vector<60x30xf32>
    %339 = tpu.matmul %336, %338, %cst_420 {dimension_numbers = #tpu.dot_dimension_numbers<[1], [0], [0], [1], [0, 0, 1, 1], [], []>} : vector<60x27xbf16>, vector<27x30xbf16>, vector<60x30xf32> -> vector<60x30xf32>
    %340 = arith.addf %333, %339 : vector<60x30xf32>
    %c1_421 = arith.constant 1 : index
    %c0_422 = arith.constant 0 : index
    %341 = vector.load %arg5[%c1_421, %c0_422] : memref<3x30xf32, #tpu.memory_space<vmem>>, vector<1x30xf32>
    %342 = vector.broadcast %341 : vector<1x30xf32> to vector<60x30xf32>
    %343 = arith.addf %340, %342 : vector<60x30xf32>
    %cst_423 = arith.constant 0.000000e+00 : f32
    %344 = vector.broadcast %cst_423 : f32 to vector<60x30xf32>
    %345 = arith.maximumf %343, %344 : vector<60x30xf32>
    %346 = arith.truncf %345 : vector<60x30xf32> to vector<60x30xbf16>
    %347 = vector.extract_strided_slice %346 {offsets = [0, 0], sizes = [10, 30], strides = [1, 1]} : vector<60x30xbf16> to vector<10x30xbf16>
    %c0_424 = arith.constant 0 : index
    %c0_425 = arith.constant 0 : index
    %c0_426 = arith.constant 0 : index
    %348 = vector.load %arg4[%c0_424, %c0_425, %c0_426] : memref<3x30x30xbf16, #tpu.memory_space<vmem>>, vector<1x30x30xbf16>
    %349 = vector.shape_cast %348 : vector<1x30x30xbf16> to vector<30x30xbf16>
    %cst_427 = arith.constant dense<0.000000e+00> : vector<10x30xf32>
    %350 = tpu.matmul %347, %349, %cst_427 {dimension_numbers = #tpu.dot_dimension_numbers<[1], [0], [0], [1], [0, 0, 1, 1], [], []>} : vector<10x30xbf16>, vector<30x30xbf16>, vector<10x30xf32> -> vector<10x30xf32>
    %351 = vector.extract_strided_slice %346 {offsets = [10, 0], sizes = [10, 30], strides = [1, 1]} : vector<60x30xbf16> to vector<10x30xbf16>
    %c1_428 = arith.constant 1 : index
    %c0_429 = arith.constant 0 : index
    %c0_430 = arith.constant 0 : index
    %352 = vector.load %arg4[%c1_428, %c0_429, %c0_430] : memref<3x30x30xbf16, #tpu.memory_space<vmem>>, vector<1x30x30xbf16>
    %353 = vector.shape_cast %352 : vector<1x30x30xbf16> to vector<30x30xbf16>
    %cst_431 = arith.constant dense<0.000000e+00> : vector<10x30xf32>
    %354 = tpu.matmul %351, %353, %cst_431 {dimension_numbers = #tpu.dot_dimension_numbers<[1], [0], [0], [1], [0, 0, 1, 1], [], []>} : vector<10x30xbf16>, vector<30x30xbf16>, vector<10x30xf32> -> vector<10x30xf32>
    %355 = arith.addf %350, %354 : vector<10x30xf32>
    %356 = vector.extract_strided_slice %346 {offsets = [20, 0], sizes = [10, 30], strides = [1, 1]} : vector<60x30xbf16> to vector<10x30xbf16>
    %c2_432 = arith.constant 2 : index
    %c0_433 = arith.constant 0 : index
    %c0_434 = arith.constant 0 : index
    %357 = vector.load %arg4[%c2_432, %c0_433, %c0_434] : memref<3x30x30xbf16, #tpu.memory_space<vmem>>, vector<1x30x30xbf16>
    %358 = vector.shape_cast %357 : vector<1x30x30xbf16> to vector<30x30xbf16>
    %cst_435 = arith.constant dense<0.000000e+00> : vector<10x30xf32>
    %359 = tpu.matmul %356, %358, %cst_435 {dimension_numbers = #tpu.dot_dimension_numbers<[1], [0], [0], [1], [0, 0, 1, 1], [], []>} : vector<10x30xbf16>, vector<30x30xbf16>, vector<10x30xf32> -> vector<10x30xf32>
    %360 = arith.addf %355, %359 : vector<10x30xf32>
    %c2_436 = arith.constant 2 : index
    %c0_437 = arith.constant 0 : index
    %361 = vector.load %arg5[%c2_436, %c0_437] : memref<3x30xf32, #tpu.memory_space<vmem>>, vector<1x30xf32>
    %362 = vector.broadcast %361 : vector<1x30xf32> to vector<10x30xf32>
    %363 = arith.addf %360, %362 : vector<10x30xf32>
    %cst_438 = arith.constant 0.000000e+00 : f32
    %364 = vector.broadcast %cst_438 : f32 to vector<10x30xf32>
    %365 = arith.maximumf %363, %364 : vector<10x30xf32>
    %c0_439 = arith.constant 0 : index
    %c0_440 = arith.constant 0 : index
    %c0_441 = arith.constant 0 : index
    %366 = vector.load %arg6[%c0_439, %c0_440, %c0_441] : memref<1x20x30xf32, #tpu.memory_space<vmem>>, vector<1x10x30xf32>
    %367 = vector.shape_cast %366 : vector<1x10x30xf32> to vector<10x30xf32>
    %368 = vector.shape_cast %365 : vector<10x30xf32> to vector<1x10x30xf32>
    tpu.vector_store %arg6[%c0_439, %c0_440, %c0_441], %368 {strides = array<i32>} : memref<1x20x30xf32, #tpu.memory_space<vmem>>, vector<1x10x30xf32>,
    %369 = vector.extract_strided_slice %346 {offsets = [20, 0], sizes = [10, 30], strides = [1, 1]} : vector<60x30xbf16> to vector<10x30xbf16>
    %c0_442 = arith.constant 0 : index
    %c0_443 = arith.constant 0 : index
    %c0_444 = arith.constant 0 : index
    %370 = vector.load %arg4[%c0_442, %c0_443, %c0_444] : memref<3x30x30xbf16, #tpu.memory_space<vmem>>, vector<1x30x30xbf16>
    %371 = vector.shape_cast %370 : vector<1x30x30xbf16> to vector<30x30xbf16>
    %cst_445 = arith.constant dense<0.000000e+00> : vector<10x30xf32>
    %372 = tpu.matmul %369, %371, %cst_445 {dimension_numbers = #tpu.dot_dimension_numbers<[1], [0], [0], [1], [0, 0, 1, 1], [], []>} : vector<10x30xbf16>, vector<30x30xbf16>, vector<10x30xf32> -> vector<10x30xf32>
    %373 = vector.extract_strided_slice %346 {offsets = [30, 0], sizes = [10, 30], strides = [1, 1]} : vector<60x30xbf16> to vector<10x30xbf16>
    %c1_446 = arith.constant 1 : index
    %c0_447 = arith.constant 0 : index
    %c0_448 = arith.constant 0 : index
    %374 = vector.load %arg4[%c1_446, %c0_447, %c0_448] : memref<3x30x30xbf16, #tpu.memory_space<vmem>>, vector<1x30x30xbf16>
    %375 = vector.shape_cast %374 : vector<1x30x30xbf16> to vector<30x30xbf16>
    %cst_449 = arith.constant dense<0.000000e+00> : vector<10x30xf32>
    %376 = tpu.matmul %373, %375, %cst_449 {dimension_numbers = #tpu.dot_dimension_numbers<[1], [0], [0], [1], [0, 0, 1, 1], [], []>} : vector<10x30xbf16>, vector<30x30xbf16>, vector<10x30xf32> -> vector<10x30xf32>
    %377 = arith.addf %372, %376 : vector<10x30xf32>
    %378 = vector.extract_strided_slice %346 {offsets = [40, 0], sizes = [10, 30], strides = [1, 1]} : vector<60x30xbf16> to vector<10x30xbf16>
    %c2_450 = arith.constant 2 : index
    %c0_451 = arith.constant 0 : index
    %c0_452 = arith.constant 0 : index
    %379 = vector.load %arg4[%c2_450, %c0_451, %c0_452] : memref<3x30x30xbf16, #tpu.memory_space<vmem>>, vector<1x30x30xbf16>
    %380 = vector.shape_cast %379 : vector<1x30x30xbf16> to vector<30x30xbf16>
    %cst_453 = arith.constant dense<0.000000e+00> : vector<10x30xf32>
    %381 = tpu.matmul %378, %380, %cst_453 {dimension_numbers = #tpu.dot_dimension_numbers<[1], [0], [0], [1], [0, 0, 1, 1], [], []>} : vector<10x30xbf16>, vector<30x30xbf16>, vector<10x30xf32> -> vector<10x30xf32>
    %382 = arith.addf %377, %381 : vector<10x30xf32>
    %c2_454 = arith.constant 2 : index
    %c0_455 = arith.constant 0 : index
    %383 = vector.load %arg5[%c2_454, %c0_455] : memref<3x30xf32, #tpu.memory_space<vmem>>, vector<1x30xf32>
    %384 = vector.broadcast %383 : vector<1x30xf32> to vector<10x30xf32>
    %385 = arith.addf %382, %384 : vector<10x30xf32>
    %cst_456 = arith.constant 0.000000e+00 : f32
    %386 = vector.broadcast %cst_456 : f32 to vector<10x30xf32>
    %387 = arith.maximumf %385, %386 : vector<10x30xf32>
    %c0_457 = arith.constant 0 : index
    %c10_458 = arith.constant 10 : index
    %c0_459 = arith.constant 0 : index
    %388 = vector.load %arg6[%c0_457, %c10_458, %c0_459] : memref<1x20x30xf32, #tpu.memory_space<vmem>>, vector<1x10x30xf32>
    %389 = vector.shape_cast %388 : vector<1x10x30xf32> to vector<10x30xf32>
    %390 = vector.shape_cast %387 : vector<10x30xf32> to vector<1x10x30xf32>
    tpu.vector_store %arg6[%c0_457, %c10_458, %c0_459], %390 {strides = array<i32>} : memref<1x20x30xf32, #tpu.memory_space<vmem>>, vector<1x10x30xf32>,
    return
  }
  func.func @transform_0(%arg0: i32) -> (i32, i32, i32, i32) {
    %c0_i32 = arith.constant 0 : i32
    %c0_i32_0 = arith.constant 0 : i32
    %c0_i32_1 = arith.constant 0 : i32
    %c0_i32_2 = arith.constant 0 : i32
    return %arg0, %c0_i32, %c0_i32_0, %c0_i32_1 : i32, i32, i32, i32
  }
  func.func @transform_1(%arg0: i32) -> (i32, i32, i32) {
    %c0_i32 = arith.constant 0 : i32
    %c0_i32_0 = arith.constant 0 : i32
    %c0_i32_1 = arith.constant 0 : i32
    %c0_i32_2 = arith.constant 0 : i32
    return %c0_i32, %c0_i32_0, %c0_i32_1 : i32, i32, i32
  }
  func.func @transform_2(%arg0: i32) -> (i32, i32, i32) {
    %c0_i32 = arith.constant 0 : i32
    %c0_i32_0 = arith.constant 0 : i32
    %c0_i32_1 = arith.constant 0 : i32
    %c0_i32_2 = arith.constant 0 : i32
    return %c0_i32, %c0_i32_0, %c0_i32_1 : i32, i32, i32
  }
  func.func @transform_3(%arg0: i32) -> (i32, i32, i32) {
    %c0_i32 = arith.constant 0 : i32
    %c0_i32_0 = arith.constant 0 : i32
    %c0_i32_1 = arith.constant 0 : i32
    %c0_i32_2 = arith.constant 0 : i32
    return %c0_i32, %c0_i32_0, %c0_i32_1 : i32, i32, i32
  }
  func.func @transform_4(%arg0: i32) -> (i32, i32) {
    %c0_i32 = arith.constant 0 : i32
    %c0_i32_0 = arith.constant 0 : i32
    %c0_i32_1 = arith.constant 0 : i32
    return %c0_i32, %c0_i32_0 : i32, i32
  }
  func.func @transform_5(%arg0: i32) -> (i32, i32, i32) {
    %c0_i32 = arith.constant 0 : i32
    %c0_i32_0 = arith.constant 0 : i32
    %c0_i32_1 = arith.constant 0 : i32
    return %arg0, %c0_i32, %c0_i32_0 : i32, i32, i32
  }
}

</mosaic_0001>

<bundles_post_ra>
// kernel: tile.18
= control target key start
LH: loop header
LB: loop body
LE: loop exit
PB: predicated region body
PF: predicated region fallthrough
CT: control target
= control target key end

     0   :  { %s28_s0 = inlined_call_operand.vmem [shape: f32[3], index: 0, kind: input, shape index: {}]   ;;  %s29_s1 = inlined_call_operand.vmem [shape: f32[9,3], index: 1, kind: output, shape index: {}]  }
   0x1   :  { %v4_v0 = vld [vmem:[%s28_s0] ss:$0 sm:$0xff] }
   0x2   :  { %5 = vst [vmem:[%s29_s1] sm:$0xff] %v4_v0 }
   0x3   :  { %8 = vst [vmem:[%s29_s1 + $0x8] sm:$0xff] %v4_v0 }

// kernel: tile.23
= control target key start
LH: loop header
LB: loop body
LE: loop exit
PB: predicated region body
PF: predicated region fallthrough
CT: control target
= control target key end

     0   :  { %s28_s0 = inlined_call_operand.vmem [shape: f32[3], index: 0, kind: input, shape index: {}]   ;;  %s29_s1 = inlined_call_operand.vmem [shape: f32[10,3], index: 1, kind: output, shape index: {}]  }
   0x1   :  { %v4_v0 = vld [vmem:[%s28_s0] ss:$0 sm:$0xff] }
   0x2   :  { %5 = vst [vmem:[%s29_s1] sm:$0xff] %v4_v0 }
   0x3   :  { %8 = vst [vmem:[%s29_s1 + $0x8] sm:$0xff] %v4_v0 }

// kernel: three_layer_conv3d_forward.1
= control target key start
LH: loop header
LB: loop body
LE: loop exit
PB: predicated region body
PF: predicated region fallthrough
CT: control target
= control target key end

     0   :  { %s14434_s18 = smov 0   ;;  %s18797_s0 = inlined_call_operand.vmem [shape: bf16[2,31,8,256], index: 0, kind: input, shape index: {}]   ;;  %s18798_s1 = inlined_call_operand.vmem [shape: bf16[10,256,27], index: 1, kind: input, shape index: {}]   ;;  %s18799_s2 = inlined_call_operand.vmem [shape: bf16[6,27,30], index: 2, kind: input, shape index: {}]   ;;  %s18800_s3 = inlined_call_operand.vmem [shape: bf16[3,30,30], index: 3, kind: input, shape index: {}]   ;;  %s18801_s4 = inlined_call_operand.vmem [shape: f32[3,30], index: 4, kind: input, shape index: {}]   ;;  %s18802_s5 = inlined_call_operand.vmem [shape: f32[2,20,30], index: 5, kind: output, shape index: {}]  }
   0x1 LB: > { %s12656_s19 = sadd.s32 4294967295, %s14401_s18   ;;  %p12660_p0 = scmp.ge.s32.totalorder %s14401_s18, 1  ;;  %s14401_s18 = sphi %s14434_s18, %s15_s18  }
   0x2   : > { %p187_p1 = scmp.lt.s32.totalorder %s14401_s18, 3 }
   0x4   : > { %p188_p2 = pnand %p12660_p0, %p187_p1 }
   0x6   : > { %191 = sbr.rel (%p188_p2) target bundleno = 2072 (0x818), region = 40 }
   0xb   : > { %v14218_v0 = vld [vmem:[%s18798_s1 + $0xb8] sm:$0xff]  ;;  %p215_p3 = scmp.lt.s32.totalorder %s12656_s19, 1  ;;  %v14217_v2 = vld [vmem:[%s18798_s1 + $0xb0] sm:$0xff]  ;;  %vm227_vm0 = vsmask.f32 256  ;;  %v14216_v5 = vld [vmem:[%s18798_s1 + $0xa8] sm:$0xff] }
   0xc   : > { %v14226_v1 = vld [vmem:[%s18798_s1 + $0xf8] sm:$0xff]  ;;  %1966 = vmatpush.bf16.msra.mxu0 %v14218_v0  ;;  %v14225_v3 = vld [vmem:[%s18798_s1 + $0xf0] sm:$0xff]  ;;  %vm230_vm1 = vsmask.f32 4352  ;;  %vm226_vm2 = vcmask 1040384   ;;  %vm18903_vm3 = vcmask 1044484  }
   0xd   : > { %s19411_s19 = smov (!%p215_p3, %s12656_s19), 1  ;;  %2015 = vmatpush.bf16.msra.mxu1 %v14226_v1  ;;  %v326_v4 = vld [vmem:[#allocation2 + $0x10] sm:$0x11]  ;;  %vm228_vm4 = vmand %vm226_vm2, %vm227_vm0  ;;  %v233_v6 = vld [vmem:[#allocation2 + $0x160] sm:$0x11]  ;;  %v18923_v12 = vmov 0 }
   0xe   : > { %s14379_s28 = smul.u32 248, %s19411_s19  ;;  %v236_v7 = vld [vmem:[#allocation2 + $0x168] sm:$0x11]  ;;  %vm329_vm5 = vsmask.f32 7938  ;;  %v14224_v9 = vld [vmem:[%s18798_s1 + $0xe8] sm:$0xff]  ;;  %vm231_vm6 = vmand %vm18903_vm3, %vm230_vm1 }
   0xf   : > { %v427_v8 = vld [vmem:[#allocation2 + $0x140] sm:$0x11]  ;;  %vm331_vm7 = vsmask.f32 7954  ;;  %v14215_v11 = vld [vmem:[%s18798_s1 + $0xa0] sm:$0xff]  ;;  %vm14475_vm8 = vmor %vm231_vm6, %vm228_vm4  ;;  %vm530_vm9 = vcmask 1043456  }
  0x10   : > { %1967 = vmatpush.bf16.msra.mxu0 %v14217_v2  ;;  %s14463_s8 = scalar_lea.vmem %s18797_s0, %s14379_s28  ;;  %v18924_v12 = vsel %vm14475_vm8, 4294967295, %v18923_v12  ;;  %v334_v13 = vld [vmem:[#allocation2 + $0x98] sm:$0x11]  ;;  %vm532_vm10 = vcmask 1047556   ;;  %v234_v17 = vsel %vm14475_vm8, 0, %v233_v6  ;;  %v237_v18 = vsel %vm14475_vm8, 0, %v236_v7  ;;  %vm330_vm11 = vmand %vm226_vm2, %vm329_vm5 }
  0x11   : > { %2016 = vmatpush.bf16.msra.mxu1 %v14225_v3  ;;  %v519_v10 = vld [vmem:[%s14463_s8] sm:$0xff]  ;;  %18925 = vst [vmem:[#allocation4_spill] sm:$0xff] %v18924_v12  ;;  %v12664_v15 = vld [vmem:[%s14463_s8 + $0x10] sm:$0xff]  ;;  %v327_v19 = vsel %vm14475_vm8, 0, %v326_v4  ;;  %v239_v21 = vld [vmem:[#allocation2 + $0x1b0] sm:$0x11] }
  0x12   : > { %v521_v14 = vshrl.u32 %v519_v10, 16  ;;  %v14223_v16 = vld [vmem:[%s18798_s1 + $0xe0] sm:$0xff]  ;;  %v563_v20 = vshrl.u32 %v12664_v15, 16  ;;  %235 = vst [vmem:[#allocation2 + $0x160] sm:$0x11] %v234_v17  ;;  %vm332_vm12 = vmand %vm18903_vm3, %vm331_vm7  ;;  %v524_v22 = vshll.u32 %v519_v10, 16 }
  0x13   : > { %v566_v23 = vshll.u32 %v12664_v15, 16  ;;  %v242_v24 = vld [vmem:[#allocation2 + $0x30] sm:$0x11]  ;;  %238 = vst [vmem:[#allocation2 + $0x168] sm:$0x11] %v237_v18  ;;  %vm14493_vm13 = vmor %vm332_vm12, %vm330_vm11  ;;  %v18926_v25 = vmov 0 }
  0x14   : > { %1968 = vmatpush.bf16.msra.mxu0 %v14216_v5  ;;  %v18927_v25 = vsel %vm14493_vm13, 4294967295, %v18926_v25  ;;  %v14497_v26 = vrot.slane %v563_v20, 7  ;;  %v337_v27 = vld [vmem:[#allocation2 + $0x1a8] sm:$0x11]  ;;  %v12666_v28 = vld [vmem:[%s14463_s8 + $0x20] sm:$0xff]  ;;  %v335_v29 = vsel %vm14493_vm13, 0, %v334_v13  ;;  %vm531_vm14 = vmand %vm530_vm9, %vm329_vm5 }
  0x15   : > { %2017 = vmatpush.bf16.msra.mxu1 %v14224_v9  ;;  %18928 = vst [vmem:[#allocation5_spill] sm:$0xff] %v18927_v25  ;;  %v428_v30 = vsel %vm14493_vm13, 0, %v427_v8  ;;  %v523_v31 = vrot.slane %v521_v14, 7  ;;  %v240_v32 = vsel %vm14475_vm8, 0, %v239_v21  ;;  %vm533_vm15 = vmand %vm532_vm10, %vm331_vm7  ;;  %v243_v33 = vsel %vm14475_vm8, 0, %v242_v24  ;;  %v14214_v35 = vld [vmem:[%s18798_s1 + $0x98] sm:$0xff] }
  0x16   : > { %328 = vst [vmem:[#allocation2 + $0x10] sm:$0x11] %v327_v19  ;;  %v340_v34 = vld [vmem:[#allocation2 + $0x8] sm:$0x11]  ;;  %v338_v37 = vsel %vm14493_vm13, 0, %v337_v27  ;;  %v601_v38 = vshrl.u32 %v12666_v28, 16  ;;  %vm14520_vm1 = vmor %vm533_vm15, %vm531_vm14  ;;  %v568_v41 = vor.u32 %v566_v23, %v14497_v26 }
  0x17   : > { %336 = vst [vmem:[#allocation2 + $0x98] sm:$0x11] %v335_v29  ;;  %v526_v36 = vor.u32 %v524_v22, %v523_v31  ;;  %v14222_v39 = vld [vmem:[%s18798_s1 + $0xd8] sm:$0xff]  ;;  %v18929_v40 = vmov 0  ;;  %v341_v42 = vsel %vm14493_vm13, 0, %v340_v34  ;;  %v14213_v44 = vld [vmem:[%s18798_s1 + $0x90] sm:$0xff] }
  0x18   : > { %1969 = vmatpush.bf16.msra.mxu0 %v14215_v11  ;;  %429 = vst [vmem:[#allocation2 + $0x140] sm:$0x11] %v428_v30  ;;  %v18930_v40 = vsel %vm14520_vm1, 4294967295, %v18929_v40  ;;  %v245_v43 = vld [vmem:[#allocation2 + $0xa0] sm:$0x11]  ;;  %vm1200_vm4 = vcmask 1041409  }
  0x19   : > { %2018 = vmatpush.bf16.msra.mxu1 %v14223_v16  ;;  %18931 = vst [vmem:[#allocation6_spill] sm:$0xff] %v18930_v40  ;;  %v604_v45 = vshll.u32 %v12666_v28, 16  ;;  %v14531_v46 = vld [vmem:[%s14463_s8 + $0x30] sm:$0xff]  ;;  %v527_v48 = vrot.slane %v523_v31, 4  ;;  %v535_v49 = vld [vmem:[#allocation2 + $0x160] sm:$0xff]  ;;  %vm18907_vm6 = vcmask 1042434  }
  0x1a   : > { %241 = vst [vmem:[#allocation2 + $0x1b0] sm:$0x11] %v240_v32  ;;  %v14221_v47 = vld [vmem:[%s18798_s1 + $0xd0] sm:$0xff]  ;;  %v248_v50 = vld [vmem:[#allocation2 + $0xd8] sm:$0x11]  ;;  %v536_v51 = vsel %vm14520_vm1, %v526_v36, %v535_v49  ;;  %v14538_v53 = vrot.slane %v601_v38, 7 }
  0x1b   : > { %244 = vst [vmem:[#allocation2 + $0x30] sm:$0x11] %v243_v33  ;;  %v573_v52 = vld [vmem:[#allocation2 + $0x168] sm:$0xff]  ;;  %v246_v54 = vsel %vm14475_vm8, 0, %v245_v43  ;;  %v1167_v56 = vrot.slane %v536_v51, 3  ;;  %vm18906_vm7 = vcmask 1043459  }
  0x1c   : > { %339 = vst [vmem:[#allocation2 + $0x1a8] sm:$0x11] %v338_v37  ;;  %1970 = vmatpush.bf16.msra.mxu0 %v14214_v35  ;;  %v574_v55 = vsel %vm14520_vm1, %v568_v41, %v573_v52  ;;  %v639_v57 = vshrl.u32 %v14531_v46, 16  ;;  %v343_v58 = vld [vmem:[#allocation2 + $0x190] sm:$0x11]  ;;  %v606_v61 = vor.u32 %v604_v45, %v14538_v53  ;;  %v249_v62 = vsel %vm14475_vm8, 0, %v248_v50 }
  0x1d   : > { %342 = vst [vmem:[#allocation2 + $0x8] sm:$0x11] %v341_v42  ;;  %2019 = vmatpush.bf16.msra.mxu1 %v14222_v39  ;;  %v1169_v60 = vrot.slane %v574_v55, 3  ;;  %v14212_v63 = vld [vmem:[%s18798_s1 + $0x88] sm:$0xff]  ;;  %v14554_v1 = vsel %vm226_vm2, %v536_v51, %v1167_v56  ;;  %v1201_v2 = vsel %vm1200_vm4, %v536_v51, %v1167_v56  ;;  %v1205_v3 = vsel %vm18907_vm6, %v536_v51, %v1167_v56  ;;  %v12670_v15 = vld [vmem:[%s14463_s8 + $0x40] sm:$0xff]  ;;  %s14380_s23 = smul.u32 24, %s19411_s19 }
  0x1e   : > { %537 = vst [vmem:[#allocation2 + $0x160] sm:$0xff] %v536_v51  ;;  %v538_v59 = vld [vmem:[#allocation2 + $0x98] sm:$0x11]  ;;  %v14220_v4 = vld [vmem:[%s18798_s1 + $0xc8] sm:$0xff]  ;;  %v14561_v5 = vrot.slane %v1201_v2, 1  ;;  %v14563_v6 = vrot.slane %v1205_v3, 2  ;;  %v1209_v7 = vsel %vm18906_vm7, %v536_v51, %v1167_v56  ;;  %v1438_v19 = vunpack.i.h.s16 %v14554_v1 }
  0x1f   : > { %575 = vst [vmem:[#allocation2 + $0x168] sm:$0xff] %v574_v55  ;;  %v539_v0 = vsel %vm14475_vm8, %v527_v48, %v538_v59  ;;  %v344_v8 = vsel %vm14493_vm13, 0, %v343_v58  ;;  %v1220_v9 = vsel %vm1200_vm4, %v574_v55, %v1169_v60  ;;  %v1223_v10 = vsel %vm18907_vm6, %v574_v55, %v1169_v60  ;;  %v14211_v20 = vld [vmem:[%s18798_s1 + $0x80] sm:$0xff]  ;;  %s224_s26 = scalar_lea.vmem %s18802_s5, %s14380_s23 }
  0x20   : > { %247 = vst [vmem:[#allocation2 + $0xa0] sm:$0x11] %v246_v54  ;;  %1971 = vmatpush.bf16.msra.mxu0 %v14213_v44  ;;  %v14570_v13 = vrot.slane %v639_v57, 7  ;;  %v642_v14 = vshll.u32 %v14531_v46, 16  ;;  %v14574_v16 = vrot.slane %v1220_v9, 1  ;;  %v14576_v17 = vrot.slane %v1223_v10, 2 }
  0x21   : > { %540 = vst [vmem:[#allocation2 + $0x98] sm:$0x11] %v539_v0  ;;  %2020 = vmatpush.bf16.msra.mxu1 %v14221_v47  ;;  %v611_v11 = vld [vmem:[#allocation2 + $0x1b0] sm:$0xff]  ;;  %v1226_v18 = vsel %vm18906_vm7, %v574_v55, %v1169_v60  ;;  %v14583_v21 = vrot.slane %v1209_v7, 3  ;;  %v1440_v22 = vunpack.i.h.s16 %v14561_v5  ;;  %v1442_v23 = vunpack.i.h.s16 %v14563_v6  ;;  %v14219_v27 = vld [vmem:[%s18798_s1 + $0xc0] sm:$0xff]  ;;  %v12672_v44 = vld [vmem:[%s14463_s8 + $0x50] sm:$0xff] }
  0x22   : > { %250 = vst [vmem:[#allocation2 + $0xd8] sm:$0x11] %v249_v62  ;;  %v569_v24 = vrot.slane %v14497_v26, 4  ;;  %v12725_v28 = vpack.i.b16 %v14561_v5, %v1438_v19  ;;  %v612_v30 = vsel %vm14520_vm1, %v606_v61, %v611_v11  ;;  %v677_v31 = vshrl.u32 %v12670_v15, 16  ;;  %v649_v43 = vld [vmem:[#allocation2 + $0x30] sm:$0xff] }
  0x23   : > { %345 = vst [vmem:[#allocation2 + $0x190] sm:$0x11] %v344_v8  ;;  %v576_v29 = vld [vmem:[#allocation2 + $0x1a8] sm:$0x11]  ;;  %v14595_v32 = vrot.slane %v1226_v18, 3  ;;  %v12726_v26 = vpack.i.b16 %v14563_v6, %v1440_v22  ;;  %v12727_v33 = vpack.i.b16 %v14583_v21, %v1442_v23  ;;  %v607_v34 = vrot.slane %v14538_v53, 4 }
  0x24   : > { %1972 = vmatpush.bf16.msra.mxu0 %v14212_v63  ;;  %1721 = vst [vmem:[#allocation1 + $0x5] ss:$9 sm:$0xff] %v14574_v16  ;;  %v14602_v35 = vsel %vm226_vm2, %v574_v55, %v1169_v60  ;;  %v614_v36 = vld [vmem:[#allocation2 + $0x8] sm:$0x11]  ;;  %v644_v37 = vor.u32 %v642_v14, %v14570_v13  ;;  %v1171_v38 = vrot.slane %v612_v30, 3  ;;  %v1444_v41 = vunpack.i.h.s16 %v14583_v21 }
  0x25   : > { %2021 = vmatpush.bf16.msra.mxu1 %v14220_v4  ;;  %1724 = vst [vmem:[#allocation1 + $0x6] ss:$9 sm:$0xff] %v14576_v17  ;;  %v577_v42 = vsel %vm14475_vm8, %v569_v24, %v576_v29  ;;  %v346_v46 = vld [vmem:[#allocation2 + $0x80] sm:$0x11]  ;;  %v680_v47 = vshll.u32 %v12670_v15, 16  ;;  %v18806_v48 = vunpack.i.h.s16 %v14602_v35  ;;  %v615_v49 = vsel %vm14475_vm8, %v607_v34, %v614_v36 }
  0x26   : > { %1706 = vst [vmem:[#allocation1] ss:$9 sm:$0xff] %v12725_v28  ;;  %v645_v50 = vrot.slane %v14570_v13, 4  ;;  %v14614_v51 = vrot.slane %v677_v31, 7  ;;  %v14621_v53 = vsel %vm14520_vm1, %v644_v37, %v649_v43  ;;  %v1237_v54 = vsel %vm1200_vm4, %v612_v30, %v1171_v38  ;;  %v251_v4 = vld [vmem:[#allocation2 + $0x68] sm:$0x11] }
  0x27   : > { %1709 = vst [vmem:[#allocation1 + $0x1] ss:$9 sm:$0xff] %v12726_v26  ;;  %v715_v56 = vshrl.u32 %v12672_v44, 16  ;;  %v1240_v59 = vsel %vm18907_vm6, %v612_v30, %v1171_v38  ;;  %v1243_v60 = vsel %vm18906_vm7, %v612_v30, %v1171_v38  ;;  %v347_v61 = vsel %vm14493_vm13, 0, %v346_v46  ;;  %v687_v9 = vld [vmem:[#allocation2 + $0xa0] sm:$0xff] }
  0x28   : > { %v1112_v39 = vld [vmem:[#allocation2 + $0x98] sm:$0x11]  ;;  %1973 = vmatpush.bf16.msra.mxu0 %v14211_v20  ;;  %1712 = vst [vmem:[#allocation1 + $0x2] ss:$9 sm:$0xff] %v12727_v33  ;;  %v682_v62 = vor.u32 %v680_v47, %v14614_v51  ;;  %v14634_v0 = vrot.slane %v14621_v53, 3  ;;  %v14637_v2 = vsel %vm226_vm2, %v612_v30, %v1171_v38  ;;  %v14639_v3 = vrot.slane %v1237_v54, 1 }
  0x29   : > { %v1168_v45 = vrot.slane %v1112_v39, 3  ;;  %2022 = vmatpush.bf16.msra.mxu1 %v14219_v27  ;;  %1727 = vst [vmem:[#allocation1 + $0x7] ss:$9 sm:$0xff] %v14595_v32  ;;  %v14642_v7 = vrot.slane %v1240_v59, 2  ;;  %v14646_v10 = vrot.slane %v715_v56, 7  ;;  %v718_v11 = vshll.u32 %v12672_v44, 16 }
  0x2a   : > { %578 = vst [vmem:[#allocation2 + $0x1a8] sm:$0x11] %v577_v42  ;;  %v652_v55 = vld [vmem:[#allocation2 + $0x190] sm:$0x11]  ;;  %v14648_v13 = vrot.slane %v1243_v60, 3  ;;  %v725_v14 = vld [vmem:[#allocation2 + $0xd8] sm:$0xff]  ;;  %v1456_v18 = vunpack.i.h.s16 %v14637_v2  ;;  %v14655_v23 = vsel %vm226_vm2, %v14621_v53, %v14634_v0  ;;  %v1458_v24 = vunpack.i.h.s16 %v14639_v3 }
  0x2b   : > { %v14617_v52 = vsel %vm226_vm2, %v1112_v39, %v1168_v45  ;;  %613 = vst [vmem:[#allocation2 + $0x1b0] sm:$0xff] %v612_v30  ;;  %v653_v8 = vsel %vm14475_vm8, %v645_v50, %v652_v55  ;;  %v254_v15 = vld [vmem:[#allocation2 + $0x90] sm:$0x11]  ;;  %v720_v19 = vor.u32 %v718_v11, %v14646_v10  ;;  %v349_v20 = vld [vmem:[#allocation2 + $0x1f8] sm:$0x11]  ;;  %v14660_v27 = vsel %vm14520_vm1, %v682_v62, %v687_v9  ;;  %v12676_v60 = vld [vmem:[%s14463_s8 + $0x70] sm:$0xff] }
  0x2c   : > { %v1595_v57 = vunpack.i.h.s16 %v14617_v52  ;;  %v12728_v58 = vpack.i.b16 %v14617_v52, %v1444_v41  ;;  %616 = vst [vmem:[#allocation2 + $0x8] sm:$0x11] %v615_v49  ;;  %v252_v28 = vsel %vm14475_vm8, 0, %v251_v4  ;;  %v1460_v30 = vunpack.i.h.s16 %v14642_v7  ;;  %v12674_v42 = vld [vmem:[%s14463_s8 + $0x60] sm:$0xff]  ;;  %v352_v4 = vld [vmem:[#allocation2 + $0x40] sm:$0x11] }
  0x2d   : > { %651 = vst [vmem:[#allocation2 + $0x30] sm:$0xff] %v14621_v53  ;;  %v14668_v31 = vsel %vm14520_vm1, %v720_v19, %v725_v14  ;;  %v255_v26 = vsel %vm14475_vm8, 0, %v254_v15  ;;  %v1462_v34 = vunpack.i.h.s16 %v14648_v13  ;;  %v350_v36 = vsel %vm14493_vm13, 0, %v349_v20  ;;  %v14201_v11 = vld [vmem:[%s18798_s1 + $0x30] sm:$0xff] }
  0x2e   : > { %v1646_v63 = vpack.i.b16 %v18806_v48, %v1595_v57  ;;  %1715 = vst [vmem:[#allocation1 + $0x3] ss:$9 sm:$0xff] %v12728_v58  ;;  %v12729_v39 = vpack.i.b16 %v14639_v3, %v1456_v18  ;;  %v1175_v41 = vrot.slane %v14660_v27, 3  ;;  %v1254_v43 = vsel %vm1200_vm4, %v14621_v53, %v14634_v0  ;;  %v14202_v57 = vld [vmem:[%s18798_s1 + $0x38] sm:$0xff]  ;;  %v14209_v14 = vld [vmem:[%s18798_s1 + $0x70] sm:$0xff] }
  0x2f   : > { %348 = vst [vmem:[#allocation2 + $0x80] sm:$0x11] %v347_v61  ;;  %v18805_v44 = vunpack.i.h.s16 %v14655_v23  ;;  %v12730_v45 = vpack.i.b16 %v14642_v7, %v1458_v24  ;;  %v12731_v50 = vpack.i.b16 %v14648_v13, %v1460_v30  ;;  %v1257_v54 = vsel %vm18907_vm6, %v14621_v53, %v14634_v0  ;;  %v14210_v58 = vld [vmem:[%s18798_s1 + $0x78] sm:$0xff]  ;;  %2388 = vmatpush.bf16.msra.mxu2 %v14202_v57 }
  0x30   : > { %1718 = vst [vmem:[#allocation1 + $0x4] ss:$9 sm:$0xff] %v1646_v63  ;;  %v753_v59 = vshrl.u32 %v12674_v42, 16  ;;  %v14704_v61 = vrot.slane %v1254_v43, 1  ;;  %v683_v62 = vrot.slane %v14614_v51, 4  ;;  %v1271_v63 = vsel %vm1200_vm4, %v14660_v27, %v1175_v41  ;;  %2437 = vmatpush.bf16.msra.mxu3 %v14210_v58 }
  0x31   : > { %v1114_v22 = vld [vmem:[#allocation2 + $0x1a8] sm:$0x11]  ;;  %654 = vst [vmem:[#allocation2 + $0x190] sm:$0x11] %v653_v8  ;;  %v14717_v51 = vrot.slane %v1257_v54, 2  ;;  %v721_v15 = vrot.slane %v14646_v10, 4 }
  0x32   : > { %v1170_v29 = vrot.slane %v1114_v22, 3  ;;  %689 = vst [vmem:[#allocation2 + $0xa0] sm:$0xff] %v14660_v27  ;;  %v756_v18 = vshll.u32 %v12674_v42, 16  ;;  %v791_v19 = vshrl.u32 %v12676_v60, 16  ;;  %v14720_v20 = vrot.slane %v1271_v63, 1 }
  0x33   : > { %v1116_v33 = vld [vmem:[#allocation2 + $0x8] sm:$0x11]  ;;  %727 = vst [vmem:[#allocation2 + $0xd8] sm:$0xff] %v14668_v31  ;;  %v14724_v24 = vrot.slane %v753_v59, 7  ;;  %2389 = vmatpush.bf16.msra.mxu2 %v14201_v11  ;;  %v355_v54 = vld [vmem:[#allocation2 + $0x58] sm:$0x11] }
  0x34   : > { %v1172_v37 = vrot.slane %v1116_v33, 3  ;;  %v14677_v38 = vsel %vm226_vm2, %v1114_v22, %v1170_v29  ;;  %253 = vst [vmem:[#allocation2 + $0x68] sm:$0x11] %v252_v28  ;;  %v1274_v22 = vsel %vm18907_vm6, %v14660_v27, %v1175_v41  ;;  %v794_v28 = vshll.u32 %v12676_v60, 16  ;;  %2438 = vmatpush.bf16.msra.mxu3 %v14209_v14  ;;  %v14199_v59 = vld [vmem:[%s18798_s1 + $0x20] sm:$0xff] }
  0x35   : > { %256 = vst [vmem:[#allocation2 + $0x90] sm:$0x11] %v255_v26  ;;  %v353_v26 = vsel %vm14493_vm13, 0, %v352_v4  ;;  %v14730_v10 = vrot.slane %v791_v19, 7  ;;  %v758_v42 = vor.u32 %v756_v18, %v14724_v24  ;;  %v14207_v60 = vld [vmem:[%s18798_s1 + $0x60] sm:$0xff]  ;;  %v356_v11 = vsel %vm14493_vm13, 0, %v355_v54 }
  0x36   : > { %v14688_v49 = vsel %vm226_vm2, %v1116_v33, %v1172_v37  ;;  %351 = vst [vmem:[#allocation2 + $0x1f8] sm:$0x11] %v350_v36  ;;  %v690_v9 = vld [vmem:[#allocation2 + $0x80] sm:$0x11]  ;;  %v1260_v33 = vsel %vm18906_vm7, %v14621_v53, %v14634_v0  ;;  %v14748_v53 = vrot.slane %v1274_v22, 2  ;;  %v1277_v0 = vsel %vm18906_vm7, %v14660_v27, %v1175_v41  ;;  %v12678_v14 = vld [vmem:[%s14463_s8 + $0x80] sm:$0xff] }
  0x37   : > { %v1728_v46 = vld [vmem:[#allocation1] sm:$0xff]  ;;  %v1729_v47 = vld [vmem:[#allocation1 + $0x9] sm:$0xff]  ;;  %v1597_v55 = vunpack.i.h.s16 %v14688_v49  ;;  %v12732_v56 = vpack.i.b16 %v14688_v49, %v1462_v34  ;;  %v691_v29 = vsel %vm14475_vm8, %v683_v62, %v690_v9  ;;  %v14738_v34 = vsel %vm226_vm2, %v14660_v27, %v1175_v41  ;;  %354 = vst [vmem:[#allocation2 + $0x40] sm:$0x11] %v353_v26 }
  0x38   : > { %1974 = vmatmul.bf16.vlgmr.msra.gmra.mxu0 %v1728_v46  ;;  %2023 = vmatmul.bf16.vlgmr.msra.gmra.mxu1 %v1729_v47  ;;  %1731 = vst [vmem:[#allocation1] ss:$9 sm:$0xff] %v14677_v38  ;;  %v1118_v30 = vld [vmem:[#allocation2 + $0x190] sm:$0x11]  ;;  %v14200_v36 = vld [vmem:[%s18798_s1 + $0x28] sm:$0xff]  ;;  %v796_v46 = vor.u32 %v794_v28, %v14730_v10  ;;  %v14758_v57 = vrot.slane %v1260_v33, 3  ;;  %v1474_v58 = vunpack.i.h.s16 %v14738_v34  ;;  %v1476_v41 = vunpack.i.h.s16 %v14720_v20 }
  0x39   : > { %1733 = vst [vmem:[#allocation1 + $0x1] ss:$9 sm:$0xff] %v12729_v39  ;;  %v1655_v8 = vpack.i.b16 %v18805_v44, %v1597_v55  ;;  %v14208_v37 = vld [vmem:[%s18798_s1 + $0x68] sm:$0xff]  ;;  %v257_v47 = vld [vmem:[#allocation2 + $0x108] sm:$0x11]  ;;  %v1174_v55 = vrot.slane %v1118_v30, 3  ;;  %2390 = vmatpush.bf16.msra.mxu2 %v14200_v36 }
  0x3a   : > { %1735 = vst [vmem:[#allocation1 + $0x2] ss:$9 sm:$0xff] %v12730_v45  ;;  %v14761_v27 = vrot.slane %v1277_v0, 3  ;;  %2439 = vmatpush.bf16.msra.mxu3 %v14208_v37  ;;  %v258_v63 = vsel %vm14475_vm8, 0, %v257_v47  ;;  %v12733_v18 = vpack.i.b16 %v14720_v20, %v1474_v58  ;;  %v12734_v26 = vpack.i.b16 %v14748_v53, %v1476_v41  ;;  %v358_v47 = vld [vmem:[#allocation2 + $0x148] sm:$0x11] }
  0x3b   : > { %1737 = vst [vmem:[#allocation1 + $0x3] ss:$9 sm:$0xff] %v12731_v50  ;;  %v763_v45 = vld [vmem:[#allocation2 + $0x68] sm:$0xff]  ;;  %v759_v33 = vrot.slane %v14724_v24, 4  ;;  %v14198_v24 = vld [vmem:[%s18798_s1 + $0x18] sm:$0xff]  ;;  %v797_v58 = vrot.slane %v14730_v10, 4 }
  0x3c   : > { %1739 = vst [vmem:[#allocation1 + $0x4] ss:$9 sm:$0xff] %v12732_v56  ;;  %v801_v50 = vld [vmem:[#allocation2 + $0x90] sm:$0xff]  ;;  %v14756_v56 = vrot.slane %v14668_v31, 3  ;;  %v14772_v62 = vsel %vm14520_vm1, %v758_v42, %v763_v45  ;;  %v1480_v36 = vunpack.i.h.s16 %v14761_v27  ;;  %v829_v42 = vshrl.u32 %v12678_v14, 16 }
  0x3d   : > { %1741 = vst [vmem:[#allocation1 + $0x5] ss:$9 sm:$0xff] %v1655_v8  ;;  %v728_v39 = vld [vmem:[#allocation2 + $0x1f8] sm:$0x11]  ;;  %v1478_v8 = vunpack.i.h.s16 %v14748_v53  ;;  %v14783_v9 = vsel %vm14520_vm1, %v796_v46, %v801_v50  ;;  %2391 = vmatpush.bf16.msra.mxu2 %v14199_v59  ;;  %v14206_v46 = vld [vmem:[%s18798_s1 + $0x58] sm:$0xff]  ;;  %v832_v50 = vshll.u32 %v12678_v14, 16 }
  0x3e   : > { %1743 = vst [vmem:[#allocation1 + $0x6] ss:$9 sm:$0xff] %v14704_v61  ;;  %v729_v43 = vsel %vm14475_vm8, %v721_v15, %v728_v39  ;;  %v1288_v4 = vsel %vm1200_vm4, %v14668_v31, %v14756_v56  ;;  %v14790_v15 = vsel %vm226_vm2, %v1118_v30, %v1174_v55  ;;  %v14796_v28 = vsel %vm226_vm2, %v14668_v31, %v14756_v56  ;;  %v14197_v55 = vld [vmem:[%s18798_s1 + $0x10] sm:$0xff]  ;;  %v263_v14 = vld [vmem:[#allocation2 + $0x38] sm:$0x11] }
  0x3f   : > { %1745 = vst [vmem:[#allocation1 + $0x7] ss:$9 sm:$0xff] %v14717_v51  ;;  %2440 = vmatpush.bf16.msra.mxu3 %v14207_v60  ;;  %v12735_v37 = vpack.i.b16 %v14761_v27, %v1478_v8  ;;  %v1179_v39 = vrot.slane %v14772_v62, 3  ;;  %v18803_v45 = vunpack.i.h.s16 %v14796_v28  ;;  %v14832_v8 = vrot.slane %v14783_v9, 3 }
  0x40   : > { %692 = vst [vmem:[#allocation2 + $0x80] sm:$0x11] %v691_v29  ;;  %v14798_v29 = vrot.slane %v1288_v4, 1  ;;  %v14828_v4 = vrot.slane %v829_v42, 7  ;;  %vm474_vm10 = vcmask 214017   ;;  %vm9904_vm14 = vcmask 216064  }
  0x41   : > { %730 = vst [vmem:[#allocation2 + $0x1f8] sm:$0x11] %v729_v43  ;;  %v766_v43 = vld [vmem:[#allocation2 + $0x40] sm:$0x11]  ;;  %2392 = vmatpush.bf16.msra.mxu2 %v14198_v24  ;;  %v1305_v10 = vsel %vm1200_vm4, %v14772_v62, %v1179_v39  ;;  %v1325_v44 = vsel %vm18907_vm6, %v14783_v9, %v14832_v8  ;;  %vm18904_vm11 = vsmask.f32 1280  ;;  %vm17699_vm3 = vmand %vm9904_vm14, %vm329_vm5 }
  0x42   : > { %765 = vst [vmem:[#allocation2 + $0x68] sm:$0xff] %v14772_v62  ;;  %v767_v60 = vsel %vm14475_vm8, %v759_v33, %v766_v43  ;;  %v260_v33 = vld [vmem:[#allocation2 + $0x28] sm:$0x11]  ;;  %v14852_v43 = vsel %vm226_vm2, %v14772_v62, %v1179_v39  ;;  %v14854_v24 = vrot.slane %v1305_v10, 1  ;;  %vm10339_vm12 = vsmask.f32 1284 }
  0x43   : > { %803 = vst [vmem:[#allocation2 + $0x90] sm:$0xff] %v14783_v9  ;;  %2441 = vmatpush.bf16.msra.mxu3 %v14206_v46  ;;  %v14204_v46 = vld [vmem:[%s18798_s1 + $0x48] sm:$0xff]  ;;  %v1492_v10 = vunpack.i.h.s16 %v14852_v43  ;;  %vm10340_vm15 = vmor %vm227_vm0, %vm10339_vm12 }
  0x44   : > { %259 = vst [vmem:[#allocation2 + $0x108] sm:$0x11] %v258_v63  ;;  %v14205_v63 = vld [vmem:[%s18798_s1 + $0x50] sm:$0xff] }
  0x45   : > { %357 = vst [vmem:[#allocation2 + $0x58] sm:$0x11] %v356_v11  ;;  %v359_v11 = vsel %vm14493_vm13, 0, %v358_v47  ;;  %2393 = vmatpush.bf16.msra.mxu2 %v14197_v55  ;;  %v266_v47 = vld [vmem:[#allocation2 + $0x130] sm:$0x11] }
  0x46   : > { %v1746_v19 = vld [vmem:[#allocation1] sm:$0xff]  ;;  %v1747_v22 = vld [vmem:[#allocation1 + $0x9] sm:$0xff]  ;;  %768 = vst [vmem:[#allocation2 + $0x40] sm:$0x11] %v767_v60  ;;  %v264_v60 = vsel %vm14475_vm8, 0, %v263_v14 }
  0x47   : > { %v1120_v30 = vld [vmem:[#allocation2 + $0x80] sm:$0x11]  ;;  %1749 = vst [vmem:[#allocation1] ss:$9 sm:$0xff] %v14758_v57  ;;  %2442 = vmatpush.bf16.msra.mxu3 %v14205_v63  ;;  %v14203_v14 = vld [vmem:[%s18798_s1 + $0x40] sm:$0xff] }
  0x48   : > { %1979 = vmatmul.bf16.gmra.mxu0 %v1746_v19  ;;  %2028 = vmatmul.bf16.gmra.mxu1 %v1747_v22  ;;  %v1176_v0 = vrot.slane %v1120_v30, 3  ;;  %1751 = vst [vmem:[#allocation1 + $0x1] ss:$9 sm:$0xff] %v14790_v15  ;;  %v1308_v19 = vsel %vm18907_vm6, %v14772_v62, %v1179_v39 }
  0x49   : > { %1753 = vst [vmem:[#allocation1 + $0x2] ss:$9 sm:$0xff] %v12733_v18  ;;  %v14862_v55 = vrot.slane %v1308_v19, 2 }
  0x4a   : > { %v14815_v54 = vsel %vm226_vm2, %v1120_v30, %v1176_v0  ;;  %1755 = vst [vmem:[#allocation1 + $0x3] ss:$9 sm:$0xff] %v12734_v26  ;;  %v834_v26 = vor.u32 %v832_v50, %v14828_v4  ;;  %v1122_v30 = vld [vmem:[#allocation2 + $0x1f8] sm:$0x11]  ;;  %v1291_v50 = vsel %vm18907_vm6, %v14668_v31, %v14756_v56 }
  0x4b   : > { %v1599_v41 = vunpack.i.h.s16 %v14815_v54  ;;  %v12736_v59 = vpack.i.b16 %v14815_v54, %v1480_v36  ;;  %1757 = vst [vmem:[#allocation1 + $0x4] ss:$9 sm:$0xff] %v12735_v37  ;;  %v1311_v36 = vsel %vm18906_vm7, %v14772_v62, %v1179_v39  ;;  %v14196_v37 = vld [vmem:[%s18798_s1 + $0x8] sm:$0xff]  ;;  %v839_v0 = vld [vmem:[#allocation2 + $0x108] sm:$0xff]  ;;  %v1294_v39 = vsel %vm18906_vm7, %v14668_v31, %v14756_v56  ;;  %2443 = vmatpush.bf16.msra.mxu3 %v14204_v46 }
  0x4c   : > { %1763 = vst [vmem:[#allocation1 + $0x7] ss:$9 sm:$0xff] %v14798_v29  ;;  %v804_v22 = vld [vmem:[#allocation2 + $0x58] sm:$0x11]  ;;  %v269_v62 = vld [vmem:[#allocation2 + $0x48] sm:$0x11]  ;;  %2394 = vmatpush.bf16.msra.mxu2 %v14196_v37 }
  0x4d   : > { %v1664_v18 = vpack.i.b16 %v18803_v45, %v1599_v41  ;;  %1759 = vst [vmem:[#allocation1 + $0x5] ss:$9 sm:$0xff] %v12736_v59  ;;  %v805_v42 = vsel %vm14475_vm8, %v797_v58, %v804_v22  ;;  %v261_v58 = vsel %vm14475_vm8, 0, %v260_v33  ;;  %v14869_v41 = vrot.slane %v1311_v36, 3  ;;  %v1124_v36 = vld [vmem:[#allocation2 + $0x40] sm:$0x11] }
  0x4e   : > { %18932 = vst [vmem:[#allocation7_spill] sm:$0xff] %v14854_v24  ;;  %v14873_v59 = vsel %vm14520_vm1, %v834_v26, %v839_v0  ;;  %v1178_v63 = vrot.slane %v1122_v30, 3  ;;  %v267_v31 = vsel %vm14475_vm8, 0, %v266_v47  ;;  %v14884_v56 = vrot.slane %v1291_v50, 2 }
  0x4f   : > { %1761 = vst [vmem:[#allocation1 + $0x6] ss:$9 sm:$0xff] %v1664_v18  ;;  %v1494_v18 = vunpack.i.h.s16 %v14854_v24  ;;  %v270_v19 = vsel %vm14475_vm8, 0, %v269_v62  ;;  %v14892_v22 = vrot.slane %v1294_v39, 3  ;;  %v14897_v26 = vsel %vm226_vm2, %v14783_v9, %v14832_v8  ;;  %2444 = vmatpush.bf16.msra.mxu3 %v14203_v14  ;;  %v361_v39 = vld [vmem:[#allocation2 + $0x1e8] sm:$0x11] }
  0x50   : > { %18933 = vst [vmem:[#allocation8_spill] sm:$0xff] %v14862_v55  ;;  %v1496_v33 = vunpack.i.h.s16 %v14862_v55  ;;  %v1498_v37 = vunpack.i.h.s16 %v14869_v41  ;;  %v1180_v46 = vrot.slane %v1124_v36, 3  ;;  %v14902_v47 = vsel %vm226_vm2, %v1122_v30, %v1178_v63 }
  0x51   : > { %360 = vst [vmem:[#allocation2 + $0x148] sm:$0x11] %v359_v11  ;;  %v14195_v11 = vld [vmem:[%s18798_s1] sm:$0xff]  ;;  %v12737_v50 = vpack.i.b16 %v14854_v24, %v1492_v10  ;;  %v12738_v62 = vpack.i.b16 %v14862_v55, %v1494_v18  ;;  %v835_v63 = vrot.slane %v14828_v4, 4  ;;  %v1183_v10 = vrot.slane %v14873_v59, 3 }
  0x52   : > { %18934 = vst [vmem:[#allocation9_spill] sm:$0xff] %v14869_v41  ;;  %2395 = vmatpush.bf16.msra.mxu2 %v14195_v11  ;;  %v12739_v30 = vpack.i.b16 %v14869_v41, %v1496_v33  ;;  %v364_v11 = vld [vmem:[#allocation2 + $0x1d0] sm:$0x11]  ;;  %v362_v4 = vsel %vm14493_vm13, 0, %v361_v39 }
  0x53   : > { %806 = vst [vmem:[#allocation2 + $0x58] sm:$0x11] %v805_v42  ;;  %v365_v45 = vsel %vm14493_vm13, 0, %v364_v11  ;;  %v367_v39 = vld [vmem:[#allocation2 + $0xf0] sm:$0x11] }
  0x54   : > { %841 = vst [vmem:[#allocation2 + $0x108] sm:$0xff] %v14873_v59  ;;  %v373_v11 = vld [vmem:[#allocation2 + $0x120] sm:$0x11] }
  0x55   : > { %262 = vst [vmem:[#allocation2 + $0x28] sm:$0x11] %v261_v58  ;;  %v18804_v58 = vunpack.i.h.s16 %v14897_v26 }
  0x56   : > { %18935 = vst [vmem:[#allocation10_spill] sm:$0xff] %v14897_v26  ;;  %v1764_v42 = vld [vmem:[#allocation1] sm:$0xff]  ;;  %v1765_v0 = vld [vmem:[#allocation1 + $0x9] sm:$0xff] }
  0x57   : > { %265 = vst [vmem:[#allocation2 + $0x38] sm:$0x11] %v264_v60  ;;  %v12680_v60 = vld [vmem:[%s14463_s8 + $0x90] sm:$0xff] }
  0x58   : > { %268 = vst [vmem:[#allocation2 + $0x130] sm:$0x11] %v267_v31  ;;  %1984 = vmatmul.bf16.gmra.mxu0 %v1764_v42  ;;  %2033 = vmatmul.bf16.gmra.mxu1 %v1765_v0  ;;  %v14910_v31 = vsel %vm226_vm2, %v1124_v36, %v1180_v46  ;;  %v12682_v42 = vld [vmem:[%s14463_s8 + $0xa0] sm:$0xff]  ;;  %v272_v36 = vld [vmem:[#allocation2 + $0xa8] sm:$0x11]  ;;  %v867_v0 = vshrl.u32 %v12680_v60, 16 }
  0x59   : > { %18936 = vst [vmem:[#allocation11_spill] sm:$0xff] %v14902_v47  ;;  %v1601_v18 = vunpack.i.h.s16 %v14910_v31  ;;  %v12740_v14 = vpack.i.b16 %v14910_v31, %v1498_v37  ;;  %v1339_v37 = vsel %vm1200_vm4, %v14873_v59, %v1183_v10 }
  0x5a   : > { %271 = vst [vmem:[#allocation2 + $0x48] sm:$0x11] %v270_v19  ;;  %v842_v19 = vld [vmem:[#allocation2 + $0x148] sm:$0x11] }
  0x5b   : > { %1767 = vst [vmem:[#allocation1] ss:$9 sm:$0xff] %v14884_v56  ;;  %v1673_v33 = vpack.i.b16 %v18804_v58, %v1601_v18  ;;  %v843_v46 = vsel %vm14475_vm8, %v835_v63, %v842_v19  ;;  %v1342_v18 = vsel %vm18907_vm6, %v14873_v59, %v1183_v10  ;;  %v870_v58 = vshll.u32 %v12680_v60, 16  ;;  %v370_v19 = vld [vmem:[#allocation2 + $0xe0] sm:$0x11] }
  0x5c   : > { %18937 = vst [vmem:[#allocation12_spill] sm:$0xff] %v14910_v31  ;;  %v1345_v63 = vsel %vm18906_vm7, %v14873_v59, %v1183_v10  ;;  %v14944_v60 = vsel %vm226_vm2, %v14873_v59, %v1183_v10  ;;  %v14950_v48 = vrot.slane %v1342_v18, 2  ;;  %v908_v31 = vshll.u32 %v12682_v42, 16 }
  0x5d   : > { %1769 = vst [vmem:[#allocation1 + $0x1] ss:$9 sm:$0xff] %v14892_v22  ;;  %v1328_v59 = vsel %vm18906_vm7, %v14783_v9, %v14832_v8  ;;  %v14961_v10 = vrot.slane %v1345_v63, 3 }
  0x5e   : > { %1771 = vst [vmem:[#allocation1 + $0x2] ss:$9 sm:$0xff] %v14902_v47  ;;  %v1514_v63 = vunpack.i.h.s16 %v14950_v48 }
  0x5f   : > { %1773 = vst [vmem:[#allocation1 + $0x3] ss:$9 sm:$0xff] %v12737_v50  ;;  %v905_v50 = vshrl.u32 %v12682_v42, 16  ;;  %v374_v42 = vsel %vm14493_vm13, 0, %v373_v11 }
  0x60   : > { %1775 = vst [vmem:[#allocation1 + $0x4] ss:$9 sm:$0xff] %v12738_v62  ;;  %v273_v62 = vsel %vm14475_vm8, 0, %v272_v36  ;;  %v14946_v36 = vrot.slane %v1339_v37, 1  ;;  %v12684_v37 = vld [vmem:[%s14463_s8 + $0xb0] sm:$0xff] }
  0x61   : > { %1777 = vst [vmem:[#allocation1 + $0x5] ss:$9 sm:$0xff] %v12739_v30  ;;  %v1322_v30 = vsel %vm1200_vm4, %v14783_v9, %v14832_v8  ;;  %v14954_v26 = vrot.slane %v905_v50, 7  ;;  %v1510_v50 = vunpack.i.h.s16 %v14944_v60  ;;  %v877_v8 = vld [vmem:[#allocation2 + $0x28] sm:$0xff] }
  0x62   : > { %1779 = vst [vmem:[#allocation1 + $0x6] ss:$9 sm:$0xff] %v12740_v14  ;;  %v1126_v14 = vld [vmem:[#allocation2 + $0x58] sm:$0x11]  ;;  %v14956_v41 = vrot.slane %v1322_v30, 1  ;;  %v1512_v9 = vunpack.i.h.s16 %v14946_v36  ;;  %v14974_v30 = vrot.slane %v1328_v59, 3 }
  0x63   : > { %1781 = vst [vmem:[#allocation1 + $0x7] ss:$9 sm:$0xff] %v1673_v33  ;;  %v14948_v33 = vrot.slane %v867_v0, 7  ;;  %v371_v0 = vsel %vm14493_vm13, 0, %v370_v19  ;;  %v1182_v18 = vrot.slane %v1126_v14, 3  ;;  %v910_v19 = vor.u32 %v908_v31, %v14954_v26 }
  0x64   : > { %844 = vst [vmem:[#allocation2 + $0x148] sm:$0x11] %v843_v46  ;;  %v368_v46 = vsel %vm14493_vm13, 0, %v367_v39  ;;  %v14970_v39 = vrot.slane %v1325_v44, 2  ;;  %v1516_v44 = vunpack.i.h.s16 %v14961_v10  ;;  %v12741_v59 = vpack.i.b16 %v14946_v36, %v1510_v50 }
  0x65   : > { %18938 = vst [vmem:[#allocation13_spill] sm:$0xff] %v14944_v60  ;;  %v14979_v60 = vld [vmem:[%s14463_s8 + $0xd0] sm:$0xff]  ;;  %v12742_v24 = vpack.i.b16 %v14950_v48, %v1512_v9 }
  0x66   : > { %18939 = vst [vmem:[#allocation14_spill] sm:$0xff] %v14946_v36 }
  0x67   : > { %18940 = vst [vmem:[#allocation15_spill] sm:$0xff] %v14950_v48  ;;  %v946_v48 = vshll.u32 %v12684_v37, 16 }
  0x68   : > { %274 = vst [vmem:[#allocation2 + $0xa8] sm:$0x11] %v273_v62  ;;  %v872_v62 = vor.u32 %v870_v58, %v14948_v33  ;;  %v915_v58 = vld [vmem:[#allocation2 + $0x38] sm:$0xff] }
  0x69   : > { %18941 = vst [vmem:[#allocation16_spill] sm:$0xff] %v14961_v10  ;;  %v916_v50 = vsel %vm14520_vm1, %v910_v19, %v915_v58 }
  0x6a   : > { %363 = vst [vmem:[#allocation2 + $0x1e8] sm:$0x11] %v362_v4  ;;  %v12686_v4 = vld [vmem:[%s14463_s8 + $0xc0] sm:$0xff]  ;;  %v1783_v25 = vld [vmem:[#allocation1 + $0x9] sm:$0xff]  ;;  %v14989_v31 = vsel %vm14520_vm1, %v872_v62, %v877_v8 }
  0x6b   : > { %366 = vst [vmem:[#allocation2 + $0x1d0] sm:$0x11] %v365_v45  ;;  %v943_v45 = vshrl.u32 %v12684_v37, 16  ;;  %v1782_v11 = vld [vmem:[#allocation1] sm:$0xff]  ;;  %v1128_v47 = vld [vmem:[#allocation2 + $0x148] sm:$0x11]  ;;  %2038 = vmatmul.bf16.gmra.mxu1 %v1783_v25 }
  0x6c   : > { %369 = vst [vmem:[#allocation2 + $0xf0] sm:$0x11] %v368_v46  ;;  %v14983_v46 = vsel %vm226_vm2, %v1126_v14, %v1182_v18  ;;  %v1184_v55 = vrot.slane %v1128_v47, 3  ;;  %1989 = vmatmul.bf16.gmra.mxu0 %v1782_v11  ;;  %v12743_v14 = vpack.i.b16 %v14961_v10, %v1514_v63  ;;  %v873_v18 = vrot.slane %v14948_v33, 4 }
  0x6d   : > { %372 = vst [vmem:[#allocation2 + $0xe0] sm:$0x11] %v371_v0  ;;  %v981_v0 = vshrl.u32 %v12686_v4, 16  ;;  %v945_v62 = vrot.slane %v943_v45, 7  ;;  %v1185_v11 = vrot.slane %v14989_v31, 3  ;;  %v911_v63 = vrot.slane %v14954_v26, 4 }
  0x6e   : > { %375 = vst [vmem:[#allocation2 + $0x120] sm:$0x11] %v374_v42  ;;  %v1019_v42 = vshrl.u32 %v14979_v60, 16  ;;  %v15000_v8 = vsel %vm226_vm2, %v1128_v47, %v1184_v55  ;;  %v984_v33 = vshll.u32 %v12686_v4, 16  ;;  %v1187_v45 = vrot.slane %v916_v50, 3  ;;  %v953_v26 = vld [vmem:[#allocation2 + $0x130] sm:$0xff] }
  0x6f   : > { %18942 = vst [vmem:[#allocation17_spill] sm:$0xff] %v14983_v46  ;;  %v12744_v25 = vpack.i.b16 %v15000_v8, %v1516_v44  ;;  %v983_v10 = vrot.slane %v981_v0, 7  ;;  %v949_v47 = vrot.slane %v945_v62, 4  ;;  %v948_v37 = vor.u32 %v946_v48, %v945_v62 }
  0x70   : > { %1785 = vst [vmem:[#allocation1] ss:$9 sm:$0xff] %v14956_v41  ;;  %v1021_v19 = vrot.slane %v1019_v42, 7  ;;  %v15011_v44 = vsel %vm226_vm2, %v14989_v31, %v1185_v11  ;;  %v1373_v48 = vsel %vm1200_vm4, %v916_v50, %v1187_v45 }
  0x71   : > { %1787 = vst [vmem:[#allocation1 + $0x1] ss:$9 sm:$0xff] %v14970_v39  ;;  %v880_v9 = vld [vmem:[#allocation2 + $0x1e8] sm:$0x11]  ;;  %v987_v4 = vrot.slane %v983_v10, 4  ;;  %v18821_v62 = vunpack.i.h.s16 %v15011_v44 }
  0x72   : > { %1789 = vst [vmem:[#allocation1 + $0x2] ss:$9 sm:$0xff] %v14974_v30  ;;  %v918_v36 = vld [vmem:[#allocation2 + $0x1d0] sm:$0x11]  ;;  %v881_v55 = vsel %vm14475_vm8, %v873_v18, %v880_v9  ;;  %v1025_v42 = vrot.slane %v1021_v19, 4  ;;  %v1376_v18 = vsel %vm18907_vm6, %v916_v50, %v1187_v45  ;;  %v1603_v9 = vunpack.i.h.s16 %v15000_v8 }
  0x73   : > { %18943 = vst [vmem:[#allocation18_spill] sm:$0xff] %v15000_v8  ;;  %v956_v58 = vld [vmem:[#allocation2 + $0xf0] sm:$0x11] }
  0x74   : > { %1791 = vst [vmem:[#allocation1 + $0x3] ss:$9 sm:$0xff] %v14983_v46  ;;  %v1022_v46 = vshll.u32 %v14979_v60, 16  ;;  %v994_v0 = vld [vmem:[#allocation2 + $0xe0] sm:$0x11]  ;;  %v957_v60 = vsel %vm14475_vm8, %v949_v47, %v956_v58  ;;  %v15032_v47 = vsel %vm226_vm2, %v916_v50, %v1187_v45  ;;  %v15034_v58 = vrot.slane %v1373_v48, 1 }
  0x75   : > { %1793 = vst [vmem:[#allocation1 + $0x4] ss:$9 sm:$0xff] %v12741_v59  ;;  %v986_v59 = vor.u32 %v984_v33, %v983_v10  ;;  %v1029_v33 = vld [vmem:[#allocation2 + $0xa8] sm:$0xff] }
  0x76   : > { %1795 = vst [vmem:[#allocation1 + $0x5] ss:$9 sm:$0xff] %v12742_v24  ;;  %v919_v24 = vsel %vm14475_vm8, %v911_v63, %v918_v36  ;;  %v15024_v36 = vsel %vm14520_vm1, %v948_v37, %v953_v26  ;;  %v1024_v10 = vor.u32 %v1022_v46, %v1021_v19  ;;  %v995_v63 = vsel %vm14475_vm8, %v987_v4, %v994_v0 }
  0x77   : > { %1797 = vst [vmem:[#allocation1 + $0x6] ss:$9 sm:$0xff] %v12743_v14  ;;  %v991_v14 = vld [vmem:[#allocation2 + $0x48] sm:$0xff]  ;;  %v1359_v46 = vsel %vm18907_vm6, %v14989_v31, %v1185_v11  ;;  %v15042_v19 = vrot.slane %v1376_v18, 2  ;;  %v1362_v26 = vsel %vm18906_vm7, %v14989_v31, %v1185_v11  ;;  %v1379_v4 = vsel %vm18906_vm7, %v916_v50, %v1187_v45 }
  0x78   : > { %1799 = vst [vmem:[#allocation1 + $0x7] ss:$9 sm:$0xff] %v12744_v25  ;;  %v1032_v25 = vld [vmem:[#allocation2 + $0x120] sm:$0x11]  ;;  %v15038_v37 = vsel %vm14520_vm1, %v986_v59, %v991_v14  ;;  %v1682_v0 = vpack.i.b16 %v18821_v62, %v1603_v9  ;;  %v1528_v18 = vunpack.i.h.s16 %v15032_v47  ;;  %v15063_v45 = vrot.slane %v1362_v26, 3 }
  0x79   : > { %18944 = vst [vmem:[#allocation19_spill] sm:$0xff] %v15011_v44  ;;  %v15065_v9 = vrot.slane %v1379_v4, 3  ;;  %v1191_v26 = vrot.slane %v15038_v37, 3 }
  0x7a   : > { %879 = vst [vmem:[#allocation2 + $0x28] sm:$0xff] %v14989_v31 }
  0x7b   : > { %882 = vst [vmem:[#allocation2 + $0x1e8] sm:$0x11] %v881_v55  ;;  %v1356_v55 = vsel %vm1200_vm4, %v14989_v31, %v1185_v11  ;;  %v15060_v31 = vrot.slane %v1359_v46, 2  ;;  %v12745_v46 = vpack.i.b16 %v15034_v58, %v1528_v18  ;;  %v1534_v18 = vunpack.i.h.s16 %v15065_v9 }
  0x7c   : > { %917 = vst [vmem:[#allocation2 + $0x38] sm:$0xff] %v916_v50  ;;  %v15056_v14 = vrot.slane %v1356_v55, 1  ;;  %v1530_v50 = vunpack.i.h.s16 %v15034_v58 }
  0x7d   : > { %920 = vst [vmem:[#allocation2 + $0x1d0] sm:$0x11] %v919_v24  ;;  %v1033_v24 = vsel %vm14475_vm8, %v1025_v42, %v1032_v25 }
  0x7e   : > { %955 = vst [vmem:[#allocation2 + $0x130] sm:$0xff] %v15024_v36 }
  0x7f   : > { %18945 = vst [vmem:[#allocation20_spill] sm:$0xff] %v15032_v47  ;;  %v1800_v59 = vld [vmem:[#allocation1] sm:$0xff]  ;;  %v1801_v48 = vld [vmem:[#allocation1 + $0x9] sm:$0xff] }
  0x80   : > { %18946 = vst [vmem:[#allocation21_spill] sm:$0xff] %v15034_v58  ;;  %1994 = vmatmul.bf16.gmra.mxu0 %v1800_v59  ;;  %2043 = vmatmul.bf16.gmra.mxu1 %v1801_v48  ;;  %v1407_v48 = vsel %vm1200_vm4, %v15038_v37, %v1191_v26 }
  0x81   : > { %958 = vst [vmem:[#allocation2 + $0xf0] sm:$0x11] %v957_v60  ;;  %v15054_v60 = vsel %vm14520_vm1, %v1024_v10, %v1029_v33  ;;  %v1532_v10 = vunpack.i.h.s16 %v15042_v19  ;;  %v1189_v33 = vrot.slane %v15024_v36, 3 }
  0x82   : > { %18947 = vst [vmem:[#allocation22_spill] sm:$0xff] %v15042_v19  ;;  %v1130_v42 = vld [vmem:[#allocation2 + $0x1e8] sm:$0x11] }
  0x83   : > { %993 = vst [vmem:[#allocation2 + $0x48] sm:$0xff] %v15038_v37  ;;  %v1186_v11 = vrot.slane %v1130_v42, 3  ;;  %v12747_v4 = vpack.i.b16 %v15065_v9, %v1532_v10  ;;  %v15085_v59 = vsel %vm226_vm2, %v15024_v36, %v1189_v33  ;;  %v1390_v10 = vsel %vm1200_vm4, %v15024_v36, %v1189_v33 }
  0x84   : > { %996 = vst [vmem:[#allocation2 + $0xe0] sm:$0x11] %v995_v63  ;;  %v1132_v25 = vld [vmem:[#allocation2 + $0x1d0] sm:$0x11]  ;;  %v1396_v62 = vsel %vm18906_vm7, %v15024_v36, %v1189_v33 }
  0x85   : > { %1031 = vst [vmem:[#allocation2 + $0xa8] sm:$0xff] %v15054_v60  ;;  %v1188_v63 = vrot.slane %v1132_v25, 3  ;;  %v15070_v55 = vsel %vm226_vm2, %v1130_v42, %v1186_v11  ;;  %v18833_v42 = vunpack.i.h.s16 %v15085_v59 }
  0x86   : > { %1034 = vst [vmem:[#allocation2 + $0x120] sm:$0x11] %v1033_v24  ;;  %v12746_v24 = vpack.i.b16 %v15042_v19, %v1530_v50  ;;  %v15109_v19 = vrot.slane %v1390_v10, 1 }
  0x87   : > { %18948 = vst [vmem:[#allocation23_spill] sm:$0xff] %v15063_v45 }
  0x88   : > { %18949 = vst [vmem:[#allocation24_spill] sm:$0xff] %v15065_v9  ;;  %v1134_v11 = vld [vmem:[#allocation2 + $0xf0] sm:$0x11] }
  0x89   : > { %1803 = vst [vmem:[#allocation1] ss:$9 sm:$0xff] %v1682_v0  ;;  %v15081_v0 = vsel %vm226_vm2, %v1132_v25, %v1188_v63  ;;  %v15096_v25 = vsel %vm226_vm2, %v15038_v37, %v1191_v26  ;;  %v15098_v63 = vrot.slane %v1407_v48, 1 }
  0x8a   : > { %18950 = vst [vmem:[#allocation25_spill] sm:$0xff] %v15070_v55  ;;  %v1605_v50 = vunpack.i.h.s16 %v15081_v0  ;;  %v1546_v48 = vunpack.i.h.s16 %v15096_v25 }
  0x8b   : > { %1805 = vst [vmem:[#allocation1 + $0x1] ss:$9 sm:$0xff] %v15056_v14  ;;  %v1136_v58 = vld [vmem:[#allocation2 + $0xe0] sm:$0x11]  ;;  %v1548_v8 = vunpack.i.h.s16 %v15098_v63 }
  0x8c   : > { %1807 = vst [vmem:[#allocation1 + $0x2] ss:$9 sm:$0xff] %v15060_v31  ;;  %v1691_v9 = vpack.i.b16 %v18833_v42, %v1605_v50  ;;  %v1193_v50 = vrot.slane %v15054_v60, 3 }
  0x8d   : > { %1809 = vst [vmem:[#allocation1 + $0x3] ss:$9 sm:$0xff] %v15063_v45 }
  0x8e   : > { %1811 = vst [vmem:[#allocation1 + $0x4] ss:$9 sm:$0xff] %v15070_v55  ;;  %v1190_v55 = vrot.slane %v1134_v11, 3 }
  0x8f   : > { %18951 = vst [vmem:[#allocation26_spill] sm:$0xff] %v15081_v0 }
  0x90   : > { %1813 = vst [vmem:[#allocation1 + $0x5] ss:$9 sm:$0xff] %v12745_v46  ;;  %v1393_v46 = vsel %vm18907_vm6, %v15024_v36, %v1189_v33  ;;  %v1413_v36 = vsel %vm18906_vm7, %v15038_v37, %v1191_v26  ;;  %v1192_v33 = vrot.slane %v1136_v58, 3  ;;  %v15123_v10 = vsel %vm226_vm2, %v1134_v11, %v1190_v55  ;;  %v1138_v11 = vld [vmem:[#allocation2 + $0x120] sm:$0x11] }
  0x91   : > { %1815 = vst [vmem:[#allocation1 + $0x6] ss:$9 sm:$0xff] %v12746_v24  ;;  %v1410_v24 = vsel %vm18907_vm6, %v15038_v37, %v1191_v26  ;;  %v15112_v47 = vrot.slane %v1393_v46, 2  ;;  %v12749_v46 = vpack.i.b16 %v15098_v63, %v1546_v48  ;;  %v1427_v48 = vsel %vm18907_vm6, %v15054_v60, %v1193_v50 }
  0x92   : > { %1817 = vst [vmem:[#allocation1 + $0x7] ss:$9 sm:$0xff] %v12747_v4  ;;  %v12748_v4 = vpack.i.b16 %v15081_v0, %v1534_v18  ;;  %v15114_v44 = vrot.slane %v1410_v24, 2  ;;  %v15117_v0 = vrot.slane %v1396_v62, 3  ;;  %v15129_v24 = vrot.slane %v1413_v36, 3 }
  0x93   : > { %18952 = vst [vmem:[#allocation27_spill] sm:$0xff] %v15098_v63  ;;  %v15134_v37 = vsel %vm226_vm2, %v1136_v58, %v1192_v33  ;;  %v1430_v36 = vsel %vm18906_vm7, %v15054_v60, %v1193_v50  ;;  %v15156_v63 = vrot.slane %v1427_v48, 2  ;;  %v1451_v48 = vunpack.i.h.s16 %v14576_v17 }
  0x94   : > { %18953 = vst [vmem:[#allocation28_spill] sm:$0xff] %v15114_v44  ;;  %v12750_v62 = vpack.i.b16 %v15114_v44, %v1548_v8  ;;  %v1552_v8 = vunpack.i.h.s16 %v15129_v24  ;;  %v1607_v26 = vunpack.i.h.s16 %v15134_v37 }
  0x99   : > { %v1818_v45 = vld [vmem:[#allocation1] sm:$0xff]  ;;  %v1819_v18 = vld [vmem:[#allocation1 + $0x9] sm:$0xff] }
  0x9a   : > { %1821 = vst [vmem:[#allocation1] ss:$9 sm:$0xff] %v12748_v4  ;;  %1999 = vmatmul.bf16.gmra.mxu0 %v1818_v45  ;;  %2048 = vmatmul.bf16.gmra.mxu1 %v1819_v18  ;;  %v15138_v45 = vsel %vm226_vm2, %v15054_v60, %v1193_v50  ;;  %v1424_v4 = vsel %vm1200_vm4, %v15054_v60, %v1193_v50  ;;  %v14234_v60 = vld [vmem:[%s18798_s1 + $0x138] sm:$0xff]  ;;  %v15167_v50 = vrot.slane %v1430_v36, 3 }
  0x9b   : > { %1823 = vst [vmem:[#allocation1 + $0x1] ss:$9 sm:$0xff] %v1691_v9  ;;  %v1550_v9 = vunpack.i.h.s16 %v15114_v44  ;;  %v1555_v55 = vunpack.i.h.s16 %v15138_v45  ;;  %v12752_v18 = vpack.i.b16 %v15134_v37, %v1552_v8  ;;  %v14258_v8 = vld [vmem:[%s18798_s1 + $0x1f8] sm:$0xff]  ;;  %3291 = vmatpush.bf16.msrb.mxu0 %v14234_v60  ;;  %v14248_v60 = vld [vmem:[%s18798_s1 + $0x1a8] sm:$0xff] }
  0x9c   : > { %1825 = vst [vmem:[#allocation1 + $0x2] ss:$9 sm:$0xff] %v15109_v19  ;;  %4259 = vmatpush.bf16.msrb.mxu3 %v14258_v8  ;;  %v12822_v8 = vpack.i.b16 %v14655_v23, %v14688_v49 }
  0x9d   : > { %1827 = vst [vmem:[#allocation1 + $0x3] ss:$9 sm:$0xff] %v15112_v47  ;;  %v12751_v58 = vpack.i.b16 %v15129_v24, %v1550_v9  ;;  %v1700_v33 = vpack.i.b16 %v1555_v55, %v1607_v26  ;;  %v14250_v9 = vld [vmem:[%s18798_s1 + $0x1b8] sm:$0xff] }
  0x9e   : > { %1829 = vst [vmem:[#allocation1 + $0x4] ss:$9 sm:$0xff] %v15117_v0  ;;  %v14242_v26 = vld [vmem:[%s18798_s1 + $0x178] sm:$0xff]  ;;  %4210 = vmatpush.bf16.msrb.mxu2 %v14250_v9  ;;  %v1467_v9 = vunpack.i.h.s16 %v14704_v61 }
  0x9f   : > { %1831 = vst [vmem:[#allocation1 + $0x5] ss:$9 sm:$0xff] %v15123_v10  ;;  %3340 = vmatpush.bf16.msrb.mxu1 %v14242_v26  ;;  %v14232_v26 = vld [vmem:[%s18798_s1 + $0x128] sm:$0xff] }
  0xa0   : > { %1833 = vst [vmem:[#allocation1 + $0x6] ss:$9 sm:$0xff] %v12749_v46  ;;  %v1194_v46 = vrot.slane %v1138_v11, 3  ;;  %v12824_v49 = vpack.i.b16 %v14717_v51, %v1467_v9  ;;  %v18959_v9 = vld [vmem:[#allocation11_spill] sm:$0xff] }
  0xa1   : > { %1835 = vst [vmem:[#allocation1 + $0x7] ss:$9 sm:$0xff] %v12750_v62  ;;  %v15154_v62 = vrot.slane %v1424_v4, 1 }
  0xa2   : > { %v15173_v4 = vsel %vm226_vm2, %v1138_v11, %v1194_v46  ;;  %v12817_v11 = vpack.i.b16 %v14602_v35, %v14617_v52  ;;  %v14257_v46 = vld [vmem:[%s18798_s1 + $0x1f0] sm:$0xff] }
  0xa3   : > { %v14233_v52 = vld [vmem:[%s18798_s1 + $0x130] sm:$0xff]  ;;  %4260 = vmatpush.bf16.msrb.mxu3 %v14257_v46  ;;  %v14227_v46 = vld [vmem:[%s18798_s1 + $0x100] sm:$0xff] }
  0xa4   : > { %3292 = vmatpush.bf16.msrb.mxu0 %v14233_v52  ;;  %v14235_v52 = vld [vmem:[%s18798_s1 + $0x140] sm:$0xff] }
  0xa8   : > { %v1836_v42 = vld [vmem:[#allocation1] sm:$0xff]  ;;  %v1837_v44 = vld [vmem:[#allocation1 + $0x9] sm:$0xff]  ;;  %3293 = vmatpush.bf16.msrb.mxu0 %v14232_v26 }
  0xa9   : > { %1839 = vst [vmem:[#allocation1] ss:$9 sm:$0xff] %v12751_v58  ;;  %v1449_v58 = vunpack.i.h.s16 %v14574_v16 }
  0xaa   : > { %1841 = vst [vmem:[#allocation1 + $0x1] ss:$9 sm:$0xff] %v12752_v18  ;;  %2004 = vmatmul.bf16.gmra.mxu0 %v1836_v42  ;;  %2053 = vmatmul.bf16.gmra.mxu1 %v1837_v44  ;;  %v14249_v44 = vld [vmem:[%s18798_s1 + $0x1b0] sm:$0xff] }
  0xab   : > { %1843 = vst [vmem:[#allocation1 + $0x2] ss:$9 sm:$0xff] %v1700_v33  ;;  %v18954_v33 = vunpack.i.h.s16 %v14602_v35  ;;  %4211 = vmatpush.bf16.msrb.mxu2 %v14249_v44  ;;  %v1487_v44 = vunpack.i.h.s16 %v14884_v56 }
  0xac   : > { %1845 = vst [vmem:[#allocation1 + $0x3] ss:$9 sm:$0xff] %v15154_v62 }
  0xad   : > { %1847 = vst [vmem:[#allocation1 + $0x4] ss:$9 sm:$0xff] %v15156_v63  ;;  %v12818_v42 = vpack.i.b16 %v14574_v16, %v18954_v33  ;;  %v12820_v16 = vpack.i.b16 %v14595_v32, %v1451_v48 }
  0xae   : > { %1849 = vst [vmem:[#allocation1 + $0x5] ss:$9 sm:$0xff] %v15167_v50 }
  0xaf   : > { %1851 = vst [vmem:[#allocation1 + $0x6] ss:$9 sm:$0xff] %v15173_v4  ;;  %4212 = vmatpush.bf16.msrb.mxu2 %v14248_v60  ;;  %v18960_v60 = vld [vmem:[#allocation9_spill] sm:$0xff] }
  0xb6   : > { %v1852_v18 = vld [vmem:[#allocation1] sm:$0xff]  ;;  %v1853_v36 = vld [vmem:[#allocation1 + $0x9] sm:$0xff] }
  0xb7   : > { %2128 = vst [vmem:[#allocation1] ss:$9 sm:$0xff] %v14554_v1  ;;  %v12819_v1 = vpack.i.b16 %v14576_v17, %v1449_v58 }
  0xb8   : > { %2131 = vst [vmem:[#allocation1 + $0x1] ss:$9 sm:$0xff] %v14561_v5  ;;  %v14241_v5 = vld [vmem:[%s18798_s1 + $0x170] sm:$0xff] }
  0xb9   : > { %2134 = vst [vmem:[#allocation1 + $0x2] ss:$9 sm:$0xff] %v14563_v6  ;;  %3341 = vmatpush.bf16.msrb.mxu1 %v14241_v5  ;;  %v1453_v6 = vunpack.i.h.s16 %v14595_v32  ;;  %v14256_v32 = vld [vmem:[%s18798_s1 + $0x1e8] sm:$0xff] }
  0xba   : > { %2137 = vst [vmem:[#allocation1 + $0x3] ss:$9 sm:$0xff] %v14583_v21  ;;  %2009 = vmatmul.bf16.gmra.mxu0 %v1852_v18  ;;  %2058 = vmatmul.bf16.gmra.mxu1 %v1853_v36 }
  0xbb   : > { %2140 = vst [vmem:[#allocation1 + $0x4] ss:$9 sm:$0xff] %v12817_v11  ;;  %v12821_v21 = vpack.i.b16 %v14677_v38, %v1453_v6  ;;  %v14240_v38 = vld [vmem:[%s18798_s1 + $0x168] sm:$0xff]  ;;  %4261 = vmatpush.bf16.msrb.mxu3 %v14256_v32  ;;  %v14247_v11 = vld [vmem:[%s18798_s1 + $0x1a0] sm:$0xff]  ;;  %v18957_v6 = vld [vmem:[#allocation7_spill] sm:$0xff] }
  0xbc   : > { %2143 = vst [vmem:[#allocation1 + $0x5] ss:$9 sm:$0xff] %v12818_v42  ;;  %4213 = vmatpush.bf16.msrb.mxu2 %v14247_v11  ;;  %v1485_v42 = vunpack.i.h.s16 %v14798_v29  ;;  %v18961_v32 = vld [vmem:[#allocation12_spill] sm:$0xff] }
  0xbd   : > { %2146 = vst [vmem:[#allocation1 + $0x6] ss:$9 sm:$0xff] %v12819_v1  ;;  %3342 = vmatpush.bf16.msrb.mxu1 %v14240_v38  ;;  %v1489_v1 = vunpack.i.h.s16 %v14892_v22  ;;  %v382_v38 = vld [vmem:[#allocation2 + $0x170] sm:$0x11] }
  0xbe   : > { %2149 = vst [vmem:[#allocation1 + $0x7] ss:$9 sm:$0xff] %v12820_v16  ;;  %v12665_v11 = vld [vmem:[%s14463_s8 + $0x18] sm:$0xff] }
  0xc5   : > { %v2150_v17 = vld [vmem:[#allocation1] sm:$0xff]  ;;  %v2151_v35 = vld [vmem:[#allocation1 + $0x9] sm:$0xff] }
  0xc6   : > { %2396 = vmatmul.bf16.vlgmr.msra.gmra.mxu2 %v2150_v17  ;;  %2445 = vmatmul.bf16.vlgmr.msra.gmra.mxu3 %v2151_v35  ;;  %2155 = vst [vmem:[#allocation1 + $0x1] ss:$9 sm:$0xff] %v14637_v2  ;;  %v18955_v2 = vunpack.i.h.s16 %v14655_v23  ;;  %v14239_v23 = vld [vmem:[%s18798_s1 + $0x160] sm:$0xff]  ;;  %v12830_v17 = vpack.i.b16 %v14892_v22, %v1487_v44  ;;  %v18958_v35 = vld [vmem:[#allocation8_spill] sm:$0xff]  ;;  %v1559_v22 = vunpack.i.h.s16 %v15156_v63  ;;  %v585_v44 = vshll.u32 %v12665_v11, 16 }
  0xc7   : > { %2157 = vst [vmem:[#allocation1 + $0x2] ss:$9 sm:$0xff] %v14639_v3  ;;  %3343 = vmatpush.bf16.msrb.mxu1 %v14239_v23  ;;  %v12663_v23 = vld [vmem:[%s14463_s8 + $0x8] sm:$0xff] }
  0xc8   : > { %2159 = vst [vmem:[#allocation1 + $0x3] ss:$9 sm:$0xff] %v14642_v7  ;;  %v12823_v3 = vpack.i.b16 %v14704_v61, %v18955_v2  ;;  %v14231_v7 = vld [vmem:[%s18798_s1 + $0x120] sm:$0xff]  ;;  %v1471_v61 = vunpack.i.h.s16 %v14758_v57  ;;  %v1557_v2 = vunpack.i.h.s16 %v15154_v62 }
  0xc9   : > { %2161 = vst [vmem:[#allocation1 + $0x4] ss:$9 sm:$0xff] %v14648_v13  ;;  %3294 = vmatpush.bf16.msrb.mxu0 %v14231_v7  ;;  %v1469_v13 = vunpack.i.h.s16 %v14717_v51  ;;  %v14255_v51 = vld [vmem:[%s18798_s1 + $0x1e0] sm:$0xff] }
  0xca   : > { %2153 = vst [vmem:[#allocation1] ss:$9 sm:$0xff] %v12821_v21  ;;  %v12826_v36 = vpack.i.b16 %v14790_v15, %v1471_v61  ;;  %v18956_v15 = vunpack.i.h.s16 %v14796_v28  ;;  %4262 = vmatpush.bf16.msrb.mxu3 %v14255_v51  ;;  %v12831_v21 = vpack.i.b16 %v18959_v9, %v1489_v1  ;;  %v383_v61 = vsel %vm14493_vm13, 0, %v382_v38  ;;  %v18973_v38 = vld [vmem:[#allocation20_spill] sm:$0xff] }
  0xcb   : > { %2163 = vst [vmem:[#allocation1 + $0x5] ss:$9 sm:$0xff] %v12822_v8  ;;  %v12825_v18 = vpack.i.b16 %v14758_v57, %v1469_v13  ;;  %v12827_v57 = vpack.i.b16 %v14796_v28, %v14815_v54  ;;  %v14237_v54 = vld [vmem:[%s18798_s1 + $0x150] sm:$0xff]  ;;  %v14236_v28 = vld [vmem:[%s18798_s1 + $0x148] sm:$0xff]  ;;  %v1503_v51 = vunpack.i.h.s16 %v14956_v41 }
  0xcc   : > { %2165 = vst [vmem:[#allocation1 + $0x6] ss:$9 sm:$0xff] %v12823_v3  ;;  %v12828_v33 = vpack.i.b16 %v14798_v29, %v18956_v15  ;;  %v12829_v29 = vpack.i.b16 %v14884_v56, %v1485_v42  ;;  %v281_v8 = vld [vmem:[#allocation2 + $0x1c0] sm:$0x11]  ;;  %v284_v56 = vld [vmem:[#allocation2 + $0x118] sm:$0x11]  ;;  %v1561_v3 = vunpack.i.h.s16 %v15167_v50 }
  0xcd   : > { %2167 = vst [vmem:[#allocation1 + $0x7] ss:$9 sm:$0xff] %v12824_v49  ;;  %v282_v49 = vsel %vm14475_vm8, 0, %v281_v8  ;;  %v285_v7 = vsel %vm14475_vm8, 0, %v284_v56  ;;  %v1521_v8 = vunpack.i.h.s16 %v15056_v14 }
  0xce   : > { %283 = vst [vmem:[#allocation2 + $0x1c0] sm:$0x11] %v282_v49 }
  0xcf   : > { %286 = vst [vmem:[#allocation2 + $0x118] sm:$0x11] %v285_v7 }
  0xd0   : > { %384 = vst [vmem:[#allocation2 + $0x170] sm:$0x11] %v383_v61  ;;  %v12839_v61 = vpack.i.b16 %v15060_v31, %v1521_v8 }
  0xd4   : > { %v2168_v58 = vld [vmem:[#allocation1] sm:$0xff]  ;;  %v2169_v48 = vld [vmem:[#allocation1 + $0x9] sm:$0xff] }
  0xd5   : > { %2175 = vst [vmem:[#allocation1 + $0x2] ss:$9 sm:$0xff] %v14738_v34  ;;  %v14230_v34 = vld [vmem:[%s18798_s1 + $0x118] sm:$0xff] }
  0xd6   : > { %2401 = vmatmul.bf16.gmra.mxu2 %v2168_v58  ;;  %2450 = vmatmul.bf16.gmra.mxu3 %v2169_v48  ;;  %2177 = vst [vmem:[#allocation1 + $0x3] ss:$9 sm:$0xff] %v14720_v20  ;;  %v14238_v20 = vld [vmem:[%s18798_s1 + $0x158] sm:$0xff]  ;;  %v15301_v58 = vpack.i.b16 %v15156_v63, %v1557_v2  ;;  %v15304_v48 = vpack.i.b16 %v15167_v50, %v1559_v22  ;;  %v547_v50 = vshll.u32 %v12663_v23, 16  ;;  %v592_v9 = vld [vmem:[#allocation2 + $0x118] sm:$0xff]  ;;  %v18971_v2 = vld [vmem:[#allocation18_spill] sm:$0xff] }
  0xd7   : > { %2179 = vst [vmem:[#allocation1 + $0x4] ss:$9 sm:$0xff] %v14748_v53  ;;  %3295 = vmatpush.bf16.msrb.mxu0 %v14230_v34  ;;  %3344 = vmatpush.bf16.msrb.mxu1 %v14238_v20  ;;  %v14229_v53 = vld [vmem:[%s18798_s1 + $0x110] sm:$0xff]  ;;  %v582_v34 = vshrl.u32 %v12665_v11, 16 }
  0xd8   : > { %2181 = vst [vmem:[#allocation1 + $0x5] ss:$9 sm:$0xff] %v14761_v27  ;;  %v14228_v27 = vld [vmem:[%s18798_s1 + $0x108] sm:$0xff]  ;;  %v18972_v22 = vld [vmem:[#allocation19_spill] sm:$0xff] }
  0xd9   : > { %2171 = vst [vmem:[#allocation1] ss:$9 sm:$0xff] %v12825_v18  ;;  %v15307_v18 = vpack.i.b16 %v15173_v4, %v1561_v3  ;;  %v15319_v42 = vrot.slane %v582_v34, 7  ;;  %v12837_v3 = vpack.i.b16 %v18972_v22, %v18971_v2  ;;  %v18974_v49 = vunpack.i.h.s16 %v18972_v22  ;;  %v18981_v22 = vld [vmem:[#allocation27_spill] sm:$0xff] }
  0xda   : > { %2173 = vst [vmem:[#allocation1 + $0x1] ss:$9 sm:$0xff] %v12826_v36  ;;  %v544_v36 = vshrl.u32 %v12663_v23, 16  ;;  %v18975_v23 = vld [vmem:[#allocation21_spill] sm:$0xff] }
  0xdb   : > { %2183 = vst [vmem:[#allocation1 + $0x6] ss:$9 sm:$0xff] %v12827_v57  ;;  %3296 = vmatpush.bf16.msrb.mxu0 %v14229_v53  ;;  %3345 = vmatpush.bf16.msrb.mxu1 %v14237_v54  ;;  %v1505_v57 = vunpack.i.h.s16 %v14970_v39  ;;  %v18964_v53 = vld [vmem:[#allocation13_spill] sm:$0xff]  ;;  %v12838_v7 = vpack.i.b16 %v15056_v14, %v18974_v49  ;;  %v588_v8 = vrot.slane %v15319_v42, 4 }
  0xdc   : > { %2185 = vst [vmem:[#allocation1 + $0x7] ss:$9 sm:$0xff] %v12828_v33  ;;  %v546_v20 = vrot.slane %v544_v36, 7  ;;  %v1507_v33 = vunpack.i.h.s16 %v14974_v30  ;;  %v18976_v36 = vld [vmem:[#allocation22_spill] sm:$0xff] }
  0xde   : > { %v550_v1 = vrot.slane %v546_v20, 4 }
  0xdf   : > { %3297 = vmatpush.bf16.msrb.mxu0 %v14228_v27  ;;  %3346 = vmatpush.bf16.msrb.mxu1 %v14236_v28  ;;  %v18966_v27 = vld [vmem:[#allocation14_spill] sm:$0xff]  ;;  %v12834_v28 = vpack.i.b16 %v14970_v39, %v1503_v51  ;;  %v587_v39 = vor.u32 %v585_v44, %v15319_v42  ;;  %v18977_v51 = vld [vmem:[#allocation25_spill] sm:$0xff] }
  0xe3   : > { %v2186_v5 = vld [vmem:[#allocation1] sm:$0xff]  ;;  %v2187_v16 = vld [vmem:[#allocation1 + $0x9] sm:$0xff]  ;;  %3298 = vmatpush.bf16.msrb.mxu0 %v14227_v46  ;;  %3347 = vmatpush.bf16.msrb.mxu1 %v14235_v52  ;;  %v12835_v52 = vpack.i.b16 %v14974_v30, %v1505_v57  ;;  %v385_v57 = vld [vmem:[#allocation2 + $0x110] sm:$0x11] }
  0xe4   : > { %2195 = vst [vmem:[#allocation1 + $0x3] ss:$9 sm:$0xff] %v14852_v43  ;;  %v18962_v43 = vld [vmem:[#allocation10_spill] sm:$0xff]  ;;  %v18967_v46 = vld [vmem:[#allocation15_spill] sm:$0xff]  ;;  %v386_v14 = vsel %vm14493_vm13, 0, %v385_v57 }
  0xe5   : > { %2197 = vst [vmem:[#allocation1 + $0x4] ss:$9 sm:$0xff] %v18957_v6  ;;  %v12832_v26 = vpack.i.b16 %v18962_v43, %v18961_v32  ;;  %v18965_v4 = vunpack.i.h.s16 %v18962_v43  ;;  %v549_v6 = vor.u32 %v547_v50, %v546_v20  ;;  %v388_v20 = vld [vmem:[#allocation2 + $0x150] sm:$0x11] }
  0xe6   : > { %2406 = vmatmul.bf16.gmra.mxu2 %v2186_v5  ;;  %2455 = vmatmul.bf16.gmra.mxu3 %v2187_v16  ;;  %2199 = vst [vmem:[#allocation1 + $0x5] ss:$9 sm:$0xff] %v18958_v35  ;;  %v18968_v5 = vld [vmem:[#allocation16_spill] sm:$0xff]  ;;  %v18969_v16 = vld [vmem:[#allocation17_spill] sm:$0xff] }
  0xe7   : > { %2201 = vst [vmem:[#allocation1 + $0x6] ss:$9 sm:$0xff] %v18960_v60  ;;  %v12833_v54 = vpack.i.b16 %v14956_v41, %v18965_v4  ;;  %v557_v41 = vld [vmem:[#allocation2 + $0x170] sm:$0x11]  ;;  %v1523_v60 = vunpack.i.h.s16 %v15060_v31  ;;  %v389_v31 = vsel %vm14493_vm13, 0, %v388_v20  ;;  %v1543_v4 = vunpack.i.h.s16 %v15117_v0 }
  0xe8   : > { %2189 = vst [vmem:[#allocation1] ss:$9 sm:$0xff] %v12829_v29  ;;  %v12836_v29 = vpack.i.b16 %v18969_v16, %v1507_v33  ;;  %v558_v35 = vsel %vm14475_vm8, %v550_v1, %v557_v41  ;;  %v1539_v33 = vunpack.i.h.s16 %v15109_v19  ;;  %v12669_v50 = vld [vmem:[%s14463_s8 + $0x38] sm:$0xff]  ;;  %v18979_v1 = vunpack.i.h.s16 %v15085_v59 }
  0xe9   : > { %2191 = vst [vmem:[#allocation1 + $0x1] ss:$9 sm:$0xff] %v12830_v17  ;;  %v554_v17 = vld [vmem:[#allocation2 + $0x1c0] sm:$0xff]  ;;  %v658_v16 = vshrl.u32 %v12669_v50, 16 }
  0xea   : > { %2193 = vst [vmem:[#allocation1 + $0x2] ss:$9 sm:$0xff] %v12831_v21  ;;  %v15330_v30 = vsel %vm14520_vm1, %v549_v6, %v554_v17  ;;  %v15335_v21 = vsel %vm14520_vm1, %v587_v39, %v592_v9  ;;  %v12846_v9 = vpack.i.b16 %v15123_v10, %v1543_v4  ;;  %v18984_v4 = vld [vmem:[#allocation28_spill] sm:$0xff] }
  0xeb   : > { %2203 = vst [vmem:[#allocation1 + $0x7] ss:$9 sm:$0xff] %v12832_v26  ;;  %v18970_v26 = vld [vmem:[#allocation23_spill] sm:$0xff] }
  0xec   : > { %556 = vst [vmem:[#allocation2 + $0x1c0] sm:$0xff] %v15330_v30  ;;  %v1525_v56 = vunpack.i.h.s16 %v18970_v26  ;;  %v12840_v11 = vpack.i.b16 %v18970_v26, %v1523_v60  ;;  %v15375_v60 = vpop.f32.mrf.mxu0 }
  0xed   : > { %559 = vst [vmem:[#allocation2 + $0x170] sm:$0x11] %v558_v35  ;;  %v18980_v35 = vld [vmem:[#allocation24_spill] sm:$0xff] }
  0xee   : > { %594 = vst [vmem:[#allocation2 + $0x118] sm:$0xff] %v15335_v21  ;;  %v12841_v34 = vpack.i.b16 %v18977_v51, %v1525_v56 }
  0xef   : > { %387 = vst [vmem:[#allocation2 + $0x110] sm:$0x11] %v386_v14  ;;  %v12847_v14 = vpack.i.b16 %v15138_v45, %v15134_v37  ;;  %v391_v37 = vld [vmem:[#allocation2 + $0x198] sm:$0x11]  ;;  %v394_v45 = vld [vmem:[#allocation2 + $0xe8] sm:$0x11] }
  0xf0   : > { %390 = vst [vmem:[#allocation2 + $0x150] sm:$0x11] %v389_v31 }
  0xf2   : > { %v2204_v15 = vld [vmem:[#allocation1] sm:$0xff]  ;;  %v2205_v63 = vld [vmem:[#allocation1 + $0x9] sm:$0xff] }
  0xf3   : > { %2215 = vst [vmem:[#allocation1 + $0x4] ss:$9 sm:$0xff] %v18964_v53  ;;  %v1541_v53 = vunpack.i.h.s16 %v15112_v47 }
  0xf4   : > { %2217 = vst [vmem:[#allocation1 + $0x5] ss:$9 sm:$0xff] %v18966_v27  ;;  %v18978_v27 = vld [vmem:[#allocation26_spill] sm:$0xff]  ;;  %v15405_v51 = vpop.f32.mrf.mxu0 }
  0xf5   : > { %2219 = vst [vmem:[#allocation1 + $0x6] ss:$9 sm:$0xff] %v18967_v46  ;;  %v12845_v39 = vpack.i.b16 %v15117_v0, %v1541_v53 }
  0xf6   : > { %2411 = vmatmul.bf16.gmra.mxu2 %v2204_v15  ;;  %2460 = vmatmul.bf16.gmra.mxu3 %v2205_v63  ;;  %2221 = vst [vmem:[#allocation1 + $0x7] ss:$9 sm:$0xff] %v18968_v5  ;;  %v290_v15 = vld [vmem:[#allocation2 + $0x88] sm:$0x11]  ;;  %v12667_v63 = vld [vmem:[%s14463_s8 + $0x28] sm:$0xff]  ;;  %v12843_v5 = vpack.i.b16 %v15109_v19, %v18979_v1  ;;  %v15377_v19 = vpop.f32.mrf.mxu1 }
  0xf7   : > { %2207 = vst [vmem:[#allocation1] ss:$9 sm:$0xff] %v12833_v54  ;;  %v287_v54 = vld [vmem:[#allocation2 + $0x78] sm:$0x11]  ;;  %v291_v46 = vsel %vm14475_vm8, 0, %v290_v15  ;;  %v12673_v15 = vld [vmem:[%s14463_s8 + $0x58] sm:$0xff] }
  0xf8   : > { %2209 = vst [vmem:[#allocation1 + $0x1] ss:$9 sm:$0xff] %v12834_v28  ;;  %v12842_v28 = vpack.i.b16 %v15085_v59, %v18978_v27  ;;  %v288_v44 = vsel %vm14475_vm8, 0, %v287_v54  ;;  %v661_v59 = vshll.u32 %v12669_v50, 16  ;;  %v633_v56 = vld [vmem:[#allocation2 + $0x150] sm:$0x11] }
  0xf9   : > { %2211 = vst [vmem:[#allocation1 + $0x2] ss:$9 sm:$0xff] %v12835_v52  ;;  %v620_v52 = vshrl.u32 %v12667_v63, 16  ;;  %v734_v53 = vshrl.u32 %v12673_v15, 16  ;;  %v2544_v54 = vrot.slane %v15335_v21, 3 }
  0xfa   : > { %2213 = vst [vmem:[#allocation1 + $0x3] ss:$9 sm:$0xff] %v12836_v29  ;;  %v12844_v29 = vpack.i.b16 %v15112_v47, %v1539_v33  ;;  %v595_v47 = vld [vmem:[#allocation2 + $0x110] sm:$0x11] }
  0xfb   : > { %289 = vst [vmem:[#allocation2 + $0x78] sm:$0x11] %v288_v44  ;;  %v622_v17 = vrot.slane %v620_v52, 7  ;;  %v596_v10 = vsel %vm14475_vm8, %v588_v8, %v595_v47  ;;  %v15422_v27 = vrot.slane %v734_v53, 7  ;;  %v2591_v52 = vsel %vm1200_vm4, %v15335_v21, %v2544_v54 }
  0xfc   : > { %292 = vst [vmem:[#allocation2 + $0x88] sm:$0x11] %v291_v46  ;;  %v2542_v46 = vrot.slane %v15330_v30, 3  ;;  %v2593_v8 = vrot.slane %v2591_v52, 1  ;;  %v2589_v47 = vsel %vm226_vm2, %v15335_v21, %v2544_v54 }
  0xfd   : > { %v626_v26 = vrot.slane %v622_v17, 4  ;;  %597 = vst [vmem:[#allocation2 + $0x110] sm:$0x11] %v596_v10 }
  0xfe   : > { %18982 = vst [vmem:[#allocation7_spill] sm:$0xff] %v15405_v51 }
 0x101   : > { %v2222_v32 = vld [vmem:[#allocation1] sm:$0xff]  ;;  %v2223_v43 = vld [vmem:[#allocation1 + $0x9] sm:$0xff] }
 0x102   : > { %2235 = vst [vmem:[#allocation1 + $0x5] ss:$9 sm:$0xff] %v18973_v38  ;;  %v630_v42 = vld [vmem:[#allocation2 + $0x78] sm:$0xff] }
 0x103   : > { %2237 = vst [vmem:[#allocation1 + $0x6] ss:$9 sm:$0xff] %v18975_v23  ;;  %v668_v38 = vld [vmem:[#allocation2 + $0x88] sm:$0xff]  ;;  %v12671_v23 = vld [vmem:[%s14463_s8 + $0x48] sm:$0xff] }
 0x104   : > { %2239 = vst [vmem:[#allocation1 + $0x7] ss:$9 sm:$0xff] %v18976_v36  ;;  %v14246_v36 = vld [vmem:[%s18798_s1 + $0x198] sm:$0xff]  ;;  %v696_v31 = vshrl.u32 %v12671_v23, 16 }
 0x105   : > { %2225 = vst [vmem:[#allocation1] ss:$9 sm:$0xff] %v12837_v3  ;;  %v634_v3 = vsel %vm14475_vm8, %v626_v26, %v633_v56  ;;  %4214 = vmatpush.bf16.msrb.mxu2 %v14246_v36 }
 0x106   : > { %2416 = vmatmul.bf16.gmra.mxu2 %v2222_v32  ;;  %2465 = vmatmul.bf16.gmra.mxu3 %v2223_v43  ;;  %2227 = vst [vmem:[#allocation1 + $0x1] ss:$9 sm:$0xff] %v12838_v7  ;;  %v623_v32 = vshll.u32 %v12667_v63, 16  ;;  %v15379_v43 = vrot.slane %v658_v16, 7  ;;  %v296_v7 = vld [vmem:[#allocation2 + $0x158] sm:$0x11]  ;;  %v12848_v63 = vpack.i.b16 %v15154_v62, %v1555_v55 }
 0x107   : > { %2229 = vst [vmem:[#allocation1 + $0x2] ss:$9 sm:$0xff] %v12839_v61  ;;  %v293_v61 = vld [vmem:[#allocation2 + $0x100] sm:$0x11]  ;;  %v297_v20 = vsel %vm14475_vm8, 0, %v296_v7  ;;  %v15424_v44 = vrot.slane %v696_v31, 7 }
 0x108   : > { %2231 = vst [vmem:[#allocation1 + $0x3] ss:$9 sm:$0xff] %v12840_v11  ;;  %v625_v0 = vor.u32 %v623_v32, %v622_v17  ;;  %v663_v2 = vor.u32 %v661_v59, %v15379_v43  ;;  %v14254_v11 = vld [vmem:[%s18798_s1 + $0x1d8] sm:$0xff]  ;;  %v294_v57 = vsel %vm14475_vm8, 0, %v293_v61  ;;  %v699_v55 = vshll.u32 %v12671_v23, 16 }
 0x109   : > { %2233 = vst [vmem:[#allocation1 + $0x4] ss:$9 sm:$0xff] %v12841_v34  ;;  %v15407_v34 = vpop.f32.mrf.mxu1  ;;  %4263 = vmatpush.bf16.msrb.mxu3 %v14254_v11  ;;  %v2487_v62 = vld [vmem:[#allocation2 + $0x170] sm:$0x11]  ;;  %v2594_v17 = vsel %vm18907_vm6, %v15335_v21, %v2544_v54  ;;  %v15444_v59 = vsel %vm18906_vm7, %v15335_v21, %v2544_v54  ;;  %v2818_v23 = vunpack.i.h.s16 %v2589_v47  ;;  %v299_v61 = vld [vmem:[#allocation2 + $0x178] sm:$0x11]  ;;  %v2820_v11 = vunpack.i.h.s16 %v2593_v8 }
 0x10a   : > { %v15390_v49 = vsel %vm14520_vm1, %v625_v0, %v630_v42  ;;  %635 = vst [vmem:[#allocation2 + $0x150] sm:$0x11] %v634_v3  ;;  %v701_v1 = vor.u32 %v699_v55, %v15424_v44  ;;  %v2577_v0 = vsel %vm18907_vm6, %v15330_v30, %v2542_v46  ;;  %v2596_v56 = vrot.slane %v2594_v17, 2  ;;  %v12675_v42 = vld [vmem:[%s14463_s8 + $0x68] sm:$0xff] }
 0x10b   : > { %632 = vst [vmem:[#allocation2 + $0x78] sm:$0xff] %v15390_v49  ;;  %v2572_v3 = vsel %vm226_vm2, %v15330_v30, %v2542_v46  ;;  %v2579_v36 = vrot.slane %v2577_v0, 2  ;;  %v12949_v54 = vpack.i.b16 %v2593_v8, %v2818_v23 }
 0x10c   : > { %18983 = vst [vmem:[#allocation8_spill] sm:$0xff] %v15407_v34 }
 0x10d   : > { %295 = vst [vmem:[#allocation2 + $0x100] sm:$0x11] %v294_v57  ;;  %v300_v57 = vsel %vm14475_vm8, 0, %v299_v61 }
 0x10e   : > { %298 = vst [vmem:[#allocation2 + $0x158] sm:$0x11] %v297_v20  ;;  %v772_v20 = vshrl.u32 %v12675_v42, 16 }
 0x10f   : > { %301 = vst [vmem:[#allocation2 + $0x178] sm:$0x11] %v300_v57 }
 0x110   : > { %v2240_v6 = vld [vmem:[#allocation1] sm:$0xff]  ;;  %v2241_v41 = vld [vmem:[#allocation1 + $0x9] sm:$0xff] }
 0x111   : > { %2243 = vst [vmem:[#allocation1] ss:$9 sm:$0xff] %v18980_v35  ;;  %v2029_v16 = vpop.f32.mrf.mxu1 }
 0x112   : > { %2245 = vst [vmem:[#allocation1 + $0x1] ss:$9 sm:$0xff] %v12842_v28  ;;  %v737_v28 = vshll.u32 %v12673_v15, 16 }
 0x113   : > { %2247 = vst [vmem:[#allocation1 + $0x2] ss:$9 sm:$0xff] %v12843_v5  ;;  %v1980_v5 = vpop.f32.mrf.mxu0 }
 0x114   : > { %2249 = vst [vmem:[#allocation1 + $0x3] ss:$9 sm:$0xff] %v12844_v29  ;;  %v395_v29 = vsel %vm14493_vm13, 0, %v394_v45  ;;  %v12950_v45 = vpack.i.b16 %v2596_v56, %v2820_v11 }
 0x115   : > { %2251 = vst [vmem:[#allocation1 + $0x4] ss:$9 sm:$0xff] %v12845_v39  ;;  %v15440_v39 = vadd.f32 %v2029_v16, %v1980_v5  ;;  %v744_v35 = vld [vmem:[#allocation2 + $0x158] sm:$0xff]  ;;  %v775_v5 = vshll.u32 %v12675_v42, 16 }
 0x116   : > { %2253 = vst [vmem:[#allocation1 + $0x5] ss:$9 sm:$0xff] %v12846_v9  ;;  %2421 = vmatmul.bf16.gmra.mxu2 %v2240_v6  ;;  %2470 = vmatmul.bf16.gmra.mxu3 %v2241_v41  ;;  %v706_v6 = vld [vmem:[#allocation2 + $0x100] sm:$0xff]  ;;  %v397_v41 = vld [vmem:[#allocation2 + $0xf8] sm:$0x11]  ;;  %v2543_v9 = vrot.slane %v2487_v62, 3 }
 0x117   : > { %2255 = vst [vmem:[#allocation1 + $0x6] ss:$9 sm:$0xff] %v15096_v25  ;;  %v15395_v25 = vsel %vm14520_vm1, %v663_v2, %v668_v38  ;;  %v15452_v32 = vsel %vm14520_vm1, %v701_v1, %v706_v6  ;;  %v398_v26 = vsel %vm14493_vm13, 0, %v397_v41  ;;  %v2580_v2 = vsel %vm18906_vm7, %v15330_v30, %v2542_v46  ;;  %v2491_v41 = vld [vmem:[#allocation2 + $0x150] sm:$0x11]  ;;  %v782_v42 = vld [vmem:[#allocation2 + $0x178] sm:$0xff] }
 0x118   : > { %2257 = vst [vmem:[#allocation1 + $0x7] ss:$9 sm:$0xff] %v18981_v22  ;;  %v2599_v22 = vrot.slane %v15444_v59, 3  ;;  %v2585_v7 = vsel %vm226_vm2, %v2487_v62, %v2543_v9  ;;  %v2582_v15 = vrot.slane %v2580_v2, 3  ;;  %v702_v62 = vrot.slane %v15424_v44, 4 }
 0x119   : > { %670 = vst [vmem:[#allocation2 + $0x88] sm:$0xff] %v15395_v25  ;;  %v12948_v53 = vpack.i.b16 %v2589_v47, %v2585_v7  ;;  %v740_v6 = vrot.slane %v15422_v27, 4  ;;  %v2547_v2 = vrot.slane %v2491_v41, 3 }
 0x11a   : > { %396 = vst [vmem:[#allocation2 + $0xe8] sm:$0x11] %v395_v29  ;;  %v302_v29 = vld [vmem:[#allocation2 + $0x50] sm:$0x11] }
 0x11b   : > { %708 = vst [vmem:[#allocation2 + $0x100] sm:$0xff] %v15452_v32  ;;  %v303_v59 = vsel %vm14475_vm8, 0, %v302_v29 }
 0x11c   : > { %399 = vst [vmem:[#allocation2 + $0xf8] sm:$0x11] %v398_v26  ;;  %v12677_v26 = vld [vmem:[%s14463_s8 + $0x78] sm:$0xff] }
 0x11d   : > { %304 = vst [vmem:[#allocation2 + $0x50] sm:$0x11] %v303_v59 }
 0x11f   : > { %v2258_v33 = vld [vmem:[#allocation1] sm:$0xff]  ;;  %v2259_v50 = vld [vmem:[#allocation1 + $0x9] sm:$0xff] }
 0x120   : > { %2261 = vst [vmem:[#allocation1] ss:$9 sm:$0xff] %v18984_v4  ;;  %v14253_v4 = vld [vmem:[%s18798_s1 + $0x1d0] sm:$0xff] }
 0x121   : > { %2263 = vst [vmem:[#allocation1 + $0x1] ss:$9 sm:$0xff] %v15129_v24  ;;  %v392_v24 = vsel %vm14493_vm13, 0, %v391_v37  ;;  %v2489_v37 = vld [vmem:[#allocation2 + $0x110] sm:$0x11]  ;;  %4264 = vmatpush.bf16.msrb.mxu3 %v14253_v4 }
 0x122   : > { %2265 = vst [vmem:[#allocation1 + $0x2] ss:$9 sm:$0xff] %v12847_v14  ;;  %v709_v1 = vld [vmem:[#allocation2 + $0xe8] sm:$0x11]  ;;  %v2545_v16 = vrot.slane %v2489_v37, 3 }
 0x123   : > { %2267 = vst [vmem:[#allocation1 + $0x3] ss:$9 sm:$0xff] %v12848_v63  ;;  %v2822_v63 = vunpack.i.h.s16 %v2596_v56  ;;  %v710_v17 = vsel %vm14475_vm8, %v702_v62, %v709_v1  ;;  %v813_v62 = vshll.u32 %v12677_v26, 16 }
 0x124   : > { %2269 = vst [vmem:[#allocation1 + $0x4] ss:$9 sm:$0xff] %v15301_v58  ;;  %v739_v58 = vor.u32 %v737_v28, %v15422_v27  ;;  %v664_v28 = vrot.slane %v15379_v43, 4  ;;  %v2546_v43 = vrot.slane %v15390_v49, 3  ;;  %v2824_v27 = vunpack.i.h.s16 %v2599_v22 }
 0x125   : > { %2271 = vst [vmem:[#allocation1 + $0x5] ss:$9 sm:$0xff] %v15304_v48  ;;  %v400_v48 = vld [vmem:[#allocation2 + $0xd0] sm:$0x11]  ;;  %v12951_v52 = vpack.i.b16 %v2599_v22, %v2822_v63  ;;  %v2602_v0 = vsel %vm226_vm2, %v2489_v37, %v2545_v16  ;;  %v305_v63 = vld [vmem:[#allocation2 + $0x1d8] sm:$0x11] }
 0x126   : > { %2273 = vst [vmem:[#allocation1 + $0x6] ss:$9 sm:$0xff] %v15307_v18  ;;  %2426 = vmatmul.bf16.gmra.mxu2 %v2258_v33  ;;  %2475 = vmatmul.bf16.gmra.mxu3 %v2259_v50  ;;  %v2574_v18 = vsel %vm1200_vm4, %v15330_v30, %v2542_v46  ;;  %v15461_v10 = vsel %vm14520_vm1, %v739_v58, %v744_v35  ;;  %v401_v21 = vsel %vm14493_vm13, 0, %v400_v48  ;;  %v14245_v30 = vld [vmem:[%s18798_s1 + $0x190] sm:$0xff]  ;;  %v15478_v33 = vpop.f32.mrf.mxu0  ;;  %v15480_v50 = vpop.f32.mrf.mxu1  ;;  %v774_v46 = vrot.slane %v772_v20, 7 }
 0x127   : > { %393 = vst [vmem:[#allocation2 + $0x198] sm:$0x11] %v392_v24  ;;  %v2576_v38 = vrot.slane %v2574_v18, 1  ;;  %4215 = vmatpush.bf16.msrb.mxu2 %v14245_v30  ;;  %v15488_v24 = vrot.slane %v15395_v25, 3  ;;  %v747_v58 = vld [vmem:[#allocation2 + $0xf8] sm:$0x11]  ;;  %v2608_v22 = vsel %vm1200_vm4, %v15390_v49, %v2546_v43  ;;  %v12952_v11 = vpack.i.b16 %v2602_v0, %v2824_v27 }
 0x128   : > { %746 = vst [vmem:[#allocation2 + $0x158] sm:$0xff] %v15461_v10  ;;  %v778_v35 = vrot.slane %v774_v46, 4  ;;  %v777_v18 = vor.u32 %v775_v5, %v774_v46  ;;  %v2606_v20 = vsel %vm226_vm2, %v15390_v49, %v2546_v43  ;;  %v2619_v30 = vsel %vm226_vm2, %v2491_v41, %v2547_v2  ;;  %v14244_v46 = vld [vmem:[%s18798_s1 + $0x188] sm:$0xff] }
 0x129   : > { %402 = vst [vmem:[#allocation2 + $0xd0] sm:$0x11] %v401_v21  ;;  %v2625_v48 = vsel %vm1200_vm4, %v15395_v25, %v15488_v24  ;;  %v748_v21 = vsel %vm14475_vm8, %v740_v6, %v747_v58  ;;  %v2628_v23 = vsel %vm18907_vm6, %v15395_v25, %v15488_v24  ;;  %v2631_v29 = vsel %vm18906_vm7, %v15395_v25, %v15488_v24  ;;  %v12679_v6 = vld [vmem:[%s14463_s8 + $0x88] sm:$0xff] }
 0x12a   : > { %18985 = vst [vmem:[#allocation11_spill] sm:$0xff] %v15478_v33  ;;  %v2627_v7 = vrot.slane %v2625_v48, 1  ;;  %v15521_v57 = vsel %vm14520_vm1, %v777_v18, %v782_v42  ;;  %v848_v58 = vshrl.u32 %v12679_v6, 16  ;;  %v851_v48 = vshll.u32 %v12679_v6, 16 }
 0x12b   : > { %18986 = vst [vmem:[#allocation9_spill] sm:$0xff] %v15480_v50  ;;  %4216 = vmatpush.bf16.msrb.mxu2 %v14244_v46  ;;  %v2633_v27 = vrot.slane %v2631_v29, 3  ;;  %v2552_v18 = vrot.slane %v15461_v10, 3 }
 0x12c   : > { %711 = vst [vmem:[#allocation2 + $0xe8] sm:$0x11] %v710_v17  ;;  %v15548_v59 = vrot.slane %v848_v58, 7  ;;  %v14243_v58 = vld [vmem:[%s18798_s1 + $0x180] sm:$0xff] }
 0x12d   : > { %v2274_v14 = vld [vmem:[#allocation1] sm:$0xff]  ;;  %v2275_v31 = vld [vmem:[#allocation1 + $0x9] sm:$0xff]  ;;  %749 = vst [vmem:[#allocation2 + $0xf8] sm:$0x11] %v748_v21 }
 0x12e   : > { %3031 = vst [vmem:[#allocation1] ss:$9 sm:$0xff] %v2572_v3  ;;  %v671_v55 = vld [vmem:[#allocation2 + $0x198] sm:$0x11]  ;;  %v1985_v9 = vpop.f32.mrf.mxu0  ;;  %v2034_v8 = vpop.f32.mrf.mxu1  ;;  %v2611_v3 = vsel %vm18907_vm6, %v15390_v49, %v2546_v43  ;;  %v853_v2 = vor.u32 %v851_v48, %v15548_v59 }
 0x12f   : > { %3034 = vst [vmem:[#allocation1 + $0x1] ss:$9 sm:$0xff] %v2576_v38  ;;  %v672_v44 = vsel %vm14475_vm8, %v664_v28, %v671_v55  ;;  %v15503_v56 = vadd.f32 %v2034_v8, %v1985_v9  ;;  %v2623_v38 = vsel %vm226_vm2, %v15395_v25, %v15488_v24  ;;  %v820_v9 = vld [vmem:[#allocation2 + $0x50] sm:$0xff]  ;;  %v406_v25 = vld [vmem:[#allocation2 + $0x138] sm:$0x11]  ;;  %v2550_v24 = vrot.slane %v15452_v32, 3  ;;  %4217 = vmatpush.bf16.msrb.mxu2 %v14243_v58 }
 0x130   : > { %3037 = vst [vmem:[#allocation1 + $0x2] ss:$9 sm:$0xff] %v2579_v36  ;;  %v785_v47 = vld [vmem:[#allocation2 + $0xd0] sm:$0x11]  ;;  %v810_v36 = vshrl.u32 %v12677_v26, 16  ;;  %v2836_v4 = vunpack.i.h.s16 %v2623_v38  ;;  %v12953_v16 = vpack.i.b16 %v2623_v38, %v2619_v30  ;;  %v2659_v30 = vsel %vm1200_vm4, %v15461_v10, %v2552_v18 }
 0x131   : > { %3040 = vst [vmem:[#allocation1 + $0x3] ss:$9 sm:$0xff] %v2582_v15  ;;  %v786_v61 = vsel %vm14475_vm8, %v778_v35, %v785_v47  ;;  %v2614_v15 = vsel %vm18906_vm7, %v15390_v49, %v2546_v43  ;;  %v403_v35 = vld [vmem:[#allocation2 + $0x128] sm:$0x11]  ;;  %v2640_v46 = vsel %vm226_vm2, %v15452_v32, %v2550_v24 }
 0x132   : > { %3043 = vst [vmem:[#allocation1 + $0x4] ss:$9 sm:$0xff] %v12948_v53  ;;  %v2630_v53 = vrot.slane %v2628_v23, 2  ;;  %v15531_v55 = vrot.slane %v810_v36, 7  ;;  %v2616_v49 = vrot.slane %v2614_v15, 3  ;;  %v12954_v43 = vpack.i.b16 %v2627_v7, %v2836_v4 }
 0x133   : > { %3046 = vst [vmem:[#allocation1 + $0x5] ss:$9 sm:$0xff] %v12949_v54  ;;  %v306_v54 = vsel %vm14475_vm8, 0, %v305_v63  ;;  %v404_v47 = vsel %vm14493_vm13, 0, %v403_v35  ;;  %v2495_v0 = vld [vmem:[#allocation2 + $0xe8] sm:$0x11]  ;;  %v2657_v63 = vsel %vm226_vm2, %v15461_v10, %v2552_v18 }
 0x134   : > { %3049 = vst [vmem:[#allocation1 + $0x6] ss:$9 sm:$0xff] %v12950_v45  ;;  %v2838_v45 = vunpack.i.h.s16 %v2627_v7  ;;  %v815_v17 = vor.u32 %v813_v62, %v15531_v55  ;;  %v2840_v21 = vunpack.i.h.s16 %v2630_v53  ;;  %v308_v23 = vld [vmem:[#allocation2 + $0x1f0] sm:$0x11]  ;;  %v2854_v29 = vunpack.i.h.s16 %v2657_v63 }
 0x135   : > { %3052 = vst [vmem:[#allocation1 + $0x7] ss:$9 sm:$0xff] %v12951_v52  ;;  %v14252_v52 = vld [vmem:[%s18798_s1 + $0x1c8] sm:$0xff]  ;;  %v309_v4 = vsel %vm14475_vm8, 0, %v308_v23  ;;  %v816_v35 = vrot.slane %v15531_v55, 4 }
 0x136   : > { %673 = vst [vmem:[#allocation2 + $0x198] sm:$0x11] %v672_v44  ;;  %2431 = vmatmul.bf16.gmra.mxu2 %v2274_v14  ;;  %2480 = vmatmul.bf16.gmra.mxu3 %v2275_v31  ;;  %v2610_v14 = vrot.slane %v2608_v22, 1  ;;  %v2613_v31 = vrot.slane %v2611_v3, 2  ;;  %v15539_v1 = vpop.f32.mrf.mxu0  ;;  %v15541_v5 = vpop.f32.mrf.mxu1  ;;  %v12955_v41 = vpack.i.b16 %v2630_v53, %v2838_v45  ;;  %v15556_v42 = vsel %vm14520_vm1, %v815_v17, %v820_v9  ;;  %v409_v22 = vld [vmem:[#allocation2 + $0x70] sm:$0x11] }
 0x137   : > { %784 = vst [vmem:[#allocation2 + $0x178] sm:$0xff] %v15521_v57  ;;  %4265 = vmatpush.bf16.msrb.mxu3 %v14252_v52  ;;  %v2842_v3 = vunpack.i.h.s16 %v2633_v27  ;;  %v410_v15 = vsel %vm14493_vm13, 0, %v409_v22  ;;  %v12956_v53 = vpack.i.b16 %v2633_v27, %v2840_v21  ;;  %v2648_v45 = vsel %vm18906_vm7, %v15452_v32, %v2550_v24 }
 0x138   : > { %787 = vst [vmem:[#allocation2 + $0xd0] sm:$0x11] %v786_v61  ;;  %v407_v61 = vsel %vm14493_vm13, 0, %v406_v25  ;;  %v2665_v27 = vsel %vm18906_vm7, %v15461_v10, %v2552_v18  ;;  %v2497_v25 = vld [vmem:[#allocation2 + $0xf8] sm:$0x11] }
 0x139   : > { %307 = vst [vmem:[#allocation2 + $0x1d8] sm:$0x11] %v306_v54  ;;  %v2645_v54 = vsel %vm18907_vm6, %v15452_v32, %v2550_v24  ;;  %v2667_v21 = vrot.slane %v2665_v27, 3 }
 0x13a   : > { %18987 = vst [vmem:[#allocation12_spill] sm:$0xff] %v15539_v1  ;;  %v2647_v6 = vrot.slane %v2645_v54, 2 }
 0x13b   : > { %18988 = vst [vmem:[#allocation10_spill] sm:$0xff] %v15541_v5 }
 0x13c   : > { %v3053_v37 = vld [vmem:[#allocation1] sm:$0xff]  ;;  %v3054_v28 = vld [vmem:[#allocation1 + $0x9] sm:$0xff]  ;;  %822 = vst [vmem:[#allocation2 + $0x50] sm:$0xff] %v15556_v42 }
 0x13d   : > { %3299 = vmatmul.bf16.vlgmr.msrb.gmra.mxu0 %v3053_v37  ;;  %3348 = vmatmul.bf16.vlgmr.msrb.gmra.mxu1 %v3054_v28  ;;  %3056 = vst [vmem:[#allocation1] ss:$9 sm:$0xff] %v12952_v11  ;;  %v2493_v44 = vld [vmem:[#allocation2 + $0x198] sm:$0x11] }
 0x13e   : > { %3058 = vst [vmem:[#allocation1 + $0x1] ss:$9 sm:$0xff] %v2606_v20  ;;  %v2549_v8 = vrot.slane %v2493_v44, 3  ;;  %v1990_v38 = vpop.f32.mrf.mxu0  ;;  %v2039_v7 = vpop.f32.mrf.mxu1 }
 0x13f   : > { %3060 = vst [vmem:[#allocation1 + $0x2] ss:$9 sm:$0xff] %v2610_v14  ;;  %v15563_v11 = vadd.f32 %v2039_v7, %v1990_v38  ;;  %v2551_v14 = vrot.slane %v2495_v0, 3  ;;  %v412_v7 = vld [vmem:[#allocation2 + $0x180] sm:$0x11] }
 0x140   : > { %3062 = vst [vmem:[#allocation1 + $0x3] ss:$9 sm:$0xff] %v2613_v31  ;;  %v858_v26 = vld [vmem:[#allocation2 + $0x1d8] sm:$0xff]  ;;  %v2636_v36 = vsel %vm226_vm2, %v2493_v44, %v2549_v8  ;;  %v2642_v31 = vsel %vm1200_vm4, %v15452_v32, %v2550_v24  ;;  %v2662_v44 = vsel %vm18907_vm6, %v15461_v10, %v2552_v18  ;;  %v311_v24 = vld [vmem:[#allocation2 + $0xc8] sm:$0x11]  ;;  %v2553_v18 = vrot.slane %v2497_v25, 3 }
 0x141   : > { %3064 = vst [vmem:[#allocation1 + $0x4] ss:$9 sm:$0xff] %v2616_v49  ;;  %v15567_v20 = vsel %vm14520_vm1, %v853_v2, %v858_v26  ;;  %v12957_v37 = vpack.i.b16 %v2636_v36, %v2842_v3  ;;  %v2644_v28 = vrot.slane %v2642_v31, 1  ;;  %v2653_v52 = vsel %vm226_vm2, %v2495_v0, %v2551_v14  ;;  %v14251_v32 = vld [vmem:[%s18798_s1 + $0x1c0] sm:$0xff]  ;;  %v314_v26 = vld [vmem:[#allocation2 + $0x60] sm:$0x11] }
 0x142   : > { %3066 = vst [vmem:[#allocation1 + $0x5] ss:$9 sm:$0xff] %v12953_v16  ;;  %v2661_v16 = vrot.slane %v2659_v30, 1  ;;  %v12958_v48 = vpack.i.b16 %v2657_v63, %v2653_v52  ;;  %4266 = vmatpush.bf16.msrb.mxu3 %v14251_v32  ;;  %v2554_v0 = vrot.slane %v15521_v57, 3  ;;  %v317_v2 = vld [vmem:[#allocation2 + $0x1c8] sm:$0x11]  ;;  %v2670_v54 = vsel %vm226_vm2, %v2497_v25, %v2553_v18 }
 0x143   : > { %3068 = vst [vmem:[#allocation1 + $0x6] ss:$9 sm:$0xff] %v12954_v43  ;;  %v2650_v43 = vrot.slane %v2648_v45, 3  ;;  %v2499_v10 = vld [vmem:[#allocation2 + $0xd0] sm:$0x11]  ;;  %v312_v22 = vsel %vm14475_vm8, 0, %v311_v24 }
 0x144   : > { %3070 = vst [vmem:[#allocation1 + $0x7] ss:$9 sm:$0xff] %v12955_v41  ;;  %v12959_v8 = vpack.i.b16 %v2661_v16, %v2854_v29  ;;  %v2856_v3 = vunpack.i.h.s16 %v2661_v16  ;;  %v315_v38 = vsel %vm14475_vm8, 0, %v314_v26  ;;  %v415_v36 = vld [vmem:[#allocation2 + $0x188] sm:$0x11]  ;;  %v2676_v14 = vsel %vm1200_vm4, %v15521_v57, %v2554_v0  ;;  %v12683_v16 = vld [vmem:[%s14463_s8 + $0xa8] sm:$0xff] }
 0x145   : > { %405 = vst [vmem:[#allocation2 + $0x128] sm:$0x11] %v404_v47  ;;  %v2664_v47 = vrot.slane %v2662_v44, 2  ;;  %v2679_v31 = vsel %vm18907_vm6, %v15521_v57, %v2554_v0  ;;  %v413_v45 = vsel %vm14493_vm13, 0, %v412_v7  ;;  %v416_v52 = vsel %vm14493_vm13, 0, %v415_v36 }
 0x146   : > { %860 = vst [vmem:[#allocation2 + $0x1d8] sm:$0xff] %v15567_v20  ;;  %v15595_v41 = vpop.f32.mrf.mxu0  ;;  %v15597_v17 = vpop.f32.mrf.mxu1  ;;  %v2682_v29 = vsel %vm18906_vm7, %v15521_v57, %v2554_v0  ;;  %v2678_v44 = vrot.slane %v2676_v14, 1  ;;  %v2681_v27 = vrot.slane %v2679_v31, 2 }
 0x147   : > { %408 = vst [vmem:[#allocation2 + $0x138] sm:$0x11] %v407_v61  ;;  %v2858_v23 = vunpack.i.h.s16 %v2664_v47  ;;  %v318_v61 = vsel %vm14475_vm8, 0, %v317_v2  ;;  %v2684_v25 = vrot.slane %v2682_v29, 3 }
 0x148   : > { %310 = vst [vmem:[#allocation2 + $0x1f0] sm:$0x11] %v309_v4  ;;  %v12681_v4 = vld [vmem:[%s14463_s8 + $0x98] sm:$0xff] }
 0x149   : > { %411 = vst [vmem:[#allocation2 + $0x70] sm:$0x11] %v410_v15  ;;  %v2860_v15 = vunpack.i.h.s16 %v2667_v21  ;;  %v889_v2 = vshll.u32 %v12681_v4, 16 }
 0x14a   : > { %18989 = vst [vmem:[#allocation13_spill] sm:$0xff] %v15595_v41 }
 0x14b   : > { %v3071_v62 = vld [vmem:[#allocation1] sm:$0xff]  ;;  %v3072_v49 = vld [vmem:[#allocation1 + $0x9] sm:$0xff]  ;;  %18990 = vst [vmem:[#allocation14_spill] sm:$0xff] %v15597_v17  ;;  %v12962_v58 = vpack.i.b16 %v2670_v54, %v2860_v15 }
 0x14c   : > { %3074 = vst [vmem:[#allocation1] ss:$9 sm:$0xff] %v12956_v53  ;;  %v823_v9 = vld [vmem:[#allocation2 + $0x128] sm:$0x11]  ;;  %v320_v53 = vld [vmem:[#allocation2] sm:$0x11] }
 0x14d   : > { %3304 = vmatmul.bf16.gmra.mxu0 %v3071_v62  ;;  %3353 = vmatmul.bf16.gmra.mxu1 %v3072_v49  ;;  %3076 = vst [vmem:[#allocation1 + $0x1] ss:$9 sm:$0xff] %v12957_v37  ;;  %v824_v55 = vsel %vm14475_vm8, %v816_v35, %v823_v9  ;;  %v2555_v62 = vrot.slane %v2499_v10, 3  ;;  %v2556_v49 = vrot.slane %v15556_v42, 3  ;;  %v924_v9 = vshrl.u32 %v12683_v16, 16 }
 0x14e   : > { %3078 = vst [vmem:[#allocation1 + $0x2] ss:$9 sm:$0xff] %v2640_v46  ;;  %v1995_v63 = vpop.f32.mrf.mxu0  ;;  %v2044_v30 = vpop.f32.mrf.mxu1  ;;  %v12960_v46 = vpack.i.b16 %v2664_v47, %v2856_v3  ;;  %v854_v3 = vrot.slane %v15548_v59, 4  ;;  %v12685_v59 = vld [vmem:[%s14463_s8 + $0xb8] sm:$0xff] }
 0x14f   : > { %3080 = vst [vmem:[#allocation1 + $0x3] ss:$9 sm:$0xff] %v2644_v28  ;;  %v15617_v37 = vadd.f32 %v2044_v30, %v1995_v63  ;;  %v321_v28 = vsel %vm14475_vm8, 0, %v320_v53  ;;  %v15631_v32 = vsel %vm1200_vm4, %v15556_v42, %v2556_v49  ;;  %v2687_v24 = vsel %vm226_vm2, %v2499_v10, %v2555_v62  ;;  %v861_v10 = vld [vmem:[#allocation2 + $0x138] sm:$0x11]  ;;  %v896_v15 = vld [vmem:[#allocation2 + $0x1f0] sm:$0xff] }
 0x150   : > { %3082 = vst [vmem:[#allocation1 + $0x4] ss:$9 sm:$0xff] %v2647_v6  ;;  %v12961_v6 = vpack.i.b16 %v2667_v21, %v2858_v23  ;;  %v2691_v47 = vsel %vm226_vm2, %v15556_v42, %v2556_v49  ;;  %v2695_v26 = vrot.slane %v15631_v32, 1  ;;  %v2696_v21 = vsel %vm18907_vm6, %v15556_v42, %v2556_v49  ;;  %v899_v30 = vld [vmem:[#allocation2 + $0x70] sm:$0x11] }
 0x151   : > { %3084 = vst [vmem:[#allocation1 + $0x5] ss:$9 sm:$0xff] %v2650_v43  ;;  %v886_v43 = vshrl.u32 %v12681_v4, 16  ;;  %v12963_v18 = vpack.i.b16 %v2691_v47, %v2687_v24  ;;  %v2698_v23 = vrot.slane %v2696_v21, 2  ;;  %v2872_v4 = vunpack.i.h.s16 %v2691_v47  ;;  %v12689_v32 = vld [vmem:[%s14463_s8 + $0xd8] sm:$0xff] }
 0x152   : > { %3086 = vst [vmem:[#allocation1 + $0x6] ss:$9 sm:$0xff] %v12958_v48  ;;  %v862_v54 = vsel %vm14475_vm8, %v854_v3, %v861_v10  ;;  %v2874_v62 = vunpack.i.h.s16 %v2695_v26 }
 0x153   : > { %3088 = vst [vmem:[#allocation1 + $0x7] ss:$9 sm:$0xff] %v12959_v8  ;;  %v2674_v8 = vsel %vm226_vm2, %v15521_v57, %v2554_v0  ;;  %v2699_v57 = vsel %vm18906_vm7, %v15556_v42, %v2556_v49  ;;  %v418_v0 = vld [vmem:[#allocation2 + $0xb8] sm:$0x11] }
 0x154   : > { %825 = vst [vmem:[#allocation2 + $0x128] sm:$0x11] %v824_v55  ;;  %v888_v55 = vrot.slane %v886_v43, 7  ;;  %v2701_v36 = vrot.slane %v2699_v57, 3  ;;  %v419_v14 = vsel %vm14493_vm13, 0, %v418_v0 }
 0x155   : > { %313 = vst [vmem:[#allocation2 + $0xc8] sm:$0x11] %v312_v22  ;;  %v421_v22 = vld [vmem:[#allocation2 + $0x20] sm:$0x11] }
 0x156   : > { %316 = vst [vmem:[#allocation2 + $0x60] sm:$0x11] %v315_v38  ;;  %v926_v38 = vrot.slane %v924_v9, 7  ;;  %v891_v31 = vor.u32 %v889_v2, %v888_v55  ;;  %v892_v42 = vrot.slane %v888_v55, 4  ;;  %v422_v63 = vsel %vm14493_vm13, 0, %v421_v22 }
 0x157   : > { %319 = vst [vmem:[#allocation2 + $0x1c8] sm:$0x11] %v318_v61  ;;  %v927_v61 = vshll.u32 %v12683_v16, 16  ;;  %v2876_v16 = vunpack.i.h.s16 %v2698_v23  ;;  %v1038_v2 = vshrl.u32 %v12689_v32, 16 }
 0x158   : > { %322 = vst [vmem:[#allocation2] sm:$0x11] %v321_v28  ;;  %v930_v28 = vrot.slane %v926_v38, 4  ;;  %v897_v29 = vsel %vm14520_vm1, %v891_v31, %v896_v15 }
 0x159   : > { %414 = vst [vmem:[#allocation2 + $0x180] sm:$0x11] %v413_v45  ;;  %v2558_v45 = vrot.slane %v15567_v20, 3  ;;  %v929_v49 = vor.u32 %v927_v61, %v926_v38  ;;  %v2560_v47 = vrot.slane %v897_v29, 3  ;;  %v12966_v55 = vpack.i.b16 %v2701_v36, %v2876_v16 }
 0x15a   : > { %v3089_v35 = vld [vmem:[#allocation1] sm:$0xff]  ;;  %v3090_v48 = vld [vmem:[#allocation1 + $0x9] sm:$0xff]  ;;  %417 = vst [vmem:[#allocation2 + $0x188] sm:$0x11] %v416_v52  ;;  %v1040_v31 = vrot.slane %v1038_v2, 7 }
 0x15b   : > { %3092 = vst [vmem:[#allocation1] ss:$9 sm:$0xff] %v12960_v46  ;;  %v2501_v7 = vld [vmem:[#allocation2 + $0x128] sm:$0x11]  ;;  %v12687_v52 = vld [vmem:[%s14463_s8 + $0xc8] sm:$0xff]  ;;  %v2713_v21 = vsel %vm18907_vm6, %v15567_v20, %v2558_v45  ;;  %v2708_v22 = vsel %vm226_vm2, %v15567_v20, %v2558_v45  ;;  %v2716_v3 = vsel %vm18906_vm7, %v15567_v20, %v2558_v45 }
 0x15c   : > { %3094 = vst [vmem:[#allocation1 + $0x1] ss:$9 sm:$0xff] %v12961_v6  ;;  %v2557_v53 = vrot.slane %v2501_v7, 3  ;;  %v900_v6 = vsel %vm14475_vm8, %v892_v42, %v899_v30  ;;  %v934_v43 = vld [vmem:[#allocation2 + $0xc8] sm:$0xff]  ;;  %v1000_v9 = vshrl.u32 %v12687_v52, 16  ;;  %v1003_v61 = vshll.u32 %v12687_v52, 16 }
 0x15d   : > { %3309 = vmatmul.bf16.gmra.mxu0 %v3089_v35  ;;  %3358 = vmatmul.bf16.gmra.mxu1 %v3090_v48  ;;  %3096 = vst [vmem:[#allocation1 + $0x2] ss:$9 sm:$0xff] %v12962_v58  ;;  %v2878_v58 = vunpack.i.h.s16 %v2701_v36  ;;  %v12964_v48 = vpack.i.b16 %v2695_v26, %v2872_v4  ;;  %v15665_v24 = vsel %vm14520_vm1, %v929_v49, %v934_v43  ;;  %v2718_v15 = vrot.slane %v2716_v3, 3 }
 0x15e   : > { %3098 = vst [vmem:[#allocation1 + $0x3] ss:$9 sm:$0xff] %v2674_v8  ;;  %v2704_v35 = vsel %vm226_vm2, %v2501_v7, %v2557_v53  ;;  %v2710_v8 = vsel %vm1200_vm4, %v15567_v20, %v2558_v45  ;;  %v1002_v38 = vrot.slane %v1000_v9, 7  ;;  %v2727_v36 = vsel %vm1200_vm4, %v897_v29, %v2560_v47  ;;  %v972_v53 = vld [vmem:[#allocation2 + $0x60] sm:$0xff] }
 0x15f   : > { %3100 = vst [vmem:[#allocation1 + $0x4] ss:$9 sm:$0xff] %v2678_v44  ;;  %v962_v44 = vshrl.u32 %v12685_v59, 16  ;;  %v12967_v10 = vpack.i.b16 %v2704_v35, %v2878_v58  ;;  %v2712_v7 = vrot.slane %v2710_v8, 1  ;;  %v2730_v20 = vsel %vm18907_vm6, %v897_v29, %v2560_v47  ;;  %v1048_v9 = vld [vmem:[#allocation2] sm:$0xff] }
 0x160   : > { %3102 = vst [vmem:[#allocation1 + $0x5] ss:$9 sm:$0xff] %v2681_v27  ;;  %v937_v46 = vld [vmem:[#allocation2 + $0x180] sm:$0x11]  ;;  %v1006_v4 = vrot.slane %v1002_v38, 4  ;;  %v2733_v45 = vsel %vm18906_vm7, %v897_v29, %v2560_v47  ;;  %v2725_v52 = vsel %vm226_vm2, %v897_v29, %v2560_v47  ;;  %v1044_v43 = vrot.slane %v1040_v31, 4 }
 0x161   : > { %3104 = vst [vmem:[#allocation1 + $0x6] ss:$9 sm:$0xff] %v2684_v25  ;;  %v938_v27 = vsel %vm14475_vm8, %v930_v28, %v937_v46  ;;  %v12965_v25 = vpack.i.b16 %v2698_v23, %v2874_v62  ;;  %v964_v26 = vrot.slane %v962_v44, 7  ;;  %v2715_v23 = vrot.slane %v2713_v21, 2  ;;  %v975_v30 = vld [vmem:[#allocation2 + $0x188] sm:$0x11] }
 0x162   : > { %3106 = vst [vmem:[#allocation1 + $0x7] ss:$9 sm:$0xff] %v12963_v18  ;;  %v965_v18 = vshll.u32 %v12685_v59, 16  ;;  %v1041_v59 = vshll.u32 %v12689_v32, 16  ;;  %v2729_v28 = vrot.slane %v2727_v36, 1  ;;  %v1005_v62 = vor.u32 %v1003_v61, %v1002_v38 }
 0x163   : > { %420 = vst [vmem:[#allocation2 + $0xb8] sm:$0x11] %v419_v14  ;;  %v968_v14 = vrot.slane %v964_v26, 4  ;;  %v2732_v44 = vrot.slane %v2730_v20, 2 }
 0x164   : > { %423 = vst [vmem:[#allocation2 + $0x20] sm:$0x11] %v422_v63  ;;  %v967_v63 = vor.u32 %v965_v18, %v964_v26  ;;  %v1043_v32 = vor.u32 %v1041_v59, %v1040_v31  ;;  %v2892_v21 = vunpack.i.h.s16 %v2729_v28  ;;  %v2562_v26 = vrot.slane %v15665_v24, 3 }
 0x165   : > { %863 = vst [vmem:[#allocation2 + $0x138] sm:$0x11] %v862_v54  ;;  %v976_v16 = vsel %vm14475_vm8, %v968_v14, %v975_v30  ;;  %v2894_v2 = vunpack.i.h.s16 %v2732_v44 }
 0x166   : > { %898 = vst [vmem:[#allocation2 + $0x1f0] sm:$0xff] %v897_v29  ;;  %v973_v58 = vsel %vm14520_vm1, %v967_v63, %v972_v53  ;;  %v12970_v3 = vpack.i.b16 %v2732_v44, %v2892_v21  ;;  %v2744_v61 = vsel %vm1200_vm4, %v15665_v24, %v2562_v26  ;;  %v2747_v14 = vsel %vm18907_vm6, %v15665_v24, %v2562_v26 }
 0x167   : > { %901 = vst [vmem:[#allocation2 + $0x70] sm:$0x11] %v900_v6  ;;  %v1010_v6 = vld [vmem:[#allocation2 + $0x1c8] sm:$0xff]  ;;  %v2746_v63 = vrot.slane %v2744_v61, 1  ;;  %v2749_v30 = vrot.slane %v2747_v14, 2 }
 0x168   : > { %936 = vst [vmem:[#allocation2 + $0xc8] sm:$0xff] %v15665_v24  ;;  %v15687_v47 = vsel %vm14520_vm1, %v1005_v62, %v1010_v6 }
 0x169   : > { %v3107_v57 = vld [vmem:[#allocation1] sm:$0xff]  ;;  %v3108_v0 = vld [vmem:[#allocation1 + $0x9] sm:$0xff]  ;;  %939 = vst [vmem:[#allocation2 + $0x180] sm:$0x11] %v938_v27  ;;  %v2566_v44 = vrot.slane %v15687_v47, 3 }
 0x16a   : > { %3110 = vst [vmem:[#allocation1] ss:$9 sm:$0xff] %v12964_v48  ;;  %v1013_v49 = vld [vmem:[#allocation2 + $0xb8] sm:$0x11]  ;;  %v2735_v48 = vrot.slane %v2733_v45, 3 }
 0x16b   : > { %3112 = vst [vmem:[#allocation1 + $0x1] ss:$9 sm:$0xff] %v12965_v25  ;;  %v1051_v35 = vld [vmem:[#allocation2 + $0x20] sm:$0x11]  ;;  %v1014_v27 = vsel %vm14475_vm8, %v1006_v4, %v1013_v49  ;;  %v2890_v25 = vunpack.i.h.s16 %v2725_v52  ;;  %v2750_v49 = vsel %vm18906_vm7, %v15665_v24, %v2562_v26  ;;  %v2778_v21 = vsel %vm1200_vm4, %v15687_v47, %v2566_v44 }
 0x16c   : > { %3114 = vst [vmem:[#allocation1 + $0x2] ss:$9 sm:$0xff] %v12966_v55  ;;  %v2503_v42 = vld [vmem:[#allocation2 + $0x138] sm:$0x11]  ;;  %v1052_v55 = vsel %vm14475_vm8, %v1044_v43, %v1051_v35  ;;  %v12971_v36 = vpack.i.b16 %v2735_v48, %v2894_v2 }
 0x16d   : > { %3314 = vmatmul.bf16.gmra.mxu0 %v3107_v57  ;;  %3363 = vmatmul.bf16.gmra.mxu1 %v3108_v0  ;;  %3116 = vst [vmem:[#allocation1 + $0x3] ss:$9 sm:$0xff] %v12967_v10  ;;  %v2559_v54 = vrot.slane %v2503_v42, 3  ;;  %v15695_v57 = vsel %vm14520_vm1, %v1043_v32, %v1048_v9  ;;  %v2896_v0 = vunpack.i.h.s16 %v2735_v48  ;;  %v2752_v32 = vrot.slane %v2750_v49, 3 }
 0x16e   : > { %3118 = vst [vmem:[#allocation1 + $0x4] ss:$9 sm:$0xff] %v2708_v22  ;;  %v2505_v46 = vld [vmem:[#allocation2 + $0x70] sm:$0x11]  ;;  %v12969_v22 = vpack.i.b16 %v2729_v28, %v2890_v25 }
 0x16f   : > { %3120 = vst [vmem:[#allocation1 + $0x5] ss:$9 sm:$0xff] %v2712_v7  ;;  %v2561_v29 = vrot.slane %v2505_v46, 3  ;;  %v2721_v8 = vsel %vm226_vm2, %v2503_v42, %v2559_v54 }
 0x170   : > { %3122 = vst [vmem:[#allocation1 + $0x6] ss:$9 sm:$0xff] %v2715_v23  ;;  %v12968_v10 = vpack.i.b16 %v2725_v52, %v2721_v8  ;;  %v2564_v23 = vrot.slane %v973_v58, 3  ;;  %v2507_v42 = vld [vmem:[#allocation2 + $0x180] sm:$0x11] }
 0x171   : > { %3124 = vst [vmem:[#allocation1 + $0x7] ss:$9 sm:$0xff] %v2718_v15  ;;  %v2738_v18 = vsel %vm226_vm2, %v2505_v46, %v2561_v29  ;;  %v2742_v15 = vsel %vm226_vm2, %v15665_v24, %v2562_v26  ;;  %v2563_v53 = vrot.slane %v2507_v42, 3  ;;  %v2568_v24 = vrot.slane %v15695_v57, 3 }
 0x172   : > { %974 = vst [vmem:[#allocation2 + $0x60] sm:$0xff] %v973_v58  ;;  %v12972_v31 = vpack.i.b16 %v2738_v18, %v2896_v0  ;;  %v2761_v59 = vsel %vm1200_vm4, %v973_v58, %v2564_v23  ;;  %v2764_v20 = vsel %vm18907_vm6, %v973_v58, %v2564_v23  ;;  %v2767_v4 = vsel %vm18906_vm7, %v973_v58, %v2564_v23 }
 0x173   : > { %977 = vst [vmem:[#allocation2 + $0x188] sm:$0x11] %v976_v16  ;;  %v2759_v28 = vsel %vm226_vm2, %v973_v58, %v2564_v23  ;;  %v2763_v45 = vrot.slane %v2761_v59, 1  ;;  %v2766_v62 = vrot.slane %v2764_v20, 2  ;;  %v2769_v46 = vrot.slane %v2767_v4, 3 }
 0x174   : > { %1012 = vst [vmem:[#allocation2 + $0x1c8] sm:$0xff] %v15687_v47  ;;  %v2755_v16 = vsel %vm226_vm2, %v2507_v42, %v2563_v53  ;;  %v2908_v6 = vunpack.i.h.s16 %v2759_v28  ;;  %v2776_v0 = vsel %vm226_vm2, %v15687_v47, %v2566_v44  ;;  %v2795_v18 = vsel %vm1200_vm4, %v15695_v57, %v2568_v24 }
 0x175   : > { %1015 = vst [vmem:[#allocation2 + $0xb8] sm:$0x11] %v1014_v27  ;;  %v2910_v43 = vunpack.i.h.s16 %v2763_v45  ;;  %v2912_v35 = vunpack.i.h.s16 %v2766_v62  ;;  %v2914_v48 = vunpack.i.h.s16 %v2769_v46  ;;  %v12973_v27 = vpack.i.b16 %v2759_v28, %v2755_v16  ;;  %v14274_v16 = vld [vmem:[%s18798_s1 + $0x278] sm:$0xff] }
 0x176   : > { %1050 = vst [vmem:[#allocation2] sm:$0xff] %v15695_v57  ;;  %v12974_v9 = vpack.i.b16 %v2763_v45, %v2908_v6  ;;  %v15727_v23 = vsel %vm226_vm2, %v15695_v57, %v2568_v24  ;;  %v15729_v61 = vrot.slane %v2795_v18, 1  ;;  %v2025_v42 = vadd.f32 %v15377_v19, %v15375_v60  ;;  %v14282_v60 = vld [vmem:[%s18798_s1 + $0x2b8] sm:$0xff]  ;;  %v2446_v45 = vpop.f32.mrf.mxu3  ;;  %v15759_v6 = vpop.f32.mrf.mxu0  ;;  %5178 = vmatpush.bf16.msra.mxu1 %v14274_v16 }
 0x177   : > { %1053 = vst [vmem:[#allocation2 + $0x20] sm:$0x11] %v1052_v55  ;;  %v12975_v29 = vpack.i.b16 %v2766_v62, %v2910_v43  ;;  %v12976_v55 = vpack.i.b16 %v2769_v46, %v2912_v35  ;;  %v18836_v59 = vunpack.i.h.s16 %v15727_v23  ;;  %v14290_v19 = vld [vmem:[%s18798_s1 + $0x2f8] sm:$0xff]  ;;  %v15761_v43 = vpop.f32.mrf.mxu1  ;;  %6048 = vmatpush.bf16.msra.mxu2 %v14282_v60 }
 0x178   : > { %v3125_v38 = vld [vmem:[#allocation1] sm:$0xff]  ;;  %v3126_v7 = vld [vmem:[#allocation1 + $0x9] sm:$0xff]  ;;  %v2928_v53 = vunpack.i.h.s16 %v15729_v61  ;;  %v14266_v62 = vld [vmem:[%s18798_s1 + $0x238] sm:$0xff]  ;;  %18991 = vst [vmem:[#allocation15_spill] sm:$0xff] %v15759_v6  ;;  %6097 = vmatpush.bf16.msra.mxu3 %v14290_v19 }
 0x179   : > { %3128 = vst [vmem:[#allocation1] ss:$9 sm:$0xff] %v12968_v10  ;;  %v2780_v10 = vrot.slane %v2778_v21, 1  ;;  %5129 = vmatpush.bf16.msra.mxu0 %v14266_v62 }
 0x17a   : > { %3130 = vst [vmem:[#allocation1 + $0x1] ss:$9 sm:$0xff] %v12969_v22  ;;  %v2509_v54 = vld [vmem:[#allocation2 + $0x188] sm:$0x11]  ;;  %v2798_v22 = vsel %vm18907_vm6, %v15695_v57, %v2568_v24 }
 0x17b   : > { %3132 = vst [vmem:[#allocation1 + $0x2] ss:$9 sm:$0xff] %v12970_v3  ;;  %v2565_v52 = vrot.slane %v2509_v54, 3  ;;  %v15733_v14 = vrot.slane %v2798_v22, 2 }
 0x17c   : > { %3134 = vst [vmem:[#allocation1 + $0x3] ss:$9 sm:$0xff] %v12971_v36  ;;  %v2511_v2 = vld [vmem:[#allocation2 + $0xb8] sm:$0x11]  ;;  %v2781_v36 = vsel %vm18907_vm6, %v15687_v47, %v2566_v44 }
 0x17d   : > { %3319 = vmatmul.bf16.gmra.mxu0 %v3125_v38  ;;  %3368 = vmatmul.bf16.gmra.mxu1 %v3126_v7  ;;  %3136 = vst [vmem:[#allocation1 + $0x4] ss:$9 sm:$0xff] %v12972_v31  ;;  %v2772_v58 = vsel %vm226_vm2, %v2509_v54, %v2565_v52  ;;  %v2567_v3 = vrot.slane %v2511_v2, 3  ;;  %v2801_v38 = vsel %vm18906_vm7, %v15695_v57, %v2568_v24  ;;  %v3405_v31 = vld [vmem:[#allocation2 + $0x1c0] sm:$0xff]  ;;  %v2783_v20 = vrot.slane %v2781_v36, 2 }
 0x17e   : > { %3138 = vst [vmem:[#allocation1 + $0x5] ss:$9 sm:$0xff] %v2742_v15  ;;  %v12977_v26 = vpack.i.b16 %v2772_v58, %v2914_v48  ;;  %v2513_v7 = vld [vmem:[#allocation2 + $0x20] sm:$0x11]  ;;  %v2784_v15 = vsel %vm18906_vm7, %v15687_v47, %v2566_v44  ;;  %v3461_v4 = vrot.slane %v3405_v31, 3  ;;  %v2930_v28 = vunpack.i.h.s16 %v15733_v14  ;;  %v2397_v47 = vpop.f32.mrf.mxu2  ;;  %v2000_v36 = vpop.f32.mrf.mxu0 }
 0x17f   : > { %3140 = vst [vmem:[#allocation1 + $0x6] ss:$9 sm:$0xff] %v2746_v63  ;;  %v15739_v63 = vrot.slane %v2801_v38, 3  ;;  %v2789_v57 = vsel %vm226_vm2, %v2511_v2, %v2567_v3  ;;  %v2786_v54 = vrot.slane %v2784_v15, 3  ;;  %v2398_v52 = vadd.f32 %v2397_v47, %v2025_v42  ;;  %v3406_v58 = vld [vmem:[#allocation2 + $0x170] sm:$0x11]  ;;  %v15777_v38 = vpop.f32.mrf.mxu3  ;;  %v2049_v42 = vpop.f32.mrf.mxu1 }
 0x180   : > { %3142 = vst [vmem:[#allocation1 + $0x7] ss:$9 sm:$0xff] %v2749_v30  ;;  %v2569_v30 = vrot.slane %v2513_v7, 3  ;;  %v12978_v46 = vpack.i.b16 %v15727_v23, %v2789_v57  ;;  %v3496_v24 = vsel %vm18907_vm6, %v3405_v31, %v3461_v4  ;;  %v15781_v57 = vadd.f32 %v2049_v42, %v2000_v36  ;;  %v3408_v42 = vld [vmem:[#allocation2 + $0x110] sm:$0x11] }
 0x181   : > { %v2932_v49 = vunpack.i.h.s16 %v15739_v63  ;;  %18992 = vst [vmem:[#allocation16_spill] sm:$0xff] %v15761_v43  ;;  %v3498_v18 = vrot.slane %v3496_v24, 2  ;;  %v14273_v24 = vld [vmem:[%s18798_s1 + $0x270] sm:$0xff] }
 0x182   : > { %v2806_v44 = vsel %vm226_vm2, %v2513_v7, %v2569_v30  ;;  %18994 = vst [vmem:[#allocation23_spill] sm:$0xff] %v15777_v38  ;;  %5179 = vmatpush.bf16.msra.mxu1 %v14273_v24 }
 0x183   : > { %v12982_v21 = vpack.i.b16 %v2806_v44, %v2932_v49  ;;  %v14281_v44 = vld [vmem:[%s18798_s1 + $0x2b0] sm:$0xff] }
 0x184   : > { %6049 = vmatpush.bf16.msra.mxu2 %v14281_v44 }
 0x186   : > { %v15775_v3 = vpop.f32.mrf.mxu2 }
 0x187   : > { %v3143_v8 = vld [vmem:[#allocation1] sm:$0xff]  ;;  %v3144_v25 = vld [vmem:[#allocation1 + $0x9] sm:$0xff]  ;;  %18993 = vst [vmem:[#allocation17_spill] sm:$0xff] %v15775_v3 }
 0x188   : > { %3146 = vst [vmem:[#allocation1] ss:$9 sm:$0xff] %v2752_v32  ;;  %v12979_v32 = vpack.i.b16 %v15729_v61, %v18836_v59 }
 0x189   : > { %3148 = vst [vmem:[#allocation1 + $0x1] ss:$9 sm:$0xff] %v12973_v27  ;;  %v12980_v27 = vpack.i.b16 %v15733_v14, %v2928_v53 }
 0x18a   : > { %3150 = vst [vmem:[#allocation1 + $0x2] ss:$9 sm:$0xff] %v12974_v9  ;;  %v3407_v9 = vld [vmem:[#allocation2 + $0x118] sm:$0xff] }
 0x18b   : > { %3152 = vst [vmem:[#allocation1 + $0x3] ss:$9 sm:$0xff] %v12975_v29  ;;  %v3493_v29 = vsel %vm1200_vm4, %v3405_v31, %v3461_v4  ;;  %v3463_v2 = vrot.slane %v3407_v9, 3 }
 0x18c   : > { %3154 = vst [vmem:[#allocation1 + $0x4] ss:$9 sm:$0xff] %v12976_v55  ;;  %v3499_v55 = vsel %vm18906_vm7, %v3405_v31, %v3461_v4 }
 0x18d   : > { %3156 = vst [vmem:[#allocation1 + $0x5] ss:$9 sm:$0xff] %v12977_v26  ;;  %3324 = vmatmul.bf16.gmra.mxu0 %v3143_v8  ;;  %3373 = vmatmul.bf16.gmra.mxu1 %v3144_v25  ;;  %v15769_v8 = vadd.f32 %v2446_v45, %v2398_v52  ;;  %v12981_v25 = vpack.i.b16 %v15739_v63, %v2930_v28  ;;  %v3462_v26 = vrot.slane %v3406_v58, 3  ;;  %v3501_v22 = vrot.slane %v3499_v55, 3  ;;  %v15801_v55 = vpop.f32.mrf.mxu1 }
 0x18e   : > { %3158 = vst [vmem:[#allocation1 + $0x6] ss:$9 sm:$0xff] %v2776_v0  ;;  %v3491_v0 = vsel %vm226_vm2, %v3405_v31, %v3461_v4  ;;  %v3508_v30 = vsel %vm226_vm2, %v3407_v9, %v3463_v2  ;;  %v3409_v4 = vld [vmem:[#allocation2 + $0x78] sm:$0xff]  ;;  %v3510_v47 = vsel %vm1200_vm4, %v3407_v9, %v3463_v2  ;;  %v3513_v52 = vsel %vm18907_vm6, %v3407_v9, %v3463_v2 }
 0x18f   : > { %3160 = vst [vmem:[#allocation1 + $0x7] ss:$9 sm:$0xff] %v2780_v10  ;;  %v3495_v10 = vrot.slane %v3493_v29, 1  ;;  %v3727_v7 = vunpack.i.h.s16 %v3491_v0  ;;  %v3504_v15 = vsel %vm226_vm2, %v3406_v58, %v3462_v26  ;;  %v3733_v53 = vunpack.i.h.s16 %v3501_v22  ;;  %v14289_v58 = vld [vmem:[%s18798_s1 + $0x2f0] sm:$0xff]  ;;  %v3410_v26 = vld [vmem:[#allocation2 + $0x150] sm:$0x11] }
 0x190   : > { %v3736_v28 = vunpack.i.h.s16 %v3508_v30  ;;  %v3465_v62 = vrot.slane %v3409_v4, 3  ;;  %18996 = vst [vmem:[#allocation19_spill] sm:$0xff] %v15801_v55  ;;  %v15803_v0 = vld [vmem:[#allocation2 + $0x88] sm:$0xff]  ;;  %6098 = vmatpush.bf16.msra.mxu3 %v14289_v58 }
 0x191   : > { %v3729_v31 = vunpack.i.h.s16 %v3495_v10  ;;  %v13079_v60 = vpack.i.b16 %v3495_v10, %v3727_v7  ;;  %v13082_v16 = vpack.i.b16 %v3504_v15, %v3733_v53  ;;  %v3466_v7 = vrot.slane %v3410_v26, 3 }
 0x192   : > { %v3533_v36 = vsel %vm18906_vm7, %v3409_v4, %v3465_v62  ;;  %v3525_v30 = vsel %vm226_vm2, %v3409_v4, %v3465_v62 }
 0x193   : > { %v13080_v19 = vpack.i.b16 %v3498_v18, %v3729_v31  ;;  %v3535_v53 = vrot.slane %v3533_v36, 3 }
 0x196   : > { %v3161_v35 = vld [vmem:[#allocation1] sm:$0xff]  ;;  %v3162_v48 = vld [vmem:[#allocation1 + $0x9] sm:$0xff] }
 0x197   : > { %3164 = vst [vmem:[#allocation1] ss:$9 sm:$0xff] %v2783_v20  ;;  %v3731_v20 = vunpack.i.h.s16 %v3498_v18 }
 0x198   : > { %3166 = vst [vmem:[#allocation1 + $0x1] ss:$9 sm:$0xff] %v2786_v54  ;;  %v3735_v54 = vunpack.i.h.s16 %v3504_v15  ;;  %v15811_v15 = vrot.slane %v15803_v0, 3 }
 0x199   : > { %3168 = vst [vmem:[#allocation1 + $0x2] ss:$9 sm:$0xff] %v12978_v46  ;;  %v13081_v45 = vpack.i.b16 %v3501_v22, %v3731_v20  ;;  %v3530_v22 = vsel %vm18907_vm6, %v3409_v4, %v3465_v62 }
 0x19a   : > { %3170 = vst [vmem:[#allocation1 + $0x3] ss:$9 sm:$0xff] %v12979_v32  ;;  %v2402_v32 = vpop.f32.mrf.mxu2  ;;  %v3532_v20 = vrot.slane %v3530_v22, 2  ;;  %v3544_v24 = vsel %vm1200_vm4, %v15803_v0, %v15811_v15  ;;  %v14288_v22 = vld [vmem:[%s18798_s1 + $0x2e8] sm:$0xff] }
 0x19b   : > { %3172 = vst [vmem:[#allocation1 + $0x4] ss:$9 sm:$0xff] %v12980_v27  ;;  %v3890_v27 = vpack.i.b16 %v3736_v28, %v3735_v54  ;;  %v2403_v29 = vadd.f32 %v2402_v32, %v15440_v39  ;;  %v3527_v39 = vsel %vm1200_vm4, %v3409_v4, %v3465_v62  ;;  %v3542_v4 = vsel %vm226_vm2, %v15803_v0, %v15811_v15 }
 0x19c   : > { %3174 = vst [vmem:[#allocation1 + $0x5] ss:$9 sm:$0xff] %v12981_v25  ;;  %v14265_v25 = vld [vmem:[%s18798_s1 + $0x230] sm:$0xff]  ;;  %v3529_v31 = vrot.slane %v3527_v39, 1  ;;  %v3749_v44 = vunpack.i.h.s16 %v3532_v20  ;;  %v3751_v32 = vunpack.i.h.s16 %v3535_v53  ;;  %v3754_v58 = vunpack.i.h.s16 %v3542_v4  ;;  %6099 = vmatpush.bf16.msra.mxu3 %v14288_v22 }
 0x19d   : > { %3176 = vst [vmem:[#allocation1 + $0x6] ss:$9 sm:$0xff] %v12982_v21  ;;  %3329 = vmatmul.bf16.gmra.mxu0 %v3161_v35  ;;  %3378 = vmatmul.bf16.gmra.mxu1 %v3162_v48  ;;  %v2451_v35 = vpop.f32.mrf.mxu3  ;;  %v3516_v48 = vsel %vm18906_vm7, %v3407_v9, %v3463_v2  ;;  %v15799_v21 = vpop.f32.mrf.mxu0  ;;  %v3512_v9 = vrot.slane %v3510_v47, 1  ;;  %v3515_v2 = vrot.slane %v3513_v52, 2  ;;  %v3538_v52 = vsel %vm226_vm2, %v3410_v26, %v3466_v7 }
 0x19e   : > { %18995 = vst [vmem:[#allocation18_spill] sm:$0xff] %v15799_v21  ;;  %v15806_v10 = vadd.f32 %v2451_v35, %v2403_v29  ;;  %5130 = vmatpush.bf16.msra.mxu0 %v14265_v25  ;;  %v3518_v18 = vrot.slane %v3516_v48, 3  ;;  %v3747_v62 = vunpack.i.h.s16 %v3529_v31  ;;  %v3413_v35 = vld [vmem:[#allocation2 + $0x100] sm:$0xff]  ;;  %v13086_v39 = vpack.i.b16 %v3538_v52, %v3751_v32 }
 0x19f   : > { %v3469_v26 = vrot.slane %v3413_v35, 3 }
 0x1a0   : > { %v13084_v25 = vpack.i.b16 %v3532_v20, %v3747_v62  ;;  %v14272_v20 = vld [vmem:[%s18798_s1 + $0x268] sm:$0xff]  ;;  %v14263_v62 = vld [vmem:[%s18798_s1 + $0x220] sm:$0xff] }
 0x1a1   : > { %v3561_v4 = vsel %vm1200_vm4, %v3413_v35, %v3469_v26  ;;  %5180 = vmatpush.bf16.msra.mxu1 %v14272_v20  ;;  %v3564_v32 = vsel %vm18907_vm6, %v3413_v35, %v3469_v26  ;;  %v3417_v20 = vld [vmem:[#allocation2 + $0x178] sm:$0xff] }
 0x1a2   : > { %v15814_v54 = vpop.f32.mrf.mxu2 }
 0x1a3   : > { %18997 = vst [vmem:[#allocation20_spill] sm:$0xff] %v15814_v54 }
 0x1a4   : > { %v3177_v49 = vld [vmem:[#allocation1] sm:$0xff]  ;;  %v3178_v46 = vld [vmem:[#allocation1 + $0x9] sm:$0xff] }
 0x1a5   : > { %3950 = vst [vmem:[#allocation1] ss:$9 sm:$0xff] %v13079_v60  ;;  %v15816_v28 = vpop.f32.mrf.mxu3  ;;  %v3464_v60 = vrot.slane %v3408_v42, 3  ;;  %v2005_v47 = vpop.f32.mrf.mxu0 }
 0x1a6   : > { %3953 = vst [vmem:[#allocation1 + $0x1] ss:$9 sm:$0xff] %v13080_v19  ;;  %v3745_v19 = vunpack.i.h.s16 %v3525_v30 }
 0x1a7   : > { %3956 = vst [vmem:[#allocation1 + $0x2] ss:$9 sm:$0xff] %v13081_v45  ;;  %v2054_v45 = vpop.f32.mrf.mxu1  ;;  %v3521_v48 = vsel %vm226_vm2, %v3408_v42, %v3464_v60  ;;  %v14264_v42 = vld [vmem:[%s18798_s1 + $0x228] sm:$0xff] }
 0x1a8   : > { %3959 = vst [vmem:[#allocation1 + $0x3] ss:$9 sm:$0xff] %v13082_v16  ;;  %v15822_v16 = vadd.f32 %v2054_v45, %v2005_v47  ;;  %v13083_v29 = vpack.i.b16 %v3529_v31, %v3745_v19  ;;  %v3546_v19 = vrot.slane %v3544_v24, 1  ;;  %v3414_v47 = vld [vmem:[#allocation2 + $0xe8] sm:$0x11]  ;;  %5131 = vmatpush.bf16.msra.mxu0 %v14264_v42  ;;  %v3550_v24 = vsel %vm18906_vm7, %v15803_v0, %v15811_v15 }
 0x1a9   : > { %3962 = vst [vmem:[#allocation1 + $0x4] ss:$9 sm:$0xff] %v3890_v27  ;;  %v3753_v27 = vunpack.i.h.s16 %v3538_v52  ;;  %v15848_v52 = vld [vmem:[#allocation2 + $0x158] sm:$0xff] }
 0x1aa   : > { %3965 = vst [vmem:[#allocation1 + $0x5] ss:$9 sm:$0xff] %v3512_v9  ;;  %v13085_v9 = vpack.i.b16 %v3535_v53, %v3749_v44  ;;  %v2407_v7 = vpop.f32.mrf.mxu2  ;;  %v14271_v44 = vld [vmem:[%s18798_s1 + $0x260] sm:$0xff] }
 0x1ab   : > { %3968 = vst [vmem:[#allocation1 + $0x6] ss:$9 sm:$0xff] %v3515_v2  ;;  %v3547_v2 = vsel %vm18907_vm6, %v15803_v0, %v15811_v15  ;;  %v3899_v30 = vpack.i.b16 %v3754_v58, %v3753_v27  ;;  %v2408_v31 = vadd.f32 %v2407_v7, %v15503_v56  ;;  %v3567_v27 = vsel %vm18906_vm7, %v3413_v35, %v3469_v26  ;;  %v3412_v58 = vld [vmem:[#allocation2 + $0x198] sm:$0x11] }
 0x1ac   : > { %3971 = vst [vmem:[#allocation1 + $0x7] ss:$9 sm:$0xff] %v3518_v18  ;;  %v14280_v18 = vld [vmem:[%s18798_s1 + $0x2a8] sm:$0xff]  ;;  %v3549_v45 = vrot.slane %v3547_v2, 2  ;;  %5132 = vmatpush.bf16.msra.mxu0 %v14263_v62  ;;  %5181 = vmatpush.bf16.msra.mxu1 %v14271_v44 }
 0x1ad   : > { %18998 = vst [vmem:[#allocation21_spill] sm:$0xff] %v15816_v28  ;;  %3334 = vmatmul.bf16.gmra.mxu0 %v3177_v49  ;;  %3383 = vmatmul.bf16.gmra.mxu1 %v3178_v46  ;;  %v2456_v36 = vpop.f32.mrf.mxu3  ;;  %v15844_v53 = vpop.f32.mrf.mxu0 }
 0x1ae   : > { %18999 = vst [vmem:[#allocation22_spill] sm:$0xff] %v15844_v53  ;;  %6050 = vmatpush.bf16.msra.mxu2 %v14280_v18  ;;  %v15851_v56 = vadd.f32 %v2456_v36, %v2408_v31  ;;  %v3468_v18 = vrot.slane %v3412_v58, 3  ;;  %v3552_v31 = vrot.slane %v3550_v24, 3 }
 0x1af   : > { %v15846_v60 = vpop.f32.mrf.mxu1 }
 0x1b0   : > { %19000 = vst [vmem:[#allocation25_spill] sm:$0xff] %v15846_v60 }
 0x1b2   : > { %v15868_v2 = vpop.f32.mrf.mxu2 }
 0x1b3   : > { %v3972_v49 = vld [vmem:[#allocation1] sm:$0xff]  ;;  %v3973_v46 = vld [vmem:[#allocation1 + $0x9] sm:$0xff]  ;;  %19001 = vst [vmem:[#allocation26_spill] sm:$0xff] %v15868_v2 }
 0x1b4   : > { %4218 = vmatmul.bf16.vlgmr.msrb.gmra.mxu2 %v3972_v49  ;;  %4267 = vmatmul.bf16.vlgmr.msrb.gmra.mxu3 %v3973_v46  ;;  %3975 = vst [vmem:[#allocation1] ss:$9 sm:$0xff] %v3521_v48  ;;  %v3470_v48 = vrot.slane %v3414_v47, 3  ;;  %v3563_v49 = vrot.slane %v3561_v4, 1  ;;  %v3566_v46 = vrot.slane %v3564_v32, 2 }
 0x1b5   : > { %3977 = vst [vmem:[#allocation1 + $0x1] ss:$9 sm:$0xff] %v13083_v29  ;;  %v15862_v29 = vrot.slane %v15848_v52, 3  ;;  %v2010_v7 = vpop.f32.mrf.mxu0 }
 0x1b6   : > { %3979 = vst [vmem:[#allocation1 + $0x2] ss:$9 sm:$0xff] %v13084_v25  ;;  %v3559_v25 = vsel %vm226_vm2, %v3413_v35, %v3469_v26  ;;  %v3572_v35 = vsel %vm226_vm2, %v3414_v47, %v3470_v48  ;;  %v3765_v42 = vunpack.i.h.s16 %v3563_v49  ;;  %v3767_v0 = vunpack.i.h.s16 %v3566_v46 }
 0x1b7   : > { %3981 = vst [vmem:[#allocation1 + $0x3] ss:$9 sm:$0xff] %v13085_v9  ;;  %v3569_v9 = vrot.slane %v3567_v27, 3  ;;  %v3763_v22 = vunpack.i.h.s16 %v3559_v25  ;;  %v2059_v36 = vpop.f32.mrf.mxu1  ;;  %v3576_v26 = vsel %vm226_vm2, %v15848_v52, %v15862_v29  ;;  %v3578_v47 = vsel %vm1200_vm4, %v15848_v52, %v15862_v29 }
 0x1b8   : > { %3983 = vst [vmem:[#allocation1 + $0x4] ss:$9 sm:$0xff] %v13086_v39  ;;  %v15870_v39 = vpop.f32.mrf.mxu3  ;;  %v3772_v4 = vunpack.i.h.s16 %v3576_v26  ;;  %v13088_v27 = vpack.i.b16 %v3566_v46, %v3765_v42  ;;  %v3473_v25 = vrot.slane %v3417_v20, 3  ;;  %v14262_v46 = vld [vmem:[%s18798_s1 + $0x218] sm:$0xff]  ;;  %v3580_v26 = vrot.slane %v3578_v47, 1 }
 0x1b9   : > { %3985 = vst [vmem:[#allocation1 + $0x5] ss:$9 sm:$0xff] %v3899_v30  ;;  %v15876_v30 = vadd.f32 %v2059_v36, %v2010_v7  ;;  %v3769_v15 = vunpack.i.h.s16 %v3569_v9  ;;  %v13087_v62 = vpack.i.b16 %v3563_v49, %v3763_v22  ;;  %v13089_v48 = vpack.i.b16 %v3569_v9, %v3767_v0  ;;  %v14287_v49 = vld [vmem:[%s18798_s1 + $0x2e0] sm:$0xff]  ;;  %v14270_v22 = vld [vmem:[%s18798_s1 + $0x258] sm:$0xff]  ;;  %5133 = vmatpush.bf16.msra.mxu0 %v14262_v46  ;;  %v14268_v46 = vld [vmem:[%s18798_s1 + $0x248] sm:$0xff] }
 0x1ba   : > { %3987 = vst [vmem:[#allocation1 + $0x6] ss:$9 sm:$0xff] %v3546_v19  ;;  %v3555_v19 = vsel %vm226_vm2, %v3412_v58, %v3468_v18  ;;  %v14279_v58 = vld [vmem:[%s18798_s1 + $0x2a0] sm:$0xff]  ;;  %v2412_v18 = vpop.f32.mrf.mxu2  ;;  %v3418_v42 = vld [vmem:[#allocation2 + $0xd0] sm:$0x11]  ;;  %6100 = vmatpush.bf16.msra.mxu3 %v14287_v49  ;;  %5182 = vmatpush.bf16.msra.mxu1 %v14270_v22  ;;  %v3593_v47 = vsel %vm226_vm2, %v3417_v20, %v3473_v25 }
 0x1bb   : > { %3989 = vst [vmem:[#allocation1 + $0x7] ss:$9 sm:$0xff] %v3549_v45  ;;  %v3771_v45 = vunpack.i.h.s16 %v3572_v35  ;;  %v13090_v24 = vpack.i.b16 %v3572_v35, %v3769_v15  ;;  %v2413_v7 = vadd.f32 %v2412_v18, %v15563_v11  ;;  %6051 = vmatpush.bf16.msra.mxu2 %v14279_v58  ;;  %v15899_v0 = vld [vmem:[#allocation2 + $0x50] sm:$0xff]  ;;  %v3595_v15 = vsel %vm1200_vm4, %v3417_v20, %v3473_v25  ;;  %v14261_v11 = vld [vmem:[%s18798_s1 + $0x210] sm:$0xff] }
 0x1bc   : > { %19002 = vst [vmem:[#allocation24_spill] sm:$0xff] %v15870_v39  ;;  %v3581_v58 = vsel %vm18907_vm6, %v15848_v52, %v15862_v29  ;;  %v3781_v22 = vunpack.i.h.s16 %v3593_v47 }
 0x1bd   : > { %v3908_v9 = vpack.i.b16 %v3772_v4, %v3771_v45  ;;  %v15895_v36 = vpop.f32.mrf.mxu0  ;;  %v14269_v45 = vld [vmem:[%s18798_s1 + $0x250] sm:$0xff]  ;;  %v3598_v4 = vsel %vm18907_vm6, %v3417_v20, %v3473_v25  ;;  %5134 = vmatpush.bf16.msra.mxu0 %v14261_v11 }
 0x1be   : > { %19003 = vst [vmem:[#allocation27_spill] sm:$0xff] %v15895_v36  ;;  %v3600_v49 = vrot.slane %v3598_v4, 2  ;;  %5183 = vmatpush.bf16.msra.mxu1 %v14269_v45 }
 0x1bf   : > { %v15897_v35 = vpop.f32.mrf.mxu1 }
 0x1c0   : > { %19004 = vst [vmem:[#allocation28_spill] sm:$0xff] %v15897_v35  ;;  %v3785_v59 = vunpack.i.h.s16 %v3600_v49 }
 0x1c2   : > { %v3990_v44 = vld [vmem:[#allocation1] sm:$0xff]  ;;  %v3991_v32 = vld [vmem:[#allocation1 + $0x9] sm:$0xff]  ;;  %5184 = vmatpush.bf16.msra.mxu1 %v14268_v46 }
 0x1c3   : > { %3993 = vst [vmem:[#allocation1] ss:$9 sm:$0xff] %v3552_v31  ;;  %v2461_v31 = vpop.f32.mrf.mxu3 }
 0x1c4   : > { %4223 = vmatmul.bf16.gmra.mxu2 %v3990_v44  ;;  %4272 = vmatmul.bf16.gmra.mxu3 %v3991_v32  ;;  %3995 = vst [vmem:[#allocation1 + $0x1] ss:$9 sm:$0xff] %v3555_v19  ;;  %v15902_v19 = vadd.f32 %v2461_v31, %v2413_v7  ;;  %v3601_v44 = vsel %vm18906_vm7, %v3417_v20, %v3473_v25  ;;  %v3416_v32 = vld [vmem:[#allocation2 + $0xf8] sm:$0x11]  ;;  %v3583_v31 = vrot.slane %v3581_v58, 2 }
 0x1c5   : > { %3997 = vst [vmem:[#allocation1 + $0x2] ss:$9 sm:$0xff] %v13087_v62  ;;  %v3474_v62 = vrot.slane %v3418_v42, 3  ;;  %v3584_v20 = vsel %vm18906_vm7, %v15848_v52, %v15862_v29  ;;  %v3603_v25 = vrot.slane %v3601_v44, 3  ;;  %v3472_v18 = vrot.slane %v3416_v32, 3  ;;  %v3300_v7 = vpop.f32.mrf.mxu0  ;;  %v14259_v52 = vld [vmem:[%s18798_s1 + $0x200] sm:$0xff] }
 0x1c6   : > { %3999 = vst [vmem:[#allocation1 + $0x3] ss:$9 sm:$0xff] %v13088_v27  ;;  %v15913_v27 = vrot.slane %v15899_v0, 3  ;;  %v3586_v4 = vrot.slane %v3584_v20, 3  ;;  %v14267_v29 = vld [vmem:[%s18798_s1 + $0x240] sm:$0xff] }
 0x1c7   : > { %4001 = vst [vmem:[#allocation1 + $0x4] ss:$9 sm:$0xff] %v13089_v48  ;;  %v3597_v48 = vrot.slane %v3595_v15, 1  ;;  %v3421_v44 = vld [vmem:[#allocation2 + $0x1d8] sm:$0xff]  ;;  %v3589_v20 = vsel %vm226_vm2, %v3416_v32, %v3472_v18  ;;  %v13093_v35 = vpack.i.b16 %v3603_v25, %v3785_v59  ;;  %5185 = vmatpush.bf16.msra.mxu1 %v14267_v29 }
 0x1c8   : > { %4003 = vst [vmem:[#allocation1 + $0x5] ss:$9 sm:$0xff] %v13090_v24  ;;  %v14260_v24 = vld [vmem:[%s18798_s1 + $0x208] sm:$0xff]  ;;  %v3610_v15 = vsel %vm226_vm2, %v15899_v0, %v15913_v27  ;;  %v3477_v36 = vrot.slane %v3421_v44, 3  ;;  %v3612_v18 = vsel %vm1200_vm4, %v15899_v0, %v15913_v27 }
 0x1c9   : > { %4005 = vst [vmem:[#allocation1 + $0x6] ss:$9 sm:$0xff] %v3908_v9  ;;  %v3606_v9 = vsel %vm226_vm2, %v3418_v42, %v3474_v62  ;;  %v3783_v11 = vunpack.i.h.s16 %v3597_v48  ;;  %5135 = vmatpush.bf16.msra.mxu0 %v14260_v24  ;;  %v3787_v42 = vunpack.i.h.s16 %v3603_v25  ;;  %v3790_v24 = vunpack.i.h.s16 %v3610_v15  ;;  %v3422_v25 = vld [vmem:[#allocation2 + $0x138] sm:$0x11] }
 0x1ca   : > { %4007 = vst [vmem:[#allocation1 + $0x7] ss:$9 sm:$0xff] %v3580_v26  ;;  %v3349_v26 = vpop.f32.mrf.mxu1  ;;  %v13091_v46 = vpack.i.b16 %v3597_v48, %v3781_v22  ;;  %v3629_v32 = vsel %vm1200_vm4, %v3421_v44, %v3477_v36  ;;  %v3632_v48 = vsel %vm18907_vm6, %v3421_v44, %v3477_v36  ;;  %v3635_v59 = vsel %vm18906_vm7, %v3421_v44, %v3477_v36 }
 0x1cb   : > { %v3350_v45 = vadd.f32 %v3349_v26, %v3300_v7  ;;  %v3789_v7 = vunpack.i.h.s16 %v3606_v9  ;;  %v13092_v26 = vpack.i.b16 %v3600_v49, %v3783_v11  ;;  %v13094_v60 = vpack.i.b16 %v3606_v9, %v3787_v42  ;;  %v3420_v49 = vld [vmem:[#allocation2 + $0x128] sm:$0x11] }
 0x1cc   : > { %v3627_v9 = vsel %vm226_vm2, %v3421_v44, %v3477_v36  ;;  %v3631_v22 = vrot.slane %v3629_v32, 1  ;;  %v3637_v15 = vrot.slane %v3635_v59, 3  ;;  %v3476_v11 = vrot.slane %v3420_v49, 3 }
 0x1cd   : > { %v15939_v62 = vadd.f32 %v3350_v45, %v15769_v8  ;;  %5136 = vmatpush.bf16.msra.mxu0 %v14259_v52  ;;  %v3917_v8 = vpack.i.b16 %v3790_v24, %v3789_v7  ;;  %v3478_v45 = vrot.slane %v3422_v25, 3  ;;  %v3799_v52 = vunpack.i.h.s16 %v3627_v9  ;;  %v3425_v24 = vld [vmem:[#allocation2 + $0xc8] sm:$0xff] }
 0x1ce   : > { %v3801_v42 = vunpack.i.h.s16 %v3631_v22  ;;  %v3805_v7 = vunpack.i.h.s16 %v3637_v15 }
 0x1d1   : > { %v4008_v47 = vld [vmem:[#allocation1] sm:$0xff]  ;;  %v4009_v58 = vld [vmem:[#allocation1 + $0x9] sm:$0xff] }
 0x1d2   : > { %4011 = vst [vmem:[#allocation1] ss:$9 sm:$0xff] %v3583_v31  ;;  %v3634_v31 = vrot.slane %v3632_v48, 2  ;;  %v3481_v48 = vrot.slane %v3425_v24, 3 }
 0x1d3   : > { %4013 = vst [vmem:[#allocation1 + $0x1] ss:$9 sm:$0xff] %v3586_v4  ;;  %v3614_v4 = vrot.slane %v3612_v18, 1 }
 0x1d4   : > { %4228 = vmatmul.bf16.gmra.mxu2 %v4008_v47  ;;  %4277 = vmatmul.bf16.gmra.mxu3 %v4009_v58  ;;  %4015 = vst [vmem:[#allocation1 + $0x2] ss:$9 sm:$0xff] %v3589_v20  ;;  %v3423_v47 = vld [vmem:[#allocation2 + $0x1f0] sm:$0xff]  ;;  %v3803_v36 = vunpack.i.h.s16 %v3634_v31 }
 0x1d5   : > { %4017 = vst [vmem:[#allocation1 + $0x3] ss:$9 sm:$0xff] %v13091_v46  ;;  %v3623_v46 = vsel %vm226_vm2, %v3420_v49, %v3476_v11  ;;  %v3663_v49 = vsel %vm1200_vm4, %v3425_v24, %v3481_v48 }
 0x1d6   : > { %4019 = vst [vmem:[#allocation1 + $0x4] ss:$9 sm:$0xff] %v13092_v26  ;;  %v3640_v26 = vsel %vm226_vm2, %v3422_v25, %v3478_v45  ;;  %v13097_v32 = vpack.i.b16 %v3637_v15, %v3803_v36  ;;  %v3666_v25 = vsel %vm18907_vm6, %v3425_v24, %v3481_v48  ;;  %v3665_v15 = vrot.slane %v3663_v49, 1 }
 0x1d7   : > { %4021 = vst [vmem:[#allocation1 + $0x5] ss:$9 sm:$0xff] %v13093_v35  ;;  %v3615_v35 = vsel %vm18907_vm6, %v15899_v0, %v15913_v27  ;;  %v13098_v59 = vpack.i.b16 %v3640_v26, %v3805_v7  ;;  %v3807_v9 = vunpack.i.h.s16 %v3640_v26  ;;  %v3668_v45 = vrot.slane %v3666_v25, 2 }
 0x1d8   : > { %4023 = vst [vmem:[#allocation1 + $0x6] ss:$9 sm:$0xff] %v13094_v60  ;;  %v3618_v60 = vsel %vm18906_vm7, %v15899_v0, %v15913_v27  ;;  %v3617_v29 = vrot.slane %v3615_v35, 2  ;;  %v3479_v0 = vrot.slane %v3423_v47, 3  ;;  %v13096_v27 = vpack.i.b16 %v3634_v31, %v3801_v42  ;;  %v3424_v35 = vld [vmem:[#allocation2 + $0x70] sm:$0x11] }
 0x1d9   : > { %4025 = vst [vmem:[#allocation1 + $0x7] ss:$9 sm:$0xff] %v3917_v8  ;;  %v3620_v58 = vrot.slane %v3618_v60, 3  ;;  %v13095_v8 = vpack.i.b16 %v3631_v22, %v3799_v52  ;;  %v3661_v60 = vsel %vm226_vm2, %v3425_v24, %v3481_v48  ;;  %v3669_v52 = vsel %vm18906_vm7, %v3425_v24, %v3481_v48 }
 0x1da   : > { %v3644_v18 = vsel %vm226_vm2, %v3423_v47, %v3479_v0  ;;  %v3646_v31 = vsel %vm1200_vm4, %v3423_v47, %v3479_v0  ;;  %v3649_v11 = vsel %vm18907_vm6, %v3423_v47, %v3479_v0  ;;  %v3480_v42 = vrot.slane %v3424_v35, 3 }
 0x1db   : > { %v3808_v22 = vunpack.i.h.s16 %v3644_v18  ;;  %v3817_v36 = vunpack.i.h.s16 %v3661_v60  ;;  %v3651_v7 = vrot.slane %v3649_v11, 2  ;;  %v3429_v18 = vld [vmem:[#allocation2 + $0x1c8] sm:$0xff] }
 0x1dc   : > { %v3485_v48 = vrot.slane %v3429_v18, 3 }
 0x1dd   : > { %v13099_v24 = vpack.i.b16 %v3665_v15, %v3817_v36 }
 0x1de   : > { %v3697_v60 = vsel %vm1200_vm4, %v3429_v18, %v3485_v48 }
 0x1e0   : > { %v4026_v44 = vld [vmem:[#allocation1] sm:$0xff]  ;;  %v4027_v20 = vld [vmem:[#allocation1 + $0x9] sm:$0xff] }
 0x1e1   : > { %4029 = vst [vmem:[#allocation1] ss:$9 sm:$0xff] %v3614_v4  ;;  %v3652_v4 = vsel %vm18906_vm7, %v3423_v47, %v3479_v0  ;;  %v3657_v47 = vsel %vm226_vm2, %v3424_v35, %v3480_v42 }
 0x1e2   : > { %4031 = vst [vmem:[#allocation1 + $0x1] ss:$9 sm:$0xff] %v3617_v29  ;;  %v3926_v29 = vpack.i.b16 %v3808_v22, %v3807_v9 }
 0x1e3   : > { %4033 = vst [vmem:[#allocation1 + $0x2] ss:$9 sm:$0xff] %v3620_v58  ;;  %v3648_v58 = vrot.slane %v3646_v31, 1 }
 0x1e4   : > { %4233 = vmatmul.bf16.gmra.mxu2 %v4026_v44  ;;  %4282 = vmatmul.bf16.gmra.mxu3 %v4027_v20  ;;  %4035 = vst [vmem:[#allocation1 + $0x3] ss:$9 sm:$0xff] %v3623_v46  ;;  %v3426_v44 = vld [vmem:[#allocation2 + $0x180] sm:$0x11]  ;;  %v3819_v46 = vunpack.i.h.s16 %v3665_v15 }
 0x1e5   : > { %4037 = vst [vmem:[#allocation1 + $0x4] ss:$9 sm:$0xff] %v13095_v8  ;;  %v3427_v20 = vld [vmem:[#allocation2 + $0x60] sm:$0xff]  ;;  %v3482_v49 = vrot.slane %v3426_v44, 3 }
 0x1e6   : > { %4039 = vst [vmem:[#allocation1 + $0x5] ss:$9 sm:$0xff] %v13096_v27  ;;  %v3654_v27 = vrot.slane %v3652_v4, 3  ;;  %v3483_v25 = vrot.slane %v3427_v20, 3  ;;  %v13100_v0 = vpack.i.b16 %v3668_v45, %v3819_v46 }
 0x1e7   : > { %4041 = vst [vmem:[#allocation1 + $0x6] ss:$9 sm:$0xff] %v13097_v32  ;;  %v3671_v32 = vrot.slane %v3669_v52, 3  ;;  %v3674_v22 = vsel %vm226_vm2, %v3426_v44, %v3482_v49  ;;  %v3695_v52 = vsel %vm226_vm2, %v3429_v18, %v3485_v48 }
 0x1e8   : > { %4043 = vst [vmem:[#allocation1 + $0x7] ss:$9 sm:$0xff] %v13098_v59  ;;  %v3821_v59 = vunpack.i.h.s16 %v3668_v45  ;;  %v3678_v31 = vsel %vm226_vm2, %v3427_v20, %v3483_v25  ;;  %v3825_v35 = vunpack.i.h.s16 %v3674_v22  ;;  %v3428_v45 = vld [vmem:[#allocation2 + $0x188] sm:$0x11]  ;;  %v3680_v4 = vsel %vm1200_vm4, %v3427_v20, %v3483_v25 }
 0x1e9   : > { %v3823_v11 = vunpack.i.h.s16 %v3671_v32  ;;  %v3826_v15 = vunpack.i.h.s16 %v3678_v31  ;;  %v3683_v42 = vsel %vm18907_vm6, %v3427_v20, %v3483_v25  ;;  %v3686_v44 = vsel %vm18906_vm7, %v3427_v20, %v3483_v25  ;;  %v15975_v31 = vpop.f32.mrf.mxu2 }
 0x1ea   : > { %v13101_v9 = vpack.i.b16 %v3671_v32, %v3821_v59  ;;  %v3484_v46 = vrot.slane %v3428_v45, 3  ;;  %v3685_v32 = vrot.slane %v3683_v42, 2  ;;  %19005 = vst [vmem:[#allocation29_spill] sm:$0xff] %v15975_v31 }
 0x1eb   : > { %v13102_v36 = vpack.i.b16 %v3674_v22, %v3823_v11  ;;  %v15977_v22 = vpop.f32.mrf.mxu3 }
 0x1ec   : > { %19006 = vst [vmem:[#allocation30_spill] sm:$0xff] %v15977_v22  ;;  %v3691_v25 = vsel %vm226_vm2, %v3428_v45, %v3484_v46  ;;  %v14278_v45 = vld [vmem:[%s18798_s1 + $0x298] sm:$0xff] }
 0x1ed   : > { %6052 = vmatpush.bf16.msra.mxu2 %v14278_v45 }
 0x1ef   : > { %v4044_v26 = vld [vmem:[#allocation1] sm:$0xff]  ;;  %v4045_v8 = vld [vmem:[#allocation1 + $0x9] sm:$0xff] }
 0x1f0   : > { %4047 = vst [vmem:[#allocation1] ss:$9 sm:$0xff] %v3926_v29  ;;  %v3699_v29 = vrot.slane %v3697_v60, 1 }
 0x1f1   : > { %4049 = vst [vmem:[#allocation1 + $0x1] ss:$9 sm:$0xff] %v3648_v58  ;;  %v3700_v58 = vsel %vm18907_vm6, %v3429_v18, %v3485_v48 }
 0x1f2   : > { %4051 = vst [vmem:[#allocation1 + $0x2] ss:$9 sm:$0xff] %v3651_v7  ;;  %v3935_v7 = vpack.i.b16 %v3826_v15, %v3825_v35  ;;  %v3702_v59 = vrot.slane %v3700_v58, 2  ;;  %v3837_v49 = vunpack.i.h.s16 %v3699_v29 }
 0x1f3   : > { %4053 = vst [vmem:[#allocation1 + $0x3] ss:$9 sm:$0xff] %v3654_v27  ;;  %v3430_v27 = vld [vmem:[#allocation2 + $0xb8] sm:$0x11] }
 0x1f4   : > { %4238 = vmatmul.bf16.gmra.mxu2 %v4044_v26  ;;  %4287 = vmatmul.bf16.gmra.mxu3 %v4045_v8  ;;  %4055 = vst [vmem:[#allocation1 + $0x4] ss:$9 sm:$0xff] %v3657_v47  ;;  %v3682_v26 = vrot.slane %v3680_v4, 1  ;;  %v3835_v8 = vunpack.i.h.s16 %v3695_v52  ;;  %v3486_v20 = vrot.slane %v3430_v27, 3  ;;  %v13104_v11 = vpack.i.b16 %v3702_v59, %v3837_v49  ;;  %v3432_v52 = vld [vmem:[#allocation2 + $0x20] sm:$0x11] }
 0x1f5   : > { %4057 = vst [vmem:[#allocation1 + $0x5] ss:$9 sm:$0xff] %v13099_v24 }
 0x1f6   : > { %4059 = vst [vmem:[#allocation1 + $0x6] ss:$9 sm:$0xff] %v13100_v0  ;;  %v3688_v0 = vrot.slane %v3686_v44, 3  ;;  %v13103_v60 = vpack.i.b16 %v3699_v29, %v3835_v8  ;;  %v3708_v15 = vsel %vm226_vm2, %v3430_v27, %v3486_v20  ;;  %v14286_v29 = vld [vmem:[%s18798_s1 + $0x2d8] sm:$0xff]  ;;  %v2466_v44 = vpop.f32.mrf.mxu3  ;;  %v15990_v27 = vpop.f32.mrf.mxu0 }
 0x1f7   : > { %4061 = vst [vmem:[#allocation1 + $0x7] ss:$9 sm:$0xff] %v13101_v9  ;;  %v3703_v9 = vsel %vm18906_vm7, %v3429_v18, %v3485_v48  ;;  %v3839_v18 = vunpack.i.h.s16 %v3702_v59  ;;  %v3843_v4 = vunpack.i.h.s16 %v3708_v15  ;;  %v3488_v59 = vrot.slane %v3432_v52, 3  ;;  %6101 = vmatpush.bf16.msra.mxu3 %v14286_v29 }
 0x1f8   : > { %v3705_v35 = vrot.slane %v3703_v9, 3  ;;  %19008 = vst [vmem:[#allocation31_spill] sm:$0xff] %v15990_v27 }
 0x1fa   : > { %v3841_v48 = vunpack.i.h.s16 %v3705_v35  ;;  %v13105_v42 = vpack.i.b16 %v3705_v35, %v3839_v18 }
 0x1fc   : > { %v13106_v58 = vpack.i.b16 %v3708_v15, %v3841_v48 }
 0x1fe   : > { %v4062_v47 = vld [vmem:[#allocation1] sm:$0xff]  ;;  %v4063_v24 = vld [vmem:[#allocation1 + $0x9] sm:$0xff]  ;;  %v3305_v15 = vpop.f32.mrf.mxu0 }
 0x1ff   : > { %4065 = vst [vmem:[#allocation1] ss:$9 sm:$0xff] %v13102_v36  ;;  %v2417_v36 = vpop.f32.mrf.mxu2 }
 0x200   : > { %4067 = vst [vmem:[#allocation1 + $0x1] ss:$9 sm:$0xff] %v3935_v7  ;;  %v19007_v7 = vunpack.i.h.s16 %v15727_v23  ;;  %v2418_v8 = vadd.f32 %v2417_v36, %v15617_v37  ;;  %v3725_v23 = vsel %vm226_vm2, %v3432_v52, %v3488_v59  ;;  %v4325_v37 = vld [vmem:[#allocation2 + $0x1a8] sm:$0x11] }
 0x201   : > { %4069 = vst [vmem:[#allocation1 + $0x2] ss:$9 sm:$0xff] %v3682_v26  ;;  %v4326_v26 = vld [vmem:[#allocation2 + $0x1b0] sm:$0xff] }
 0x202   : > { %4071 = vst [vmem:[#allocation1 + $0x3] ss:$9 sm:$0xff] %v3685_v32  ;;  %v3944_v46 = vpack.i.b16 %v19007_v7, %v3843_v4  ;;  %v15992_v32 = vpop.f32.mrf.mxu1  ;;  %v4382_v9 = vrot.slane %v4326_v26, 3 }
 0x203   : > { %4073 = vst [vmem:[#allocation1 + $0x4] ss:$9 sm:$0xff] %v3688_v0  ;;  %v4324_v0 = vld [vmem:[#allocation2 + $0x168] sm:$0xff] }
 0x204   : > { %4075 = vst [vmem:[#allocation1 + $0x5] ss:$9 sm:$0xff] %v3691_v25  ;;  %4243 = vmatmul.bf16.gmra.mxu2 %v4062_v47  ;;  %4292 = vmatmul.bf16.gmra.mxu3 %v4063_v24  ;;  %v15994_v24 = vadd.f32 %v2466_v44, %v2418_v8  ;;  %v4380_v20 = vrot.slane %v4324_v0, 3  ;;  %v4429_v25 = vsel %vm1200_vm4, %v4326_v26, %v4382_v9 }
 0x205   : > { %4077 = vst [vmem:[#allocation1 + $0x6] ss:$9 sm:$0xff] %v13103_v60  ;;  %v4432_v35 = vsel %vm18907_vm6, %v4326_v26, %v4382_v9  ;;  %v16008_v4 = vsel %vm226_vm2, %v4326_v26, %v4382_v9  ;;  %v4435_v29 = vsel %vm18906_vm7, %v4326_v26, %v4382_v9 }
 0x206   : > { %4079 = vst [vmem:[#allocation1 + $0x7] ss:$9 sm:$0xff] %v13104_v11  ;;  %v16003_v11 = vpop.f32.mrf.mxu3  ;;  %v4415_v52 = vsel %vm18907_vm6, %v4324_v0, %v4380_v20  ;;  %v4418_v45 = vsel %vm18906_vm7, %v4324_v0, %v4380_v20  ;;  %v16021_v36 = vsel %vm226_vm2, %v4324_v0, %v4380_v20 }
 0x207   : > { %19009 = vst [vmem:[#allocation32_spill] sm:$0xff] %v15992_v32  ;;  %v16001_v60 = vpop.f32.mrf.mxu2  ;;  %v16027_v8 = vrot.slane %v4415_v52, 2 }
 0x208   : > { %19010 = vst [vmem:[#allocation33_spill] sm:$0xff] %v16001_v60 }
 0x209   : > { %19011 = vst [vmem:[#allocation34_spill] sm:$0xff] %v16003_v11 }
 0x20a   : > { %v3354_v18 = vpop.f32.mrf.mxu1 }
 0x20b   : > { %v3355_v48 = vadd.f32 %v3354_v18, %v3305_v15  ;;  %v16046_v18 = vpop.f32.mrf.mxu0 }
 0x20c   : > { %19012 = vst [vmem:[#allocation35_spill] sm:$0xff] %v16046_v18 }
 0x20d   : > { %v4080_v49 = vld [vmem:[#allocation1] sm:$0xff]  ;;  %v4081_v47 = vld [vmem:[#allocation1 + $0x9] sm:$0xff] }
 0x20e   : > { %4083 = vst [vmem:[#allocation1] ss:$9 sm:$0xff] %v13105_v42  ;;  %v16013_v42 = vrot.slane %v4432_v35, 2  ;;  %v14285_v35 = vld [vmem:[%s18798_s1 + $0x2d0] sm:$0xff] }
 0x20f   : > { %4085 = vst [vmem:[#allocation1 + $0x1] ss:$9 sm:$0xff] %v13106_v58  ;;  %v16016_v58 = vadd.f32 %v3355_v48, %v15806_v10  ;;  %v2422_v9 = vpop.f32.mrf.mxu2  ;;  %6102 = vmatpush.bf16.msra.mxu3 %v14285_v35 }
 0x210   : > { %4087 = vst [vmem:[#allocation1 + $0x2] ss:$9 sm:$0xff] %v3944_v46  ;;  %v18837_v46 = vunpack.i.h.s16 %v16008_v4  ;;  %v4660_v26 = vunpack.i.h.s16 %v16013_v42  ;;  %v2423_v15 = vadd.f32 %v2422_v9, %v15781_v57 }
 0x211   : > { %4089 = vst [vmem:[#allocation1 + $0x3] ss:$9 sm:$0xff] %v15729_v61  ;;  %v4381_v61 = vrot.slane %v4325_v37, 3 }
 0x212   : > { %4091 = vst [vmem:[#allocation1 + $0x4] ss:$9 sm:$0xff] %v15733_v14  ;;  %v4412_v14 = vsel %vm1200_vm4, %v4324_v0, %v4380_v20  ;;  %v14277_v0 = vld [vmem:[%s18798_s1 + $0x290] sm:$0xff] }
 0x213   : > { %4093 = vst [vmem:[#allocation1 + $0x5] ss:$9 sm:$0xff] %v15739_v63  ;;  %v16010_v63 = vrot.slane %v4429_v25, 1  ;;  %v16023_v44 = vrot.slane %v4412_v14, 1  ;;  %v4423_v7 = vsel %vm226_vm2, %v4325_v37, %v4381_v61  ;;  %v2471_v37 = vpop.f32.mrf.mxu3  ;;  %v16040_v25 = vld [vmem:[#allocation2 + $0xa0] sm:$0xff]  ;;  %v16048_v61 = vpop.f32.mrf.mxu1  ;;  %6053 = vmatpush.bf16.msra.mxu2 %v14277_v0 }
 0x214   : > { %4095 = vst [vmem:[#allocation1 + $0x6] ss:$9 sm:$0xff] %v3725_v23  ;;  %4248 = vmatmul.bf16.gmra.mxu2 %v4080_v49  ;;  %4297 = vmatmul.bf16.gmra.mxu3 %v4081_v47  ;;  %v16030_v47 = vrot.slane %v4418_v45, 3  ;;  %v16032_v23 = vrot.slane %v4435_v29, 3  ;;  %v13203_v20 = vpack.i.b16 %v16008_v4, %v4423_v7  ;;  %v4327_v14 = vld [vmem:[#allocation2 + $0x8] sm:$0x11]  ;;  %v16056_v45 = vadd.f32 %v2471_v37, %v2423_v15  ;;  %v3310_v53 = vpop.f32.mrf.mxu0 }
 0x215   : > { %v4658_v59 = vunpack.i.h.s16 %v16010_v63  ;;  %19013 = vst [vmem:[#allocation36_spill] sm:$0xff] %v16048_v61  ;;  %v13204_v48 = vpack.i.b16 %v16010_v63, %v18837_v46  ;;  %v4328_v29 = vld [vmem:[#allocation2 + $0x30] sm:$0xff]  ;;  %v4386_v7 = vrot.slane %v16040_v25, 3  ;;  %v4383_v9 = vrot.slane %v4327_v14, 3 }
 0x216   : > { %v13206_v57 = vpack.i.b16 %v16032_v23, %v4660_v26  ;;  %v4329_v46 = vld [vmem:[#allocation2 + $0x190] sm:$0x11]  ;;  %v4384_v0 = vrot.slane %v4328_v29, 3  ;;  %v4662_v37 = vunpack.i.h.s16 %v16032_v23 }
 0x217   : > { %v13205_v52 = vpack.i.b16 %v16013_v42, %v4658_v59  ;;  %v4463_v59 = vsel %vm1200_vm4, %v16040_v25, %v4386_v7  ;;  %v16064_v35 = vpop.f32.mrf.mxu2  ;;  %v4440_v15 = vsel %vm226_vm2, %v4327_v14, %v4383_v9 }
 0x218   : > { %19014 = vst [vmem:[#allocation37_spill] sm:$0xff] %v16064_v35  ;;  %v16074_v60 = vrot.slane %v4463_v59, 1  ;;  %v4449_v35 = vsel %vm18907_vm6, %v4328_v29, %v4384_v0  ;;  %v13207_v14 = vpack.i.b16 %v4440_v15, %v4662_v37 }
 0x219   : > { %v16090_v43 = vrot.slane %v4449_v35, 2 }
 0x21b   : > { %v4096_v49 = vld [vmem:[#allocation1] sm:$0xff]  ;;  %v4097_v10 = vld [vmem:[#allocation1 + $0x9] sm:$0xff]  ;;  %v16066_v26 = vpop.f32.mrf.mxu3  ;;  %v3359_v11 = vpop.f32.mrf.mxu1 }
 0x21c   : > { %4869 = vst [vmem:[#allocation1] ss:$9 sm:$0xff] %v16021_v36  ;;  %v16108_v15 = vpop.f32.mrf.mxu0 }
 0x21d   : > { %4872 = vst [vmem:[#allocation1 + $0x1] ss:$9 sm:$0xff] %v16023_v44 }
 0x21e   : > { %4875 = vst [vmem:[#allocation1 + $0x2] ss:$9 sm:$0xff] %v16027_v8 }
 0x21f   : > { %4878 = vst [vmem:[#allocation1 + $0x3] ss:$9 sm:$0xff] %v16030_v47 }
 0x220   : > { %4881 = vst [vmem:[#allocation1 + $0x4] ss:$9 sm:$0xff] %v13203_v20  ;;  %v4385_v20 = vrot.slane %v4329_v46, 3 }
 0x221   : > { %4884 = vst [vmem:[#allocation1 + $0x5] ss:$9 sm:$0xff] %v13204_v48  ;;  %v3360_v48 = vadd.f32 %v3359_v11, %v3310_v53  ;;  %v16084_v53 = vsel %vm226_vm2, %v4328_v29, %v4384_v0 }
 0x222   : > { %4887 = vst [vmem:[#allocation1 + $0x6] ss:$9 sm:$0xff] %v13205_v52  ;;  %v4446_v52 = vsel %vm1200_vm4, %v4328_v29, %v4384_v0 }
 0x223   : > { %4890 = vst [vmem:[#allocation1 + $0x7] ss:$9 sm:$0xff] %v13206_v57  ;;  %v16072_v57 = vsel %vm226_vm2, %v16040_v25, %v4386_v7  ;;  %v16080_v9 = vadd.f32 %v3360_v48, %v15851_v56  ;;  %v16086_v11 = vrot.slane %v4446_v52, 1  ;;  %v4676_v56 = vunpack.i.h.s16 %v16074_v60  ;;  %v2476_v35 = vpop.f32.mrf.mxu3  ;;  %v4331_v52 = vld [vmem:[#allocation2 + $0x80] sm:$0x11] }
 0x224   : > { %19015 = vst [vmem:[#allocation38_spill] sm:$0xff] %v16066_v26  ;;  %4253 = vmatmul.bf16.gmra.mxu2 %v4096_v49  ;;  %4302 = vmatmul.bf16.gmra.mxu3 %v4097_v10  ;;  %v4466_v26 = vsel %vm18907_vm6, %v16040_v25, %v4386_v7  ;;  %v4452_v49 = vsel %vm18906_vm7, %v4328_v29, %v4384_v0  ;;  %v18838_v59 = vunpack.i.h.s16 %v16072_v57  ;;  %v14276_v29 = vld [vmem:[%s18798_s1 + $0x288] sm:$0xff]  ;;  %v2427_v0 = vpop.f32.mrf.mxu2  ;;  %v3315_v31 = vpop.f32.mrf.mxu0 }
 0x225   : > { %v4457_v10 = vsel %vm226_vm2, %v4329_v46, %v4385_v20  ;;  %v16092_v6 = vrot.slane %v4466_v26, 2  ;;  %v16095_v37 = vrot.slane %v4452_v49, 3  ;;  %v14284_v46 = vld [vmem:[%s18798_s1 + $0x2c8] sm:$0xff]  ;;  %19016 = vst [vmem:[#allocation39_spill] sm:$0xff] %v16108_v15  ;;  %v16110_v20 = vpop.f32.mrf.mxu1  ;;  %6054 = vmatpush.bf16.msra.mxu2 %v14276_v29 }
 0x226   : > { %v13208_v26 = vpack.i.b16 %v16072_v57, %v4457_v10  ;;  %19017 = vst [vmem:[#allocation40_spill] sm:$0xff] %v16110_v20  ;;  %v13209_v48 = vpack.i.b16 %v16074_v60, %v18838_v59  ;;  %6103 = vmatpush.bf16.msra.mxu3 %v14284_v46  ;;  %v4387_v10 = vrot.slane %v4331_v52, 3  ;;  %v4333_v59 = vld [vmem:[#allocation2 + $0x1f8] sm:$0x11] }
 0x227   : > { %v4678_v46 = vunpack.i.h.s16 %v16092_v6  ;;  %v4389_v17 = vrot.slane %v4333_v59, 3 }
 0x22a   : > { %v4891_v55 = vld [vmem:[#allocation1] sm:$0xff]  ;;  %v4892_v21 = vld [vmem:[#allocation1 + $0x9] sm:$0xff] }
 0x22b   : > { %5137 = vmatmul.bf16.vlgmr.msra.gmra.mxu0 %v4891_v55  ;;  %5186 = vmatmul.bf16.vlgmr.msra.gmra.mxu1 %v4892_v21  ;;  %4894 = vst [vmem:[#allocation1] ss:$9 sm:$0xff] %v13207_v14  ;;  %v4469_v21 = vsel %vm18906_vm7, %v16040_v25, %v4386_v7  ;;  %v2428_v55 = vadd.f32 %v2427_v0, %v15822_v16  ;;  %v4332_v25 = vld [vmem:[#allocation2 + $0xd8] sm:$0xff]  ;;  %v4334_v16 = vld [vmem:[#allocation2 + $0x68] sm:$0xff] }
 0x22c   : > { %4896 = vst [vmem:[#allocation1 + $0x1] ss:$9 sm:$0xff] %v16084_v53  ;;  %v13210_v14 = vpack.i.b16 %v16092_v6, %v4676_v56  ;;  %v16121_v49 = vrot.slane %v4469_v21, 3  ;;  %v4388_v0 = vrot.slane %v4332_v25, 3  ;;  %v4390_v29 = vrot.slane %v4334_v16, 3  ;;  %v16125_v22 = vpop.f32.mrf.mxu2 }
 0x22d   : > { %4898 = vst [vmem:[#allocation1 + $0x2] ss:$9 sm:$0xff] %v16086_v11  ;;  %v16118_v7 = vadd.f32 %v2476_v35, %v2428_v55  ;;  %v16127_v35 = vpop.f32.mrf.mxu3  ;;  %v4474_v55 = vsel %vm226_vm2, %v4331_v52, %v4387_v10  ;;  %v3364_v21 = vpop.f32.mrf.mxu1 }
 0x22e   : > { %4900 = vst [vmem:[#allocation1 + $0x3] ss:$9 sm:$0xff] %v16090_v43  ;;  %v4680_v56 = vunpack.i.h.s16 %v16121_v49  ;;  %v4497_v41 = vsel %vm1200_vm4, %v4334_v16, %v4390_v29  ;;  %v13211_v39 = vpack.i.b16 %v16121_v49, %v4678_v46  ;;  %v4483_v20 = vsel %vm18907_vm6, %v4332_v25, %v4388_v0 }
 0x22f   : > { %4902 = vst [vmem:[#allocation1 + $0x4] ss:$9 sm:$0xff] %v16095_v37  ;;  %v4486_v10 = vsel %vm18906_vm7, %v4332_v25, %v4388_v0  ;;  %v16147_v28 = vrot.slane %v4497_v41, 1  ;;  %v16150_v5 = vrot.slane %v4483_v20, 2  ;;  %v14283_v41 = vld [vmem:[%s18798_s1 + $0x2c0] sm:$0xff] }
 0x230   : > { %4904 = vst [vmem:[#allocation1 + $0x5] ss:$9 sm:$0xff] %v13208_v26  ;;  %v4480_v26 = vsel %vm1200_vm4, %v4332_v25, %v4388_v0  ;;  %6104 = vmatpush.bf16.msra.mxu3 %v14283_v41 }
 0x231   : > { %4906 = vst [vmem:[#allocation1 + $0x6] ss:$9 sm:$0xff] %v13209_v48  ;;  %v3365_v48 = vadd.f32 %v3364_v21, %v3315_v31  ;;  %v16140_v52 = vrot.slane %v4480_v26, 1  ;;  %v16144_v31 = vsel %vm226_vm2, %v4332_v25, %v4388_v0  ;;  %v4491_v21 = vsel %vm226_vm2, %v4333_v59, %v4389_v17  ;;  %v14275_v25 = vld [vmem:[%s18798_s1 + $0x280] sm:$0xff]  ;;  %v4335_v0 = vld [vmem:[#allocation2 + $0x40] sm:$0x11] }
 0x232   : > { %4908 = vst [vmem:[#allocation1 + $0x7] ss:$9 sm:$0xff] %v13210_v14  ;;  %v16132_v14 = vsel %vm226_vm2, %v4334_v16, %v4390_v29  ;;  %6055 = vmatpush.bf16.msra.mxu2 %v14275_v25  ;;  %v4336_v26 = vld [vmem:[#allocation2 + $0x90] sm:$0xff]  ;;  %v4338_v25 = vld [vmem:[#allocation2 + $0x108] sm:$0xff] }
 0x233   : > { %19018 = vst [vmem:[#allocation41_spill] sm:$0xff] %v16125_v22  ;;  %v13212_v22 = vpack.i.b16 %v4474_v55, %v4680_v56  ;;  %v18839_v46 = vunpack.i.h.s16 %v16132_v14  ;;  %v4500_v56 = vsel %vm18907_vm6, %v4334_v16, %v4390_v29  ;;  %v13213_v59 = vpack.i.b16 %v16132_v14, %v4491_v21 }
 0x234   : > { %19019 = vst [vmem:[#allocation42_spill] sm:$0xff] %v16127_v35  ;;  %v16138_v35 = vadd.f32 %v3365_v48, %v15902_v19  ;;  %v16152_v19 = vrot.slane %v4486_v10, 3  ;;  %v2432_v17 = vpop.f32.mrf.mxu2  ;;  %v376_v48 = vld [vmem:[#allocation2 + $0x1b8] sm:$0x11]  ;;  %v4391_v10 = vrot.slane %v4335_v0, 3  ;;  %v4392_v41 = vrot.slane %v4336_v26, 3 }
 0x235   : > { %v13214_v20 = vpack.i.b16 %v16147_v28, %v18839_v46  ;;  %v2481_v55 = vpop.f32.mrf.mxu3  ;;  %v377_v21 = vsel %vm14493_vm13, 0, %v376_v48  ;;  %v4337_v46 = vld [vmem:[#allocation2 + $0x58] sm:$0x11] }
 0x236   : > { %378 = vst [vmem:[#allocation2 + $0x1b8] sm:$0x11] %v377_v21  ;;  %v4393_v48 = vrot.slane %v4337_v46, 3  ;;  %v4514_v18 = vsel %vm1200_vm4, %v4336_v26, %v4392_v41  ;;  %v4517_v33 = vsel %vm18907_vm6, %v4336_v26, %v4392_v41  ;;  %v16201_v34 = vsel %vm226_vm2, %v4336_v26, %v4392_v41 }
 0x237   : > { %v16197_v3 = vrot.slane %v4514_v18, 1 }
 0x239   : > { %v4909_v15 = vld [vmem:[#allocation1] sm:$0xff]  ;;  %v4910_v2 = vld [vmem:[#allocation1 + $0x9] sm:$0xff] }
 0x23a   : > { %4912 = vst [vmem:[#allocation1] ss:$9 sm:$0xff] %v13211_v39  ;;  %v2433_v39 = vadd.f32 %v2432_v17, %v15876_v30  ;;  %v4694_v17 = vunpack.i.h.s16 %v16147_v28 }
 0x23b   : > { %5142 = vmatmul.bf16.gmra.mxu0 %v4909_v15  ;;  %5191 = vmatmul.bf16.gmra.mxu1 %v4910_v2  ;;  %4914 = vst [vmem:[#allocation1 + $0x1] ss:$9 sm:$0xff] %v13212_v22  ;;  %v4503_v2 = vsel %vm18906_vm7, %v4334_v16, %v4390_v29  ;;  %v16165_v22 = vpop.f32.mrf.mxu0  ;;  %v16167_v15 = vpop.f32.mrf.mxu1  ;;  %v16174_v16 = vrot.slane %v4500_v56, 2 }
 0x23c   : > { %4916 = vst [vmem:[#allocation1 + $0x2] ss:$9 sm:$0xff] %v16144_v31  ;;  %v16176_v30 = vadd.f32 %v2481_v55, %v2433_v39  ;;  %v16179_v29 = vrot.slane %v4503_v2, 3  ;;  %v12690_v39 = vld [vmem:[%s14463_s8 + $0xe0] sm:$0xff] }
 0x23d   : > { %19020 = vst [vmem:[#allocation43_spill] sm:$0xff] %v16165_v22  ;;  %v4696_v56 = vunpack.i.h.s16 %v16174_v16  ;;  %v275_v2 = vld [vmem:[#allocation2 + $0x18] sm:$0x11]  ;;  %v4394_v22 = vrot.slane %v4338_v25, 3  ;;  %v13215_v54 = vpack.i.b16 %v16174_v16, %v4694_v17  ;;  %v1060_v17 = vshll.u32 %v12690_v39, 16 }
 0x23e   : > { %19021 = vst [vmem:[#allocation44_spill] sm:$0xff] %v16167_v15  ;;  %v4698_v55 = vunpack.i.h.s16 %v16179_v29  ;;  %v1057_v15 = vshrl.u32 %v12690_v39, 16 }
 0x23f   : > { %4918 = vst [vmem:[#allocation1 + $0x3] ss:$9 sm:$0xff] %v16140_v52  ;;  %v13216_v21 = vpack.i.b16 %v16179_v29, %v4696_v56  ;;  %v16207_v56 = vrot.slane %v4517_v33, 2  ;;  %v4534_v18 = vsel %vm18907_vm6, %v4338_v25, %v4394_v22  ;;  %v1070_v33 = vld [vmem:[#allocation2 + $0x1b8] sm:$0x11] }
 0x240   : > { %4920 = vst [vmem:[#allocation1 + $0x4] ss:$9 sm:$0xff] %v16150_v5 }
 0x241   : > { %4922 = vst [vmem:[#allocation1 + $0x5] ss:$9 sm:$0xff] %v16152_v19 }
 0x242   : > { %4924 = vst [vmem:[#allocation1 + $0x6] ss:$9 sm:$0xff] %v13213_v59  ;;  %v4508_v59 = vsel %vm226_vm2, %v4335_v0, %v4391_v10  ;;  %v1059_v0 = vrot.slane %v1057_v15, 7 }
 0x243   : > { %4926 = vst [vmem:[#allocation1 + $0x7] ss:$9 sm:$0xff] %v13214_v20  ;;  %v3320_v1 = vpop.f32.mrf.mxu0  ;;  %v3369_v61 = vpop.f32.mrf.mxu1  ;;  %v276_v20 = vsel %vm14475_vm8, 0, %v275_v2  ;;  %v13217_v38 = vpack.i.b16 %v4508_v59, %v4698_v55  ;;  %v4520_v2 = vsel %vm18906_vm7, %v4336_v26, %v4392_v41  ;;  %v4339_v41 = vld [vmem:[#allocation2 + $0x148] sm:$0x11] }
 0x244   : > { %v3370_v50 = vadd.f32 %v3369_v61, %v3320_v1  ;;  %277 = vst [vmem:[#allocation2 + $0x18] sm:$0x11] %v276_v20  ;;  %v4525_v1 = vsel %vm226_vm2, %v4337_v46, %v4393_v48  ;;  %v16205_v61 = vsel %vm226_vm2, %v4338_v25, %v4394_v22  ;;  %v1063_v15 = vrot.slane %v1059_v0, 4  ;;  %v4340_v55 = vld [vmem:[#allocation2 + $0x28] sm:$0xff] }
 0x245   : > { %19023 = vst [vmem:[#allocation46_spill] sm:$0xff] %v16205_v61  ;;  %v13218_v46 = vpack.i.b16 %v16205_v61, %v4525_v1  ;;  %v1062_v26 = vor.u32 %v1060_v17, %v1059_v0  ;;  %v18840_v20 = vunpack.i.h.s16 %v16205_v61  ;;  %v4396_v0 = vrot.slane %v4340_v55, 3  ;;  %v4342_v1 = vld [vmem:[#allocation2 + $0x38] sm:$0xff]  ;;  %v5244_v61 = vld [vmem:[#allocation2 + $0x1a8] sm:$0x11] }
 0x246   : > { %v16195_v32 = vadd.f32 %v3370_v50, %v15994_v24  ;;  %v4531_v50 = vsel %vm1200_vm4, %v4338_v25, %v4394_v22  ;;  %v16210_v24 = vrot.slane %v4520_v2, 3 }
 0x247   : > { %v16217_v39 = vrot.slane %v4531_v50, 1  ;;  %v4554_v51 = vsel %vm18906_vm7, %v4340_v55, %v4396_v0 }
 0x248   : > { %19022 = vst [vmem:[#allocation45_spill] sm:$0xff] %v16195_v32 }
 0x249   : > { %19024 = vst [vmem:[#allocation47_spill] sm:$0xff] %v16217_v39  ;;  %v13219_v50 = vpack.i.b16 %v16217_v39, %v18840_v20  ;;  %v4341_v20 = vld [vmem:[#allocation2 + $0x1e8] sm:$0x11] }
 0x24a   : > { %v4927_v10 = vld [vmem:[#allocation1] sm:$0xff]  ;;  %v4928_v27 = vld [vmem:[#allocation1 + $0x9] sm:$0xff] }
 0x24b   : > { %4930 = vst [vmem:[#allocation1] ss:$9 sm:$0xff] %v13215_v54  ;;  %5147 = vmatmul.bf16.gmra.mxu0 %v4927_v10  ;;  %5196 = vmatmul.bf16.gmra.mxu1 %v4928_v27  ;;  %v4537_v54 = vsel %vm18906_vm7, %v4338_v25, %v4394_v22  ;;  %v1067_v27 = vld [vmem:[#allocation2 + $0x18] sm:$0xff]  ;;  %v1071_v22 = vsel %vm14475_vm8, %v1063_v15, %v1070_v33  ;;  %v4395_v25 = vrot.slane %v4339_v41, 3 }
 0x24c   : > { %4932 = vst [vmem:[#allocation1 + $0x1] ss:$9 sm:$0xff] %v13216_v21  ;;  %v16223_v59 = vrot.slane %v4537_v54, 3  ;;  %v16230_v48 = vsel %vm14520_vm1, %v1062_v26, %v1067_v27  ;;  %v4712_v21 = vunpack.i.h.s16 %v16217_v39  ;;  %v4548_v15 = vsel %vm1200_vm4, %v4340_v55, %v4396_v0 }
 0x24d   : > { %4934 = vst [vmem:[#allocation1 + $0x2] ss:$9 sm:$0xff] %v13217_v38  ;;  %v16220_v38 = vrot.slane %v4534_v18, 2  ;;  %v4542_v17 = vsel %vm226_vm2, %v4339_v41, %v4395_v25  ;;  %v4398_v54 = vrot.slane %v4342_v1, 3  ;;  %v4551_v27 = vsel %vm18907_vm6, %v4340_v55, %v4396_v0 }
 0x24e   : > { %4936 = vst [vmem:[#allocation1 + $0x3] ss:$9 sm:$0xff] %v16201_v34  ;;  %v4716_v2 = vunpack.i.h.s16 %v16223_v59  ;;  %v4546_v41 = vsel %vm226_vm2, %v4340_v55, %v4396_v0  ;;  %v4550_v25 = vrot.slane %v4548_v15, 1  ;;  %v4553_v40 = vrot.slane %v4551_v27, 2  ;;  %v4344_v15 = vld [vmem:[#allocation2 + $0x130] sm:$0xff] }
 0x24f   : > { %4938 = vst [vmem:[#allocation1 + $0x4] ss:$9 sm:$0xff] %v16197_v3  ;;  %v4714_v10 = vunpack.i.h.s16 %v16220_v38  ;;  %v13220_v18 = vpack.i.b16 %v16220_v38, %v4712_v21  ;;  %v4565_v21 = vsel %vm1200_vm4, %v4342_v1, %v4398_v54  ;;  %v4568_v12 = vsel %vm18907_vm6, %v4342_v1, %v4398_v54 }
 0x250   : > { %4940 = vst [vmem:[#allocation1 + $0x5] ss:$9 sm:$0xff] %v16207_v56  ;;  %v16250_v55 = vsel %vm226_vm2, %v4342_v1, %v4398_v54  ;;  %v16252_v0 = vrot.slane %v4565_v21, 1 }
 0x251   : > { %19025 = vst [vmem:[#allocation48_spill] sm:$0xff] %v16220_v38 }
 0x252   : > { %4942 = vst [vmem:[#allocation1 + $0x6] ss:$9 sm:$0xff] %v16210_v24  ;;  %v4730_v27 = vunpack.i.h.s16 %v16252_v0 }
 0x253   : > { %19026 = vst [vmem:[#allocation49_spill] sm:$0xff] %v16223_v59 }
 0x254   : > { %4944 = vst [vmem:[#allocation1 + $0x7] ss:$9 sm:$0xff] %v13218_v46  ;;  %v13221_v46 = vpack.i.b16 %v16223_v59, %v4714_v10  ;;  %v4556_v10 = vrot.slane %v4554_v51, 3 }
 0x255   : > { %1069 = vst [vmem:[#allocation2 + $0x18] sm:$0xff] %v16230_v48 }
 0x256   : > { %1072 = vst [vmem:[#allocation2 + $0x1b8] sm:$0x11] %v1071_v22  ;;  %v13222_v22 = vpack.i.b16 %v4542_v17, %v4716_v2  ;;  %v4397_v2 = vrot.slane %v4341_v20, 3  ;;  %v4571_v17 = vsel %vm18906_vm7, %v4342_v1, %v4398_v54  ;;  %v4346_v54 = vld [vmem:[#allocation2 + $0x48] sm:$0xff] }
 0x257   : > { %19027 = vst [vmem:[#allocation50_spill] sm:$0xff] %v16250_v55  ;;  %v16256_v51 = vrot.slane %v4571_v17, 3 }
 0x258   : > { %19028 = vst [vmem:[#allocation51_spill] sm:$0xff] %v16252_v0 }
 0x259   : > { %19030 = vst [vmem:[#allocation53_spill] sm:$0xff] %v16256_v51 }
 0x25b   : > { %v4945_v26 = vld [vmem:[#allocation1] sm:$0xff]  ;;  %v4946_v33 = vld [vmem:[#allocation1 + $0x9] sm:$0xff] }
 0x25c   : > { %4948 = vst [vmem:[#allocation1] ss:$9 sm:$0xff] %v13219_v50  ;;  %5152 = vmatmul.bf16.gmra.mxu0 %v4945_v26  ;;  %5201 = vmatmul.bf16.gmra.mxu1 %v4946_v33  ;;  %v4343_v50 = vld [vmem:[#allocation2 + $0x1d0] sm:$0x11]  ;;  %v4559_v26 = vsel %vm226_vm2, %v4341_v20, %v4397_v2  ;;  %v18847_v33 = vunpack.i.h.s16 %v16250_v55  ;;  %v4402_v2 = vrot.slane %v4346_v54, 3 }
 0x25d   : > { %4950 = vst [vmem:[#allocation1 + $0x1] ss:$9 sm:$0xff] %v13220_v18  ;;  %v16254_v18 = vrot.slane %v4568_v12, 2  ;;  %v13223_v12 = vpack.i.b16 %v16250_v55, %v4559_v26  ;;  %v4345_v26 = vld [vmem:[#allocation2 + $0xf0] sm:$0x11] }
 0x25e   : > { %4952 = vst [vmem:[#allocation1 + $0x2] ss:$9 sm:$0xff] %v13221_v46  ;;  %v4399_v46 = vrot.slane %v4343_v50, 3 }
 0x25f   : > { %4954 = vst [vmem:[#allocation1 + $0x3] ss:$9 sm:$0xff] %v13222_v22  ;;  %v4400_v22 = vrot.slane %v4344_v15, 3  ;;  %v4732_v1 = vunpack.i.h.s16 %v16254_v18  ;;  %v13225_v20 = vpack.i.b16 %v16254_v18, %v4730_v27  ;;  %v4599_v27 = vsel %vm1200_vm4, %v4346_v54, %v4402_v2 }
 0x260   : > { %4956 = vst [vmem:[#allocation1 + $0x4] ss:$9 sm:$0xff] %v4546_v41  ;;  %v4734_v41 = vunpack.i.h.s16 %v16256_v51 }
 0x261   : > { %4958 = vst [vmem:[#allocation1 + $0x5] ss:$9 sm:$0xff] %v4550_v25  ;;  %v13224_v25 = vpack.i.b16 %v16252_v0, %v18847_v33  ;;  %v4582_v17 = vsel %vm1200_vm4, %v4344_v15, %v4400_v22  ;;  %v13226_v13 = vpack.i.b16 %v16256_v51, %v4732_v1  ;;  %v4585_v32 = vsel %vm18907_vm6, %v4344_v15, %v4400_v22 }
 0x262   : > { %4960 = vst [vmem:[#allocation1 + $0x6] ss:$9 sm:$0xff] %v4553_v40  ;;  %v4576_v40 = vsel %vm226_vm2, %v4343_v50, %v4399_v46  ;;  %v4580_v50 = vsel %vm226_vm2, %v4344_v15, %v4400_v22  ;;  %v4584_v46 = vrot.slane %v4582_v17, 1  ;;  %v4587_v33 = vrot.slane %v4585_v32, 2  ;;  %v4348_v32 = vld [vmem:[#allocation2 + $0xa8] sm:$0xff] }
 0x263   : > { %19029 = vst [vmem:[#allocation52_spill] sm:$0xff] %v16254_v18  ;;  %v13227_v59 = vpack.i.b16 %v4576_v40, %v4734_v41  ;;  %v4602_v18 = vsel %vm18907_vm6, %v4346_v54, %v4402_v2  ;;  %v4401_v1 = vrot.slane %v4345_v26, 3  ;;  %v4605_v51 = vsel %vm18906_vm7, %v4346_v54, %v4402_v2  ;;  %v4347_v41 = vld [vmem:[#allocation2 + $0xe0] sm:$0x11] }
 0x264   : > { %4962 = vst [vmem:[#allocation1 + $0x7] ss:$9 sm:$0xff] %v4556_v10  ;;  %v4601_v40 = vrot.slane %v4599_v27, 1  ;;  %v4404_v0 = vrot.slane %v4348_v32, 3  ;;  %v4406_v27 = vrot.slane %v16230_v48, 3 }
 0x26b   : > { %v4963_v21 = vld [vmem:[#allocation1] sm:$0xff]  ;;  %v4964_v10 = vld [vmem:[#allocation1 + $0x9] sm:$0xff] }
 0x26c   : > { %4966 = vst [vmem:[#allocation1] ss:$9 sm:$0xff] %v13223_v12  ;;  %5157 = vmatmul.bf16.gmra.mxu0 %v4963_v21  ;;  %5206 = vmatmul.bf16.gmra.mxu1 %v4964_v10  ;;  %v4597_v12 = vsel %vm226_vm2, %v4346_v54, %v4402_v2  ;;  %v4403_v21 = vrot.slane %v4347_v41, 3  ;;  %v4593_v10 = vsel %vm226_vm2, %v4345_v26, %v4401_v1  ;;  %v16282_v26 = vpop.f32.mrf.mxu2  ;;  %v16284_v1 = vpop.f32.mrf.mxu3 }
 0x26d   : > { %4968 = vst [vmem:[#allocation1 + $0x1] ss:$9 sm:$0xff] %v13224_v25  ;;  %v4604_v25 = vrot.slane %v4602_v18, 2  ;;  %v4746_v17 = vunpack.i.h.s16 %v4597_v12  ;;  %v13228_v39 = vpack.i.b16 %v4597_v12, %v4593_v10  ;;  %v4349_v12 = vld [vmem:[#allocation2 + $0x120] sm:$0x11]  ;;  %v4619_v10 = vsel %vm18907_vm6, %v4348_v32, %v4404_v0 }
 0x26e   : > { %4970 = vst [vmem:[#allocation1 + $0x2] ss:$9 sm:$0xff] %v13225_v20  ;;  %v4588_v20 = vsel %vm18906_vm7, %v4344_v15, %v4400_v22  ;;  %v4610_v54 = vsel %vm226_vm2, %v4347_v41, %v4403_v21  ;;  %v4616_v15 = vsel %vm1200_vm4, %v4348_v32, %v4404_v0  ;;  %v4614_v41 = vsel %vm226_vm2, %v4348_v32, %v4404_v0 }
 0x26f   : > { %4972 = vst [vmem:[#allocation1 + $0x3] ss:$9 sm:$0xff] %v13226_v13  ;;  %v4607_v13 = vrot.slane %v4605_v51, 3  ;;  %v4590_v55 = vrot.slane %v4588_v20, 3  ;;  %v4750_v38 = vunpack.i.h.s16 %v4604_v25  ;;  %v13229_v2 = vpack.i.b16 %v4601_v40, %v4746_v17  ;;  %v4351_v20 = vld [vmem:[#allocation2 + $0x1b8] sm:$0x11] }
 0x270   : > { %4974 = vst [vmem:[#allocation1 + $0x4] ss:$9 sm:$0xff] %v13227_v59  ;;  %v4748_v59 = vunpack.i.h.s16 %v4601_v40  ;;  %v4618_v40 = vrot.slane %v4616_v15, 1 }
 0x271   : > { %4976 = vst [vmem:[#allocation1 + $0x5] ss:$9 sm:$0xff] %v4580_v50  ;;  %v4752_v50 = vunpack.i.h.s16 %v4607_v13  ;;  %v13231_v51 = vpack.i.b16 %v4607_v13, %v4750_v38  ;;  %v4636_v38 = vsel %vm18907_vm6, %v16230_v48, %v4406_v27  ;;  %v4631_v13 = vsel %vm226_vm2, %v16230_v48, %v4406_v27 }
 0x272   : > { %4978 = vst [vmem:[#allocation1 + $0x6] ss:$9 sm:$0xff] %v4584_v46  ;;  %v13230_v46 = vpack.i.b16 %v4604_v25, %v4748_v59  ;;  %v4633_v25 = vsel %vm1200_vm4, %v16230_v48, %v4406_v27  ;;  %v4638_v17 = vrot.slane %v4636_v38, 2  ;;  %v4622_v59 = vsel %vm18906_vm7, %v4348_v32, %v4404_v0  ;;  %v14298_v0 = vld [vmem:[%s18798_s1 + $0x338] sm:$0xff]  ;;  %v16310_v38 = vpop.f32.mrf.mxu0 }
 0x273   : > { %4980 = vst [vmem:[#allocation1 + $0x7] ss:$9 sm:$0xff] %v4587_v33  ;;  %v13232_v22 = vpack.i.b16 %v4610_v54, %v4752_v50  ;;  %v4635_v21 = vrot.slane %v4633_v25, 1  ;;  %v4407_v54 = vrot.slane %v4351_v20, 3  ;;  %v4624_v15 = vrot.slane %v4622_v59, 3  ;;  %v14306_v25 = vld [vmem:[%s18798_s1 + $0x378] sm:$0xff]  ;;  %6967 = vmatpush.bf16.msrb.mxu0 %v14298_v0 }
 0x274   : > { %19031 = vst [vmem:[#allocation54_spill] sm:$0xff] %v16282_v26  ;;  %7016 = vmatpush.bf16.msrb.mxu1 %v14306_v25  ;;  %v19037_v25 = vunpack.i.h.s16 %v16008_v4  ;;  %v5248_v4 = vld [vmem:[#allocation2 + $0x190] sm:$0x11] }
 0x275   : > { %19032 = vst [vmem:[#allocation55_spill] sm:$0xff] %v16284_v1 }
 0x276   : > { %19033 = vst [vmem:[#allocation56_spill] sm:$0xff] %v16310_v38 }
 0x27a   : > { %v4981_v18 = vld [vmem:[#allocation1] sm:$0xff]  ;;  %v4982_v33 = vld [vmem:[#allocation1 + $0x9] sm:$0xff] }
 0x27b   : > { %4984 = vst [vmem:[#allocation1] ss:$9 sm:$0xff] %v4590_v55  ;;  %v4639_v55 = vsel %vm18906_vm7, %v16230_v48, %v4406_v27  ;;  %v14314_v48 = vld [vmem:[%s18798_s1 + $0x3b8] sm:$0xff] }
 0x27c   : > { %4986 = vst [vmem:[#allocation1 + $0x1] ss:$9 sm:$0xff] %v13228_v39  ;;  %5162 = vmatmul.bf16.gmra.mxu0 %v4981_v18  ;;  %5211 = vmatmul.bf16.gmra.mxu1 %v4982_v33  ;;  %v4405_v39 = vrot.slane %v4349_v12, 3  ;;  %v4641_v50 = vrot.slane %v4639_v55, 3  ;;  %v4621_v18 = vrot.slane %v4619_v10, 2  ;;  %v4766_v33 = vunpack.i.h.s16 %v4635_v21  ;;  %v14322_v27 = vld [vmem:[%s18798_s1 + $0x3f8] sm:$0xff] }
 0x27d   : > { %4988 = vst [vmem:[#allocation1 + $0x2] ss:$9 sm:$0xff] %v13229_v2  ;;  %v4644_v55 = vsel %vm226_vm2, %v4351_v20, %v4407_v54  ;;  %7886 = vmatpush.bf16.msrb.mxu2 %v14314_v48  ;;  %7935 = vmatpush.bf16.msrb.mxu3 %v14322_v27  ;;  %v3325_v54 = vpop.f32.mrf.mxu0 }
 0x27e   : > { %4990 = vst [vmem:[#allocation1 + $0x3] ss:$9 sm:$0xff] %v13230_v46  ;;  %v4627_v2 = vsel %vm226_vm2, %v4349_v12, %v4405_v39  ;;  %v4764_v46 = vunpack.i.h.s16 %v4631_v13  ;;  %v4770_v32 = vunpack.i.h.s16 %v4641_v50  ;;  %v16312_v39 = vpop.f32.mrf.mxu1  ;;  %v13235_v26 = vpack.i.b16 %v4638_v17, %v4766_v33 }
 0x27f   : > { %4992 = vst [vmem:[#allocation1 + $0x4] ss:$9 sm:$0xff] %v13231_v51  ;;  %v4768_v51 = vunpack.i.h.s16 %v4638_v17  ;;  %v13233_v12 = vpack.i.b16 %v4631_v13, %v4627_v2  ;;  %v5565_v17 = vunpack.i.h.s16 %v16021_v36  ;;  %v5569_v33 = vunpack.i.h.s16 %v16027_v8 }
 0x280   : > { %4994 = vst [vmem:[#allocation1 + $0x5] ss:$9 sm:$0xff] %v13232_v22  ;;  %v4219_v22 = vpop.f32.mrf.mxu2  ;;  %v13234_v10 = vpack.i.b16 %v4635_v21, %v4764_v46  ;;  %v5567_v46 = vunpack.i.h.s16 %v16023_v44 }
 0x281   : > { %4996 = vst [vmem:[#allocation1 + $0x6] ss:$9 sm:$0xff] %v4614_v41  ;;  %v4268_v41 = vpop.f32.mrf.mxu3  ;;  %v13236_v2 = vpack.i.b16 %v4641_v50, %v4768_v51  ;;  %v13334_v48 = vpack.i.b16 %v16023_v44, %v5565_v17  ;;  %v13336_v27 = vpack.i.b16 %v16030_v47, %v5569_v33  ;;  %v14321_v44 = vld [vmem:[%s18798_s1 + $0x3f0] sm:$0xff] }
 0x282   : > { %4998 = vst [vmem:[#allocation1 + $0x7] ss:$9 sm:$0xff] %v4618_v40  ;;  %v4269_v40 = vadd.f32 %v4268_v41, %v4219_v22  ;;  %v13237_v22 = vpack.i.b16 %v4644_v55, %v4770_v32  ;;  %v5300_v41 = vrot.slane %v5244_v61, 3  ;;  %v13335_v36 = vpack.i.b16 %v16027_v8, %v5567_v46  ;;  %v14313_v32 = vld [vmem:[%s18798_s1 + $0x3b0] sm:$0xff]  ;;  %7936 = vmatpush.bf16.msrb.mxu3 %v14321_v44 }
 0x283   : > { %19034 = vst [vmem:[#allocation57_spill] sm:$0xff] %v16312_v39  ;;  %v14305_v55 = vld [vmem:[%s18798_s1 + $0x370] sm:$0xff]  ;;  %7887 = vmatpush.bf16.msrb.mxu2 %v14313_v32  ;;  %v14320_v32 = vld [vmem:[%s18798_s1 + $0x3e8] sm:$0xff] }
 0x284   : > { %v16316_v13 = vadd.f32 %v4269_v40, %v15939_v62  ;;  %v5342_v50 = vsel %vm226_vm2, %v5244_v61, %v5300_v41  ;;  %7017 = vmatpush.bf16.msrb.mxu1 %v14305_v55  ;;  %v5304_v41 = vrot.slane %v5248_v4, 3 }
 0x285   : > { %v5573_v51 = vunpack.i.h.s16 %v5342_v50 }
 0x286   : > { %v3374_v62 = vpop.f32.mrf.mxu1  ;;  %7937 = vmatpush.bf16.msrb.mxu3 %v14320_v32  ;;  %v14302_v32 = vld [vmem:[%s18798_s1 + $0x358] sm:$0xff] }
 0x288   : > { %v16318_v20 = vpop.f32.mrf.mxu2 }
 0x289   : > { %v4999_v59 = vld [vmem:[#allocation1] sm:$0xff]  ;;  %v5000_v1 = vld [vmem:[#allocation1 + $0x9] sm:$0xff]  ;;  %19035 = vst [vmem:[#allocation58_spill] sm:$0xff] %v16318_v20  ;;  %v16320_v21 = vpop.f32.mrf.mxu3 }
 0x28a   : > { %5002 = vst [vmem:[#allocation1] ss:$9 sm:$0xff] %v4621_v18  ;;  %v3375_v18 = vadd.f32 %v3374_v62, %v3325_v54 }
 0x28b   : > { %5004 = vst [vmem:[#allocation1 + $0x1] ss:$9 sm:$0xff] %v4624_v15 }
 0x28c   : > { %5006 = vst [vmem:[#allocation1 + $0x2] ss:$9 sm:$0xff] %v13233_v12  ;;  %5167 = vmatmul.bf16.gmra.mxu0 %v4999_v59  ;;  %5216 = vmatmul.bf16.gmra.mxu1 %v5000_v1  ;;  %v16328_v15 = vadd.f32 %v3375_v18, %v16056_v45  ;;  %v5728_v45 = vpack.i.b16 %v19037_v25, %v5573_v51 }
 0x28d   : > { %5008 = vst [vmem:[#allocation1 + $0x3] ss:$9 sm:$0xff] %v13234_v10  ;;  %v16347_v10 = vpop.f32.mrf.mxu0  ;;  %v5376_v18 = vsel %vm226_vm2, %v5248_v4, %v5304_v41  ;;  %v14303_v4 = vld [vmem:[%s18798_s1 + $0x360] sm:$0xff] }
 0x28e   : > { %5010 = vst [vmem:[#allocation1 + $0x4] ss:$9 sm:$0xff] %v13235_v26  ;;  %v5571_v26 = vunpack.i.h.s16 %v16030_v47  ;;  %v14297_v47 = vld [vmem:[%s18798_s1 + $0x330] sm:$0xff]  ;;  %v16349_v59 = vpop.f32.mrf.mxu1 }
 0x28f   : > { %5012 = vst [vmem:[#allocation1 + $0x5] ss:$9 sm:$0xff] %v13236_v2  ;;  %6968 = vmatpush.bf16.msrb.mxu0 %v14297_v47  ;;  %v5252_v47 = vld [vmem:[#allocation2 + $0x1f8] sm:$0x11] }
 0x290   : > { %19036 = vst [vmem:[#allocation59_spill] sm:$0xff] %v16320_v21  ;;  %v13337_v61 = vpack.i.b16 %v5342_v50, %v5571_v26  ;;  %v4224_v12 = vpop.f32.mrf.mxu2  ;;  %v5308_v41 = vrot.slane %v5252_v47, 3 }
 0x291   : > { %5014 = vst [vmem:[#allocation1 + $0x6] ss:$9 sm:$0xff] %v13237_v22  ;;  %v4273_v40 = vpop.f32.mrf.mxu3  ;;  %v5246_v22 = vld [vmem:[#allocation2 + $0x8] sm:$0x11] }
 0x292   : > { %v4274_v8 = vadd.f32 %v4273_v40, %v4224_v12  ;;  %19038 = vst [vmem:[#allocation60_spill] sm:$0xff] %v16347_v10  ;;  %v5302_v62 = vrot.slane %v5246_v22, 3 }
 0x293   : > { %19039 = vst [vmem:[#allocation61_spill] sm:$0xff] %v16349_v59 }
 0x294   : > { %v16352_v2 = vadd.f32 %v4274_v8, %v16016_v58  ;;  %v5583_v58 = vunpack.i.h.s16 %v16084_v53  ;;  %v5359_v51 = vsel %vm226_vm2, %v5246_v22, %v5302_v62  ;;  %v5250_v22 = vld [vmem:[#allocation2 + $0x80] sm:$0x11] }
 0x295   : > { %v3330_v50 = vpop.f32.mrf.mxu0 }
 0x296   : > { %v3379_v46 = vpop.f32.mrf.mxu1  ;;  %v13338_v53 = vpack.i.b16 %v16086_v11, %v5583_v58  ;;  %v5306_v58 = vrot.slane %v5250_v22, 3 }
 0x297   : > { %v3380_v33 = vadd.f32 %v3379_v46, %v3330_v50  ;;  %v5601_v50 = vunpack.i.h.s16 %v16144_v31 }
 0x298   : > { %v5015_v1 = vld [vmem:[#allocation1] sm:$0xff]  ;;  %v5016_v0 = vld [vmem:[#allocation1 + $0x9] sm:$0xff]  ;;  %v16357_v17 = vpop.f32.mrf.mxu2 }
 0x299   : > { %5788 = vst [vmem:[#allocation1] ss:$9 sm:$0xff] %v13334_v48  ;;  %v16359_v54 = vpop.f32.mrf.mxu3  ;;  %v16367_v26 = vadd.f32 %v3380_v33, %v16118_v7  ;;  %v5591_v48 = vunpack.i.h.s16 %v5376_v18  ;;  %v14312_v7 = vld [vmem:[%s18798_s1 + $0x3a8] sm:$0xff]  ;;  %v5603_v33 = vunpack.i.h.s16 %v16140_v52 }
 0x29a   : > { %5791 = vst [vmem:[#allocation1 + $0x1] ss:$9 sm:$0xff] %v13335_v36  ;;  %7888 = vmatpush.bf16.msrb.mxu2 %v14312_v7 }
 0x29b   : > { %5794 = vst [vmem:[#allocation1 + $0x2] ss:$9 sm:$0xff] %v13336_v27 }
 0x29c   : > { %5797 = vst [vmem:[#allocation1 + $0x3] ss:$9 sm:$0xff] %v13337_v61  ;;  %5172 = vmatmul.bf16.gmra.mxu0 %v5015_v1  ;;  %5221 = vmatmul.bf16.gmra.mxu1 %v5016_v0 }
 0x29d   : > { %5800 = vst [vmem:[#allocation1 + $0x4] ss:$9 sm:$0xff] %v5728_v45  ;;  %v14304_v45 = vld [vmem:[%s18798_s1 + $0x368] sm:$0xff]  ;;  %v16387_v44 = vpop.f32.mrf.mxu0 }
 0x29e   : > { %5803 = vst [vmem:[#allocation1 + $0x5] ss:$9 sm:$0xff] %v16010_v63  ;;  %v5585_v63 = vunpack.i.h.s16 %v16086_v11  ;;  %v16389_v8 = vpop.f32.mrf.mxu1  ;;  %7018 = vmatpush.bf16.msrb.mxu1 %v14304_v45  ;;  %v5254_v45 = vld [vmem:[#allocation2 + $0x40] sm:$0x11] }
 0x29f   : > { %5806 = vst [vmem:[#allocation1 + $0x6] ss:$9 sm:$0xff] %v16013_v42  ;;  %v5587_v42 = vunpack.i.h.s16 %v16090_v43 }
 0x2a0   : > { %5809 = vst [vmem:[#allocation1 + $0x7] ss:$9 sm:$0xff] %v16032_v23  ;;  %v5589_v23 = vunpack.i.h.s16 %v16095_v37  ;;  %v13339_v36 = vpack.i.b16 %v16090_v43, %v5585_v63  ;;  %v4229_v12 = vpop.f32.mrf.mxu2  ;;  %v14296_v43 = vld [vmem:[%s18798_s1 + $0x328] sm:$0xff]  ;;  %v5410_v63 = vsel %vm226_vm2, %v5252_v47, %v5308_v41 }
 0x2a1   : > { %19040 = vst [vmem:[#allocation62_spill] sm:$0xff] %v16357_v17  ;;  %v13340_v0 = vpack.i.b16 %v16095_v37, %v5587_v42  ;;  %v4278_v11 = vpop.f32.mrf.mxu3  ;;  %v19042_v37 = vunpack.i.h.s16 %v16072_v57  ;;  %6969 = vmatpush.bf16.msrb.mxu0 %v14296_v43  ;;  %v14295_v57 = vld [vmem:[%s18798_s1 + $0x320] sm:$0xff]  ;;  %v5605_v42 = vunpack.i.h.s16 %v16150_v5 }
 0x2a2   : > { %19041 = vst [vmem:[#allocation63_spill] sm:$0xff] %v16359_v54  ;;  %v13341_v61 = vpack.i.b16 %v5376_v18, %v5589_v23  ;;  %v4279_v25 = vadd.f32 %v4278_v11, %v4229_v12  ;;  %7019 = vmatpush.bf16.msrb.mxu1 %v14303_v4  ;;  %v5310_v4 = vrot.slane %v5254_v45, 3 }
 0x2a3   : > { %v5737_v40 = vpack.i.b16 %v19042_v37, %v5591_v48  ;;  %19043 = vst [vmem:[#allocation64_spill] sm:$0xff] %v16387_v44  ;;  %v5609_v48 = vunpack.i.h.s16 %v5410_v63  ;;  %v5256_v37 = vld [vmem:[#allocation2 + $0x58] sm:$0x11] }
 0x2a4   : > { %19044 = vst [vmem:[#allocation65_spill] sm:$0xff] %v16389_v8  ;;  %v16392_v55 = vadd.f32 %v4279_v25, %v16080_v9  ;;  %v14301_v25 = vld [vmem:[%s18798_s1 + $0x350] sm:$0xff]  ;;  %v5312_v47 = vrot.slane %v5256_v37, 3 }
 0x2a5   : > { %6970 = vmatpush.bf16.msrb.mxu0 %v14295_v57  ;;  %v3335_v46 = vpop.f32.mrf.mxu0  ;;  %v14300_v57 = vld [vmem:[%s18798_s1 + $0x348] sm:$0xff] }
 0x2a6   : > { %v3384_v18 = vpop.f32.mrf.mxu1  ;;  %7020 = vmatpush.bf16.msrb.mxu1 %v14302_v32 }
 0x2a7   : > { %v5810_v27 = vld [vmem:[#allocation1] sm:$0xff]  ;;  %v5811_v1 = vld [vmem:[#allocation1 + $0x9] sm:$0xff] }
 0x2a8   : > { %6056 = vmatmul.bf16.vlgmr.msra.gmra.mxu2 %v5810_v27  ;;  %6105 = vmatmul.bf16.vlgmr.msra.gmra.mxu3 %v5811_v1  ;;  %5813 = vst [vmem:[#allocation1] ss:$9 sm:$0xff] %v5359_v51  ;;  %v16402_v9 = vpop.f32.mrf.mxu2  ;;  %v5393_v51 = vsel %vm226_vm2, %v5250_v22, %v5306_v58  ;;  %v13343_v27 = vpack.i.b16 %v16150_v5, %v5603_v33  ;;  %v14294_v5 = vld [vmem:[%s18798_s1 + $0x318] sm:$0xff]  ;;  %v5619_v22 = vunpack.i.h.s16 %v16201_v34  ;;  %v14299_v33 = vld [vmem:[%s18798_s1 + $0x340] sm:$0xff]  ;;  %v5625_v34 = vunpack.i.h.s16 %v16210_v24 }
 0x2a9   : > { %5815 = vst [vmem:[#allocation1 + $0x1] ss:$9 sm:$0xff] %v13338_v53  ;;  %v16404_v62 = vpop.f32.mrf.mxu3  ;;  %v13342_v53 = vpack.i.b16 %v16140_v52, %v5601_v50  ;;  %v13344_v1 = vpack.i.b16 %v16152_v19, %v5605_v42  ;;  %v14319_v52 = vld [vmem:[%s18798_s1 + $0x3e0] sm:$0xff]  ;;  %6971 = vmatpush.bf16.msrb.mxu0 %v14294_v5  ;;  %v5444_v50 = vsel %vm226_vm2, %v5256_v37, %v5312_v47  ;;  %v5259_v42 = vld [vmem:[#allocation2 + $0x28] sm:$0xff] }
 0x2aa   : > { %5817 = vst [vmem:[#allocation1 + $0x2] ss:$9 sm:$0xff] %v13339_v36  ;;  %7938 = vmatpush.bf16.msrb.mxu3 %v14319_v52  ;;  %7021 = vmatpush.bf16.msrb.mxu1 %v14301_v25 }
 0x2ab   : > { %5819 = vst [vmem:[#allocation1 + $0x3] ss:$9 sm:$0xff] %v13340_v0 }
 0x2ac   : > { %5821 = vst [vmem:[#allocation1 + $0x4] ss:$9 sm:$0xff] %v13341_v61 }
 0x2ad   : > { %5823 = vst [vmem:[#allocation1 + $0x5] ss:$9 sm:$0xff] %v5737_v40  ;;  %v16433_v11 = vpop.f32.mrf.mxu0  ;;  %v14293_v40 = vld [vmem:[%s18798_s1 + $0x310] sm:$0xff] }
 0x2ae   : > { %5825 = vst [vmem:[#allocation1 + $0x6] ss:$9 sm:$0xff] %v16074_v60  ;;  %v3385_v60 = vadd.f32 %v3384_v18, %v3335_v46  ;;  %v16435_v43 = vpop.f32.mrf.mxu1  ;;  %6972 = vmatpush.bf16.msrb.mxu0 %v14293_v40  ;;  %v5623_v18 = vunpack.i.h.s16 %v16207_v56  ;;  %7022 = vmatpush.bf16.msrb.mxu1 %v14300_v57 }
 0x2af   : > { %5827 = vst [vmem:[#allocation1 + $0x7] ss:$9 sm:$0xff] %v16092_v6  ;;  %v5607_v6 = vunpack.i.h.s16 %v16152_v19 }
 0x2b0   : > { %19045 = vst [vmem:[#allocation66_spill] sm:$0xff] %v16402_v9  ;;  %v16412_v23 = vadd.f32 %v3385_v60, %v16176_v30  ;;  %v14311_v30 = vld [vmem:[%s18798_s1 + $0x3a0] sm:$0xff]  ;;  %v4234_v61 = vpop.f32.mrf.mxu2 }
 0x2b1   : > { %19046 = vst [vmem:[#allocation67_spill] sm:$0xff] %v16404_v62  ;;  %v13345_v0 = vpack.i.b16 %v5410_v63, %v5607_v6  ;;  %v4283_v19 = vpop.f32.mrf.mxu3  ;;  %7889 = vmatpush.bf16.msrb.mxu2 %v14311_v30  ;;  %v14291_v63 = vld [vmem:[%s18798_s1 + $0x300] sm:$0xff] }
 0x2b2   : > { %v4284_v12 = vadd.f32 %v4283_v19, %v4234_v61  ;;  %19048 = vst [vmem:[#allocation68_spill] sm:$0xff] %v16433_v11  ;;  %7023 = vmatpush.bf16.msrb.mxu1 %v14299_v33 }
 0x2b3   : > { %19049 = vst [vmem:[#allocation69_spill] sm:$0xff] %v16435_v43 }
 0x2b5   : > { %v5138_v41 = vpop.f32.mrf.mxu0 }
 0x2b6   : > { %v5828_v31 = vld [vmem:[#allocation1] sm:$0xff]  ;;  %v5829_v36 = vld [vmem:[#allocation1 + $0x9] sm:$0xff]  ;;  %v5187_v58 = vpop.f32.mrf.mxu1 }
 0x2b7   : > { %5831 = vst [vmem:[#allocation1] ss:$9 sm:$0xff] %v16121_v49  ;;  %v19047_v49 = vunpack.i.h.s16 %v16132_v14  ;;  %v16438_v14 = vadd.f32 %v4284_v12, %v16138_v35  ;;  %v14292_v35 = vld [vmem:[%s18798_s1 + $0x308] sm:$0xff]  ;;  %v5188_v46 = vadd.f32 %v5187_v58, %v5138_v41  ;;  %v19052_v41 = vld [vmem:[#allocation47_spill] sm:$0xff] }
 0x2b8   : > { %6061 = vmatmul.bf16.gmra.mxu2 %v5828_v31  ;;  %6110 = vmatmul.bf16.gmra.mxu3 %v5829_v36  ;;  %5833 = vst [vmem:[#allocation1 + $0x1] ss:$9 sm:$0xff] %v5393_v51  ;;  %v13346_v31 = vpack.i.b16 %v16197_v3, %v5619_v22 }
 0x2b9   : > { %v5746_v7 = vpack.i.b16 %v19047_v49, %v5609_v48  ;;  %5835 = vst [vmem:[#allocation1 + $0x2] ss:$9 sm:$0xff] %v13342_v53  ;;  %6973 = vmatpush.bf16.msrb.mxu0 %v14292_v35  ;;  %v16465_v60 = vadd.f32 %v5188_v46, %v16316_v13  ;;  %v5427_v48 = vsel %vm226_vm2, %v5254_v45, %v5310_v4  ;;  %v5627_v53 = vunpack.i.h.s16 %v5444_v50  ;;  %v5263_v35 = vld [vmem:[#allocation2 + $0x130] sm:$0xff]  ;;  %v19054_v46 = vld [vmem:[#allocation49_spill] sm:$0xff] }
 0x2ba   : > { %5837 = vst [vmem:[#allocation1 + $0x3] ss:$9 sm:$0xff] %v13343_v27  ;;  %v13348_v27 = vpack.i.b16 %v16210_v24, %v5623_v18  ;;  %v5315_v13 = vrot.slane %v5259_v42, 3  ;;  %v5260_v24 = vld [vmem:[#allocation2 + $0x1e8] sm:$0x11]  ;;  %v5319_v18 = vrot.slane %v5263_v35, 3 }
 0x2bb   : > { %5839 = vst [vmem:[#allocation1 + $0x4] ss:$9 sm:$0xff] %v13344_v1  ;;  %v13349_v1 = vpack.i.b16 %v5444_v50, %v5625_v34  ;;  %v5316_v32 = vrot.slane %v5260_v24, 3  ;;  %v19053_v50 = vld [vmem:[#allocation48_spill] sm:$0xff] }
 0x2bc   : > { %5841 = vst [vmem:[#allocation1 + $0x5] ss:$9 sm:$0xff] %v13345_v0  ;;  %v19050_v0 = vld [vmem:[#allocation46_spill] sm:$0xff]  ;;  %v5465_v5 = vsel %vm226_vm2, %v5259_v42, %v5315_v13  ;;  %v5501_v33 = vsel %vm1200_vm4, %v5263_v35, %v5319_v18 }
 0x2bd   : > { %5843 = vst [vmem:[#allocation1 + $0x6] ss:$9 sm:$0xff] %v5746_v7  ;;  %6974 = vmatpush.bf16.msrb.mxu0 %v14291_v63  ;;  %v19051_v30 = vunpack.i.h.s16 %v19050_v0  ;;  %v5637_v12 = vunpack.i.h.s16 %v5465_v5  ;;  %v5478_v4 = vsel %vm226_vm2, %v5260_v24, %v5316_v32  ;;  %v5267_v5 = vld [vmem:[#allocation2 + $0xa8] sm:$0xff] }
 0x2be   : > { %5845 = vst [vmem:[#allocation1 + $0x7] ss:$9 sm:$0xff] %v16147_v28  ;;  %v5621_v28 = vunpack.i.h.s16 %v16197_v3  ;;  %v5467_v3 = vsel %vm1200_vm4, %v5259_v42, %v5315_v13  ;;  %v5645_v34 = vunpack.i.h.s16 %v5478_v4 }
 0x2bf   : > { %v5755_v52 = vpack.i.b16 %v19051_v30, %v5627_v53  ;;  %v5469_v61 = vrot.slane %v5467_v3, 1  ;;  %v5264_v30 = vld [vmem:[#allocation2 + $0xf0] sm:$0x11] }
 0x2c0   : > { %v13347_v36 = vpack.i.b16 %v16207_v56, %v5621_v28  ;;  %v5258_v56 = vld [vmem:[#allocation2 + $0x148] sm:$0x11] }
 0x2c1   : > { %v5314_v7 = vrot.slane %v5258_v56, 3  ;;  %v5639_v37 = vunpack.i.h.s16 %v5469_v61  ;;  %v13350_v22 = vpack.i.b16 %v5469_v61, %v5637_v12  ;;  %v19057_v61 = vld [vmem:[#allocation51_spill] sm:$0xff]  ;;  %v19058_v12 = vld [vmem:[#allocation52_spill] sm:$0xff] }
 0x2c3   : > { %v5461_v57 = vsel %vm226_vm2, %v5258_v56, %v5314_v7 }
 0x2c5   : > { %v5846_v6 = vld [vmem:[#allocation1] sm:$0xff]  ;;  %v5847_v51 = vld [vmem:[#allocation1 + $0x9] sm:$0xff] }
 0x2c6   : > { %5849 = vst [vmem:[#allocation1] ss:$9 sm:$0xff] %v16174_v16  ;;  %v5470_v16 = vsel %vm18907_vm6, %v5259_v42, %v5315_v13 }
 0x2c7   : > { %5851 = vst [vmem:[#allocation1 + $0x1] ss:$9 sm:$0xff] %v16179_v29  ;;  %v5473_v29 = vsel %vm18906_vm7, %v5259_v42, %v5315_v13  ;;  %v5472_v19 = vrot.slane %v5470_v16, 2  ;;  %v5504_v42 = vsel %vm18907_vm6, %v5263_v35, %v5319_v18  ;;  %v5507_v13 = vsel %vm18906_vm7, %v5263_v35, %v5319_v18 }
 0x2c8   : > { %6066 = vmatmul.bf16.gmra.mxu2 %v5846_v6  ;;  %6115 = vmatmul.bf16.gmra.mxu3 %v5847_v51  ;;  %5853 = vst [vmem:[#allocation1 + $0x2] ss:$9 sm:$0xff] %v5427_v48  ;;  %v5475_v49 = vrot.slane %v5473_v29, 3  ;;  %v5262_v6 = vld [vmem:[#allocation2 + $0x1d0] sm:$0x11]  ;;  %v5499_v51 = vsel %vm226_vm2, %v5263_v35, %v5319_v18  ;;  %v5503_v48 = vrot.slane %v5501_v33, 1 }
 0x2c9   : > { %5855 = vst [vmem:[#allocation1 + $0x3] ss:$9 sm:$0xff] %v13346_v31  ;;  %v5641_v40 = vunpack.i.h.s16 %v5472_v19  ;;  %v13351_v58 = vpack.i.b16 %v5472_v19, %v5639_v37  ;;  %v5506_v53 = vrot.slane %v5504_v42, 2  ;;  %v19055_v31 = vld [vmem:[#allocation50_spill] sm:$0xff]  ;;  %v5655_v0 = vunpack.i.h.s16 %v5499_v51 }
 0x2ca   : > { %5857 = vst [vmem:[#allocation1 + $0x4] ss:$9 sm:$0xff] %v13347_v36  ;;  %v5643_v47 = vunpack.i.h.s16 %v5475_v49  ;;  %v19056_v36 = vunpack.i.h.s16 %v19055_v31  ;;  %v5657_v3 = vunpack.i.h.s16 %v5503_v48  ;;  %v5509_v56 = vrot.slane %v5507_v13, 3  ;;  %v5269_v31 = vld [vmem:[#allocation2 + $0x18] sm:$0xff] }
 0x2cb   : > { %5859 = vst [vmem:[#allocation1 + $0x5] ss:$9 sm:$0xff] %v13348_v27  ;;  %v13352_v28 = vpack.i.b16 %v5475_v49, %v5641_v40  ;;  %v5659_v24 = vunpack.i.h.s16 %v5506_v53  ;;  %v5320_v19 = vrot.slane %v5264_v30, 3  ;;  %v13354_v32 = vpack.i.b16 %v5503_v48, %v5655_v0  ;;  %v19059_v40 = vld [vmem:[#allocation53_spill] sm:$0xff] }
 0x2cc   : > { %5861 = vst [vmem:[#allocation1 + $0x6] ss:$9 sm:$0xff] %v13349_v1  ;;  %v13353_v63 = vpack.i.b16 %v5478_v4, %v5643_v47  ;;  %v5764_v27 = vpack.i.b16 %v19056_v36, %v5645_v34  ;;  %v5318_v1 = vrot.slane %v5262_v6, 3  ;;  %v13355_v37 = vpack.i.b16 %v5506_v53, %v5657_v3 }
 0x2cd   : > { %5863 = vst [vmem:[#allocation1 + $0x7] ss:$9 sm:$0xff] %v5755_v52  ;;  %v5265_v52 = vld [vmem:[#allocation2 + $0x48] sm:$0xff]  ;;  %v5512_v47 = vsel %vm226_vm2, %v5264_v30, %v5320_v19  ;;  %v5661_v4 = vunpack.i.h.s16 %v5509_v56 }
 0x2ce   : > { %v5321_v49 = vrot.slane %v5265_v52, 3  ;;  %v5495_v7 = vsel %vm226_vm2, %v5262_v6, %v5318_v1  ;;  %v5268_v6 = vld [vmem:[#allocation2 + $0x120] sm:$0x11] }
 0x2cf   : > { %v13357_v33 = vpack.i.b16 %v5512_v47, %v5661_v4  ;;  %v14310_v4 = vld [vmem:[%s18798_s1 + $0x398] sm:$0xff] }
 0x2d0   : > { %v5516_v35 = vsel %vm226_vm2, %v5265_v52, %v5321_v49  ;;  %v5521_v18 = vsel %vm18907_vm6, %v5265_v52, %v5321_v49  ;;  %v5524_v34 = vsel %vm18906_vm7, %v5265_v52, %v5321_v49  ;;  %7890 = vmatpush.bf16.msrb.mxu2 %v14310_v4 }
 0x2d1   : > { %v5523_v36 = vrot.slane %v5521_v18, 2  ;;  %v5526_v30 = vrot.slane %v5524_v34, 3 }
 0x2d4   : > { %v5864_v25 = vld [vmem:[#allocation1] sm:$0xff]  ;;  %v5865_v45 = vld [vmem:[#allocation1 + $0x9] sm:$0xff] }
 0x2d5   : > { %5867 = vst [vmem:[#allocation1] ss:$9 sm:$0xff] %v19052_v41  ;;  %v5664_v41 = vunpack.i.h.s16 %v5516_v35 }
 0x2d6   : > { %5869 = vst [vmem:[#allocation1 + $0x1] ss:$9 sm:$0xff] %v19053_v50  ;;  %v5518_v50 = vsel %vm1200_vm4, %v5265_v52, %v5321_v49  ;;  %v5324_v52 = vrot.slane %v5268_v6, 3 }
 0x2d7   : > { %5871 = vst [vmem:[#allocation1 + $0x2] ss:$9 sm:$0xff] %v19054_v46  ;;  %v5520_v48 = vrot.slane %v5518_v50, 1 }
 0x2d8   : > { %6071 = vmatmul.bf16.gmra.mxu2 %v5864_v25  ;;  %6120 = vmatmul.bf16.gmra.mxu3 %v5865_v45  ;;  %5873 = vst [vmem:[#allocation1 + $0x3] ss:$9 sm:$0xff] %v5461_v57  ;;  %v5323_v25 = vrot.slane %v5267_v5, 3  ;;  %v13356_v45 = vpack.i.b16 %v5509_v56, %v5659_v24  ;;  %v5325_v56 = vrot.slane %v5269_v31, 3 }
 0x2d9   : > { %5875 = vst [vmem:[#allocation1 + $0x4] ss:$9 sm:$0xff] %v13350_v22  ;;  %v5663_v22 = vunpack.i.h.s16 %v5512_v47 }
 0x2da   : > { %5877 = vst [vmem:[#allocation1 + $0x5] ss:$9 sm:$0xff] %v13351_v58  ;;  %v5535_v57 = vsel %vm1200_vm4, %v5267_v5, %v5323_v25  ;;  %v5266_v58 = vld [vmem:[#allocation2 + $0xe0] sm:$0x11]  ;;  %v5541_v3 = vsel %vm18906_vm7, %v5267_v5, %v5323_v25  ;;  %v5555_v35 = vsel %vm18907_vm6, %v5269_v31, %v5325_v56  ;;  %v5558_v50 = vsel %vm18906_vm7, %v5269_v31, %v5325_v56 }
 0x2db   : > { %5879 = vst [vmem:[#allocation1 + $0x6] ss:$9 sm:$0xff] %v13352_v28  ;;  %v5533_v28 = vsel %vm226_vm2, %v5267_v5, %v5323_v25  ;;  %v5537_v46 = vrot.slane %v5535_v57, 1  ;;  %v5773_v42 = vpack.i.b16 %v5664_v41, %v5663_v22  ;;  %v5322_v51 = vrot.slane %v5266_v58, 3  ;;  %v14318_v22 = vld [vmem:[%s18798_s1 + $0x3d8] sm:$0xff] }
 0x2dc   : > { %5881 = vst [vmem:[#allocation1 + $0x7] ss:$9 sm:$0xff] %v13353_v63  ;;  %v5538_v63 = vsel %vm18907_vm6, %v5267_v5, %v5323_v25  ;;  %v5673_v53 = vunpack.i.h.s16 %v5533_v28  ;;  %v5543_v49 = vrot.slane %v5541_v3, 3  ;;  %v5546_v5 = vsel %vm226_vm2, %v5268_v6, %v5324_v52  ;;  %v5270_v25 = vld [vmem:[#allocation2 + $0x1b8] sm:$0x11]  ;;  %7939 = vmatpush.bf16.msrb.mxu3 %v14318_v22 }
 0x2dd   : > { %v5675_v13 = vunpack.i.h.s16 %v5537_v46  ;;  %v5529_v24 = vsel %vm226_vm2, %v5266_v58, %v5322_v51  ;;  %v5326_v34 = vrot.slane %v5270_v25, 3 }
 0x2e3   : > { %v5882_v16 = vld [vmem:[#allocation1] sm:$0xff]  ;;  %v5883_v29 = vld [vmem:[#allocation1 + $0x9] sm:$0xff] }
 0x2e4   : > { %5885 = vst [vmem:[#allocation1] ss:$9 sm:$0xff] %v5764_v27  ;;  %v5540_v27 = vrot.slane %v5538_v63, 2  ;;  %v16519_v63 = vpop.f32.mrf.mxu0 }
 0x2e5   : > { %5887 = vst [vmem:[#allocation1 + $0x1] ss:$9 sm:$0xff] %v19057_v61  ;;  %v13358_v61 = vpack.i.b16 %v5537_v46, %v5673_v53  ;;  %v6164_v46 = vld [vmem:[#allocation2 + $0x78] sm:$0xff] }
 0x2e6   : > { %5889 = vst [vmem:[#allocation1 + $0x2] ss:$9 sm:$0xff] %v19058_v12  ;;  %v13359_v19 = vpack.i.b16 %v5540_v27, %v5675_v13  ;;  %v5679_v12 = vunpack.i.h.s16 %v5543_v49  ;;  %v19064_v53 = vld [vmem:[#allocation45_spill] sm:$0xff]  ;;  %v6220_v13 = vrot.slane %v6164_v46, 3 }
 0x2e7   : > { %5891 = vst [vmem:[#allocation1 + $0x3] ss:$9 sm:$0xff] %v19059_v40 }
 0x2e8   : > { %6076 = vmatmul.bf16.gmra.mxu2 %v5882_v16  ;;  %6125 = vmatmul.bf16.gmra.mxu3 %v5883_v29  ;;  %5893 = vst [vmem:[#allocation1 + $0x4] ss:$9 sm:$0xff] %v5495_v7  ;;  %v16503_v16 = vpop.f32.mrf.mxu2  ;;  %v16505_v29 = vpop.f32.mrf.mxu3  ;;  %v5550_v7 = vsel %vm226_vm2, %v5269_v31, %v5325_v56  ;;  %v13361_v57 = vpack.i.b16 %v5546_v5, %v5679_v12 }
 0x2e9   : > { %5895 = vst [vmem:[#allocation1 + $0x5] ss:$9 sm:$0xff] %v13354_v32  ;;  %v5677_v32 = vunpack.i.h.s16 %v5540_v27  ;;  %v5682_v40 = vunpack.i.h.s16 %v5550_v7  ;;  %v5560_v27 = vrot.slane %v5558_v50, 3  ;;  %v6267_v3 = vsel %vm1200_vm4, %v6164_v46, %v6220_v13 }
 0x2ea   : > { %5897 = vst [vmem:[#allocation1 + $0x6] ss:$9 sm:$0xff] %v13355_v37  ;;  %v5681_v37 = vunpack.i.h.s16 %v5546_v5  ;;  %v16537_v12 = vrot.slane %v6267_v3, 1 }
 0x2eb   : > { %5899 = vst [vmem:[#allocation1 + $0x7] ss:$9 sm:$0xff] %v13356_v45  ;;  %v5552_v45 = vsel %vm1200_vm4, %v5269_v31, %v5325_v56  ;;  %v13360_v47 = vpack.i.b16 %v5543_v49, %v5677_v32  ;;  %v6162_v31 = vld [vmem:[#allocation2 + $0x118] sm:$0xff]  ;;  %v16535_v32 = vsel %vm226_vm2, %v6164_v46, %v6220_v13 }
 0x2ec   : > { %19060 = vst [vmem:[#allocation46_spill] sm:$0xff] %v16503_v16  ;;  %v5782_v28 = vpack.i.b16 %v5682_v40, %v5681_v37  ;;  %v18855_v22 = vunpack.i.h.s16 %v16535_v32 }
 0x2ed   : > { %19061 = vst [vmem:[#allocation47_spill] sm:$0xff] %v16505_v29  ;;  %v424_v29 = vld [vmem:[#allocation2 + $0xb0] sm:$0x11] }
 0x2ee   : > { %19062 = vst [vmem:[#allocation48_spill] sm:$0xff] %v16519_v63 }
 0x2f0   : > { %v4239_v41 = vpop.f32.mrf.mxu2  ;;  %v4288_v58 = vpop.f32.mrf.mxu3 }
 0x2f1   : > { %v4289_v18 = vadd.f32 %v4288_v58, %v4239_v41  ;;  %v6496_v58 = vunpack.i.h.s16 %v16537_v12 }
 0x2f2   : > { %v5900_v1 = vld [vmem:[#allocation1] sm:$0xff]  ;;  %v5901_v0 = vld [vmem:[#allocation1 + $0x9] sm:$0xff] }
 0x2f3   : > { %5903 = vst [vmem:[#allocation1] ss:$9 sm:$0xff] %v13357_v33  ;;  %v16521_v33 = vpop.f32.mrf.mxu1 }
 0x2f4   : > { %5905 = vst [vmem:[#allocation1 + $0x1] ss:$9 sm:$0xff] %v5773_v42  ;;  %v5554_v42 = vrot.slane %v5552_v45, 1 }
 0x2f5   : > { %5907 = vst [vmem:[#allocation1 + $0x2] ss:$9 sm:$0xff] %v5520_v48  ;;  %v5557_v48 = vrot.slane %v5555_v35, 2 }
 0x2f6   : > { %5909 = vst [vmem:[#allocation1 + $0x3] ss:$9 sm:$0xff] %v5523_v36  ;;  %v16524_v36 = vadd.f32 %v4289_v18, %v19064_v53  ;;  %v14317_v53 = vld [vmem:[%s18798_s1 + $0x3d0] sm:$0xff] }
 0x2f7   : > { %5911 = vst [vmem:[#allocation1 + $0x4] ss:$9 sm:$0xff] %v5526_v30  ;;  %v6218_v30 = vrot.slane %v6162_v31, 3  ;;  %7940 = vmatpush.bf16.msrb.mxu3 %v14317_v53 }
 0x2f8   : > { %5913 = vst [vmem:[#allocation1 + $0x5] ss:$9 sm:$0xff] %v5529_v24  ;;  %6081 = vmatmul.bf16.gmra.mxu2 %v5900_v1  ;;  %6130 = vmatmul.bf16.gmra.mxu3 %v5901_v0  ;;  %v5563_v1 = vsel %vm226_vm2, %v5270_v25, %v5326_v34  ;;  %v6163_v0 = vld [vmem:[#allocation2 + $0x110] sm:$0x11]  ;;  %v16528_v52 = vpop.f32.mrf.mxu2  ;;  %v16530_v56 = vpop.f32.mrf.mxu3  ;;  %v6270_v24 = vsel %vm18907_vm6, %v6164_v46, %v6220_v13  ;;  %v14309_v34 = vld [vmem:[%s18798_s1 + $0x390] sm:$0xff] }
 0x2f9   : > { %5915 = vst [vmem:[#allocation1 + $0x6] ss:$9 sm:$0xff] %v13358_v61  ;;  %v5143_v61 = vpop.f32.mrf.mxu0  ;;  %v6219_v49 = vrot.slane %v6163_v0, 3  ;;  %v6250_v7 = vsel %vm1200_vm4, %v6162_v31, %v6218_v30  ;;  %v6253_v37 = vsel %vm18907_vm6, %v6162_v31, %v6218_v30  ;;  %v16540_v40 = vrot.slane %v6270_v24, 2  ;;  %7891 = vmatpush.bf16.msrb.mxu2 %v14309_v34 }
 0x2fa   : > { %5917 = vst [vmem:[#allocation1 + $0x7] ss:$9 sm:$0xff] %v13359_v19  ;;  %v6256_v45 = vsel %vm18906_vm7, %v6162_v31, %v6218_v30  ;;  %v16548_v35 = vsel %vm226_vm2, %v6162_v31, %v6218_v30  ;;  %v16554_v41 = vrot.slane %v6253_v37, 2 }
 0x2fb   : > { %19063 = vst [vmem:[#allocation49_spill] sm:$0xff] %v16521_v33  ;;  %v5192_v19 = vpop.f32.mrf.mxu1  ;;  %v6261_v4 = vsel %vm226_vm2, %v6163_v0, %v6219_v49  ;;  %v6165_v0 = vld [vmem:[#allocation2 + $0x150] sm:$0x11]  ;;  %v13460_v30 = vpack.i.b16 %v16540_v40, %v6496_v58 }
 0x2fc   : > { %19065 = vst [vmem:[#allocation50_spill] sm:$0xff] %v16528_v52  ;;  %v5193_v5 = vadd.f32 %v5192_v19, %v5143_v61  ;;  %v6166_v61 = vld [vmem:[#allocation2 + $0x88] sm:$0xff]  ;;  %v6221_v49 = vrot.slane %v6165_v0, 3 }
 0x2fd   : > { %19066 = vst [vmem:[#allocation51_spill] sm:$0xff] %v16530_v56 }
 0x2fe   : > { %v16543_v25 = vadd.f32 %v5193_v5, %v16352_v2  ;;  %v6167_v5 = vld [vmem:[#allocation2 + $0x198] sm:$0x11] }
 0x2ff   : > { %v6223_v34 = vrot.slane %v6167_v5, 3 }
 0x301   : > { %v5918_v6 = vld [vmem:[#allocation1] sm:$0xff]  ;;  %v5919_v51 = vld [vmem:[#allocation1 + $0x9] sm:$0xff]  ;;  %v16572_v31 = vpop.f32.mrf.mxu0 }
 0x302   : > { %5921 = vst [vmem:[#allocation1] ss:$9 sm:$0xff] %v13360_v47  ;;  %v6273_v47 = vsel %vm18906_vm7, %v6164_v46, %v6220_v13  ;;  %v6498_v46 = vunpack.i.h.s16 %v16540_v40 }
 0x303   : > { %5923 = vst [vmem:[#allocation1 + $0x1] ss:$9 sm:$0xff] %v13361_v57  ;;  %v16550_v57 = vrot.slane %v6250_v7, 1  ;;  %v16559_v18 = vrot.slane %v6273_v47, 3  ;;  %v16574_v13 = vpop.f32.mrf.mxu1  ;;  %v6222_v7 = vrot.slane %v6166_v61, 3 }
 0x304   : > { %5925 = vst [vmem:[#allocation1 + $0x2] ss:$9 sm:$0xff] %v5782_v28  ;;  %v16557_v28 = vrot.slane %v6256_v45, 3 }
 0x305   : > { %5927 = vst [vmem:[#allocation1 + $0x3] ss:$9 sm:$0xff] %v5554_v42  ;;  %v4244_v42 = vpop.f32.mrf.mxu2  ;;  %v13461_v24 = vpack.i.b16 %v16559_v18, %v6498_v46 }
 0x306   : > { %5929 = vst [vmem:[#allocation1 + $0x4] ss:$9 sm:$0xff] %v5557_v48  ;;  %v16567_v48 = vld [vmem:[#allocation2 + $0x100] sm:$0xff] }
 0x307   : > { %5931 = vst [vmem:[#allocation1 + $0x5] ss:$9 sm:$0xff] %v5560_v27  ;;  %v6224_v19 = vrot.slane %v16567_v48, 3 }
 0x308   : > { %5933 = vst [vmem:[#allocation1 + $0x6] ss:$9 sm:$0xff] %v5563_v1  ;;  %6086 = vmatmul.bf16.gmra.mxu2 %v5918_v6  ;;  %6135 = vmatmul.bf16.gmra.mxu3 %v5919_v51  ;;  %v4293_v6 = vpop.f32.mrf.mxu3  ;;  %v13458_v51 = vpack.i.b16 %v16535_v32, %v6261_v4  ;;  %v13459_v1 = vpack.i.b16 %v16537_v12, %v18855_v22 }
 0x309   : > { %v4294_v27 = vadd.f32 %v4293_v6, %v4244_v42  ;;  %19067 = vst [vmem:[#allocation52_spill] sm:$0xff] %v16572_v31  ;;  %v6301_v37 = vsel %vm1200_vm4, %v16567_v48, %v6224_v19  ;;  %v6278_v4 = vsel %vm226_vm2, %v6165_v0, %v6221_v49  ;;  %v5148_v58 = vpop.f32.mrf.mxu0  ;;  %v6284_v6 = vsel %vm1200_vm4, %v6166_v61, %v6222_v7  ;;  %v6180_v31 = vld [vmem:[#allocation2 + $0xc8] sm:$0xff] }
 0x30a   : > { %19068 = vst [vmem:[#allocation53_spill] sm:$0xff] %v16574_v13  ;;  %v16601_v53 = vrot.slane %v6301_v37, 1  ;;  %v6295_v49 = vsel %vm226_vm2, %v6167_v5, %v6223_v34  ;;  %v14316_v5 = vld [vmem:[%s18798_s1 + $0x3c8] sm:$0xff]  ;;  %v6236_v33 = vrot.slane %v6180_v31, 3 }
 0x30b   : > { %v16583_v3 = vadd.f32 %v4294_v27, %v16328_v15  ;;  %v6500_v15 = vunpack.i.h.s16 %v16559_v18  ;;  %v5197_v46 = vpop.f32.mrf.mxu1  ;;  %v6287_v27 = vsel %vm18907_vm6, %v6166_v61, %v6222_v7  ;;  %7941 = vmatpush.bf16.msrb.mxu3 %v14316_v5 }
 0x30c   : > { %v5198_v42 = vadd.f32 %v5197_v46, %v5148_v58  ;;  %v16617_v22 = vrot.slane %v6287_v27, 2 }
 0x30d   : > { %v16591_v45 = vpop.f32.mrf.mxu2  ;;  %v13462_v0 = vpack.i.b16 %v6278_v4, %v6500_v15 }
 0x30e   : > { %19069 = vst [vmem:[#allocation45_spill] sm:$0xff] %v16591_v45 }
 0x30f   : > { %v5934_v50 = vld [vmem:[#allocation1] sm:$0xff]  ;;  %v5935_v2 = vld [vmem:[#allocation1 + $0x9] sm:$0xff] }
 0x310   : > { %6707 = vst [vmem:[#allocation1] ss:$9 sm:$0xff] %v16548_v35  ;;  %v16593_v47 = vpop.f32.mrf.mxu3 }
 0x311   : > { %6710 = vst [vmem:[#allocation1 + $0x1] ss:$9 sm:$0xff] %v16550_v57  ;;  %v16634_v27 = vpop.f32.mrf.mxu0 }
 0x312   : > { %6713 = vst [vmem:[#allocation1 + $0x2] ss:$9 sm:$0xff] %v16554_v41 }
 0x313   : > { %6716 = vst [vmem:[#allocation1 + $0x3] ss:$9 sm:$0xff] %v16557_v28 }
 0x314   : > { %6719 = vst [vmem:[#allocation1 + $0x4] ss:$9 sm:$0xff] %v13458_v51  ;;  %v16599_v51 = vsel %vm226_vm2, %v16567_v48, %v6224_v19 }
 0x315   : > { %6722 = vst [vmem:[#allocation1 + $0x5] ss:$9 sm:$0xff] %v13459_v1  ;;  %v6304_v1 = vsel %vm18907_vm6, %v16567_v48, %v6224_v19  ;;  %v18856_v37 = vunpack.i.h.s16 %v16599_v51  ;;  %v13463_v34 = vpack.i.b16 %v16599_v51, %v6295_v49 }
 0x316   : > { %6725 = vst [vmem:[#allocation1 + $0x6] ss:$9 sm:$0xff] %v13460_v30  ;;  %v16607_v30 = vadd.f32 %v5198_v42, %v16392_v55  ;;  %v16619_v43 = vrot.slane %v6304_v1, 2  ;;  %v6514_v55 = vunpack.i.h.s16 %v16601_v53  ;;  %v6307_v42 = vsel %vm18906_vm7, %v16567_v48, %v6224_v19  ;;  %v16636_v1 = vpop.f32.mrf.mxu1  ;;  %v6172_v19 = vld [vmem:[#allocation2 + $0x178] sm:$0xff] }
 0x317   : > { %6728 = vst [vmem:[#allocation1 + $0x7] ss:$9 sm:$0xff] %v13461_v24  ;;  %v16613_v24 = vrot.slane %v6284_v6, 1  ;;  %v6228_v5 = vrot.slane %v6172_v19, 3 }
 0x318   : > { %19070 = vst [vmem:[#allocation70_spill] sm:$0xff] %v16593_v47  ;;  %6091 = vmatmul.bf16.gmra.mxu2 %v5934_v50  ;;  %6140 = vmatmul.bf16.gmra.mxu3 %v5935_v2  ;;  %v6290_v50 = vsel %vm18906_vm7, %v6166_v61, %v6222_v7  ;;  %v16611_v2 = vsel %vm226_vm2, %v6166_v61, %v6222_v7  ;;  %v14308_v61 = vld [vmem:[%s18798_s1 + $0x388] sm:$0xff]  ;;  %v4249_v7 = vpop.f32.mrf.mxu2  ;;  %v4298_v4 = vpop.f32.mrf.mxu3 }
 0x319   : > { %v16622_v15 = vrot.slane %v6290_v50, 3  ;;  %v4299_v6 = vadd.f32 %v4298_v4, %v4249_v7  ;;  %19071 = vst [vmem:[#allocation71_spill] sm:$0xff] %v16634_v27  ;;  %v6169_v50 = vld [vmem:[#allocation2 + $0xe8] sm:$0x11]  ;;  %7892 = vmatpush.bf16.msrb.mxu2 %v14308_v61  ;;  %v13465_v49 = vpack.i.b16 %v16619_v43, %v6514_v55  ;;  %v6171_v61 = vld [vmem:[#allocation2 + $0xf8] sm:$0x11]  ;;  %v6516_v55 = vunpack.i.h.s16 %v16619_v43  ;;  %v5153_v8 = vpop.f32.mrf.mxu0 }
 0x31a   : > { %19072 = vst [vmem:[#allocation72_spill] sm:$0xff] %v16636_v1  ;;  %v6225_v7 = vrot.slane %v6169_v50, 3  ;;  %v6227_v44 = vrot.slane %v6171_v61, 3  ;;  %v6335_v47 = vsel %vm1200_vm4, %v6172_v19, %v6228_v5 }
 0x31b   : > { %v16645_v48 = vadd.f32 %v4299_v6, %v16367_v26  ;;  %v16674_v10 = vrot.slane %v6335_v47, 1 }
 0x31c   : > { %v6312_v6 = vsel %vm226_vm2, %v6169_v50, %v6225_v7 }
 0x31e   : > { %v6729_v58 = vld [vmem:[#allocation1] sm:$0xff]  ;;  %v6730_v46 = vld [vmem:[#allocation1 + $0x9] sm:$0xff] }
 0x31f   : > { %6975 = vmatmul.bf16.vlgmr.msrb.gmra.mxu0 %v6729_v58  ;;  %7024 = vmatmul.bf16.vlgmr.msrb.gmra.mxu1 %v6730_v46  ;;  %6732 = vst [vmem:[#allocation1] ss:$9 sm:$0xff] %v13462_v0  ;;  %v13464_v0 = vpack.i.b16 %v16601_v53, %v18856_v37  ;;  %v6170_v58 = vld [vmem:[#allocation2 + $0x158] sm:$0xff]  ;;  %v16648_v46 = vrot.slane %v6307_v42, 3  ;;  %v5202_v42 = vpop.f32.mrf.mxu1 }
 0x320   : > { %6734 = vst [vmem:[#allocation1 + $0x1] ss:$9 sm:$0xff] %v16611_v2  ;;  %v6226_v4 = vrot.slane %v6170_v58, 3  ;;  %v16652_v11 = vpop.f32.mrf.mxu2  ;;  %v16654_v26 = vpop.f32.mrf.mxu3 }
 0x321   : > { %6736 = vst [vmem:[#allocation1 + $0x2] ss:$9 sm:$0xff] %v16613_v24  ;;  %v6518_v37 = vunpack.i.h.s16 %v16648_v46  ;;  %v13466_v45 = vpack.i.b16 %v16648_v46, %v6516_v55 }
 0x322   : > { %6738 = vst [vmem:[#allocation1 + $0x3] ss:$9 sm:$0xff] %v16617_v22  ;;  %v6321_v56 = vsel %vm18907_vm6, %v6170_v58, %v6226_v4  ;;  %v6324_v7 = vsel %vm18906_vm7, %v6170_v58, %v6226_v4 }
 0x323   : > { %6740 = vst [vmem:[#allocation1 + $0x4] ss:$9 sm:$0xff] %v16622_v15  ;;  %v16677_v39 = vrot.slane %v6321_v56, 2 }
 0x324   : > { %6742 = vst [vmem:[#allocation1 + $0x5] ss:$9 sm:$0xff] %v13463_v34  ;;  %v6318_v34 = vsel %vm1200_vm4, %v6170_v58, %v6226_v4 }
 0x325   : > { %6744 = vst [vmem:[#allocation1 + $0x6] ss:$9 sm:$0xff] %v13464_v0  ;;  %v5203_v0 = vadd.f32 %v5202_v42, %v5153_v8  ;;  %v16667_v50 = vrot.slane %v6318_v34, 1  ;;  %v16671_v8 = vsel %vm226_vm2, %v6170_v58, %v6226_v4  ;;  %v6329_v42 = vsel %vm226_vm2, %v6171_v61, %v6227_v44  ;;  %v14307_v58 = vld [vmem:[%s18798_s1 + $0x380] sm:$0xff] }
 0x326   : > { %6746 = vst [vmem:[#allocation1 + $0x7] ss:$9 sm:$0xff] %v13465_v49  ;;  %v16659_v49 = vsel %vm226_vm2, %v6172_v19, %v6228_v5  ;;  %v14315_v44 = vld [vmem:[%s18798_s1 + $0x3c0] sm:$0xff]  ;;  %7893 = vmatpush.bf16.msrb.mxu2 %v14307_v58 }
 0x327   : > { %19073 = vst [vmem:[#allocation73_spill] sm:$0xff] %v16652_v11  ;;  %v13467_v11 = vpack.i.b16 %v6312_v6, %v6518_v37  ;;  %v18857_v55 = vunpack.i.h.s16 %v16659_v49  ;;  %v6338_v37 = vsel %vm18907_vm6, %v6172_v19, %v6228_v5  ;;  %v13468_v56 = vpack.i.b16 %v16659_v49, %v6329_v42  ;;  %v6173_v6 = vld [vmem:[#allocation2 + $0xd0] sm:$0x11]  ;;  %7942 = vmatpush.bf16.msrb.mxu3 %v14315_v44  ;;  %v6176_v58 = vld [vmem:[#allocation2 + $0x1d8] sm:$0xff] }
 0x328   : > { %19074 = vst [vmem:[#allocation74_spill] sm:$0xff] %v16654_v26  ;;  %v16665_v26 = vadd.f32 %v5203_v0, %v16438_v14  ;;  %v16679_v14 = vrot.slane %v6324_v7, 3  ;;  %v4254_v47 = vpop.f32.mrf.mxu2  ;;  %v4303_v4 = vpop.f32.mrf.mxu3  ;;  %v16700_v34 = vrot.slane %v6338_v37, 2  ;;  %v6229_v7 = vrot.slane %v6173_v6, 3 }
 0x329   : > { %v13469_v61 = vpack.i.b16 %v16674_v10, %v18857_v55  ;;  %v6532_v42 = vunpack.i.h.s16 %v16674_v10 }
 0x32d   : > { %v6747_v52 = vld [vmem:[#allocation1] sm:$0xff]  ;;  %v6748_v59 = vld [vmem:[#allocation1 + $0x9] sm:$0xff] }
 0x32e   : > { %6750 = vst [vmem:[#allocation1] ss:$9 sm:$0xff] %v13466_v45  ;;  %v16693_v45 = vpop.f32.mrf.mxu1 }
 0x32f   : > { %6980 = vmatmul.bf16.gmra.mxu0 %v6747_v52  ;;  %7029 = vmatmul.bf16.gmra.mxu1 %v6748_v59  ;;  %6752 = vst [vmem:[#allocation1 + $0x1] ss:$9 sm:$0xff] %v13467_v11  ;;  %v6341_v59 = vsel %vm18906_vm7, %v6172_v19, %v6228_v5  ;;  %v4304_v52 = vadd.f32 %v4303_v4, %v4254_v47  ;;  %v16691_v11 = vpop.f32.mrf.mxu0  ;;  %v6174_v5 = vld [vmem:[#allocation2 + $0x50] sm:$0xff]  ;;  %v6175_v47 = vld [vmem:[#allocation2 + $0x128] sm:$0x11]  ;;  %v6534_v4 = vunpack.i.h.s16 %v16700_v34 }
 0x330   : > { %6754 = vst [vmem:[#allocation1 + $0x2] ss:$9 sm:$0xff] %v16671_v8  ;;  %v16706_v0 = vrot.slane %v6341_v59, 3  ;;  %v6230_v44 = vrot.slane %v6174_v5, 3  ;;  %v6231_v38 = vrot.slane %v6175_v47, 3  ;;  %v13470_v59 = vpack.i.b16 %v16700_v34, %v6532_v42 }
 0x331   : > { %19075 = vst [vmem:[#allocation75_spill] sm:$0xff] %v16691_v11  ;;  %v16703_v19 = vadd.f32 %v4304_v52, %v16412_v23  ;;  %v6346_v23 = vsel %vm226_vm2, %v6173_v6, %v6229_v7  ;;  %v425_v7 = vsel %vm14493_vm13, 0, %v424_v29  ;;  %v6403_v6 = vsel %vm1200_vm4, %v6180_v31, %v6236_v33 }
 0x332   : > { %19076 = vst [vmem:[#allocation76_spill] sm:$0xff] %v16693_v45  ;;  %v6536_v37 = vunpack.i.h.s16 %v16706_v0  ;;  %v6232_v45 = vrot.slane %v6176_v58, 3  ;;  %v13471_v11 = vpack.i.b16 %v16706_v0, %v6534_v4  ;;  %v6355_v16 = vsel %vm18907_vm6, %v6174_v5, %v6230_v44 }
 0x333   : > { %6756 = vst [vmem:[#allocation1 + $0x3] ss:$9 sm:$0xff] %v16667_v50  ;;  %v6358_v42 = vsel %vm18906_vm7, %v6174_v5, %v6230_v44  ;;  %v6363_v4 = vsel %vm226_vm2, %v6175_v47, %v6231_v38  ;;  %v323_v47 = vld [vmem:[#allocation2 + $0x1e0] sm:$0x11] }
 0x334   : > { %6758 = vst [vmem:[#allocation1 + $0x4] ss:$9 sm:$0xff] %v16677_v39  ;;  %v13472_v1 = vpack.i.b16 %v6346_v23, %v6536_v37  ;;  %v16729_v37 = vsel %vm226_vm2, %v6176_v58, %v6232_v45  ;;  %v16734_v23 = vrot.slane %v6355_v16, 2  ;;  %v6369_v29 = vsel %vm1200_vm4, %v6176_v58, %v6232_v45 }
 0x335   : > { %6760 = vst [vmem:[#allocation1 + $0x5] ss:$9 sm:$0xff] %v16679_v14  ;;  %v6372_v38 = vsel %vm18907_vm6, %v6176_v58, %v6232_v45  ;;  %v6375_v16 = vsel %vm18906_vm7, %v6176_v58, %v6232_v45 }
 0x336   : > { %6762 = vst [vmem:[#allocation1 + $0x6] ss:$9 sm:$0xff] %v13468_v56  ;;  %v5207_v55 = vpop.f32.mrf.mxu1 }
 0x337   : > { %6764 = vst [vmem:[#allocation1 + $0x7] ss:$9 sm:$0xff] %v13469_v61  ;;  %v5158_v52 = vpop.f32.mrf.mxu0  ;;  %v6352_v61 = vsel %vm1200_vm4, %v6174_v5, %v6230_v44 }
 0x338   : > { %v5208_v56 = vadd.f32 %v5207_v55, %v5158_v52  ;;  %426 = vst [vmem:[#allocation2 + $0xb0] sm:$0x11] %v425_v7  ;;  %v16723_v55 = vsel %vm226_vm2, %v6174_v5, %v6230_v44  ;;  %v16725_v52 = vrot.slane %v6352_v61, 1  ;;  %v16738_v5 = vrot.slane %v6358_v42, 3  ;;  %v6178_v42 = vld [vmem:[#allocation2 + $0x1f0] sm:$0xff] }
 0x339   : > { %v13473_v44 = vpack.i.b16 %v16729_v37, %v6363_v4  ;;  %v16745_v61 = vrot.slane %v6369_v29, 1  ;;  %v16753_v4 = vrot.slane %v6375_v16, 3  ;;  %v6234_v13 = vrot.slane %v6178_v42, 3 }
 0x33a   : > { %v16717_v27 = vadd.f32 %v5208_v56, %v16524_v36  ;;  %v16732_v36 = vld [vmem:[%s14463_s8 + $0xe8] sm:$0xff] }
 0x33b   : > { %v1076_v56 = vshrl.u32 %v16732_v36, 16  ;;  %19079 = vst [vmem:[#allocation78_spill] sm:$0xff] %v16745_v61  ;;  %v6554_v54 = vunpack.i.h.s16 %v16753_v4  ;;  %v1079_v20 = vshll.u32 %v16732_v36, 16 }
 0x33c   : > { %19077 = vst [vmem:[#allocation77_spill] sm:$0xff] %v16717_v27  ;;  %v6406_v27 = vsel %vm18907_vm6, %v6180_v31, %v6236_v33 }
 0x33d   : > { %19082 = vst [vmem:[#allocation80_spill] sm:$0xff] %v16753_v4 }
 0x33e   : > { %v6765_v62 = vld [vmem:[#allocation1] sm:$0xff]  ;;  %v6766_v9 = vld [vmem:[#allocation1 + $0x9] sm:$0xff] }
 0x33f   : > { %6768 = vst [vmem:[#allocation1] ss:$9 sm:$0xff] %v13470_v59  ;;  %6985 = vmatmul.bf16.gmra.mxu0 %v6765_v62  ;;  %7034 = vmatmul.bf16.gmra.mxu1 %v6766_v9  ;;  %v1078_v59 = vrot.slane %v1076_v56, 7  ;;  %v16748_v9 = vrot.slane %v6372_v38, 2  ;;  %v1089_v45 = vld [vmem:[#allocation2 + $0xb0] sm:$0x11]  ;;  %v18858_v56 = vunpack.i.h.s16 %v16729_v37  ;;  %v6550_v38 = vunpack.i.h.s16 %v16745_v61 }
 0x340   : > { %6770 = vst [vmem:[#allocation1 + $0x1] ss:$9 sm:$0xff] %v13471_v11  ;;  %v6177_v11 = vld [vmem:[#allocation2 + $0x138] sm:$0x11] }
 0x341   : > { %6772 = vst [vmem:[#allocation1 + $0x2] ss:$9 sm:$0xff] %v13472_v1  ;;  %v324_v1 = vsel %vm14475_vm8, 0, %v323_v47  ;;  %v1082_v7 = vrot.slane %v1078_v59, 4  ;;  %v6233_v58 = vrot.slane %v6177_v11, 3  ;;  %v6552_v47 = vunpack.i.h.s16 %v16748_v9 }
 0x342   : > { %6774 = vst [vmem:[#allocation1 + $0x3] ss:$9 sm:$0xff] %v16723_v55  ;;  %v13475_v17 = vpack.i.b16 %v16748_v9, %v6550_v38 }
 0x343   : > { %6776 = vst [vmem:[#allocation1 + $0x4] ss:$9 sm:$0xff] %v16725_v52  ;;  %v1090_v29 = vsel %vm14475_vm8, %v1082_v7, %v1089_v45  ;;  %v6380_v16 = vsel %vm226_vm2, %v6177_v11, %v6233_v58  ;;  %v6386_v7 = vsel %vm1200_vm4, %v6178_v42, %v6234_v13  ;;  %v6392_v11 = vsel %vm18906_vm7, %v6178_v42, %v6234_v13  ;;  %v6179_v58 = vld [vmem:[#allocation2 + $0x70] sm:$0x11] }
 0x344   : > { %6778 = vst [vmem:[#allocation1 + $0x5] ss:$9 sm:$0xff] %v16734_v23  ;;  %v13477_v21 = vpack.i.b16 %v6380_v16, %v6554_v54  ;;  %v6388_v62 = vrot.slane %v6386_v7, 1  ;;  %v1081_v54 = vor.u32 %v1079_v20, %v1078_v59  ;;  %v6235_v36 = vrot.slane %v6179_v58, 3  ;;  %v6182_v7 = vld [vmem:[#allocation2 + $0x60] sm:$0xff] }
 0x345   : > { %19080 = vst [vmem:[#allocation79_spill] sm:$0xff] %v16748_v9  ;;  %v6409_v16 = vsel %vm18906_vm7, %v6180_v31, %v6236_v33 }
 0x346   : > { %6780 = vst [vmem:[#allocation1 + $0x6] ss:$9 sm:$0xff] %v16738_v5 }
 0x347   : > { %6782 = vst [vmem:[#allocation1 + $0x7] ss:$9 sm:$0xff] %v13473_v44  ;;  %v13474_v44 = vpack.i.b16 %v16745_v61, %v18858_v56  ;;  %v6384_v56 = vsel %vm226_vm2, %v6178_v42, %v6234_v13 }
 0x348   : > { %325 = vst [vmem:[#allocation2 + $0x1e0] sm:$0x11] %v324_v1  ;;  %v13476_v1 = vpack.i.b16 %v16753_v4, %v6552_v47  ;;  %v6394_v47 = vrot.slane %v6392_v11, 3  ;;  %v6181_v4 = vld [vmem:[#allocation2 + $0x180] sm:$0x11] }
 0x349   : > { %1091 = vst [vmem:[#allocation2 + $0xb0] sm:$0x11] %v1090_v29  ;;  %v6389_v29 = vsel %vm18907_vm6, %v6178_v42, %v6234_v13  ;;  %v6401_v13 = vsel %vm226_vm2, %v6180_v31, %v6236_v33  ;;  %v6408_v42 = vrot.slane %v6406_v27, 2  ;;  %v6237_v20 = vrot.slane %v6181_v4, 3  ;;  %v6184_v27 = vld [vmem:[#allocation2 + $0x1c8] sm:$0xff] }
 0x34a   : > { %v6391_v38 = vrot.slane %v6389_v29, 2  ;;  %v6566_v59 = vunpack.i.h.s16 %v6401_v13  ;;  %v6238_v29 = vrot.slane %v6182_v7, 3 }
 0x34b   : > { %v6570_v33 = vunpack.i.h.s16 %v6408_v42 }
 0x34c   : > { %v6418_v9 = vsel %vm226_vm2, %v6182_v7, %v6238_v29 }
 0x34e   : > { %v6783_v45 = vld [vmem:[#allocation1] sm:$0xff]  ;;  %v6784_v63 = vld [vmem:[#allocation1 + $0x9] sm:$0xff] }
 0x34f   : > { %6786 = vst [vmem:[#allocation1] ss:$9 sm:$0xff] %v13474_v44  ;;  %6990 = vmatmul.bf16.gmra.mxu0 %v6783_v45  ;;  %7039 = vmatmul.bf16.gmra.mxu1 %v6784_v63  ;;  %v1086_v44 = vld [vmem:[#allocation2 + $0x1e0] sm:$0xff]  ;;  %v6240_v63 = vrot.slane %v6184_v27, 3 }
 0x350   : > { %6788 = vst [vmem:[#allocation1 + $0x1] ss:$9 sm:$0xff] %v13475_v17  ;;  %v6405_v17 = vrot.slane %v6403_v6, 1  ;;  %v16778_v45 = vsel %vm14520_vm1, %v1081_v54, %v1086_v44 }
 0x351   : > { %6790 = vst [vmem:[#allocation1 + $0x2] ss:$9 sm:$0xff] %v13476_v1  ;;  %v6411_v1 = vrot.slane %v6409_v16, 3 }
 0x352   : > { %6792 = vst [vmem:[#allocation1 + $0x3] ss:$9 sm:$0xff] %v13477_v21  ;;  %v6397_v21 = vsel %vm226_vm2, %v6179_v58, %v6235_v36  ;;  %v13479_v11 = vpack.i.b16 %v6405_v17, %v6566_v59  ;;  %v6423_v58 = vsel %vm18907_vm6, %v6182_v7, %v6238_v29  ;;  %v16790_v59 = vsel %vm226_vm2, %v6184_v27, %v6240_v63 }
 0x353   : > { %6794 = vst [vmem:[#allocation1 + $0x4] ss:$9 sm:$0xff] %v6384_v56  ;;  %v6568_v56 = vunpack.i.h.s16 %v6405_v17  ;;  %v6572_v31 = vunpack.i.h.s16 %v6411_v1  ;;  %v13478_v6 = vpack.i.b16 %v6401_v13, %v6397_v21  ;;  %v13481_v54 = vpack.i.b16 %v6411_v1, %v6570_v33  ;;  %v6183_v13 = vld [vmem:[#allocation2 + $0x188] sm:$0x11] }
 0x354   : > { %6796 = vst [vmem:[#allocation1 + $0x5] ss:$9 sm:$0xff] %v6388_v62  ;;  %v6414_v62 = vsel %vm226_vm2, %v6181_v4, %v6237_v20  ;;  %v6425_v21 = vrot.slane %v6423_v58, 2  ;;  %v6437_v4 = vsel %vm1200_vm4, %v6184_v27, %v6240_v63  ;;  %v6440_v17 = vsel %vm18907_vm6, %v6184_v27, %v6240_v63  ;;  %v6185_v20 = vld [vmem:[#allocation2 + $0xb8] sm:$0x11] }
 0x355   : > { %6798 = vst [vmem:[#allocation1 + $0x6] ss:$9 sm:$0xff] %v6391_v38  ;;  %v13480_v38 = vpack.i.b16 %v6408_v42, %v6568_v56  ;;  %v13482_v36 = vpack.i.b16 %v6414_v62, %v6572_v31  ;;  %v6239_v42 = vrot.slane %v6183_v13, 3  ;;  %v6443_v1 = vsel %vm18906_vm7, %v6184_v27, %v6240_v63 }
 0x356   : > { %6800 = vst [vmem:[#allocation1 + $0x7] ss:$9 sm:$0xff] %v6394_v47  ;;  %v6420_v47 = vsel %vm1200_vm4, %v6182_v7, %v6238_v29  ;;  %v16792_v56 = vrot.slane %v6437_v4, 1  ;;  %v16794_v33 = vrot.slane %v6440_v17, 2  ;;  %v6426_v31 = vsel %vm18906_vm7, %v6182_v7, %v6238_v29 }
 0x357   : > { %1088 = vst [vmem:[#allocation2 + $0x1e0] sm:$0xff] %v16778_v45  ;;  %v6422_v61 = vrot.slane %v6420_v47, 1  ;;  %v16797_v62 = vrot.slane %v6443_v1, 3  ;;  %v6428_v47 = vrot.slane %v6426_v31, 3  ;;  %v16815_v1 = vpop.f32.mrf.mxu3 }
 0x358   : > { %19084 = vst [vmem:[#allocation81_spill] sm:$0xff] %v16792_v56  ;;  %v6588_v27 = vunpack.i.h.s16 %v16794_v33 }
 0x359   : > { %19085 = vst [vmem:[#allocation82_spill] sm:$0xff] %v16794_v33 }
 0x35a   : > { %19086 = vst [vmem:[#allocation83_spill] sm:$0xff] %v16797_v62  ;;  %v13486_v4 = vpack.i.b16 %v16797_v62, %v6588_v27 }
 0x35b   : > { %19088 = vst [vmem:[#allocation85_spill] sm:$0xff] %v16815_v1  ;;  %v16864_v1 = vpop.f32.mrf.mxu0 }
 0x35c   : > { %19091 = vst [vmem:[#allocation88_spill] sm:$0xff] %v16864_v1 }
 0x35d   : > { %v6801_v16 = vld [vmem:[#allocation1] sm:$0xff]  ;;  %v6802_v44 = vld [vmem:[#allocation1 + $0x9] sm:$0xff] }
 0x35e   : > { %6804 = vst [vmem:[#allocation1] ss:$9 sm:$0xff] %v13478_v6  ;;  %v6186_v6 = vld [vmem:[#allocation2] sm:$0xff] }
 0x35f   : > { %6806 = vst [vmem:[#allocation1 + $0x1] ss:$9 sm:$0xff] %v13479_v11  ;;  %6995 = vmatmul.bf16.gmra.mxu0 %v6801_v16  ;;  %7044 = vmatmul.bf16.gmra.mxu1 %v6802_v44  ;;  %v6241_v11 = vrot.slane %v6185_v20, 3  ;;  %v6242_v63 = vrot.slane %v6186_v6, 3 }
 0x360   : > { %6808 = vst [vmem:[#allocation1 + $0x2] ss:$9 sm:$0xff] %v13480_v38  ;;  %v18863_v38 = vunpack.i.h.s16 %v16790_v59 }
 0x361   : > { %6810 = vst [vmem:[#allocation1 + $0x3] ss:$9 sm:$0xff] %v13481_v54  ;;  %v6590_v54 = vunpack.i.h.s16 %v16797_v62  ;;  %v6448_v7 = vsel %vm226_vm2, %v6185_v20, %v6241_v11  ;;  %v6187_v20 = vld [vmem:[#allocation2 + $0x20] sm:$0x11]  ;;  %v16818_v31 = vsel %vm226_vm2, %v6186_v6, %v6242_v63 }
 0x362   : > { %6812 = vst [vmem:[#allocation1 + $0x4] ss:$9 sm:$0xff] %v13482_v36  ;;  %v13484_v29 = vpack.i.b16 %v16792_v56, %v18863_v38 }
 0x363   : > { %6814 = vst [vmem:[#allocation1 + $0x5] ss:$9 sm:$0xff] %v6418_v9  ;;  %v6431_v9 = vsel %vm226_vm2, %v6183_v13, %v6239_v42  ;;  %v6244_v13 = vrot.slane %v16778_v45, 3  ;;  %v13487_v17 = vpack.i.b16 %v6448_v7, %v6590_v54  ;;  %v16813_v42 = vpop.f32.mrf.mxu2  ;;  %v6189_v54 = vld [vmem:[#allocation2 + $0xb0] sm:$0x11] }
 0x364   : > { %6816 = vst [vmem:[#allocation1 + $0x6] ss:$9 sm:$0xff] %v6422_v61  ;;  %v6586_v61 = vunpack.i.h.s16 %v16792_v56  ;;  %v13483_v16 = vpack.i.b16 %v16790_v59, %v6431_v9 }
 0x365   : > { %6818 = vst [vmem:[#allocation1 + $0x7] ss:$9 sm:$0xff] %v6425_v21  ;;  %v6454_v21 = vsel %vm1200_vm4, %v6186_v6, %v6242_v63  ;;  %v6471_v9 = vsel %vm1200_vm4, %v16778_v45, %v6244_v13  ;;  %v6477_v27 = vsel %vm18906_vm7, %v16778_v45, %v6244_v13 }
 0x366   : > { %v13485_v44 = vpack.i.b16 %v16794_v33, %v6586_v61  ;;  %19087 = vst [vmem:[#allocation84_spill] sm:$0xff] %v16813_v42  ;;  %v16820_v11 = vrot.slane %v6454_v21, 1  ;;  %v6474_v61 = vsel %vm18907_vm6, %v16778_v45, %v6244_v13  ;;  %v16833_v7 = vrot.slane %v6471_v9, 1  ;;  %v16866_v42 = vpop.f32.mrf.mxu1 }
 0x367   : > { %19089 = vst [vmem:[#allocation86_spill] sm:$0xff] %v16818_v31  ;;  %v6245_v21 = vrot.slane %v6189_v54, 3 }
 0x368   : > { %19090 = vst [vmem:[#allocation87_spill] sm:$0xff] %v16820_v11 }
 0x369   : > { %19092 = vst [vmem:[#allocation89_spill] sm:$0xff] %v16866_v42  ;;  %v6482_v62 = vsel %vm226_vm2, %v6189_v54, %v6245_v21 }
 0x36c   : > { %v6819_v58 = vld [vmem:[#allocation1] sm:$0xff]  ;;  %v6820_v36 = vld [vmem:[#allocation1 + $0x9] sm:$0xff] }
 0x36d   : > { %6822 = vst [vmem:[#allocation1] ss:$9 sm:$0xff] %v6428_v47  ;;  %v6243_v47 = vrot.slane %v6187_v20, 3 }
 0x36e   : > { %6824 = vst [vmem:[#allocation1 + $0x1] ss:$9 sm:$0xff] %v13483_v16  ;;  %v16831_v16 = vsel %vm226_vm2, %v16778_v45, %v6244_v13  ;;  %v6604_v45 = vunpack.i.h.s16 %v16833_v7 }
 0x36f   : > { %6826 = vst [vmem:[#allocation1 + $0x2] ss:$9 sm:$0xff] %v13484_v29  ;;  %7000 = vmatmul.bf16.gmra.mxu0 %v6819_v58  ;;  %7049 = vmatmul.bf16.gmra.mxu1 %v6820_v36  ;;  %v6457_v29 = vsel %vm18907_vm6, %v6186_v6, %v6242_v63  ;;  %v6460_v58 = vsel %vm18906_vm7, %v6186_v6, %v6242_v63  ;;  %v16840_v36 = vrot.slane %v6477_v27, 3  ;;  %v14354_v6 = vld [vmem:[%s18798_s1 + $0x4f8] sm:$0xff]  ;;  %v6057_v63 = vpop.f32.mrf.mxu2  ;;  %v19093_v33 = vunpack.i.h.s16 %v16831_v16 }
 0x370   : > { %6828 = vst [vmem:[#allocation1 + $0x3] ss:$9 sm:$0xff] %v13485_v44  ;;  %v16837_v44 = vrot.slane %v6474_v61, 2  ;;  %v16844_v38 = vrot.slane %v6457_v29, 2  ;;  %v16847_v13 = vrot.slane %v6460_v58, 3  ;;  %v14346_v61 = vld [vmem:[%s18798_s1 + $0x4b8] sm:$0xff]  ;;  %9773 = vmatpush.bf16.msra.mxu3 %v14354_v6  ;;  %v5163_v6 = vpop.f32.mrf.mxu0 }
 0x371   : > { %6830 = vst [vmem:[#allocation1 + $0x4] ss:$9 sm:$0xff] %v13486_v4  ;;  %v6465_v4 = vsel %vm226_vm2, %v6187_v20, %v6243_v47  ;;  %v6106_v20 = vpop.f32.mrf.mxu3  ;;  %v14330_v47 = vld [vmem:[%s18798_s1 + $0x438] sm:$0xff]  ;;  %v6608_v27 = vunpack.i.h.s16 %v16840_v36  ;;  %v13489_v56 = vpack.i.b16 %v16833_v7, %v19093_v33  ;;  %9724 = vmatpush.bf16.msra.mxu2 %v14346_v61 }
 0x372   : > { %6832 = vst [vmem:[#allocation1 + $0x5] ss:$9 sm:$0xff] %v13487_v17  ;;  %v6606_v9 = vunpack.i.h.s16 %v16837_v44  ;;  %v13488_v29 = vpack.i.b16 %v16831_v16, %v6465_v4  ;;  %v6107_v58 = vadd.f32 %v6106_v20, %v6057_v63  ;;  %v14338_v17 = vld [vmem:[%s18798_s1 + $0x478] sm:$0xff]  ;;  %v13490_v4 = vpack.i.b16 %v16837_v44, %v6604_v45  ;;  %8805 = vmatpush.bf16.msra.mxu0 %v14330_v47  ;;  %v5212_v47 = vpop.f32.mrf.mxu1 }
 0x373   : > { %6834 = vst [vmem:[#allocation1 + $0x6] ss:$9 sm:$0xff] %v16818_v31  ;;  %v7082_v63 = vld [vmem:[#allocation2 + $0x110] sm:$0x11]  ;;  %8854 = vmatpush.bf16.msra.mxu1 %v14338_v17  ;;  %v13492_v21 = vpack.i.b16 %v6482_v62, %v6608_v27  ;;  %v7405_v62 = vunpack.i.h.s16 %v16550_v57  ;;  %v7409_v27 = vunpack.i.h.s16 %v16557_v28 }
 0x374   : > { %6836 = vst [vmem:[#allocation1 + $0x7] ss:$9 sm:$0xff] %v16820_v11  ;;  %v16875_v20 = vadd.f32 %v6107_v58, %v16465_v60  ;;  %v13491_v54 = vpack.i.b16 %v16840_v36, %v6606_v9  ;;  %v7138_v33 = vrot.slane %v7082_v63, 3  ;;  %v7403_v60 = vunpack.i.h.s16 %v16548_v35 }
 0x375   : > { %v5213_v9 = vadd.f32 %v5212_v47, %v5163_v6  ;;  %v13590_v35 = vpack.i.b16 %v16554_v41, %v7405_v62  ;;  %v19096_v47 = vunpack.i.h.s16 %v16535_v32  ;;  %v7086_v32 = vld [vmem:[#allocation2 + $0x198] sm:$0x11] }
 0x376   : > { %v7180_v17 = vsel %vm226_vm2, %v7082_v63, %v7138_v33 }
 0x377   : > { %v16879_v61 = vpop.f32.mrf.mxu2  ;;  %v7411_v58 = vunpack.i.h.s16 %v7180_v17  ;;  %v13592_v63 = vpack.i.b16 %v7180_v17, %v7409_v27  ;;  %v7142_v27 = vrot.slane %v7086_v32, 3 }
 0x378   : > { %19094 = vst [vmem:[#allocation90_spill] sm:$0xff] %v16879_v61  ;;  %v16908_v17 = vpop.f32.mrf.mxu0 }
 0x379   : > { %v16881_v45 = vpop.f32.mrf.mxu3  ;;  %19097 = vst [vmem:[#allocation92_spill] sm:$0xff] %v16908_v17 }
 0x37a   : > { %19095 = vst [vmem:[#allocation91_spill] sm:$0xff] %v16881_v45  ;;  %v16910_v62 = vpop.f32.mrf.mxu1 }
 0x37b   : > { %v6837_v11 = vld [vmem:[#allocation1] sm:$0xff]  ;;  %v6838_v31 = vld [vmem:[#allocation1 + $0x9] sm:$0xff]  ;;  %19098 = vst [vmem:[#allocation93_spill] sm:$0xff] %v16910_v62 }
 0x37c   : > { %6840 = vst [vmem:[#allocation1] ss:$9 sm:$0xff] %v16844_v38 }
 0x37d   : > { %6842 = vst [vmem:[#allocation1 + $0x1] ss:$9 sm:$0xff] %v16847_v13 }
 0x37e   : > { %6844 = vst [vmem:[#allocation1 + $0x2] ss:$9 sm:$0xff] %v13488_v29  ;;  %v16889_v29 = vadd.f32 %v5213_v9, %v16583_v3  ;;  %v7566_v3 = vpack.i.b16 %v19096_v47, %v7411_v58 }
 0x37f   : > { %6846 = vst [vmem:[#allocation1 + $0x3] ss:$9 sm:$0xff] %v13489_v56  ;;  %7005 = vmatmul.bf16.gmra.mxu0 %v6837_v11  ;;  %7054 = vmatmul.bf16.gmra.mxu1 %v6838_v31  ;;  %v7407_v56 = vunpack.i.h.s16 %v16554_v41  ;;  %v6062_v33 = vpop.f32.mrf.mxu2 }
 0x380   : > { %6848 = vst [vmem:[#allocation1 + $0x4] ss:$9 sm:$0xff] %v13490_v4  ;;  %v13589_v4 = vpack.i.b16 %v16550_v57, %v7403_v60  ;;  %v14353_v57 = vld [vmem:[%s18798_s1 + $0x4f0] sm:$0xff] }
 0x381   : > { %6850 = vst [vmem:[#allocation1 + $0x5] ss:$9 sm:$0xff] %v13491_v54  ;;  %v13591_v11 = vpack.i.b16 %v16557_v28, %v7407_v56  ;;  %v6111_v6 = vpop.f32.mrf.mxu3  ;;  %v14329_v28 = vld [vmem:[%s18798_s1 + $0x430] sm:$0xff]  ;;  %9774 = vmatpush.bf16.msra.mxu3 %v14353_v57  ;;  %v7084_v56 = vld [vmem:[#allocation2 + $0x150] sm:$0x11] }
 0x382   : > { %6852 = vst [vmem:[#allocation1 + $0x6] ss:$9 sm:$0xff] %v13492_v21  ;;  %v14345_v21 = vld [vmem:[%s18798_s1 + $0x4b0] sm:$0xff]  ;;  %v6112_v41 = vadd.f32 %v6111_v6, %v6062_v33  ;;  %8806 = vmatpush.bf16.msra.mxu0 %v14329_v28 }
 0x383   : > { %v14337_v60 = vld [vmem:[%s18798_s1 + $0x470] sm:$0xff]  ;;  %9725 = vmatpush.bf16.msra.mxu2 %v14345_v21  ;;  %v5217_v21 = vpop.f32.mrf.mxu1 }
 0x384   : > { %v16913_v9 = vadd.f32 %v6112_v41, %v16543_v25  ;;  %8855 = vmatpush.bf16.msra.mxu1 %v14337_v60  ;;  %v7421_v25 = vunpack.i.h.s16 %v16611_v2  ;;  %v14352_v60 = vld [vmem:[%s18798_s1 + $0x4e8] sm:$0xff] }
 0x385   : > { %9775 = vmatpush.bf16.msra.mxu3 %v14352_v60 }
 0x386   : > { %v13593_v2 = vpack.i.b16 %v16613_v24, %v7421_v25 }
 0x387   : > { %v16918_v58 = vpop.f32.mrf.mxu2 }
 0x388   : > { %19099 = vst [vmem:[#allocation94_spill] sm:$0xff] %v16918_v58 }
 0x389   : > { %v6853_v31 = vld [vmem:[#allocation1] sm:$0xff]  ;;  %v6854_v54 = vld [vmem:[#allocation1 + $0x9] sm:$0xff] }
 0x38a   : > { %7626 = vst [vmem:[#allocation1] ss:$9 sm:$0xff] %v13589_v4  ;;  %v16920_v4 = vpop.f32.mrf.mxu3 }
 0x38b   : > { %7629 = vst [vmem:[#allocation1 + $0x1] ss:$9 sm:$0xff] %v13590_v35  ;;  %v7140_v35 = vrot.slane %v7084_v56, 3 }
 0x38c   : > { %7632 = vst [vmem:[#allocation1 + $0x2] ss:$9 sm:$0xff] %v13591_v11  ;;  %v5168_v11 = vpop.f32.mrf.mxu0 }
 0x38d   : > { %7635 = vst [vmem:[#allocation1 + $0x3] ss:$9 sm:$0xff] %v13592_v63  ;;  %v7214_v63 = vsel %vm226_vm2, %v7086_v32, %v7142_v27  ;;  %v5218_v33 = vadd.f32 %v5217_v21, %v5168_v11  ;;  %v7197_v47 = vsel %vm226_vm2, %v7084_v56, %v7140_v35  ;;  %v14336_v35 = vld [vmem:[%s18798_s1 + $0x468] sm:$0xff]  ;;  %v16950_v11 = vpop.f32.mrf.mxu1  ;;  %v7090_v21 = vld [vmem:[#allocation2 + $0xf8] sm:$0x11] }
 0x38e   : > { %7638 = vst [vmem:[#allocation1 + $0x4] ss:$9 sm:$0xff] %v7566_v3  ;;  %v7429_v3 = vunpack.i.h.s16 %v7214_v63  ;;  %8856 = vmatpush.bf16.msra.mxu1 %v14336_v35 }
 0x38f   : > { %7641 = vst [vmem:[#allocation1 + $0x5] ss:$9 sm:$0xff] %v16537_v12  ;;  %7010 = vmatmul.bf16.gmra.mxu0 %v6853_v31  ;;  %7059 = vmatmul.bf16.gmra.mxu1 %v6854_v54  ;;  %v7423_v12 = vunpack.i.h.s16 %v16613_v24  ;;  %v16928_v6 = vadd.f32 %v5218_v33, %v16645_v48  ;;  %v14344_v48 = vld [vmem:[%s18798_s1 + $0x4a8] sm:$0xff]  ;;  %v6067_v32 = vpop.f32.mrf.mxu2  ;;  %v7088_v33 = vld [vmem:[#allocation2 + $0xe8] sm:$0x11] }
 0x390   : > { %7644 = vst [vmem:[#allocation1 + $0x6] ss:$9 sm:$0xff] %v16540_v40  ;;  %v7425_v40 = vunpack.i.h.s16 %v16617_v22  ;;  %9726 = vmatpush.bf16.msra.mxu2 %v14344_v48 }
 0x391   : > { %7647 = vst [vmem:[#allocation1 + $0x7] ss:$9 sm:$0xff] %v16559_v18  ;;  %v7427_v18 = vunpack.i.h.s16 %v16622_v15  ;;  %v13594_v31 = vpack.i.b16 %v16617_v22, %v7423_v12  ;;  %v14328_v22 = vld [vmem:[%s18798_s1 + $0x428] sm:$0xff]  ;;  %v14335_v12 = vld [vmem:[%s18798_s1 + $0x460] sm:$0xff] }
 0x392   : > { %19100 = vst [vmem:[#allocation95_spill] sm:$0xff] %v16920_v4  ;;  %v13595_v41 = vpack.i.b16 %v16622_v15, %v7425_v40  ;;  %v6116_v24 = vpop.f32.mrf.mxu3  ;;  %v19101_v15 = vunpack.i.h.s16 %v16599_v51  ;;  %8807 = vmatpush.bf16.msra.mxu0 %v14328_v22  ;;  %v14327_v51 = vld [vmem:[%s18798_s1 + $0x420] sm:$0xff]  ;;  %v7146_v40 = vrot.slane %v7090_v21, 3  ;;  %8857 = vmatpush.bf16.msra.mxu1 %v14335_v12 }
 0x393   : > { %v13596_v28 = vpack.i.b16 %v7214_v63, %v7427_v18  ;;  %v6117_v27 = vadd.f32 %v6116_v24, %v6067_v32  ;;  %19103 = vst [vmem:[#allocation97_spill] sm:$0xff] %v16950_v11 }
 0x394   : > { %v7575_v56 = vpack.i.b16 %v19101_v15, %v7429_v3  ;;  %v16948_v25 = vpop.f32.mrf.mxu0  ;;  %v7439_v3 = vunpack.i.h.s16 %v16671_v8 }
 0x395   : > { %19102 = vst [vmem:[#allocation96_spill] sm:$0xff] %v16948_v25  ;;  %v16953_v63 = vadd.f32 %v6117_v27, %v16607_v30 }
 0x396   : > { %8808 = vmatpush.bf16.msra.mxu0 %v14327_v51  ;;  %v13597_v32 = vpack.i.b16 %v16667_v50, %v7439_v3  ;;  %v14333_v3 = vld [vmem:[%s18798_s1 + $0x450] sm:$0xff] }
 0x397   : > { %v16963_v30 = vpop.f32.mrf.mxu2 }
 0x398   : > { %v7648_v54 = vld [vmem:[#allocation1] sm:$0xff]  ;;  %v7649_v57 = vld [vmem:[#allocation1 + $0x9] sm:$0xff]  ;;  %19104 = vst [vmem:[#allocation98_spill] sm:$0xff] %v16963_v30 }
 0x399   : > { %7894 = vmatmul.bf16.vlgmr.msrb.gmra.mxu2 %v7648_v54  ;;  %7943 = vmatmul.bf16.vlgmr.msrb.gmra.mxu3 %v7649_v57  ;;  %7651 = vst [vmem:[#allocation1] ss:$9 sm:$0xff] %v7197_v47  ;;  %v7144_v47 = vrot.slane %v7088_v33, 3  ;;  %v7248_v54 = vsel %vm226_vm2, %v7090_v21, %v7146_v40  ;;  %v7441_v57 = vunpack.i.h.s16 %v16667_v50  ;;  %v14351_v50 = vld [vmem:[%s18798_s1 + $0x4e0] sm:$0xff]  ;;  %v14334_v21 = vld [vmem:[%s18798_s1 + $0x458] sm:$0xff] }
 0x39a   : > { %7653 = vst [vmem:[#allocation1 + $0x1] ss:$9 sm:$0xff] %v13593_v2  ;;  %v16965_v18 = vpop.f32.mrf.mxu3  ;;  %v7447_v60 = vunpack.i.h.s16 %v7248_v54  ;;  %9776 = vmatpush.bf16.msra.mxu3 %v14351_v50  ;;  %v7094_v40 = vld [vmem:[#allocation2 + $0x128] sm:$0x11]  ;;  %8858 = vmatpush.bf16.msra.mxu1 %v14334_v21  ;;  %v19109_v21 = vunpack.i.h.s16 %v16729_v37 }
 0x39b   : > { %7655 = vst [vmem:[#allocation1 + $0x2] ss:$9 sm:$0xff] %v13594_v31  ;;  %v5222_v31 = vpop.f32.mrf.mxu1  ;;  %v7231_v48 = vsel %vm226_vm2, %v7088_v33, %v7144_v47  ;;  %v13598_v22 = vpack.i.b16 %v16677_v39, %v7441_v57  ;;  %v14325_v47 = vld [vmem:[%s18798_s1 + $0x410] sm:$0xff] }
 0x39c   : > { %7657 = vst [vmem:[#allocation1 + $0x3] ss:$9 sm:$0xff] %v13595_v41  ;;  %v5173_v2 = vpop.f32.mrf.mxu0  ;;  %v7443_v41 = vunpack.i.h.s16 %v16677_v39  ;;  %v14326_v39 = vld [vmem:[%s18798_s1 + $0x418] sm:$0xff] }
 0x39d   : > { %7659 = vst [vmem:[#allocation1 + $0x4] ss:$9 sm:$0xff] %v13596_v28  ;;  %8809 = vmatpush.bf16.msra.mxu0 %v14326_v39 }
 0x39e   : > { %7661 = vst [vmem:[#allocation1 + $0x5] ss:$9 sm:$0xff] %v7575_v56  ;;  %v13599_v15 = vpack.i.b16 %v16679_v14, %v7443_v41  ;;  %8859 = vmatpush.bf16.msra.mxu1 %v14333_v3 }
 0x39f   : > { %7663 = vst [vmem:[#allocation1 + $0x6] ss:$9 sm:$0xff] %v16601_v53  ;;  %v5223_v53 = vadd.f32 %v5222_v31, %v5173_v2  ;;  %v6072_v27 = vpop.f32.mrf.mxu2  ;;  %v7092_v2 = vld [vmem:[#allocation2 + $0xd0] sm:$0x11]  ;;  %v7150_v31 = vrot.slane %v7094_v40, 3 }
 0x3a0   : > { %7665 = vst [vmem:[#allocation1 + $0x7] ss:$9 sm:$0xff] %v16619_v43  ;;  %v7445_v43 = vunpack.i.h.s16 %v16679_v14  ;;  %v7148_v57 = vrot.slane %v7092_v2, 3 }
 0x3a1   : > { %19105 = vst [vmem:[#allocation99_spill] sm:$0xff] %v16965_v18  ;;  %v16973_v28 = vadd.f32 %v5223_v53, %v16703_v19  ;;  %v14343_v19 = vld [vmem:[%s18798_s1 + $0x4a0] sm:$0xff]  ;;  %8810 = vmatpush.bf16.msra.mxu0 %v14325_v47  ;;  %v7457_v53 = vunpack.i.h.s16 %v16723_v55  ;;  %v7463_v55 = vunpack.i.h.s16 %v16738_v5 }
 0x3a2   : > { %v13600_v56 = vpack.i.b16 %v7248_v54, %v7445_v43  ;;  %v6121_v14 = vpop.f32.mrf.mxu3  ;;  %9727 = vmatpush.bf16.msra.mxu2 %v14343_v19  ;;  %v14332_v54 = vld [vmem:[%s18798_s1 + $0x448] sm:$0xff]  ;;  %v7265_v50 = vsel %vm226_vm2, %v7092_v2, %v7148_v57 }
 0x3a3   : > { %v6122_v51 = vadd.f32 %v6121_v14, %v6072_v27  ;;  %v16996_v33 = vpop.f32.mrf.mxu1  ;;  %8860 = vmatpush.bf16.msra.mxu1 %v14332_v54  ;;  %v13601_v27 = vpack.i.b16 %v16725_v52, %v7457_v53  ;;  %v7099_v54 = vld [vmem:[#allocation2 + $0xc8] sm:$0xff] }
 0x3a4   : > { %v16994_v12 = vpop.f32.mrf.mxu0  ;;  %19108 = vst [vmem:[#allocation101_spill] sm:$0xff] %v16996_v33 }
 0x3a5   : > { %19107 = vst [vmem:[#allocation100_spill] sm:$0xff] %v16994_v12 }
 0x3a7   : > { %v7666_v8 = vld [vmem:[#allocation1] sm:$0xff]  ;;  %v7667_v24 = vld [vmem:[#allocation1 + $0x9] sm:$0xff] }
 0x3a8   : > { %7669 = vst [vmem:[#allocation1] ss:$9 sm:$0xff] %v16648_v46  ;;  %v19106_v46 = vunpack.i.h.s16 %v16659_v49  ;;  %v16999_v49 = vadd.f32 %v6122_v51, %v16665_v26  ;;  %v14324_v26 = vld [vmem:[%s18798_s1 + $0x408] sm:$0xff] }
 0x3a9   : > { %7899 = vmatmul.bf16.gmra.mxu2 %v7666_v8  ;;  %7948 = vmatmul.bf16.gmra.mxu3 %v7667_v24  ;;  %7671 = vst [vmem:[#allocation1 + $0x1] ss:$9 sm:$0xff] %v7231_v48  ;;  %v7282_v48 = vsel %vm226_vm2, %v7094_v40, %v7150_v31  ;;  %v14323_v8 = vld [vmem:[%s18798_s1 + $0x400] sm:$0xff] }
 0x3aa   : > { %v7584_v35 = vpack.i.b16 %v19106_v46, %v7447_v60  ;;  %7673 = vst [vmem:[#allocation1 + $0x2] ss:$9 sm:$0xff] %v13597_v32  ;;  %v7461_v32 = vunpack.i.h.s16 %v16734_v23  ;;  %8811 = vmatpush.bf16.msra.mxu0 %v14324_v26  ;;  %v14331_v24 = vld [vmem:[%s18798_s1 + $0x440] sm:$0xff]  ;;  %v7465_v39 = vunpack.i.h.s16 %v7282_v48 }
 0x3ab   : > { %7675 = vst [vmem:[#allocation1 + $0x3] ss:$9 sm:$0xff] %v13598_v22  ;;  %v7025_v43 = vpop.f32.mrf.mxu1  ;;  %8861 = vmatpush.bf16.msra.mxu1 %v14331_v24 }
 0x3ac   : > { %7677 = vst [vmem:[#allocation1 + $0x4] ss:$9 sm:$0xff] %v13599_v15  ;;  %v6976_v41 = vpop.f32.mrf.mxu0  ;;  %v7097_v15 = vld [vmem:[#allocation2 + $0x1f0] sm:$0xff]  ;;  %v13603_v46 = vpack.i.b16 %v16738_v5, %v7461_v32  ;;  %v7593_v51 = vpack.i.b16 %v19109_v21, %v7465_v39 }
 0x3ad   : > { %7679 = vst [vmem:[#allocation1 + $0x5] ss:$9 sm:$0xff] %v13600_v56  ;;  %v7026_v60 = vadd.f32 %v7025_v43, %v6976_v41  ;;  %v7098_v5 = vld [vmem:[#allocation2 + $0x70] sm:$0x11] }
 0x3ae   : > { %7681 = vst [vmem:[#allocation1 + $0x6] ss:$9 sm:$0xff] %v7584_v35  ;;  %8812 = vmatpush.bf16.msra.mxu0 %v14323_v8  ;;  %v13604_v35 = vpack.i.b16 %v7282_v48, %v7463_v55  ;;  %v7154_v31 = vrot.slane %v7098_v5, 3  ;;  %v7101_v48 = vld [vmem:[#allocation2 + $0x60] sm:$0xff]  ;;  %v19112_v39 = vld [vmem:[#allocation80_spill] sm:$0xff] }
 0x3af   : > { %7683 = vst [vmem:[#allocation1 + $0x7] ss:$9 sm:$0xff] %v16674_v10  ;;  %v7459_v10 = vunpack.i.h.s16 %v16725_v52  ;;  %v17026_v22 = vadd.f32 %v7026_v60, %v16875_v20  ;;  %v7153_v20 = vrot.slane %v7097_v15, 3  ;;  %v7155_v60 = vrot.slane %v7099_v54, 3  ;;  %v19110_v55 = vld [vmem:[#allocation78_spill] sm:$0xff] }
 0x3b0   : > { %v7316_v8 = vsel %vm226_vm2, %v7098_v5, %v7154_v31 }
 0x3b1   : > { %v13602_v14 = vpack.i.b16 %v16734_v23, %v7459_v10  ;;  %v7305_v52 = vsel %vm1200_vm4, %v7097_v15, %v7153_v20  ;;  %v7096_v23 = vld [vmem:[#allocation2 + $0x138] sm:$0x11]  ;;  %v7303_v40 = vsel %vm226_vm2, %v7097_v15, %v7153_v20 }
 0x3b2   : > { %v7307_v47 = vrot.slane %v7305_v52, 1  ;;  %v7152_v37 = vrot.slane %v7096_v23, 3  ;;  %v7475_v26 = vunpack.i.h.s16 %v7303_v40  ;;  %v7322_v52 = vsel %vm1200_vm4, %v7099_v54, %v7155_v60 }
 0x3b3   : > { %v7328_v40 = vsel %vm18906_vm7, %v7099_v54, %v7155_v60 }
 0x3b4   : > { %v7477_v57 = vunpack.i.h.s16 %v7307_v47  ;;  %v7299_v32 = vsel %vm226_vm2, %v7096_v23, %v7152_v37  ;;  %v13605_v24 = vpack.i.b16 %v7307_v47, %v7475_v26  ;;  %v7325_v23 = vsel %vm18907_vm6, %v7099_v54, %v7155_v60 }
 0x3b5   : > { %v7324_v37 = vrot.slane %v7322_v52, 1  ;;  %v7327_v26 = vrot.slane %v7325_v23, 2  ;;  %v17059_v23 = vpop.f32.mrf.mxu2 }
 0x3b6   : > { %v7684_v56 = vld [vmem:[#allocation1] sm:$0xff]  ;;  %v7685_v19 = vld [vmem:[#allocation1 + $0x9] sm:$0xff]  ;;  %19116 = vst [vmem:[#allocation78_spill] sm:$0xff] %v17059_v23 }
 0x3b7   : > { %7687 = vst [vmem:[#allocation1] ss:$9 sm:$0xff] %v16700_v34  ;;  %v7308_v34 = vsel %vm18907_vm6, %v7097_v15, %v7153_v20 }
 0x3b8   : > { %7689 = vst [vmem:[#allocation1 + $0x1] ss:$9 sm:$0xff] %v16706_v0  ;;  %v7311_v0 = vsel %vm18906_vm7, %v7097_v15, %v7153_v20  ;;  %v7310_v3 = vrot.slane %v7308_v34, 2 }
 0x3b9   : > { %7904 = vmatmul.bf16.gmra.mxu2 %v7684_v56  ;;  %7953 = vmatmul.bf16.gmra.mxu3 %v7685_v19  ;;  %7691 = vst [vmem:[#allocation1 + $0x2] ss:$9 sm:$0xff] %v7265_v50  ;;  %v7313_v2 = vrot.slane %v7311_v0, 3  ;;  %v19111_v56 = vld [vmem:[#allocation79_spill] sm:$0xff]  ;;  %v7157_v19 = vrot.slane %v7101_v48, 3 }
 0x3ba   : > { %7693 = vst [vmem:[#allocation1 + $0x3] ss:$9 sm:$0xff] %v13601_v27  ;;  %v7479_v53 = vunpack.i.h.s16 %v7310_v3  ;;  %v13606_v15 = vpack.i.b16 %v7310_v3, %v7477_v57 }
 0x3bb   : > { %7695 = vst [vmem:[#allocation1 + $0x4] ss:$9 sm:$0xff] %v13602_v14  ;;  %v7481_v10 = vunpack.i.h.s16 %v7313_v2  ;;  %v7320_v14 = vsel %vm226_vm2, %v7099_v54, %v7155_v60  ;;  %v7342_v20 = vsel %vm18907_vm6, %v7101_v48, %v7157_v19  ;;  %v7337_v34 = vsel %vm226_vm2, %v7101_v48, %v7157_v19 }
 0x3bc   : > { %7697 = vst [vmem:[#allocation1 + $0x5] ss:$9 sm:$0xff] %v13603_v46  ;;  %v13607_v50 = vpack.i.b16 %v7313_v2, %v7479_v53  ;;  %v7339_v46 = vsel %vm1200_vm4, %v7101_v48, %v7157_v19  ;;  %v7484_v21 = vunpack.i.h.s16 %v7320_v14  ;;  %v7344_v5 = vrot.slane %v7342_v20, 2  ;;  %v7102_v53 = vld [vmem:[#allocation2 + $0x188] sm:$0x11]  ;;  %v19114_v20 = vld [vmem:[#allocation86_spill] sm:$0xff] }
 0x3bd   : > { %7699 = vst [vmem:[#allocation1 + $0x6] ss:$9 sm:$0xff] %v13604_v35  ;;  %v13608_v27 = vpack.i.b16 %v7316_v8, %v7481_v10  ;;  %v7483_v35 = vunpack.i.h.s16 %v7316_v8  ;;  %v7341_v0 = vrot.slane %v7339_v46, 1  ;;  %v7345_v3 = vsel %vm18906_vm7, %v7101_v48, %v7157_v19 }
 0x3be   : > { %7701 = vst [vmem:[#allocation1 + $0x7] ss:$9 sm:$0xff] %v7593_v51  ;;  %v7100_v51 = vld [vmem:[#allocation2 + $0x180] sm:$0x11]  ;;  %v7493_v31 = vunpack.i.h.s16 %v7337_v34  ;;  %v7497_v8 = vunpack.i.h.s16 %v7344_v5  ;;  %v7158_v54 = vrot.slane %v7102_v53, 3 }
 0x3bf   : > { %v7602_v47 = vpack.i.b16 %v7484_v21, %v7483_v35  ;;  %v7156_v2 = vrot.slane %v7100_v51, 3  ;;  %v7495_v57 = vunpack.i.h.s16 %v7341_v0  ;;  %v7511_v35 = vunpack.i.h.s16 %v19114_v20  ;;  %v7106_v21 = vld [vmem:[#allocation2 + $0x20] sm:$0x11] }
 0x3c1   : > { %v13610_v60 = vpack.i.b16 %v7344_v5, %v7495_v57  ;;  %v17061_v5 = vpop.f32.mrf.mxu3  ;;  %v7515_v57 = vunpack.i.h.s16 %v16844_v38 }
 0x3c2   : > { %19117 = vst [vmem:[#allocation79_spill] sm:$0xff] %v17061_v5  ;;  %v379_v5 = vld [vmem:[#allocation2 + $0x1a0] sm:$0x11] }
 0x3c5   : > { %v7702_v41 = vld [vmem:[#allocation1] sm:$0xff]  ;;  %v7703_v43 = vld [vmem:[#allocation1 + $0x9] sm:$0xff] }
 0x3c6   : > { %7705 = vst [vmem:[#allocation1] ss:$9 sm:$0xff] %v19110_v55  ;;  %v13609_v55 = vpack.i.b16 %v7341_v0, %v7493_v31  ;;  %v19120_v31 = vld [vmem:[#allocation83_spill] sm:$0xff] }
 0x3c7   : > { %7707 = vst [vmem:[#allocation1 + $0x1] ss:$9 sm:$0xff] %v19111_v56 }
 0x3c8   : > { %7709 = vst [vmem:[#allocation1 + $0x2] ss:$9 sm:$0xff] %v19112_v39 }
 0x3c9   : > { %7909 = vmatmul.bf16.gmra.mxu2 %v7702_v41  ;;  %7958 = vmatmul.bf16.gmra.mxu3 %v7703_v43  ;;  %7711 = vst [vmem:[#allocation1 + $0x3] ss:$9 sm:$0xff] %v7299_v32  ;;  %v7330_v41 = vrot.slane %v7328_v40, 3  ;;  %v7347_v32 = vrot.slane %v7345_v3, 3  ;;  %v7162_v40 = vrot.slane %v7106_v21, 3  ;;  %v19118_v3 = vld [vmem:[#allocation81_spill] sm:$0xff] }
 0x3ca   : > { %7713 = vst [vmem:[#allocation1 + $0x4] ss:$9 sm:$0xff] %v13605_v24  ;;  %v7333_v24 = vsel %vm226_vm2, %v7100_v51, %v7156_v2  ;;  %v19115_v51 = vld [vmem:[#allocation87_spill] sm:$0xff] }
 0x3cb   : > { %7715 = vst [vmem:[#allocation1 + $0x5] ss:$9 sm:$0xff] %v13606_v15  ;;  %v13611_v48 = vpack.i.b16 %v7347_v32, %v7497_v8  ;;  %v7350_v15 = vsel %vm226_vm2, %v7102_v53, %v7158_v54  ;;  %v7499_v56 = vunpack.i.h.s16 %v7347_v32  ;;  %v7513_v52 = vunpack.i.h.s16 %v19115_v51  ;;  %v14342_v8 = vld [vmem:[%s18798_s1 + $0x498] sm:$0xff]  ;;  %v6126_v54 = vpop.f32.mrf.mxu3 }
 0x3cc   : > { %7717 = vst [vmem:[#allocation1 + $0x6] ss:$9 sm:$0xff] %v13607_v50  ;;  %v7501_v19 = vunpack.i.h.s16 %v7350_v15  ;;  %v7104_v50 = vld [vmem:[#allocation2 + $0xb8] sm:$0x11]  ;;  %v7517_v53 = vunpack.i.h.s16 %v16847_v13  ;;  %9728 = vmatpush.bf16.msra.mxu2 %v14342_v8 }
 0x3cd   : > { %7719 = vst [vmem:[#allocation1 + $0x7] ss:$9 sm:$0xff] %v13608_v27  ;;  %v13612_v39 = vpack.i.b16 %v7350_v15, %v7499_v56  ;;  %v19113_v27 = vunpack.i.h.s16 %v16790_v59  ;;  %v7160_v46 = vrot.slane %v7104_v50, 3  ;;  %v13613_v59 = vpack.i.b16 %v19115_v51, %v7511_v35  ;;  %v17081_v56 = vpop.f32.mrf.mxu0  ;;  %v8001_v35 = vld [vmem:[#allocation2 + $0x8] sm:$0x11] }
 0x3ce   : > { %v13614_v2 = vpack.i.b16 %v16844_v38, %v7513_v52  ;;  %v19121_v38 = vunpack.i.h.s16 %v16831_v16  ;;  %19122 = vst [vmem:[#allocation80_spill] sm:$0xff] %v17081_v56 }
 0x3cf   : > { %v7611_v14 = vpack.i.b16 %v19113_v27, %v7501_v19  ;;  %v17083_v19 = vpop.f32.mrf.mxu1  ;;  %v19124_v27 = vld [vmem:[#allocation77_spill] sm:$0xff] }
 0x3d0   : > { %19123 = vst [vmem:[#allocation86_spill] sm:$0xff] %v17083_v19 }
 0x3d4   : > { %v7720_v43 = vld [vmem:[#allocation1] sm:$0xff]  ;;  %v7721_v10 = vld [vmem:[#allocation1 + $0x9] sm:$0xff] }
 0x3d5   : > { %7723 = vst [vmem:[#allocation1] ss:$9 sm:$0xff] %v7602_v47  ;;  %v7367_v47 = vsel %vm226_vm2, %v7104_v50, %v7160_v46  ;;  %v8000_v46 = vld [vmem:[#allocation2 + $0x1b0] sm:$0xff] }
 0x3d6   : > { %7725 = vst [vmem:[#allocation1 + $0x1] ss:$9 sm:$0xff] %v7324_v37  ;;  %v19119_v37 = vld [vmem:[#allocation82_spill] sm:$0xff] }
 0x3d7   : > { %7727 = vst [vmem:[#allocation1 + $0x2] ss:$9 sm:$0xff] %v7327_v26  ;;  %v7384_v26 = vsel %vm226_vm2, %v7106_v21, %v7162_v40  ;;  %v8056_v21 = vrot.slane %v8000_v46, 3  ;;  %v6981_v40 = vpop.f32.mrf.mxu0 }
 0x3d8   : > { %7729 = vst [vmem:[#allocation1 + $0x3] ss:$9 sm:$0xff] %v7330_v41  ;;  %v7519_v41 = vunpack.i.h.s16 %v7384_v26  ;;  %v13616_v32 = vpack.i.b16 %v7384_v26, %v7517_v53 }
 0x3d9   : > { %7731 = vst [vmem:[#allocation1 + $0x4] ss:$9 sm:$0xff] %v7333_v24  ;;  %7914 = vmatmul.bf16.gmra.mxu2 %v7720_v43  ;;  %7963 = vmatmul.bf16.gmra.mxu3 %v7721_v10  ;;  %v7108_v43 = vld [vmem:[#allocation2 + $0xb0] sm:$0x11]  ;;  %v13615_v10 = vpack.i.b16 %v16847_v13, %v7515_v57  ;;  %v8094_v26 = vsel %vm18906_vm7, %v8000_v46, %v8056_v21 }
 0x3da   : > { %7733 = vst [vmem:[#allocation1 + $0x5] ss:$9 sm:$0xff] %v13609_v55  ;;  %v14350_v24 = vld [vmem:[%s18798_s1 + $0x4d8] sm:$0xff]  ;;  %v6077_v55 = vpop.f32.mrf.mxu2  ;;  %v7164_v13 = vrot.slane %v7108_v43, 3  ;;  %v17113_v53 = vsel %vm226_vm2, %v8000_v46, %v8056_v21 }
 0x3db   : > { %7735 = vst [vmem:[#allocation1 + $0x6] ss:$9 sm:$0xff] %v13610_v60  ;;  %v7620_v60 = vpack.i.b16 %v19121_v38, %v7519_v41  ;;  %v6127_v15 = vadd.f32 %v6126_v54, %v6077_v55  ;;  %9777 = vmatpush.bf16.msra.mxu3 %v14350_v24  ;;  %v17122_v55 = vrot.slane %v8094_v26, 3 }
 0x3dc   : > { %7737 = vst [vmem:[#allocation1 + $0x7] ss:$9 sm:$0xff] %v13611_v48  ;;  %v8002_v48 = vld [vmem:[#allocation2 + $0x30] sm:$0xff]  ;;  %v7401_v16 = vsel %vm226_vm2, %v7108_v43, %v7164_v13 }
 0x3dd   : > { %v8058_v20 = vrot.slane %v8002_v48, 3 }
 0x3df   : > { %v8105_v51 = vsel %vm1200_vm4, %v8002_v48, %v8058_v20  ;;  %v8111_v57 = vsel %vm18906_vm7, %v8002_v48, %v8058_v20 }
 0x3e0   : > { %v17124_v54 = vrot.slane %v8111_v57, 3 }
 0x3e2   : > { %v17093_v52 = vpop.f32.mrf.mxu2 }
 0x3e3   : > { %v7738_v34 = vld [vmem:[#allocation1] sm:$0xff]  ;;  %v7739_v0 = vld [vmem:[#allocation1 + $0x9] sm:$0xff]  ;;  %19125 = vst [vmem:[#allocation87_spill] sm:$0xff] %v17093_v52 }
 0x3e4   : > { %7741 = vst [vmem:[#allocation1] ss:$9 sm:$0xff] %v13612_v39 }
 0x3e5   : > { %7743 = vst [vmem:[#allocation1 + $0x1] ss:$9 sm:$0xff] %v7611_v14  ;;  %v17086_v14 = vadd.f32 %v6127_v15, %v19124_v27 }
 0x3e6   : > { %7745 = vst [vmem:[#allocation1 + $0x2] ss:$9 sm:$0xff] %v19118_v3  ;;  %v17100_v3 = vsel %vm226_vm2, %v8002_v48, %v8058_v20 }
 0x3e7   : > { %7747 = vst [vmem:[#allocation1 + $0x3] ss:$9 sm:$0xff] %v19119_v37 }
 0x3e8   : > { %7749 = vst [vmem:[#allocation1 + $0x4] ss:$9 sm:$0xff] %v19120_v31 }
 0x3e9   : > { %7751 = vst [vmem:[#allocation1 + $0x5] ss:$9 sm:$0xff] %v7367_v47  ;;  %7919 = vmatmul.bf16.gmra.mxu2 %v7738_v34  ;;  %7968 = vmatmul.bf16.gmra.mxu3 %v7739_v0  ;;  %v17095_v34 = vpop.f32.mrf.mxu3  ;;  %v8108_v0 = vsel %vm18907_vm6, %v8002_v48, %v8058_v20  ;;  %v7030_v47 = vpop.f32.mrf.mxu1 }
 0x3ea   : > { %7753 = vst [vmem:[#allocation1 + $0x6] ss:$9 sm:$0xff] %v13613_v59  ;;  %v7031_v59 = vadd.f32 %v7030_v47, %v6981_v40  ;;  %v17105_v37 = vrot.slane %v8108_v0, 2  ;;  %v6082_v48 = vpop.f32.mrf.mxu2  ;;  %v8004_v40 = vld [vmem:[#allocation2 + $0xa0] sm:$0xff] }
 0x3eb   : > { %7755 = vst [vmem:[#allocation1 + $0x7] ss:$9 sm:$0xff] %v13614_v2  ;;  %v8091_v2 = vsel %vm18907_vm6, %v8000_v46, %v8056_v21 }
 0x3ec   : > { %19126 = vst [vmem:[#allocation81_spill] sm:$0xff] %v17095_v34  ;;  %v17108_v31 = vadd.f32 %v7031_v59, %v16913_v9  ;;  %v8336_v38 = vunpack.i.h.s16 %v17105_v37  ;;  %v8005_v59 = vld [vmem:[#allocation2 + $0x80] sm:$0x11] }
 0x3ee   : > { %v13716_v0 = vpack.i.b16 %v17124_v54, %v8336_v38 }
 0x3f1   : > { %v6131_v15 = vpop.f32.mrf.mxu3  ;;  %v17139_v20 = vpop.f32.mrf.mxu1 }
 0x3f2   : > { %v7756_v50 = vld [vmem:[#allocation1] sm:$0xff]  ;;  %v7757_v39 = vld [vmem:[#allocation1 + $0x9] sm:$0xff]  ;;  %v6132_v27 = vadd.f32 %v6131_v15, %v6082_v48  ;;  %19128 = vst [vmem:[#allocation83_spill] sm:$0xff] %v17139_v20  ;;  %v17156_v26 = vpop.f32.mrf.mxu2  ;;  %v8018_v20 = vld [vmem:[#allocation2 + $0x130] sm:$0xff] }
 0x3f3   : > { %7759 = vst [vmem:[#allocation1] ss:$9 sm:$0xff] %v13615_v10  ;;  %v18870_v10 = vunpack.i.h.s16 %v17100_v3 }
 0x3f4   : > { %7761 = vst [vmem:[#allocation1 + $0x1] ss:$9 sm:$0xff] %v13616_v32  ;;  %v17119_v32 = vrot.slane %v8091_v2, 2 }
 0x3f5   : > { %7763 = vst [vmem:[#allocation1 + $0x2] ss:$9 sm:$0xff] %v7620_v60  ;;  %v14341_v60 = vld [vmem:[%s18798_s1 + $0x490] sm:$0xff] }
 0x3f6   : > { %7765 = vst [vmem:[#allocation1 + $0x3] ss:$9 sm:$0xff] %v16833_v7  ;;  %v8057_v7 = vrot.slane %v8001_v35, 3  ;;  %9729 = vmatpush.bf16.msra.mxu2 %v14341_v60  ;;  %v8061_v60 = vrot.slane %v8005_v59, 3 }
 0x3f7   : > { %7767 = vst [vmem:[#allocation1 + $0x4] ss:$9 sm:$0xff] %v16837_v44  ;;  %v8088_v44 = vsel %vm1200_vm4, %v8000_v46, %v8056_v21  ;;  %v17137_v46 = vpop.f32.mrf.mxu0 }
 0x3f8   : > { %7769 = vst [vmem:[#allocation1 + $0x5] ss:$9 sm:$0xff] %v16840_v36  ;;  %v17102_v36 = vrot.slane %v8105_v51, 1  ;;  %v17115_v41 = vrot.slane %v8088_v44, 1  ;;  %v8099_v43 = vsel %vm226_vm2, %v8001_v35, %v8057_v7  ;;  %v8003_v35 = vld [vmem:[#allocation2 + $0x190] sm:$0x11]  ;;  %v17148_v51 = vadd.f32 %v6132_v27, %v16889_v29 }
 0x3f9   : > { %7771 = vst [vmem:[#allocation1 + $0x6] ss:$9 sm:$0xff] %v7401_v16  ;;  %7924 = vmatmul.bf16.gmra.mxu2 %v7756_v50  ;;  %7973 = vmatmul.bf16.gmra.mxu3 %v7757_v39  ;;  %v13713_v13 = vpack.i.b16 %v17100_v3, %v8099_v43  ;;  %v17132_v50 = vld [vmem:[#allocation2 + $0xd8] sm:$0xff]  ;;  %v14349_v39 = vld [vmem:[%s18798_s1 + $0x4d0] sm:$0xff]  ;;  %v8059_v7 = vrot.slane %v8003_v35, 3  ;;  %v8060_v44 = vrot.slane %v8004_v40, 3  ;;  %v8338_v29 = vunpack.i.h.s16 %v17124_v54  ;;  %v17158_v57 = vpop.f32.mrf.mxu3  ;;  %v7035_v38 = vpop.f32.mrf.mxu1 }
 0x3fa   : > { %v8334_v8 = vunpack.i.h.s16 %v17102_v36  ;;  %19127 = vst [vmem:[#allocation82_spill] sm:$0xff] %v17137_v46  ;;  %v13714_v16 = vpack.i.b16 %v17102_v36, %v18870_v10  ;;  %9778 = vmatpush.bf16.msra.mxu3 %v14349_v39  ;;  %v8062_v47 = vrot.slane %v17132_v50, 3 }
 0x3fb   : > { %19129 = vst [vmem:[#allocation77_spill] sm:$0xff] %v17156_v26  ;;  %v8116_v43 = vsel %vm226_vm2, %v8003_v35, %v8059_v7  ;;  %v8122_v15 = vsel %vm1200_vm4, %v8004_v40, %v8060_v44  ;;  %v8125_v27 = vsel %vm18907_vm6, %v8004_v40, %v8060_v44  ;;  %v8133_v7 = vsel %vm226_vm2, %v8005_v59, %v8061_v60  ;;  %v14348_v59 = vld [vmem:[%s18798_s1 + $0x4c8] sm:$0xff] }
 0x3fc   : > { %v13715_v21 = vpack.i.b16 %v17105_v37, %v8334_v8  ;;  %v8139_v2 = vsel %vm1200_vm4, %v17132_v50, %v8062_v47  ;;  %19130 = vst [vmem:[#allocation102_spill] sm:$0xff] %v17158_v57  ;;  %v13717_v35 = vpack.i.b16 %v8116_v43, %v8338_v29  ;;  %v17182_v10 = vrot.slane %v8125_v27, 2 }
 0x3fd   : > { %v17166_v39 = vrot.slane %v8139_v2, 1 }
 0x3fe   : > { %9779 = vmatpush.bf16.msra.mxu3 %v14348_v59 }
 0x3ff   : > { %v6986_v8 = vpop.f32.mrf.mxu0 }
 0x400   : > { %v7772_v24 = vld [vmem:[#allocation1] sm:$0xff]  ;;  %v7773_v9 = vld [vmem:[#allocation1 + $0x9] sm:$0xff]  ;;  %v7036_v48 = vadd.f32 %v7035_v38, %v6986_v8 }
 0x401   : > { %8545 = vst [vmem:[#allocation1] ss:$9 sm:$0xff] %v17113_v53  ;;  %v6136_v43 = vpop.f32.mrf.mxu3 }
 0x402   : > { %8548 = vst [vmem:[#allocation1 + $0x1] ss:$9 sm:$0xff] %v17115_v41 }
 0x403   : > { %8551 = vst [vmem:[#allocation1 + $0x2] ss:$9 sm:$0xff] %v17119_v32 }
 0x404   : > { %8554 = vst [vmem:[#allocation1 + $0x3] ss:$9 sm:$0xff] %v17122_v55 }
 0x405   : > { %8557 = vst [vmem:[#allocation1 + $0x4] ss:$9 sm:$0xff] %v13713_v13  ;;  %v17164_v13 = vsel %vm226_vm2, %v17132_v50, %v8062_v47 }
 0x406   : > { %8560 = vst [vmem:[#allocation1 + $0x5] ss:$9 sm:$0xff] %v13714_v16  ;;  %v8142_v16 = vsel %vm18907_vm6, %v17132_v50, %v8062_v47  ;;  %v18871_v2 = vunpack.i.h.s16 %v17164_v13  ;;  %v13718_v60 = vpack.i.b16 %v17164_v13, %v8133_v7 }
 0x407   : > { %8563 = vst [vmem:[#allocation1 + $0x6] ss:$9 sm:$0xff] %v13715_v21  ;;  %v17172_v21 = vadd.f32 %v7036_v48, %v16953_v63  ;;  %v17184_v33 = vrot.slane %v8142_v16, 2  ;;  %v8352_v63 = vunpack.i.h.s16 %v17166_v39  ;;  %v8145_v48 = vsel %vm18906_vm7, %v17132_v50, %v8062_v47  ;;  %v17199_v27 = vpop.f32.mrf.mxu0  ;;  %v17201_v16 = vpop.f32.mrf.mxu1  ;;  %v8010_v47 = vld [vmem:[#allocation2 + $0x90] sm:$0xff] }
 0x408   : > { %8566 = vst [vmem:[#allocation1 + $0x7] ss:$9 sm:$0xff] %v13716_v0  ;;  %v17178_v0 = vrot.slane %v8122_v15, 1  ;;  %v8066_v59 = vrot.slane %v8010_v47, 3 }
 0x409   : > { %7929 = vmatmul.bf16.gmra.mxu2 %v7772_v24  ;;  %7978 = vmatmul.bf16.gmra.mxu3 %v7773_v9  ;;  %v8128_v24 = vsel %vm18906_vm7, %v8004_v40, %v8060_v44  ;;  %v17176_v9 = vsel %vm226_vm2, %v8004_v40, %v8060_v44  ;;  %v14340_v40 = vld [vmem:[%s18798_s1 + $0x488] sm:$0xff]  ;;  %v6087_v44 = vpop.f32.mrf.mxu2  ;;  %19131 = vst [vmem:[#allocation103_spill] sm:$0xff] %v17199_v27 }
 0x40a   : > { %v17187_v29 = vrot.slane %v8128_v24, 3  ;;  %v6137_v15 = vadd.f32 %v6136_v43, %v6087_v44  ;;  %19132 = vst [vmem:[#allocation104_spill] sm:$0xff] %v17201_v16  ;;  %v8007_v24 = vld [vmem:[#allocation2 + $0x1f8] sm:$0x11]  ;;  %9730 = vmatpush.bf16.msra.mxu2 %v14340_v40  ;;  %v13720_v7 = vpack.i.b16 %v17184_v33, %v8352_v63  ;;  %v8009_v40 = vld [vmem:[#allocation2 + $0x40] sm:$0x11]  ;;  %v8354_v63 = vunpack.i.h.s16 %v17184_v33 }
 0x40b   : > { %v8063_v44 = vrot.slane %v8007_v24, 3  ;;  %v8065_v25 = vrot.slane %v8009_v40, 3  ;;  %v8173_v57 = vsel %vm1200_vm4, %v8010_v47, %v8066_v59 }
 0x40c   : > { %v17210_v50 = vadd.f32 %v6137_v15, %v16928_v6  ;;  %v17219_v6 = vpop.f32.mrf.mxu3  ;;  %v17239_v17 = vrot.slane %v8173_v57, 1 }
 0x40d   : > { %19134 = vst [vmem:[#allocation106_spill] sm:$0xff] %v17219_v6  ;;  %v8150_v15 = vsel %vm226_vm2, %v8007_v24, %v8063_v44 }
 0x40f   : > { %v8567_v8 = vld [vmem:[#allocation1] sm:$0xff]  ;;  %v8568_v38 = vld [vmem:[#allocation1 + $0x9] sm:$0xff]  ;;  %v6991_v11 = vpop.f32.mrf.mxu0 }
 0x410   : > { %8813 = vmatmul.bf16.vlgmr.msra.gmra.mxu0 %v8567_v8  ;;  %8862 = vmatmul.bf16.vlgmr.msra.gmra.mxu1 %v8568_v38  ;;  %8570 = vst [vmem:[#allocation1] ss:$9 sm:$0xff] %v13717_v35  ;;  %v13719_v35 = vpack.i.b16 %v17166_v39, %v18871_v2  ;;  %v8008_v8 = vld [vmem:[#allocation2 + $0x68] sm:$0xff]  ;;  %v17213_v38 = vrot.slane %v8145_v48, 3  ;;  %v7040_v48 = vpop.f32.mrf.mxu1 }
 0x411   : > { %8572 = vst [vmem:[#allocation1 + $0x1] ss:$9 sm:$0xff] %v17176_v9  ;;  %v8064_v43 = vrot.slane %v8008_v8, 3  ;;  %v17217_v12 = vpop.f32.mrf.mxu2 }
 0x412   : > { %8574 = vst [vmem:[#allocation1 + $0x2] ss:$9 sm:$0xff] %v17178_v0  ;;  %v8356_v2 = vunpack.i.h.s16 %v17213_v38  ;;  %v13721_v26 = vpack.i.b16 %v17213_v38, %v8354_v63 }
 0x413   : > { %8576 = vst [vmem:[#allocation1 + $0x3] ss:$9 sm:$0xff] %v17182_v10  ;;  %v8159_v34 = vsel %vm18907_vm6, %v8008_v8, %v8064_v43  ;;  %v8162_v44 = vsel %vm18906_vm7, %v8008_v8, %v8064_v43 }
 0x414   : > { %8578 = vst [vmem:[#allocation1 + $0x4] ss:$9 sm:$0xff] %v17187_v29  ;;  %v17242_v42 = vrot.slane %v8159_v34, 2 }
 0x415   : > { %8580 = vst [vmem:[#allocation1 + $0x5] ss:$9 sm:$0xff] %v13718_v60  ;;  %v8156_v60 = vsel %vm1200_vm4, %v8008_v8, %v8064_v43 }
 0x416   : > { %8582 = vst [vmem:[#allocation1 + $0x6] ss:$9 sm:$0xff] %v13719_v35  ;;  %v7041_v35 = vadd.f32 %v7040_v48, %v6991_v11  ;;  %v17232_v24 = vrot.slane %v8156_v60, 1  ;;  %v17236_v11 = vsel %vm226_vm2, %v8008_v8, %v8064_v43  ;;  %v8167_v48 = vsel %vm226_vm2, %v8009_v40, %v8065_v25  ;;  %v14339_v8 = vld [vmem:[%s18798_s1 + $0x480] sm:$0xff]  ;;  %v6141_v43 = vpop.f32.mrf.mxu3 }
 0x417   : > { %8584 = vst [vmem:[#allocation1 + $0x7] ss:$9 sm:$0xff] %v13720_v7  ;;  %v17224_v7 = vsel %vm226_vm2, %v8010_v47, %v8066_v59  ;;  %v14347_v25 = vld [vmem:[%s18798_s1 + $0x4c0] sm:$0xff]  ;;  %9731 = vmatpush.bf16.msra.mxu2 %v14339_v8  ;;  %v8014_v8 = vld [vmem:[#allocation2 + $0x28] sm:$0xff] }
 0x418   : > { %19133 = vst [vmem:[#allocation105_spill] sm:$0xff] %v17217_v12  ;;  %v13722_v12 = vpack.i.b16 %v8150_v15, %v8356_v2  ;;  %v17230_v6 = vadd.f32 %v7041_v35, %v16999_v49  ;;  %v18872_v63 = vunpack.i.h.s16 %v17224_v7  ;;  %v17244_v49 = vrot.slane %v8162_v44, 3  ;;  %v8011_v15 = vld [vmem:[#allocation2 + $0x58] sm:$0x11]  ;;  %9780 = vmatpush.bf16.msra.mxu3 %v14347_v25 }
 0x419   : > { %v8176_v2 = vsel %vm18907_vm6, %v8010_v47, %v8066_v59  ;;  %v6092_v57 = vpop.f32.mrf.mxu2  ;;  %v13723_v34 = vpack.i.b16 %v17224_v7, %v8167_v48  ;;  %v8067_v44 = vrot.slane %v8011_v15, 3  ;;  %v8370_v48 = vunpack.i.h.s16 %v17239_v17 }
 0x41a   : > { %v13724_v40 = vpack.i.b16 %v17239_v17, %v18872_v63  ;;  %v17265_v60 = vrot.slane %v8176_v2, 2 }
 0x41e   : > { %v8585_v52 = vld [vmem:[#allocation1] sm:$0xff]  ;;  %v8586_v62 = vld [vmem:[#allocation1 + $0x9] sm:$0xff] }
 0x41f   : > { %8588 = vst [vmem:[#allocation1] ss:$9 sm:$0xff] %v13721_v26  ;;  %v17258_v26 = vpop.f32.mrf.mxu1 }
 0x420   : > { %8818 = vmatmul.bf16.gmra.mxu0 %v8585_v52  ;;  %8867 = vmatmul.bf16.gmra.mxu1 %v8586_v62  ;;  %8590 = vst [vmem:[#allocation1 + $0x1] ss:$9 sm:$0xff] %v13722_v12  ;;  %v8179_v62 = vsel %vm18906_vm7, %v8010_v47, %v8066_v59  ;;  %v6142_v52 = vadd.f32 %v6141_v43, %v6092_v57  ;;  %v17256_v12 = vpop.f32.mrf.mxu0  ;;  %v8012_v59 = vld [vmem:[#allocation2 + $0x108] sm:$0xff]  ;;  %v8372_v43 = vunpack.i.h.s16 %v17265_v60 }
 0x421   : > { %8592 = vst [vmem:[#allocation1 + $0x2] ss:$9 sm:$0xff] %v17236_v11  ;;  %v17271_v35 = vrot.slane %v8179_v62, 3  ;;  %v8013_v57 = vld [vmem:[#allocation2 + $0x148] sm:$0x11]  ;;  %v8068_v25 = vrot.slane %v8012_v59, 3  ;;  %v13725_v62 = vpack.i.b16 %v17265_v60, %v8370_v48 }
 0x422   : > { %19135 = vst [vmem:[#allocation107_spill] sm:$0xff] %v17256_v12  ;;  %v17268_v47 = vadd.f32 %v6142_v52, %v16973_v28  ;;  %v8184_v28 = vsel %vm226_vm2, %v8011_v15, %v8067_v44  ;;  %v8069_v1 = vrot.slane %v8013_v57, 3  ;;  %v380_v44 = vsel %vm14493_vm13, 0, %v379_v5  ;;  %vm17680_vm13 = vmand %vm474_vm10, %vm18904_vm11 }
 0x423   : > { %19136 = vst [vmem:[#allocation108_spill] sm:$0xff] %v17258_v26  ;;  %v8374_v2 = vunpack.i.h.s16 %v17271_v35  ;;  %v8070_v26 = vrot.slane %v8014_v8, 3  ;;  %v13726_v12 = vpack.i.b16 %v17271_v35, %v8372_v43  ;;  %v8193_v23 = vsel %vm18907_vm6, %v8012_v59, %v8068_v25 }
 0x424   : > { %8594 = vst [vmem:[#allocation1 + $0x3] ss:$9 sm:$0xff] %v17232_v24  ;;  %v8196_v48 = vsel %vm18906_vm7, %v8012_v59, %v8068_v25  ;;  %v8201_v43 = vsel %vm226_vm2, %v8013_v57, %v8069_v1  ;;  %v278_v57 = vld [vmem:[#allocation2 + $0xc0] sm:$0x11]  ;;  %vm9888_vm10 = vsmask.f32 4368 }
 0x425   : > { %8596 = vst [vmem:[#allocation1 + $0x4] ss:$9 sm:$0xff] %v17242_v42  ;;  %v13727_v16 = vpack.i.b16 %v8184_v28, %v8374_v2  ;;  %v17294_v2 = vsel %vm226_vm2, %v8014_v8, %v8070_v26  ;;  %v17299_v28 = vrot.slane %v8193_v23, 2  ;;  %v8207_v5 = vsel %vm1200_vm4, %v8014_v8, %v8070_v26  ;;  %vm17714_vm5 = vmor %vm227_vm0, %vm9888_vm10 }
 0x426   : > { %8598 = vst [vmem:[#allocation1 + $0x5] ss:$9 sm:$0xff] %v17244_v49  ;;  %v8210_v1 = vsel %vm18907_vm6, %v8014_v8, %v8070_v26  ;;  %v8213_v23 = vsel %vm18906_vm7, %v8014_v8, %v8070_v26  ;;  %vm10343_vm11 = vsmask.f32 3340 }
 0x427   : > { %8600 = vst [vmem:[#allocation1 + $0x6] ss:$9 sm:$0xff] %v13723_v34  ;;  %v7045_v63 = vpop.f32.mrf.mxu1 }
 0x428   : > { %8602 = vst [vmem:[#allocation1 + $0x7] ss:$9 sm:$0xff] %v13724_v40  ;;  %v6996_v52 = vpop.f32.mrf.mxu0  ;;  %v8190_v40 = vsel %vm1200_vm4, %v8012_v59, %v8068_v25 }
 0x429   : > { %v7046_v34 = vadd.f32 %v7045_v63, %v6996_v52  ;;  %381 = vst [vmem:[#allocation2 + $0x1a0] sm:$0x11] %v380_v44  ;;  %v17288_v63 = vsel %vm226_vm2, %v8012_v59, %v8068_v25  ;;  %v17290_v52 = vrot.slane %v8190_v40, 1  ;;  %v17303_v59 = vrot.slane %v8196_v48, 3  ;;  %v8016_v44 = vld [vmem:[#allocation2 + $0x38] sm:$0xff] }
 0x42a   : > { %v13728_v25 = vpack.i.b16 %v17294_v2, %v8201_v43  ;;  %v17310_v40 = vrot.slane %v8207_v5, 1  ;;  %v17318_v48 = vrot.slane %v8213_v23, 3  ;;  %v18873_v43 = vunpack.i.h.s16 %v17294_v2 }
 0x42b   : > { %v17282_v27 = vadd.f32 %v7046_v34, %v17086_v14  ;;  %v17297_v14 = vld [vmem:[%s14463_s8 + $0xf0] sm:$0xff] }
 0x42c   : > { %v1095_v34 = vshrl.u32 %v17297_v14, 16  ;;  %19138 = vst [vmem:[#allocation5_spill] sm:$0xff] %v17310_v40  ;;  %v8392_v46 = vunpack.i.h.s16 %v17318_v48  ;;  %v1098_v56 = vshll.u32 %v17297_v14, 16 }
 0x42d   : > { %19141 = vst [vmem:[#allocation4_spill] sm:$0xff] %v17318_v48 }
 0x42f   : > { %v8603_v18 = vld [vmem:[#allocation1] sm:$0xff]  ;;  %v8604_v30 = vld [vmem:[#allocation1 + $0x9] sm:$0xff] }
 0x430   : > { %8606 = vst [vmem:[#allocation1] ss:$9 sm:$0xff] %v13725_v62  ;;  %8823 = vmatmul.bf16.gmra.mxu0 %v8603_v18  ;;  %8872 = vmatmul.bf16.gmra.mxu1 %v8604_v30  ;;  %v1097_v62 = vrot.slane %v1095_v34, 7  ;;  %v17313_v30 = vrot.slane %v8210_v1, 2  ;;  %v1108_v26 = vld [vmem:[#allocation2 + $0x1a0] sm:$0x11]  ;;  %v8388_v34 = vunpack.i.h.s16 %v17310_v40 }
 0x431   : > { %8608 = vst [vmem:[#allocation1 + $0x1] ss:$9 sm:$0xff] %v13726_v12  ;;  %v8015_v12 = vld [vmem:[#allocation2 + $0x1e8] sm:$0x11]  ;;  %v8072_v1 = vrot.slane %v8016_v44, 3  ;;  %v8074_v18 = vrot.slane %v8018_v20, 3 }
 0x432   : > { %8610 = vst [vmem:[#allocation1 + $0x2] ss:$9 sm:$0xff] %v13727_v16  ;;  %v279_v16 = vsel %vm14475_vm8, 0, %v278_v57  ;;  %v1101_v15 = vrot.slane %v1097_v62, 4  ;;  %v8071_v8 = vrot.slane %v8015_v12, 3  ;;  %v8390_v57 = vunpack.i.h.s16 %v17313_v30 }
 0x433   : > { %8612 = vst [vmem:[#allocation1 + $0x3] ss:$9 sm:$0xff] %v17288_v63  ;;  %v13730_v4 = vpack.i.b16 %v17313_v30, %v8388_v34  ;;  %v8244_v14 = vsel %vm18907_vm6, %v8018_v20, %v8074_v18 }
 0x434   : > { %8614 = vst [vmem:[#allocation1 + $0x4] ss:$9 sm:$0xff] %v17290_v52  ;;  %v1109_v5 = vsel %vm14475_vm8, %v1101_v15, %v1108_v26  ;;  %v8218_v23 = vsel %vm226_vm2, %v8015_v12, %v8071_v8  ;;  %v8224_v15 = vsel %vm1200_vm4, %v8016_v44, %v8072_v1  ;;  %v8230_v12 = vsel %vm18906_vm7, %v8016_v44, %v8072_v1  ;;  %v8017_v8 = vld [vmem:[#allocation2 + $0x1d0] sm:$0x11] }
 0x435   : > { %8616 = vst [vmem:[#allocation1 + $0x5] ss:$9 sm:$0xff] %v17299_v28  ;;  %v13732_v19 = vpack.i.b16 %v8218_v23, %v8392_v46  ;;  %v17339_v34 = vrot.slane %v8224_v15, 1  ;;  %v17344_v46 = vrot.slane %v8230_v12, 3  ;;  %v1100_v23 = vor.u32 %v1098_v56, %v1097_v62 }
 0x436   : > { %19139 = vst [vmem:[#allocation109_spill] sm:$0xff] %v17313_v30  ;;  %v17350_v15 = vsel %vm226_vm2, %v8018_v20, %v8074_v18  ;;  %vm430_vm8 = vcmask 212992  }
 0x437   : > { %8618 = vst [vmem:[#allocation1 + $0x6] ss:$9 sm:$0xff] %v17303_v59  ;;  %vm17640_vm9 = vmand %vm430_vm8, %vm227_vm0 }
 0x438   : > { %8620 = vst [vmem:[#allocation1 + $0x7] ss:$9 sm:$0xff] %v13728_v25  ;;  %v13729_v25 = vpack.i.b16 %v17310_v40, %v18873_v43  ;;  %v17337_v43 = vsel %vm226_vm2, %v8016_v44, %v8072_v1 }
 0x439   : > { %280 = vst [vmem:[#allocation2 + $0xc0] sm:$0x11] %v279_v16  ;;  %v13731_v16 = vpack.i.b16 %v17318_v48, %v8390_v57  ;;  %v8241_v57 = vsel %vm1200_vm4, %v8018_v20, %v8074_v18  ;;  %v8022_v48 = vld [vmem:[#allocation2 + $0xa8] sm:$0xff] }
 0x43a   : > { %1110 = vst [vmem:[#allocation2 + $0x1a0] sm:$0x11] %v1109_v5  ;;  %v8227_v5 = vsel %vm18907_vm6, %v8016_v44, %v8072_v1  ;;  %v8247_v44 = vsel %vm18906_vm7, %v8018_v20, %v8074_v18  ;;  %v18883_v18 = vunpack.i.h.s16 %v17350_v15 }
 0x43b   : > { %19142 = vst [vmem:[#allocation110_spill] sm:$0xff] %v17339_v34  ;;  %v17341_v45 = vrot.slane %v8227_v5, 2  ;;  %v17352_v5 = vrot.slane %v8241_v57, 1  ;;  %v17358_v56 = vrot.slane %v8247_v44, 3 }
 0x43c   : > { %19144 = vst [vmem:[#allocation112_spill] sm:$0xff] %v17344_v46 }
 0x43d   : > { %19143 = vst [vmem:[#allocation111_spill] sm:$0xff] %v17341_v45  ;;  %v8406_v12 = vunpack.i.h.s16 %v17352_v5  ;;  %v8410_v44 = vunpack.i.h.s16 %v17358_v56 }
 0x43e   : > { %19145 = vst [vmem:[#allocation113_spill] sm:$0xff] %v17352_v5 }
 0x43f   : > { %v8621_v26 = vld [vmem:[#allocation1] sm:$0xff]  ;;  %v8622_v58 = vld [vmem:[#allocation1 + $0x9] sm:$0xff]  ;;  %19147 = vst [vmem:[#allocation115_spill] sm:$0xff] %v17358_v56 }
 0x440   : > { %8624 = vst [vmem:[#allocation1] ss:$9 sm:$0xff] %v13729_v25  ;;  %8828 = vmatmul.bf16.gmra.mxu0 %v8621_v26  ;;  %8877 = vmatmul.bf16.gmra.mxu1 %v8622_v58  ;;  %v8073_v25 = vrot.slane %v8017_v8, 3  ;;  %v1105_v1 = vld [vmem:[#allocation2 + $0xc0] sm:$0xff]  ;;  %v17355_v58 = vrot.slane %v8244_v14, 2 }
 0x441   : > { %8626 = vst [vmem:[#allocation1 + $0x1] ss:$9 sm:$0xff] %v13730_v4  ;;  %v8019_v4 = vld [vmem:[#allocation2 + $0xf0] sm:$0x11] }
 0x442   : > { %8628 = vst [vmem:[#allocation1 + $0x2] ss:$9 sm:$0xff] %v13731_v16  ;;  %v17363_v16 = vsel %vm14520_vm1, %v1100_v23, %v1105_v1  ;;  %v8075_v26 = vrot.slane %v8019_v4, 3  ;;  %v8235_v20 = vsel %vm226_vm2, %v8017_v8, %v8073_v25  ;;  %v8408_v14 = vunpack.i.h.s16 %v17355_v58 }
 0x443   : > { %8630 = vst [vmem:[#allocation1 + $0x3] ss:$9 sm:$0xff] %v13732_v19  ;;  %v8020_v19 = vld [vmem:[#allocation2 + $0x48] sm:$0xff]  ;;  %v13733_v61 = vpack.i.b16 %v17350_v15, %v8235_v20  ;;  %v13734_v8 = vpack.i.b16 %v17352_v5, %v18883_v18  ;;  %v13735_v25 = vpack.i.b16 %v17355_v58, %v8406_v12  ;;  %v8021_v20 = vld [vmem:[#allocation2 + $0xe0] sm:$0x11] }
 0x444   : > { %8632 = vst [vmem:[#allocation1 + $0x4] ss:$9 sm:$0xff] %v17337_v43  ;;  %v8076_v57 = vrot.slane %v8020_v19, 3  ;;  %v8252_v23 = vsel %vm226_vm2, %v8019_v4, %v8075_v26  ;;  %v13736_v62 = vpack.i.b16 %v17358_v56, %v8408_v14  ;;  %vm10341_vm1 = vsmask.f32 2312 }
 0x445   : > { %8634 = vst [vmem:[#allocation1 + $0x5] ss:$9 sm:$0xff] %v17339_v34  ;;  %v13737_v34 = vpack.i.b16 %v8252_v23, %v8410_v44  ;;  %v8023_v23 = vld [vmem:[#allocation2 + $0x120] sm:$0x11]  ;;  %vm17703_vm12 = vmor %vm10340_vm15, %vm10341_vm1  ;;  %vm10346_vm15 = vsmask.f32 5396 }
 0x446   : > { %19146 = vst [vmem:[#allocation114_spill] sm:$0xff] %v17355_v58  ;;  %v8258_v1 = vsel %vm1200_vm4, %v8020_v19, %v8076_v57  ;;  %v17381_v4 = vsel %vm226_vm2, %v8020_v19, %v8076_v57  ;;  %vm10344_vm14 = vmor %vm17703_vm12, %vm10343_vm11  ;;  %vm10348_vm1 = vsmask.f32 6424  ;;  %vm10350_vm12 = vsmask.f32 7452 }
 0x447   : > { %8636 = vst [vmem:[#allocation1 + $0x6] ss:$9 sm:$0xff] %v17341_v45  ;;  %v8261_v45 = vsel %vm18907_vm6, %v8020_v19, %v8076_v57  ;;  %v17383_v26 = vrot.slane %v8258_v1, 1  ;;  %v8079_v1 = vrot.slane %v8023_v23, 3  ;;  %vm10345_vm0 = vmor %vm10344_vm14, %vm9888_vm10 }
 0x448   : > { %8638 = vst [vmem:[#allocation1 + $0x7] ss:$9 sm:$0xff] %v17344_v46  ;;  %v8078_v46 = vrot.slane %v8022_v48, 3  ;;  %v17385_v12 = vrot.slane %v8261_v45, 2  ;;  %vm17741_vm11 = vmor %vm10345_vm0, %vm10346_vm15  ;;  %vm9916_vm0 = vsmask.f32 3328 }
 0x449   : > { %1107 = vst [vmem:[#allocation2 + $0xc0] sm:$0xff] %v17363_v16  ;;  %vm10349_vm10 = vmor %vm17741_vm11, %vm10348_vm1  ;;  %vm9917_vm15 = vsmask.f32 7440  ;;  %vm9947_vm11 = vcmask 1042432   ;;  %vm9948_vm1 = vcmask 1046532  }
 0x44a   : > { %19149 = vst [vmem:[#allocation6_spill] sm:$0xff] %v17381_v4  ;;  %v8275_v14 = vsel %vm1200_vm4, %v8022_v48, %v8078_v46  ;;  %v8278_v18 = vsel %vm18907_vm6, %v8022_v48, %v8078_v46  ;;  %v8281_v44 = vsel %vm18906_vm7, %v8022_v48, %v8078_v46  ;;  %vm17777_vm14 = vmor %vm10349_vm10, %vm10350_vm12  ;;  %vm9962_vm10 = vsmask.f32 2304 }
 0x44b   : > { %19150 = vst [vmem:[#allocation116_spill] sm:$0xff] %v17383_v26  ;;  %v17395_v45 = vrot.slane %v8275_v14, 1  ;;  %vm9963_vm12 = vsmask.f32 6416 }
 0x44c   : > { %19151 = vst [vmem:[#allocation117_spill] sm:$0xff] %v17385_v12 }
 0x44d   : > { %19153 = vst [vmem:[#allocation119_spill] sm:$0xff] %v17395_v45  ;;  %v8424_v58 = vunpack.i.h.s16 %v17395_v45 }
 0x44f   : > { %v8639_v30 = vld [vmem:[#allocation1] sm:$0xff]  ;;  %v8640_v40 = vld [vmem:[#allocation1 + $0x9] sm:$0xff] }
 0x450   : > { %8642 = vst [vmem:[#allocation1] ss:$9 sm:$0xff] %v13733_v61  ;;  %8833 = vmatmul.bf16.gmra.mxu0 %v8639_v30  ;;  %8882 = vmatmul.bf16.gmra.mxu1 %v8640_v40  ;;  %v8077_v61 = vrot.slane %v8021_v20, 3  ;;  %v8264_v40 = vsel %vm18906_vm7, %v8020_v19, %v8076_v57  ;;  %v8024_v30 = vld [vmem:[#allocation2 + $0x18] sm:$0xff]  ;;  %v8286_v19 = vsel %vm226_vm2, %v8023_v23, %v8079_v1  ;;  %v17422_v23 = vpop.f32.mrf.mxu3 }
 0x451   : > { %8644 = vst [vmem:[#allocation1 + $0x1] ss:$9 sm:$0xff] %v13734_v8  ;;  %v17393_v8 = vsel %vm226_vm2, %v8022_v48, %v8078_v46  ;;  %v17406_v48 = vrot.slane %v8264_v40, 3  ;;  %v8080_v46 = vrot.slane %v8024_v30, 3  ;;  %v8082_v40 = vrot.slane %v17363_v16, 3 }
 0x452   : > { %8646 = vst [vmem:[#allocation1 + $0x2] ss:$9 sm:$0xff] %v13735_v25  ;;  %v17401_v25 = vrot.slane %v8281_v44, 3  ;;  %v18892_v56 = vunpack.i.h.s16 %v17393_v8  ;;  %v8025_v1 = vld [vmem:[#allocation2 + $0x1b8] sm:$0x11] }
 0x453   : > { %8648 = vst [vmem:[#allocation1 + $0x3] ss:$9 sm:$0xff] %v13736_v62  ;;  %v8269_v62 = vsel %vm226_vm2, %v8021_v20, %v8077_v61 }
 0x454   : > { %8650 = vst [vmem:[#allocation1 + $0x4] ss:$9 sm:$0xff] %v13737_v34  ;;  %v17398_v34 = vrot.slane %v8278_v18, 2  ;;  %v8428_v18 = vunpack.i.h.s16 %v17401_v25  ;;  %v13738_v5 = vpack.i.b16 %v17393_v8, %v8269_v62  ;;  %v13739_v57 = vpack.i.b16 %v17395_v45, %v18892_v56  ;;  %v17420_v62 = vpop.f32.mrf.mxu2 }
 0x455   : > { %8652 = vst [vmem:[#allocation1 + $0x5] ss:$9 sm:$0xff] %v17381_v4  ;;  %v17425_v56 = vsel %vm226_vm2, %v8024_v30, %v8080_v46 }
 0x456   : > { %8654 = vst [vmem:[#allocation1 + $0x6] ss:$9 sm:$0xff] %v17383_v26  ;;  %v8426_v14 = vunpack.i.h.s16 %v17398_v34  ;;  %v13740_v44 = vpack.i.b16 %v17398_v34, %v8424_v58  ;;  %v13742_v4 = vpack.i.b16 %v8286_v19, %v8428_v18  ;;  %v8315_v18 = vsel %vm18906_vm7, %v17363_v16, %v8082_v40  ;;  %v8027_v19 = vld [vmem:[#allocation2 + $0x1a0] sm:$0x11] }
 0x457   : > { %19152 = vst [vmem:[#allocation118_spill] sm:$0xff] %v17393_v8 }
 0x458   : > { %8656 = vst [vmem:[#allocation1 + $0x7] ss:$9 sm:$0xff] %v17385_v12  ;;  %v8292_v12 = vsel %vm1200_vm4, %v8024_v30, %v8080_v46  ;;  %v13741_v26 = vpack.i.b16 %v17401_v25, %v8426_v14  ;;  %v8312_v14 = vsel %vm18907_vm6, %v17363_v16, %v8082_v40 }
 0x459   : > { %19154 = vst [vmem:[#allocation120_spill] sm:$0xff] %v17398_v34  ;;  %v17427_v58 = vrot.slane %v8292_v12, 1  ;;  %v8309_v34 = vsel %vm1200_vm4, %v17363_v16, %v8082_v40  ;;  %v17438_v12 = vsel %vm226_vm2, %v17363_v16, %v8082_v40 }
 0x45a   : > { %19155 = vst [vmem:[#allocation121_spill] sm:$0xff] %v17401_v25 }
 0x45b   : > { %19156 = vst [vmem:[#allocation122_spill] sm:$0xff] %v17406_v48 }
 0x45c   : > { %19157 = vst [vmem:[#allocation123_spill] sm:$0xff] %v17420_v62  ;;  %v18902_v62 = vunpack.i.h.s16 %v17438_v12  ;;  %v7895_v45 = vpop.f32.mrf.mxu2 }
 0x45d   : > { %19158 = vst [vmem:[#allocation124_spill] sm:$0xff] %v17422_v23 }
 0x45e   : > { %19159 = vst [vmem:[#allocation125_spill] sm:$0xff] %v17425_v56 }
 0x45f   : > { %v8657_v20 = vld [vmem:[#allocation1] sm:$0xff]  ;;  %v8658_v61 = vld [vmem:[#allocation1 + $0x9] sm:$0xff]  ;;  %19160 = vst [vmem:[#allocation126_spill] sm:$0xff] %v17427_v58 }
 0x460   : > { %8660 = vst [vmem:[#allocation1] ss:$9 sm:$0xff] %v17406_v48  ;;  %8838 = vmatmul.bf16.gmra.mxu0 %v8657_v20  ;;  %8887 = vmatmul.bf16.gmra.mxu1 %v8658_v61  ;;  %v8298_v20 = vsel %vm18906_vm7, %v8024_v30, %v8080_v46  ;;  %v17447_v61 = vrot.slane %v8315_v18, 3  ;;  %v17459_v18 = vpop.f32.mrf.mxu0  ;;  %v8920_v48 = vld [vmem:[#allocation2 + $0x8] sm:$0x11] }
 0x461   : > { %8662 = vst [vmem:[#allocation1 + $0x1] ss:$9 sm:$0xff] %v13738_v5  ;;  %v8081_v5 = vrot.slane %v8025_v1, 3 }
 0x462   : > { %8664 = vst [vmem:[#allocation1 + $0x2] ss:$9 sm:$0xff] %v13739_v57  ;;  %v17440_v57 = vrot.slane %v8309_v34, 1  ;;  %v17454_v34 = vrot.slane %v8298_v20, 3 }
 0x463   : > { %8666 = vst [vmem:[#allocation1 + $0x3] ss:$9 sm:$0xff] %v13740_v44  ;;  %v8083_v44 = vrot.slane %v8027_v19, 3  ;;  %v8303_v23 = vsel %vm226_vm2, %v8025_v1, %v8081_v5  ;;  %v17461_v1 = vpop.f32.mrf.mxu1 }
 0x464   : > { %8668 = vst [vmem:[#allocation1 + $0x4] ss:$9 sm:$0xff] %v13741_v26  ;;  %v8295_v26 = vsel %vm18907_vm6, %v8024_v30, %v8080_v46  ;;  %v8442_v16 = vunpack.i.h.s16 %v17440_v57  ;;  %v13743_v30 = vpack.i.b16 %v17438_v12, %v8303_v23 }
 0x465   : > { %8670 = vst [vmem:[#allocation1 + $0x5] ss:$9 sm:$0xff] %v13742_v4  ;;  %v17444_v4 = vrot.slane %v8312_v14, 2  ;;  %v17451_v25 = vrot.slane %v8295_v26, 2  ;;  %v7944_v14 = vpop.f32.mrf.mxu3  ;;  %v8320_v5 = vsel %vm226_vm2, %v8027_v19, %v8083_v44  ;;  %v13744_v26 = vpack.i.b16 %v17440_v57, %v18902_v62  ;;  %v17474_v44 = vpop.f32.mrf.mxu2 }
 0x466   : > { %8672 = vst [vmem:[#allocation1 + $0x6] ss:$9 sm:$0xff] %v17425_v56  ;;  %v7945_v46 = vadd.f32 %v7944_v14, %v7895_v45  ;;  %v8976_v19 = vrot.slane %v8920_v48, 3 }
 0x467   : > { %8674 = vst [vmem:[#allocation1 + $0x7] ss:$9 sm:$0xff] %v17427_v58  ;;  %v8444_v40 = vunpack.i.h.s16 %v17444_v4  ;;  %v8446_v58 = vunpack.i.h.s16 %v17447_v61  ;;  %v13745_v8 = vpack.i.b16 %v17444_v4, %v8442_v16  ;;  %v9241_v16 = vunpack.i.h.s16 %v17113_v53 }
 0x468   : > { %19161 = vst [vmem:[#allocation127_spill] sm:$0xff] %v17459_v18  ;;  %v17470_v23 = vadd.f32 %v7945_v46, %v17026_v22  ;;  %v9245_v46 = vunpack.i.h.s16 %v17119_v32 }
 0x469   : > { %19162 = vst [vmem:[#allocation128_spill] sm:$0xff] %v17461_v1  ;;  %v13746_v45 = vpack.i.b16 %v17447_v61, %v8444_v40  ;;  %v13747_v14 = vpack.i.b16 %v8320_v5, %v8446_v58  ;;  %v7001_v1 = vpop.f32.mrf.mxu0  ;;  %v9018_v40 = vsel %vm226_vm2, %v8920_v48, %v8976_v19  ;;  %v9243_v58 = vunpack.i.h.s16 %v17115_v41 }
 0x46a   : > { %19163 = vst [vmem:[#allocation129_spill] sm:$0xff] %v17474_v44 }
 0x46b   : > { %v7050_v22 = vpop.f32.mrf.mxu1  ;;  %v13845_v53 = vpack.i.b16 %v17119_v32, %v9243_v58  ;;  %v9259_v58 = vunpack.i.h.s16 %v17176_v9 }
 0x46d   : > { %v17476_v62 = vpop.f32.mrf.mxu3  ;;  %v7900_v19 = vpop.f32.mrf.mxu2  ;;  %v13848_v9 = vpack.i.b16 %v17178_v0, %v9259_v58 }
 0x46e   : > { %v8675_v20 = vld [vmem:[#allocation1] sm:$0xff]  ;;  %v8676_v56 = vld [vmem:[#allocation1 + $0x9] sm:$0xff]  ;;  %19164 = vst [vmem:[#allocation130_spill] sm:$0xff] %v17476_v62 }
 0x46f   : > { %8678 = vst [vmem:[#allocation1] ss:$9 sm:$0xff] %v17451_v25 }
 0x470   : > { %8680 = vst [vmem:[#allocation1 + $0x1] ss:$9 sm:$0xff] %v17454_v34  ;;  %8843 = vmatmul.bf16.gmra.mxu0 %v8675_v20  ;;  %8892 = vmatmul.bf16.gmra.mxu1 %v8676_v56  ;;  %v13846_v20 = vpack.i.b16 %v17122_v55, %v9245_v46 }
 0x471   : > { %8682 = vst [vmem:[#allocation1 + $0x2] ss:$9 sm:$0xff] %v13743_v30  ;;  %v7051_v30 = vadd.f32 %v7050_v22, %v7001_v1  ;;  %v19165_v1 = vunpack.i.h.s16 %v17100_v3  ;;  %v17491_v44 = vpop.f32.mrf.mxu0 }
 0x472   : > { %8684 = vst [vmem:[#allocation1 + $0x3] ss:$9 sm:$0xff] %v13744_v26  ;;  %v9249_v26 = vunpack.i.h.s16 %v9018_v40 }
 0x473   : > { %8686 = vst [vmem:[#allocation1 + $0x4] ss:$9 sm:$0xff] %v13745_v8  ;;  %v9247_v8 = vunpack.i.h.s16 %v17122_v55  ;;  %v17484_v5 = vadd.f32 %v7051_v30, %v17148_v51  ;;  %v17493_v51 = vpop.f32.mrf.mxu1  ;;  %v8922_v55 = vld [vmem:[#allocation2 + $0x190] sm:$0x11] }
 0x474   : > { %8688 = vst [vmem:[#allocation1 + $0x5] ss:$9 sm:$0xff] %v13746_v45  ;;  %v13844_v45 = vpack.i.b16 %v17115_v41, %v9241_v16  ;;  %v9404_v22 = vpack.i.b16 %v19165_v1, %v9249_v26  ;;  %v8924_v41 = vld [vmem:[#allocation2 + $0x80] sm:$0x11] }
 0x475   : > { %8690 = vst [vmem:[#allocation1 + $0x6] ss:$9 sm:$0xff] %v13747_v14  ;;  %v13847_v48 = vpack.i.b16 %v9018_v40, %v9247_v8  ;;  %v7949_v18 = vpop.f32.mrf.mxu3  ;;  %v8980_v16 = vrot.slane %v8924_v41, 3  ;;  %v17501_v3 = vpop.f32.mrf.mxu2  ;;  %v8978_v40 = vrot.slane %v8922_v55, 3 }
 0x476   : > { %v7950_v62 = vadd.f32 %v7949_v18, %v7900_v19 }
 0x477   : > { %v9035_v26 = vsel %vm226_vm2, %v8922_v55, %v8978_v40 }
 0x478   : > { %v17496_v32 = vadd.f32 %v7950_v62, %v17108_v31  ;;  %v9052_v62 = vsel %vm226_vm2, %v8924_v41, %v8980_v16  ;;  %v8926_v16 = vld [vmem:[#allocation2 + $0x1f8] sm:$0x11] }
 0x479   : > { %v7006_v30 = vpop.f32.mrf.mxu0 }
 0x47b   : > { %v7055_v31 = vpop.f32.mrf.mxu1 }
 0x47c   : > { %v8691_v56 = vld [vmem:[#allocation1] sm:$0xff]  ;;  %v8692_v14 = vld [vmem:[#allocation1 + $0x9] sm:$0xff]  ;;  %v7056_v46 = vadd.f32 %v7055_v31, %v7006_v30  ;;  %v8982_v30 = vrot.slane %v8926_v16, 3  ;;  %v9277_v31 = vunpack.i.h.s16 %v17236_v11 }
 0x47d   : > { %9464 = vst [vmem:[#allocation1] ss:$9 sm:$0xff] %v13844_v45  ;;  %v17503_v18 = vpop.f32.mrf.mxu3  ;;  %v9267_v45 = vunpack.i.h.s16 %v9052_v62  ;;  %v7905_v19 = vpop.f32.mrf.mxu2 }
 0x47e   : > { %9467 = vst [vmem:[#allocation1 + $0x1] ss:$9 sm:$0xff] %v13845_v53  ;;  %v17511_v8 = vadd.f32 %v7056_v46, %v17210_v50  ;;  %v19166_v50 = vunpack.i.h.s16 %v17164_v13  ;;  %v9279_v46 = vunpack.i.h.s16 %v17232_v24 }
 0x47f   : > { %9470 = vst [vmem:[#allocation1 + $0x2] ss:$9 sm:$0xff] %v13846_v20 }
 0x480   : > { %9473 = vst [vmem:[#allocation1 + $0x3] ss:$9 sm:$0xff] %v13847_v48  ;;  %8848 = vmatmul.bf16.gmra.mxu0 %v8691_v56  ;;  %8897 = vmatmul.bf16.gmra.mxu1 %v8692_v14 }
 0x481   : > { %9476 = vst [vmem:[#allocation1 + $0x4] ss:$9 sm:$0xff] %v9404_v22  ;;  %v9413_v22 = vpack.i.b16 %v19166_v50, %v9267_v45  ;;  %v17519_v55 = vpop.f32.mrf.mxu0 }
 0x482   : > { %9479 = vst [vmem:[#allocation1 + $0x5] ss:$9 sm:$0xff] %v17102_v36  ;;  %v9261_v36 = vunpack.i.h.s16 %v17178_v0 }
 0x483   : > { %9482 = vst [vmem:[#allocation1 + $0x6] ss:$9 sm:$0xff] %v17105_v37  ;;  %v9263_v37 = vunpack.i.h.s16 %v17182_v10  ;;  %v17521_v0 = vpop.f32.mrf.mxu1 }
 0x484   : > { %9485 = vst [vmem:[#allocation1 + $0x7] ss:$9 sm:$0xff] %v17124_v54  ;;  %v9265_v54 = vunpack.i.h.s16 %v17187_v29  ;;  %v13849_v53 = vpack.i.b16 %v17182_v10, %v9261_v36  ;;  %v8928_v10 = vld [vmem:[#allocation2 + $0x40] sm:$0x11] }
 0x485   : > { %v13850_v14 = vpack.i.b16 %v17187_v29, %v9263_v37  ;;  %v7954_v1 = vpop.f32.mrf.mxu3  ;;  %v8984_v40 = vrot.slane %v8928_v10, 3  ;;  %v17528_v13 = vpop.f32.mrf.mxu2 }
 0x486   : > { %v13851_v48 = vpack.i.b16 %v9052_v62, %v9265_v54  ;;  %v7955_v41 = vadd.f32 %v7954_v1, %v7905_v19  ;;  %v9283_v54 = vunpack.i.h.s16 %v17244_v49  ;;  %v19167_v19 = vunpack.i.h.s16 %v17224_v7 }
 0x488   : > { %v17524_v29 = vadd.f32 %v7955_v41, %v17172_v21  ;;  %v9086_v21 = vsel %vm226_vm2, %v8928_v10, %v8984_v40  ;;  %v9295_v10 = vunpack.i.h.s16 %v17288_v63  ;;  %v9297_v40 = vunpack.i.h.s16 %v17290_v52 }
 0x489   : > { %v7011_v62 = vpop.f32.mrf.mxu0  ;;  %v9285_v45 = vunpack.i.h.s16 %v9086_v21 }
 0x48b   : > { %v9486_v20 = vld [vmem:[#allocation1] sm:$0xff]  ;;  %v9487_v56 = vld [vmem:[#allocation1 + $0x9] sm:$0xff]  ;;  %v7060_v36 = vpop.f32.mrf.mxu1  ;;  %v9422_v1 = vpack.i.b16 %v19167_v19, %v9285_v45 }
 0x48c   : > { %9732 = vmatmul.bf16.vlgmr.msra.gmra.mxu2 %v9486_v20  ;;  %9781 = vmatmul.bf16.vlgmr.msra.gmra.mxu3 %v9487_v56  ;;  %9489 = vst [vmem:[#allocation1] ss:$9 sm:$0xff] %v9035_v26  ;;  %v7061_v37 = vadd.f32 %v7060_v36, %v7011_v62  ;;  %v9069_v26 = vsel %vm226_vm2, %v8926_v16, %v8982_v30  ;;  %v9301_v30 = vunpack.i.h.s16 %v17303_v59 }
 0x48d   : > { %9491 = vst [vmem:[#allocation1 + $0x1] ss:$9 sm:$0xff] %v13848_v9  ;;  %v17530_v58 = vpop.f32.mrf.mxu3  ;;  %v13852_v9 = vpack.i.b16 %v17232_v24, %v9277_v31  ;;  %v13853_v20 = vpack.i.b16 %v17242_v42, %v9279_v46  ;;  %v8932_v24 = vld [vmem:[#allocation2 + $0x148] sm:$0x11]  ;;  %v13857_v46 = vpack.i.b16 %v17299_v28, %v9297_v40 }
 0x48e   : > { %9493 = vst [vmem:[#allocation1 + $0x2] ss:$9 sm:$0xff] %v13849_v53 }
 0x48f   : > { %9495 = vst [vmem:[#allocation1 + $0x3] ss:$9 sm:$0xff] %v13850_v14  ;;  %v13855_v14 = vpack.i.b16 %v9086_v21, %v9283_v54  ;;  %v13856_v21 = vpack.i.b16 %v17290_v52, %v9295_v10  ;;  %v19173_v10 = vld [vmem:[#allocation109_spill] sm:$0xff] }
 0x490   : > { %9497 = vst [vmem:[#allocation1 + $0x4] ss:$9 sm:$0xff] %v13851_v48  ;;  %v7910_v48 = vpop.f32.mrf.mxu2 }
 0x491   : > { %9499 = vst [vmem:[#allocation1 + $0x5] ss:$9 sm:$0xff] %v9413_v22 }
 0x492   : > { %9501 = vst [vmem:[#allocation1 + $0x6] ss:$9 sm:$0xff] %v17166_v39  ;;  %v9281_v39 = vunpack.i.h.s16 %v17242_v42 }
 0x493   : > { %9503 = vst [vmem:[#allocation1 + $0x7] ss:$9 sm:$0xff] %v17184_v33  ;;  %v17538_v33 = vadd.f32 %v7061_v37, %v17268_v47 }
 0x494   : > { %v13854_v56 = vpack.i.b16 %v17244_v49, %v9281_v39  ;;  %v8988_v49 = vrot.slane %v8932_v24, 3 }
 0x495   : > { %v7959_v47 = vpop.f32.mrf.mxu3 }
 0x496   : > { %v7960_v50 = vadd.f32 %v7959_v47, %v7910_v48  ;;  %v9120_v16 = vsel %vm226_vm2, %v8932_v24, %v8988_v49  ;;  %v19172_v49 = vld [vmem:[#allocation5_spill] sm:$0xff] }
 0x497   : > { %v9303_v36 = vunpack.i.h.s16 %v9120_v16  ;;  %v13859_v37 = vpack.i.b16 %v9120_v16, %v9301_v30  ;;  %v19174_v16 = vld [vmem:[#allocation4_spill] sm:$0xff] }
 0x498   : > { %v17548_v42 = vadd.f32 %v7960_v50, %v17230_v6  ;;  %v17551_v22 = vpop.f32.mrf.mxu2  ;;  %v9299_v6 = vunpack.i.h.s16 %v17299_v28 }
 0x49a   : > { %v9504_v11 = vld [vmem:[#allocation1] sm:$0xff]  ;;  %v9505_v53 = vld [vmem:[#allocation1 + $0x9] sm:$0xff]  ;;  %v13858_v63 = vpack.i.b16 %v17303_v59, %v9299_v6 }
 0x49b   : > { %9507 = vst [vmem:[#allocation1] ss:$9 sm:$0xff] %v17213_v38  ;;  %v8930_v38 = vld [vmem:[#allocation2 + $0x58] sm:$0x11] }
 0x49c   : > { %9737 = vmatmul.bf16.gmra.mxu2 %v9504_v11  ;;  %9786 = vmatmul.bf16.gmra.mxu3 %v9505_v53  ;;  %9509 = vst [vmem:[#allocation1 + $0x1] ss:$9 sm:$0xff] %v9069_v26  ;;  %v8986_v7 = vrot.slane %v8930_v38, 3  ;;  %v19168_v26 = vunpack.i.h.s16 %v17294_v2  ;;  %v9313_v2 = vunpack.i.h.s16 %v17337_v43 }
 0x49d   : > { %9511 = vst [vmem:[#allocation1 + $0x2] ss:$9 sm:$0xff] %v13852_v9  ;;  %v17553_v41 = vpop.f32.mrf.mxu3 }
 0x49e   : > { %9513 = vst [vmem:[#allocation1 + $0x3] ss:$9 sm:$0xff] %v13853_v20  ;;  %v9431_v45 = vpack.i.b16 %v19168_v26, %v9303_v36  ;;  %v19169_v20 = vld [vmem:[#allocation110_spill] sm:$0xff]  ;;  %v8938_v36 = vld [vmem:[#allocation2 + $0xf0] sm:$0x11] }
 0x49f   : > { %9515 = vst [vmem:[#allocation1 + $0x4] ss:$9 sm:$0xff] %v13854_v56  ;;  %v9315_v56 = vunpack.i.h.s16 %v19169_v20 }
 0x4a0   : > { %9517 = vst [vmem:[#allocation1 + $0x5] ss:$9 sm:$0xff] %v13855_v14  ;;  %v7915_v39 = vpop.f32.mrf.mxu2  ;;  %v19170_v14 = vld [vmem:[#allocation111_spill] sm:$0xff] }
 0x4a1   : > { %9519 = vst [vmem:[#allocation1 + $0x6] ss:$9 sm:$0xff] %v9422_v1  ;;  %v9317_v48 = vunpack.i.h.s16 %v19170_v14 }
 0x4a2   : > { %9521 = vst [vmem:[#allocation1 + $0x7] ss:$9 sm:$0xff] %v17239_v17  ;;  %v9103_v17 = vsel %vm226_vm2, %v8930_v38, %v8986_v7  ;;  %v13860_v38 = vpack.i.b16 %v19169_v20, %v9313_v2  ;;  %v13861_v7 = vpack.i.b16 %v19170_v14, %v9315_v56  ;;  %v19179_v20 = vld [vmem:[#allocation113_spill] sm:$0xff] }
 0x4a5   : > { %v7964_v54 = vpop.f32.mrf.mxu3 }
 0x4a6   : > { %v7965_v9 = vadd.f32 %v7964_v54, %v7915_v39  ;;  %v8994_v39 = vrot.slane %v8938_v36, 3  ;;  %v19176_v54 = vld [vmem:[#allocation6_spill] sm:$0xff] }
 0x4a7   : > { %v9331_v26 = vunpack.i.h.s16 %v19176_v54 }
 0x4a8   : > { %v17569_v52 = vadd.f32 %v7965_v9, %v17282_v27  ;;  %v17571_v28 = vpop.f32.mrf.mxu2  ;;  %v19171_v27 = vld [vmem:[#allocation112_spill] sm:$0xff]  ;;  %v9171_v2 = vsel %vm226_vm2, %v8938_v36, %v8994_v39 }
 0x4a9   : > { %v9522_v31 = vld [vmem:[#allocation1] sm:$0xff]  ;;  %v9523_v62 = vld [vmem:[#allocation1 + $0x9] sm:$0xff]  ;;  %v9319_v1 = vunpack.i.h.s16 %v19171_v27  ;;  %v13862_v43 = vpack.i.b16 %v19171_v27, %v9317_v48 }
 0x4aa   : > { %9525 = vst [vmem:[#allocation1] ss:$9 sm:$0xff] %v17265_v60  ;;  %v8934_v60 = vld [vmem:[#allocation2 + $0x1e8] sm:$0x11]  ;;  %v19180_v48 = vld [vmem:[#allocation114_spill] sm:$0xff] }
 0x4ab   : > { %9527 = vst [vmem:[#allocation1 + $0x1] ss:$9 sm:$0xff] %v17271_v35  ;;  %v8936_v35 = vld [vmem:[#allocation2 + $0x1d0] sm:$0x11]  ;;  %v8990_v11 = vrot.slane %v8934_v60, 3  ;;  %v19182_v27 = vld [vmem:[#allocation115_spill] sm:$0xff] }
 0x4ac   : > { %9742 = vmatmul.bf16.gmra.mxu2 %v9522_v31  ;;  %9791 = vmatmul.bf16.gmra.mxu3 %v9523_v62  ;;  %9529 = vst [vmem:[#allocation1 + $0x2] ss:$9 sm:$0xff] %v9103_v17  ;;  %v8992_v53 = vrot.slane %v8936_v35, 3 }
 0x4ad   : > { %9531 = vst [vmem:[#allocation1 + $0x3] ss:$9 sm:$0xff] %v13856_v21  ;;  %v17573_v59 = vpop.f32.mrf.mxu3  ;;  %v9137_v50 = vsel %vm226_vm2, %v8934_v60, %v8990_v11  ;;  %v19175_v21 = vunpack.i.h.s16 %v17350_v15  ;;  %v8940_v60 = vld [vmem:[#allocation2 + $0xe0] sm:$0x11] }
 0x4ae   : > { %9533 = vst [vmem:[#allocation1 + $0x4] ss:$9 sm:$0xff] %v13857_v46  ;;  %v9154_v24 = vsel %vm226_vm2, %v8936_v35, %v8992_v53  ;;  %v8996_v56 = vrot.slane %v8940_v60, 3 }
 0x4af   : > { %9535 = vst [vmem:[#allocation1 + $0x5] ss:$9 sm:$0xff] %v13858_v63  ;;  %v13863_v40 = vpack.i.b16 %v9154_v24, %v9319_v1  ;;  %v9321_v17 = vunpack.i.h.s16 %v9154_v24 }
 0x4b0   : > { %9537 = vst [vmem:[#allocation1 + $0x6] ss:$9 sm:$0xff] %v13859_v37  ;;  %v7920_v6 = vpop.f32.mrf.mxu2  ;;  %v9188_v24 = vsel %vm226_vm2, %v8940_v60, %v8996_v56 }
 0x4b1   : > { %9539 = vst [vmem:[#allocation1 + $0x7] ss:$9 sm:$0xff] %v9431_v45  ;;  %v9440_v46 = vpack.i.b16 %v19175_v21, %v9321_v17  ;;  %v19177_v45 = vld [vmem:[#allocation116_spill] sm:$0xff]  ;;  %v19185_v21 = vld [vmem:[#allocation125_spill] sm:$0xff] }
 0x4b2   : > { %v9333_v9 = vunpack.i.h.s16 %v19177_v45  ;;  %v13864_v15 = vpack.i.b16 %v19177_v45, %v9331_v26  ;;  %v19186_v26 = vld [vmem:[#allocation126_spill] sm:$0xff] }
 0x4b3   : > { %v9351_v45 = vunpack.i.h.s16 %v19186_v26 }
 0x4b5   : > { %v7969_v30 = vpop.f32.mrf.mxu3 }
 0x4b6   : > { %v7970_v31 = vadd.f32 %v7969_v30, %v7920_v6 }
 0x4b8   : > { %v9540_v47 = vld [vmem:[#allocation1] sm:$0xff]  ;;  %v9541_v19 = vld [vmem:[#allocation1 + $0x9] sm:$0xff]  ;;  %v17588_v62 = vadd.f32 %v7970_v31, %v17484_v5  ;;  %v17592_v63 = vpop.f32.mrf.mxu2 }
 0x4b9   : > { %9543 = vst [vmem:[#allocation1] ss:$9 sm:$0xff] %v19172_v49  ;;  %v19178_v5 = vld [vmem:[#allocation117_spill] sm:$0xff] }
 0x4ba   : > { %9545 = vst [vmem:[#allocation1 + $0x1] ss:$9 sm:$0xff] %v19173_v10  ;;  %v9335_v53 = vunpack.i.h.s16 %v19178_v5  ;;  %v13865_v14 = vpack.i.b16 %v19178_v5, %v9333_v9  ;;  %v9339_v10 = vunpack.i.h.s16 %v9188_v24  ;;  %v8944_v9 = vld [vmem:[#allocation2 + $0x1b8] sm:$0x11]  ;;  %v13869_v5 = vpack.i.b16 %v17451_v25, %v9351_v45 }
 0x4bb   : > { %9547 = vst [vmem:[#allocation1 + $0x2] ss:$9 sm:$0xff] %v19174_v16 }
 0x4bc   : > { %9747 = vmatmul.bf16.gmra.mxu2 %v9540_v47  ;;  %9796 = vmatmul.bf16.gmra.mxu3 %v9541_v19  ;;  %9549 = vst [vmem:[#allocation1 + $0x3] ss:$9 sm:$0xff] %v9137_v50  ;;  %v19181_v47 = vld [vmem:[#allocation122_spill] sm:$0xff] }
 0x4bd   : > { %9551 = vst [vmem:[#allocation1 + $0x4] ss:$9 sm:$0xff] %v13860_v38  ;;  %v17594_v37 = vpop.f32.mrf.mxu3  ;;  %v13866_v19 = vpack.i.b16 %v19181_v47, %v9335_v53  ;;  %v9337_v49 = vunpack.i.h.s16 %v19181_v47  ;;  %v19188_v53 = vld [vmem:[#allocation120_spill] sm:$0xff]  ;;  %v9355_v47 = vunpack.i.h.s16 %v17454_v34 }
 0x4be   : > { %9553 = vst [vmem:[#allocation1 + $0x5] ss:$9 sm:$0xff] %v13861_v7 }
 0x4bf   : > { %9555 = vst [vmem:[#allocation1 + $0x6] ss:$9 sm:$0xff] %v13862_v43  ;;  %v8942_v43 = vld [vmem:[#allocation2 + $0x120] sm:$0x11]  ;;  %v13867_v16 = vpack.i.b16 %v9188_v24, %v9337_v49 }
 0x4c0   : > { %9557 = vst [vmem:[#allocation1 + $0x7] ss:$9 sm:$0xff] %v13863_v40  ;;  %v7925_v1 = vpop.f32.mrf.mxu2  ;;  %v19183_v40 = vld [vmem:[#allocation118_spill] sm:$0xff]  ;;  %v8998_v36 = vrot.slane %v8942_v43, 3 }
 0x4c1   : > { %v19184_v6 = vunpack.i.h.s16 %v19183_v40 }
 0x4c3   : > { %v9449_v30 = vpack.i.b16 %v19184_v6, %v9339_v10  ;;  %v453_v6 = vld [vmem:[#allocation3 + $0x38] sm:$0x1] }
 0x4c5   : > { %v7974_v50 = vpop.f32.mrf.mxu3 }
 0x4c6   : > { %v7975_v38 = vadd.f32 %v7974_v50, %v7925_v1  ;;  %v8946_v1 = vld [vmem:[#allocation2 + $0x1a0] sm:$0x11] }
 0x4c7   : > { %v9558_v35 = vld [vmem:[#allocation1] sm:$0xff]  ;;  %v9559_v11 = vld [vmem:[#allocation1 + $0x9] sm:$0xff] }
 0x4c8   : > { %9561 = vst [vmem:[#allocation1] ss:$9 sm:$0xff] %v9440_v46  ;;  %v17609_v7 = vadd.f32 %v7975_v38, %v17511_v8  ;;  %v17613_v31 = vpop.f32.mrf.mxu2  ;;  %v9349_v46 = vunpack.i.h.s16 %v19185_v21  ;;  %v9205_v8 = vsel %vm226_vm2, %v8942_v43, %v8998_v36  ;;  %v19190_v38 = vunpack.i.h.s16 %v17438_v12  ;;  %v432_v12 = vld [vmem:[#allocation3] sm:$0x1] }
 0x4c9   : > { %9563 = vst [vmem:[#allocation1 + $0x1] ss:$9 sm:$0xff] %v19179_v20 }
 0x4ca   : > { %9565 = vst [vmem:[#allocation1 + $0x2] ss:$9 sm:$0xff] %v19180_v48  ;;  %v13868_v60 = vpack.i.b16 %v19186_v26, %v9349_v46  ;;  %v9353_v48 = vunpack.i.h.s16 %v17451_v25  ;;  %v19193_v46 = vld [vmem:[#allocation7_spill] sm:$0xff]  ;;  %v19195_v26 = vld [vmem:[#allocation17_spill] sm:$0xff] }
 0x4cb   : > { %9567 = vst [vmem:[#allocation1 + $0x3] ss:$9 sm:$0xff] %v19182_v27 }
 0x4cc   : > { %9752 = vmatmul.bf16.gmra.mxu2 %v9558_v35  ;;  %9801 = vmatmul.bf16.gmra.mxu3 %v9559_v11  ;;  %9569 = vst [vmem:[#allocation1 + $0x4] ss:$9 sm:$0xff] %v9171_v2  ;;  %v19187_v35 = vld [vmem:[#allocation119_spill] sm:$0xff]  ;;  %v9000_v11 = vrot.slane %v8944_v9, 3  ;;  %v19189_v2 = vld [vmem:[#allocation121_spill] sm:$0xff]  ;;  %v13870_v50 = vpack.i.b16 %v17454_v34, %v9353_v48 }
 0x4cd   : > { %9571 = vst [vmem:[#allocation1 + $0x5] ss:$9 sm:$0xff] %v13864_v15  ;;  %v17615_v17 = vpop.f32.mrf.mxu3 }
 0x4ce   : > { %9573 = vst [vmem:[#allocation1 + $0x6] ss:$9 sm:$0xff] %v13865_v14  ;;  %v9222_v56 = vsel %vm226_vm2, %v8944_v9, %v9000_v11 }
 0x4cf   : > { %9575 = vst [vmem:[#allocation1 + $0x7] ss:$9 sm:$0xff] %v13866_v19  ;;  %v9357_v27 = vunpack.i.h.s16 %v9222_v56  ;;  %v13871_v24 = vpack.i.b16 %v9222_v56, %v9355_v47  ;;  %v19200_v56 = vld [vmem:[#allocation59_spill] sm:$0xff]  ;;  %v19201_v47 = vld [vmem:[#allocation48_spill] sm:$0xff] }
 0x4d0   : > { %v7930_v15 = vpop.f32.mrf.mxu2 }
 0x4d1   : > { %v9458_v49 = vpack.i.b16 %v19190_v38, %v9357_v27  ;;  %v19202_v27 = vld [vmem:[#allocation49_spill] sm:$0xff]  ;;  %v19203_v38 = vld [vmem:[#allocation90_spill] sm:$0xff] }
 0x4d5   : > { %v7979_v20 = vpop.f32.mrf.mxu3 }
 0x4d6   : > { %v9576_v39 = vld [vmem:[#allocation1] sm:$0xff]  ;;  %v9577_v54 = vld [vmem:[#allocation1 + $0x9] sm:$0xff]  ;;  %v7980_v14 = vadd.f32 %v7979_v20, %v7930_v15 }
 0x4d7   : > { %9579 = vst [vmem:[#allocation1] ss:$9 sm:$0xff] %v13867_v16  ;;  %v9002_v16 = vrot.slane %v8946_v1, 3  ;;  %v19199_v20 = vld [vmem:[#allocation58_spill] sm:$0xff] }
 0x4d8   : > { %9581 = vst [vmem:[#allocation1 + $0x1] ss:$9 sm:$0xff] %v9449_v30  ;;  %v17629_v19 = vadd.f32 %v7980_v14, %v17538_v33  ;;  %v433_v33 = vsel %vm17640_vm9, 0, %v432_v12  ;;  %v454_v30 = vsel %vm17640_vm9, 0, %v453_v6  ;;  %v17655_v9 = vpop.f32.mrf.mxu2  ;;  %v4271_v14 = vadd.f32 %v19200_v56, %v19199_v20 }
 0x4d9   : > { %9583 = vst [vmem:[#allocation1 + $0x2] ss:$9 sm:$0xff] %v19187_v35  ;;  %v9239_v25 = vsel %vm226_vm2, %v8946_v1, %v9002_v16  ;;  %v19197_v35 = vld [vmem:[#allocation32_spill] sm:$0xff]  ;;  %v5190_v1 = vadd.f32 %v19202_v27, %v19201_v47  ;;  %v477_v47 = vld [vmem:[#allocation3 + $0x4] sm:$0x2] }
 0x4da   : > { %9585 = vst [vmem:[#allocation1 + $0x3] ss:$9 sm:$0xff] %v19188_v53  ;;  %v19205_v16 = vld [vmem:[#allocation80_spill] sm:$0xff] }
 0x4db   : > { %9587 = vst [vmem:[#allocation1 + $0x4] ss:$9 sm:$0xff] %v19189_v2  ;;  %v19198_v2 = vld [vmem:[#allocation23_spill] sm:$0xff] }
 0x4dc   : > { %9757 = vmatmul.bf16.gmra.mxu2 %v9576_v39  ;;  %9806 = vmatmul.bf16.gmra.mxu3 %v9577_v54  ;;  %9589 = vst [vmem:[#allocation1 + $0x5] ss:$9 sm:$0xff] %v9205_v8  ;;  %v19194_v39 = vld [vmem:[#allocation8_spill] sm:$0xff] }
 0x4dd   : > { %9591 = vst [vmem:[#allocation1 + $0x6] ss:$9 sm:$0xff] %v13868_v60  ;;  %v2027_v54 = vadd.f32 %v19194_v39, %v19193_v46  ;;  %v17657_v8 = vpop.f32.mrf.mxu3  ;;  %v19196_v60 = vld [vmem:[#allocation31_spill] sm:$0xff] }
 0x4de   : > { %9593 = vst [vmem:[#allocation1 + $0x7] ss:$9 sm:$0xff] %v13869_v5  ;;  %v3352_v11 = vadd.f32 %v19197_v35, %v19196_v60 }
 0x4df   : > { %434 = vst [vmem:[#allocation3] sm:$0x1] %v433_v33  ;;  %v2400_v45 = vadd.f32 %v19195_v26, %v2027_v54 }
 0x4e0   : > { %455 = vst [vmem:[#allocation3 + $0x38] sm:$0x1] %v454_v30  ;;  %v17674_v30 = vld [vmem:[%s18801_s4] ss:$0 sm:$0xff] }
 0x4e1   : > { %v2449_v15 = vadd.f32 %v19198_v2, %v2400_v45 }
 0x4e3   : > { %v3390_v48 = vadd.f32 %v3352_v11, %v2449_v15 }
 0x4e5   : > { %v9594_v10 = vld [vmem:[#allocation1] sm:$0xff]  ;;  %v9595_v43 = vld [vmem:[#allocation1 + $0x9] sm:$0xff] }
 0x4e6   : > { %9597 = vst [vmem:[#allocation1] ss:$9 sm:$0xff] %v13870_v50 }
 0x4e7   : > { %9599 = vst [vmem:[#allocation1 + $0x1] ss:$9 sm:$0xff] %v13871_v24  ;;  %v4309_v24 = vadd.f32 %v4271_v14, %v3390_v48  ;;  %v435_v14 = vld [vmem:[#allocation3 + $0x8] sm:$0x1] }
 0x4e8   : > { %9601 = vst [vmem:[#allocation1 + $0x2] ss:$9 sm:$0xff] %v9458_v49  ;;  %v19204_v49 = vld [vmem:[#allocation91_spill] sm:$0xff] }
 0x4e9   : > { %9603 = vst [vmem:[#allocation1 + $0x3] ss:$9 sm:$0xff] %v17440_v57  ;;  %v17646_v57 = vpop.f32.mrf.mxu0 }
 0x4ea   : > { %9605 = vst [vmem:[#allocation1 + $0x4] ss:$9 sm:$0xff] %v17444_v4  ;;  %v17648_v4 = vpop.f32.mrf.mxu1 }
 0x4eb   : > { %9607 = vst [vmem:[#allocation1 + $0x5] ss:$9 sm:$0xff] %v17447_v61 }
 0x4ec   : > { %9762 = vmatmul.bf16.gmra.mxu2 %v9594_v10  ;;  %9811 = vmatmul.bf16.gmra.mxu3 %v9595_v43  ;;  %9609 = vst [vmem:[#allocation1 + $0x6] ss:$9 sm:$0xff] %v9239_v25  ;;  %v6109_v10 = vadd.f32 %v19204_v49, %v19203_v38  ;;  %v5228_v43 = vadd.f32 %v5190_v1, %v4309_v24  ;;  %v19206_v25 = vld [vmem:[#allocation86_spill] sm:$0xff]  ;;  %v19211_v38 = vld [vmem:[#allocation11_spill] sm:$0xff]  ;;  %v19212_v49 = vld [vmem:[#allocation9_spill] sm:$0xff] }
 0x4ed   : > { %v7028_v12 = vadd.f32 %v19206_v25, %v19205_v16 }
 0x4ee   : > { %v6147_v46 = vadd.f32 %v6109_v10, %v5228_v43  ;;  %v2032_v10 = vadd.f32 %v19212_v49, %v19211_v38 }
 0x4f0   : > { %v7066_v60 = vadd.f32 %v7028_v12, %v6147_v46  ;;  %v14009_v46 = vld [vmem:[%s18799_s2 + $0x28] sm:$0xf] }
 0x4f1   : > { %v8814_v36 = vpop.f32.mrf.mxu0 }
 0x4f2   : > { %v8863_v21 = vpop.f32.mrf.mxu1 }
 0x4f3   : > { %v9610_v61 = vld [vmem:[#allocation1] sm:$0xff]  ;;  %v9611_v40 = vld [vmem:[#allocation1 + $0x9] sm:$0xff]  ;;  %v8864_v50 = vadd.f32 %v8863_v21, %v8814_v36 }
 0x4f4   : > { %v19207_v36 = vld [vmem:[#allocation129_spill] sm:$0xff]  ;;  %v19208_v21 = vld [vmem:[#allocation130_spill] sm:$0xff] }
 0x4f5   : > { %v7947_v39 = vadd.f32 %v19208_v21, %v19207_v36  ;;  %v9906_v36 = vld [vmem:[#allocation3] sm:$0xf] }
 0x4f7   : > { %v7985_v2 = vadd.f32 %v7947_v39, %v7066_v60 }
 0x4f9   : > { %v8816_v5 = vpop.f32.mrf.mxu0 }
 0x4fa   : > { %v8865_v53 = vpop.f32.mrf.mxu1 }
 0x4fb   : > { %v8866_v35 = vadd.f32 %v8865_v53, %v8816_v5  ;;  %v436_v5 = vsel %vm17640_vm9, 0, %v435_v14  ;;  %v478_v53 = vsel %vm17680_vm13, 0, %v477_v47  ;;  %v19222_v47 = vld [vmem:[#allocation12_spill] sm:$0xff] }
 0x4fc   : > { %9767 = vmatmul.bf16.gmra.mxu2 %v9610_v61  ;;  %9816 = vmatmul.bf16.gmra.mxu3 %v9611_v40  ;;  %v8903_v40 = vadd.f32 %v8864_v50, %v17470_v23  ;;  %437 = vst [vmem:[#allocation3 + $0x8] sm:$0x1] %v436_v5  ;;  %v19224_v5 = vld [vmem:[#allocation21_spill] sm:$0xff] }
 0x4fd   : > { %v8904_v23 = vadd.f32 %v8866_v35, %v7985_v2  ;;  %479 = vst [vmem:[#allocation3 + $0x4] sm:$0x2] %v478_v53  ;;  %v9912_v35 = vld [vmem:[#allocation3 + $0x38] sm:$0xf] }
 0x501   : > { %v8819_v54 = vpop.f32.mrf.mxu0 }
 0x502   : > { %v8868_v26 = vpop.f32.mrf.mxu1 }
 0x503   : > { %v8869_v43 = vadd.f32 %v8868_v26, %v8819_v54  ;;  %v19218_v26 = vld [vmem:[#allocation35_spill] sm:$0xff] }
 0x509   : > { %v17692_v16 = vpop.f32.mrf.mxu0 }
 0x50a   : > { %v17694_v25 = vpop.f32.mrf.mxu1 }
 0x50f   : > { %v9733_v33 = vpop.f32.mrf.mxu2  ;;  %v9782_v61 = vpop.f32.mrf.mxu3 }
 0x510   : > { %v9783_v6 = vadd.f32 %v9782_v61, %v9733_v33 }
 0x512   : > { %v9822_v45 = vadd.f32 %v9783_v6, %v8903_v40  ;;  %v19213_v40 = vld [vmem:[#allocation20_spill] sm:$0xff] }
 0x513   : > { %v2405_v6 = vadd.f32 %v19213_v40, %v2032_v10 }
 0x514   : > { %v9840_v11 = vadd.f32 %v17674_v30, %v9822_v45  ;;  %v19219_v45 = vld [vmem:[#allocation36_spill] sm:$0xff] }
 0x515   : > { %v3357_v60 = vadd.f32 %v19219_v45, %v19218_v26  ;;  %v2454_v53 = vadd.f32 %v19224_v5, %v2405_v6  ;;  %v19229_v6 = vld [vmem:[#allocation53_spill] sm:$0xff]  ;;  %v19231_v26 = vld [vmem:[#allocation40_spill] sm:$0xff] }
 0x516   : > { %v9856_v15 = vmax.f32 %v9840_v11, 0.0 }
 0x517   : > { %v9735_v20 = vpop.f32.mrf.mxu2  ;;  %v9784_v56 = vpop.f32.mrf.mxu3  ;;  %v3392_v40 = vadd.f32 %v3357_v60, %v2454_v53  ;;  %v19233_v60 = vld [vmem:[#allocation95_spill] sm:$0xff] }
 0x518   : > { %v9872_v27 = vpack.c.bf16 %v9856_v15, %v9856_v15  ;;  %v9785_v1 = vadd.f32 %v9784_v56, %v9735_v20  ;;  %v8905_v15 = vadd.f32 %v8869_v43, %v17496_v32 }
 0x51a   : > { %v9891_v50 = vshrl.u32 %v9872_v27, 16  ;;  %v9823_v24 = vadd.f32 %v9785_v1, %v8904_v23  ;;  %v9894_v33 = vshll.u32 %v9872_v27, 16  ;;  %v19223_v27 = vld [vmem:[#allocation10_spill] sm:$0xff] }
 0x51b   : > { %v2037_v1 = vadd.f32 %v19223_v27, %v19222_v47  ;;  %v19234_v47 = vld [vmem:[#allocation24_spill] sm:$0xff] }
 0x51c   : > { %v9893_v12 = vrot.slane %v9891_v50, 7  ;;  %v9841_v61 = vadd.f32 %v17674_v30, %v9823_v24  ;;  %v19225_v50 = vld [vmem:[#allocation62_spill] sm:$0xff]  ;;  %v19226_v24 = vld [vmem:[#allocation63_spill] sm:$0xff] }
 0x51d   : > { %v4276_v38 = vadd.f32 %v19226_v24, %v19225_v50  ;;  %v498_v24 = vld [vmem:[#allocation3 + $0x3c] sm:$0x2] }
 0x51e   : > { %v9896_v21 = vor.u32 %v9894_v33, %v9893_v12  ;;  %v9857_v54 = vmax.f32 %v9841_v61, 0.0  ;;  %v9897_v32 = vrot.slane %v9893_v12, 4  ;;  %v19227_v33 = vld [vmem:[#allocation26_spill] sm:$0xff] }
 0x51f   : > { %v9738_v11 = vpop.f32.mrf.mxu2  ;;  %v9787_v2 = vpop.f32.mrf.mxu3  ;;  %v2410_v61 = vadd.f32 %v19227_v33, %v2037_v1  ;;  %v19248_v1 = vld [vmem:[#allocation99_spill] sm:$0xff] }
 0x520   : > { %v9907_v23 = vsel %vm17699_vm3, %v9896_v21, %v9906_v36  ;;  %v9873_v20 = vpack.c.bf16 %v9857_v54, %v9857_v54  ;;  %v9788_v14 = vadd.f32 %v9787_v2, %v9738_v11  ;;  %v19228_v36 = vld [vmem:[#allocation52_spill] sm:$0xff]  ;;  %v19230_v54 = vld [vmem:[#allocation39_spill] sm:$0xff]  ;;  %v19232_v11 = vld [vmem:[#allocation94_spill] sm:$0xff] }
 0x521   : > { %9908 = vst [vmem:[#allocation3] sm:$0xf] %v9907_v23  ;;  %v5195_v21 = vadd.f32 %v19229_v6, %v19228_v36  ;;  %v3362_v45 = vadd.f32 %v19231_v26, %v19230_v54  ;;  %v6114_v2 = vadd.f32 %v19233_v60, %v19232_v11  ;;  %v8873_v23 = vpop.f32.mrf.mxu1  ;;  %v2459_v27 = vadd.f32 %v19234_v47, %v2410_v61  ;;  %v19239_v36 = vld [vmem:[#allocation82_spill] sm:$0xff]  ;;  %v19240_v6 = vld [vmem:[#allocation83_spill] sm:$0xff]  ;;  %v19242_v26 = vld [vmem:[#allocation72_spill] sm:$0xff] }
 0x522   : > { %v9899_v49 = vshll.u32 %v9873_v20, 16  ;;  %v9913_v10 = vsel %vm17699_vm3, %v9873_v20, %v9912_v35  ;;  %v9824_v43 = vadd.f32 %v9788_v14, %v8905_v15  ;;  %v4311_v35 = vadd.f32 %v4276_v38, %v3392_v40  ;;  %v8824_v15 = vpop.f32.mrf.mxu0  ;;  %v456_v14 = vld [vmem:[#allocation3 + $0x40] sm:$0x1]  ;;  %v19241_v54 = vld [vmem:[#allocation71_spill] sm:$0xff] }
 0x523   : > { %9914 = vst [vmem:[#allocation3 + $0x38] sm:$0xf] %v9913_v10  ;;  %v457_v50 = vsel %vm17640_vm9, 0, %v456_v14  ;;  %v19237_v38 = vld [vmem:[#allocation66_spill] sm:$0xff]  ;;  %v499_v61 = vsel %vm17680_vm13, 0, %v498_v24  ;;  %v3394_v40 = vadd.f32 %v3362_v45, %v2459_v27  ;;  %v5200_v11 = vadd.f32 %v19242_v26, %v19241_v54  ;;  %v19251_v54 = vld [vmem:[#allocation103_spill] sm:$0xff] }
 0x524   : > { %v9901_v39 = vsel %vm17714_vm5, %v9897_v32, %v9899_v49  ;;  %v9842_v12 = vadd.f32 %v17674_v30, %v9824_v43  ;;  %v19238_v32 = vld [vmem:[#allocation67_spill] sm:$0xff]  ;;  %v5230_v10 = vadd.f32 %v5195_v21, %v4311_v35  ;;  %458 = vst [vmem:[#allocation3 + $0x40] sm:$0x1] %v457_v50  ;;  %v7952_v14 = vadd.f32 %v17503_v18, %v17501_v3  ;;  %v19247_v27 = vld [vmem:[#allocation98_spill] sm:$0xff]  ;;  %v19252_v26 = vld [vmem:[#allocation104_spill] sm:$0xff] }
 0x525   : > { %9910 = vst.msk [vmem:[#allocation3 + $0x4] sm:$0x1] %vm430_vm8, %v9901_v39  ;;  %v4281_v49 = vadd.f32 %v19238_v32, %v19237_v38  ;;  %v7033_v39 = vadd.f32 %v19240_v6, %v19239_v36  ;;  %v6119_v50 = vadd.f32 %v19248_v1, %v19247_v27  ;;  %v8871_v38 = vadd.f32 %v17694_v25, %v17692_v16 }
 0x526   : > { %v9858_v20 = vmax.f32 %v9842_v12, 0.0  ;;  %500 = vst [vmem:[#allocation3 + $0x3c] sm:$0x2] %v499_v61  ;;  %v6149_v60 = vadd.f32 %v6114_v2, %v5230_v10 }
 0x527   : > { %v9740_v5 = vpop.f32.mrf.mxu2  ;;  %v9789_v53 = vpop.f32.mrf.mxu3  ;;  %v4313_v2 = vadd.f32 %v4281_v49, %v3394_v40 }
 0x528   : > { %v10155_v43 = vld [vmem:[#allocation3] sm:$0xf]  ;;  %v9874_v33 = vpack.c.bf16 %v9858_v20, %v9858_v20  ;;  %v7068_v24 = vadd.f32 %v7033_v39, %v6149_v60  ;;  %v7038_v60 = vadd.f32 %v19252_v26, %v19251_v54 }
 0x529   : > { %v10179_v12 = vrot.slane %v10155_v43, 3  ;;  %v5232_v36 = vadd.f32 %v5200_v11, %v4313_v2 }
 0x52a   : > { %9915 = vst.msk [vmem:[#allocation3 + $0x3c] sm:$0x1] %vm430_vm8, %v9874_v33  ;;  %v7987_v6 = vadd.f32 %v7952_v14, %v7068_v24  ;;  %v8826_v1 = vpop.f32.mrf.mxu0  ;;  %v8874_v14 = vadd.f32 %v8873_v23, %v8824_v15 }
 0x52b   : > { %v17762_v21 = vsel %vm226_vm2, %v10155_v43, %v10179_v12  ;;  %v10194_v45 = vsel %vm1200_vm4, %v10155_v43, %v10179_v12  ;;  %v10197_v35 = vsel %vm18907_vm6, %v10155_v43, %v10179_v12  ;;  %v10200_v20 = vsel %vm18906_vm7, %v10155_v43, %v10179_v12  ;;  %vm17809_vm7 = vmor %vm9916_vm0, %vm9917_vm15 }
 0x52c   : > { %19243 = vst [vmem:[#allocation110_spill] sm:$0xff] %v17762_v21  ;;  %v17767_v47 = vrot.slane %v10194_v45, 1  ;;  %v17769_v3 = vrot.slane %v10197_v35, 2  ;;  %v17771_v18 = vrot.slane %v10200_v20, 3  ;;  %v10352_v10 = vshrl.u32 %v17762_v21, 16  ;;  %vm17818_vm6 = vmor %vm9947_vm11, %vm9948_vm1  ;;  %v19308_v21 = vld [vmem:[#allocation89_spill] sm:$0xff] }
 0x52d   : > { %v9790_v12 = vadd.f32 %v9789_v53, %v9740_v5  ;;  %v9920_v20 = vshrl.u32 %v9874_v33, 16  ;;  %v8906_v27 = vadd.f32 %v8871_v38, %v7987_v6  ;;  %v6151_v5 = vadd.f32 %v6119_v50, %v5232_v36  ;;  %v438_v6 = vld [vmem:[#allocation3 + $0x10] sm:$0x1]  ;;  %v10285_v26 = vld [vmem:[#allocation3 + $0x4] sm:$0x3]  ;;  %vm17842_vm0 = vmor %vm9962_vm10, %vm9963_vm12 }
 0x52e   : > { %19244 = vst [vmem:[#allocation111_spill] sm:$0xff] %v17767_v47  ;;  %v10357_v49 = vshll.u32 %v17767_v47, 16  ;;  %v10360_v43 = vshrl.u32 %v17767_v47, 16  ;;  %v10365_v61 = vshll.u32 %v17769_v3, 16  ;;  %v10368_v40 = vshrl.u32 %v17769_v3, 16  ;;  %v19307_v47 = vld [vmem:[#allocation88_spill] sm:$0xff] }
 0x52f   : > { %19245 = vst [vmem:[#allocation112_spill] sm:$0xff] %v17769_v3  ;;  %v10373_v39 = vshll.u32 %v17771_v18, 16  ;;  %v9743_v16 = vpop.f32.mrf.mxu2  ;;  %v9792_v25 = vpop.f32.mrf.mxu3  ;;  %v7957_v53 = vadd.f32 %v17530_v58, %v17528_v13  ;;  %v9825_v2 = vadd.f32 %v9790_v12, %v8906_v27  ;;  %v7070_v24 = vadd.f32 %v7038_v60, %v6151_v5  ;;  %v480_v12 = vld [vmem:[#allocation3 + $0xc] sm:$0x2] }
 0x530   : > { %19246 = vst [vmem:[#allocation5_spill] sm:$0xff] %v17771_v18  ;;  %v10359_v45 = vsel %vm17777_vm14, %v10352_v10, %v10357_v49  ;;  %v10367_v35 = vsel %vm17777_vm14, %v10360_v43, %v10365_v61  ;;  %v8875_v3 = vpop.f32.mrf.mxu1  ;;  %v9922_v49 = vrot.slane %v9920_v20, 4  ;;  %v9923_v43 = vshll.u32 %v9874_v33, 16 }
 0x531   : > { %v10375_v11 = vsel %vm17777_vm14, %v10368_v40, %v10373_v39  ;;  %10592 = vst [vmem:[#allocation1] ss:$9 sm:$0xff] %v10359_v45  ;;  %v8876_v10 = vadd.f32 %v8875_v3, %v8826_v1  ;;  %v7989_v61 = vadd.f32 %v7957_v53, %v7070_v24  ;;  %v8907_v54 = vadd.f32 %v8874_v14, %v17524_v29  ;;  %v501_v1 = vld [vmem:[#allocation3 + $0x44] sm:$0x2] }
 0x532   : > { %10595 = vst [vmem:[#allocation1 + $0x1] ss:$9 sm:$0xff] %v10367_v35  ;;  %v9925_v38 = vrot.slane %v9923_v43, 5  ;;  %v9843_v40 = vadd.f32 %v17674_v30, %v9825_v2  ;;  %v9793_v39 = vadd.f32 %v9792_v25, %v9743_v16  ;;  %v439_v33 = vsel %vm17640_vm9, 0, %v438_v6  ;;  %v9941_v6 = vld [vmem:[#allocation3 + $0x8] sm:$0xf] }
 0x533   : > { %10598 = vst [vmem:[#allocation1 + $0x2] ss:$9 sm:$0xff] %v10375_v11  ;;  %v8908_v13 = vadd.f32 %v8876_v10, %v7989_v61  ;;  %v10376_v60 = vshrl.u32 %v17771_v18, 16  ;;  %v10297_v29 = vrot.slane %v10285_v26, 3  ;;  %v481_v27 = vsel %vm17680_vm13, 0, %v480_v12 }
 0x534   : > { %v9926_v58 = vor.u32 %v9925_v38, %v9922_v49  ;;  %v9859_v15 = vmax.f32 %v9843_v40, 0.0  ;;  %v9826_v23 = vadd.f32 %v9793_v39, %v8907_v54  ;;  %440 = vst [vmem:[#allocation3 + $0x10] sm:$0x1] %v439_v33  ;;  %v19253_v2 = vmov 0  ;;  %v9958_v33 = vld [vmem:[#allocation3 + $0x40] sm:$0xf] }
 0x535   : > { %v10305_v35 = vsel %vm226_vm2, %v10285_v26, %v10297_v29  ;;  %v10306_v20 = vsel %vm1200_vm4, %v10285_v26, %v10297_v29  ;;  %482 = vst [vmem:[#allocation3 + $0xc] sm:$0x2] %v481_v27  ;;  %v19254_v2 = vsel %vm17809_vm7, 4294967295, %v19253_v2  ;;  %v502_v40 = vsel %vm17680_vm13, 0, %v501_v1 }
 0x536   : > { %v9875_v16 = vpack.c.bf16 %v9859_v15, %v9859_v15  ;;  %v9844_v25 = vadd.f32 %v17674_v30, %v9826_v23  ;;  %v9927_v11 = vrot.slane %v9926_v58, 4  ;;  %19255 = vst [vmem:[#allocation109_spill] sm:$0xff] %v19254_v2  ;;  %v10308_v49 = vrot.slane %v10306_v20, 1  ;;  %v19312_v2 = vld [vmem:[#allocation81_spill] sm:$0xff] }
 0x537   : > { %v9745_v50 = vpop.f32.mrf.mxu2  ;;  %v9794_v36 = vpop.f32.mrf.mxu3  ;;  %v10380_v43 = vshll.u32 %v10305_v35, 16  ;;  %v19256_v39 = vmov 0  ;;  %v10383_v26 = vshrl.u32 %v10305_v35, 16  ;;  %503 = vst [vmem:[#allocation3 + $0x44] sm:$0x2] %v502_v40  ;;  %vm19263_vm15 = vcmask 1042434  }
 0x538   : > { %v9795_v3 = vadd.f32 %v9794_v36, %v9745_v50  ;;  %v9929_v5 = vshll.u32 %v9875_v16, 16  ;;  %v9933_v53 = vshrl.u32 %v9875_v16, 16  ;;  %v9860_v14 = vmax.f32 %v9844_v25, 0.0  ;;  %v8878_v40 = vpop.f32.mrf.mxu1  ;;  %vm19284_vm1 = vmmov %vm19263_vm15 }
 0x539   : > { %v13936_v24 = vrot.slane %v9875_v16, 9  ;;  %v19257_v39 = vsel %vm17818_vm6, 4294967295, %v19256_v39  ;;  %v10382_v36 = vsel %vm17777_vm14, %v10376_v60, %v10380_v43  ;;  %vm19266_vm11 = vcmask 1043459  }
 0x53a   : > { %v9827_v45 = vadd.f32 %v9795_v3, %v8908_v13  ;;  %v9931_v61 = vrot.slane %v9929_v5, 5  ;;  %v9935_v38 = vrot.slane %v9933_v53, 4  ;;  %v9876_v54 = vpack.c.bf16 %v9860_v14, %v9860_v14  ;;  %19258 = vst [vmem:[#allocation4_spill] sm:$0xff] %v19257_v39  ;;  %vm19286_vm10 = vmmov %vm19266_vm11 }
 0x53b   : > { %v10388_v13 = vshll.u32 %v10308_v49, 16  ;;  %10601 = vst [vmem:[#allocation1 + $0x3] ss:$9 sm:$0xff] %v10382_v36  ;;  %v483_v49 = vld [vmem:[#allocation3 + $0x14] sm:$0x2] }
 0x53c   : > { %v9845_v10 = vadd.f32 %v17674_v30, %v9827_v45  ;;  %v9932_v58 = vsel %vm17809_vm7, %v9927_v11, %v9931_v61  ;;  %v9936_v15 = vor.u32 %v9935_v38, %v9931_v61  ;;  %v9952_v23 = vrot.slane %v9876_v54, 5 }
 0x53d   : > { %v9966_v3 = vshrl.u32 %v9876_v54, 16  ;;  %v9942_v12 = vsel %vm17699_vm3, %v9932_v58, %v9941_v6  ;;  %v9969_v29 = vshll.u32 %v9876_v54, 16  ;;  %v10390_v60 = vsel %vm17777_vm14, %v10383_v26, %v10388_v13  ;;  %v9987_v6 = vld [vmem:[#allocation3 + $0x10] sm:$0xf]  ;;  %v8829_v54 = vpop.f32.mrf.mxu0  ;;  %v504_v13 = vld [vmem:[#allocation3 + $0x4c] sm:$0x2] }
 0x53e   : > { %v9861_v50 = vmax.f32 %v9845_v10, 0.0  ;;  %v9937_v25 = vrot.slane %v9936_v15, 4  ;;  %9943 = vst [vmem:[#allocation3 + $0x8] sm:$0xf] %v9942_v12  ;;  %v9953_v45 = vsel %vm17818_vm6, %v13936_v24, %v9952_v23  ;;  %v9954_v35 = vrot.slane %v9952_v23, 4 }
 0x53f   : > { %v9968_v20 = vrot.slane %v9966_v3, 5  ;;  %v9959_v27 = vsel %vm17699_vm3, %v9953_v45, %v9958_v33  ;;  %v9971_v1 = vrot.slane %v9969_v29, 6  ;;  %10604 = vst [vmem:[#allocation1 + $0x4] ss:$9 sm:$0xff] %v10390_v60  ;;  %v19259_v24 = vmov 0  ;;  %v9748_v23 = vpop.f32.mrf.mxu2  ;;  %v9797_v33 = vpop.f32.mrf.mxu3 }
 0x540   : > { %v17828_v16 = vpack.c.bf16 %v9861_v50, %v9861_v50  ;;  %9944 = vst.msk [vmem:[#allocation3 + $0xc] sm:$0x1] %vm430_vm8, %v9937_v25  ;;  %v19260_v24 = vsel %vm17842_vm0, 4294967295, %v19259_v24  ;;  %v484_v38 = vsel %vm17680_vm13, 0, %v483_v49  ;;  %v8879_v3 = vadd.f32 %v8878_v40, %v8829_v54 }
 0x541   : > { %9960 = vst [vmem:[#allocation3 + $0x40] sm:$0xf] %v9959_v27  ;;  %v9972_v53 = vor.u32 %v9971_v1, %v9968_v20  ;;  %v505_v20 = vsel %vm17680_vm13, 0, %v504_v13  ;;  %v19267_v27 = vld [vmem:[#allocation13_spill] sm:$0xff]  ;;  %v19268_v1 = vld [vmem:[#allocation14_spill] sm:$0xff]  ;;  %v19272_v13 = vld [vmem:[#allocation44_spill] sm:$0xff] }
 0x542   : > { %v9975_v11 = vshrl.u32 %v17828_v16, 16  ;;  %v9978_v5 = vshll.u32 %v17828_v16, 16  ;;  %9961 = vst.msk [vmem:[#allocation3 + $0x44] sm:$0x1] %vm430_vm8, %v9954_v35  ;;  %v8909_v54 = vadd.f32 %v8879_v3, %v17548_v42  ;;  %v19274_v3 = vld [vmem:[#allocation46_spill] sm:$0xff] }
 0x543   : > { %19261 = vst [vmem:[#allocation6_spill] sm:$0xff] %v19260_v24  ;;  %v9973_v43 = vrot.slane %v9972_v53, 4  ;;  %vm19288_vm12 = vsmask.f32 1280  ;;  %v5210_v24 = vadd.f32 %v19308_v21, %v19307_v47  ;;  %v19313_v47 = vld [vmem:[#allocation77_spill] sm:$0xff] }
 0x544   : > { %v9977_v14 = vrot.slane %v9975_v11, 5  ;;  %v9980_v10 = vrot.slane %v9978_v5, 6  ;;  %485 = vst [vmem:[#allocation3 + $0x14] sm:$0x2] %v484_v38  ;;  %v2042_v11 = vadd.f32 %v19268_v1, %v19267_v27  ;;  %v19270_v38 = vld [vmem:[#allocation29_spill] sm:$0xff]  ;;  %v19277_v27 = vld [vmem:[#allocation76_spill] sm:$0xff] }
 0x545   : > { %v10157_v50 = vld [vmem:[#allocation3 + $0x8] sm:$0xf]  ;;  %506 = vst [vmem:[#allocation3 + $0x4c] sm:$0x2] %v505_v20 }
 0x546   : > { %v9981_v61 = vor.u32 %v9980_v10, %v9977_v14  ;;  %v10181_v26 = vrot.slane %v10157_v50, 3  ;;  %v9798_v14 = vadd.f32 %v9797_v33, %v9748_v23  ;;  %v19273_v33 = vld [vmem:[#allocation30_spill] sm:$0xff]  ;;  %v19276_v20 = vld [vmem:[#allocation75_spill] sm:$0xff] }
 0x547   : > { %v5205_v1 = vadd.f32 %v19277_v27, %v19276_v20 }
 0x548   : > { %v9982_v36 = vsel %vm17842_vm0, %v9973_v43, %v9981_v61  ;;  %v9983_v58 = vrot.slane %v9981_v61, 4  ;;  %v17853_v12 = vsel %vm226_vm2, %v10157_v50, %v10181_v26  ;;  %v10209_v29 = vsel %vm1200_vm4, %v10157_v50, %v10181_v26 }
 0x549   : > { %v9988_v15 = vsel %vm17699_vm3, %v9982_v36, %v9987_v6  ;;  %19262 = vst [vmem:[#allocation116_spill] sm:$0xff] %v17853_v12  ;;  %v10212_v60 = vsel %vm19263_vm15, %v10157_v50, %v10181_v26  ;;  %v17857_v25 = vrot.slane %v10209_v29, 1  ;;  %v10215_v35 = vsel %vm19266_vm11, %v10157_v50, %v10181_v26  ;;  %v19271_v26 = vld [vmem:[#allocation43_spill] sm:$0xff] }
 0x54a   : > { %v17859_v45 = vrot.slane %v10212_v60, 2  ;;  %v17866_v5 = vrot.slane %v10215_v35, 3  ;;  %v10391_v53 = vshrl.u32 %v17853_v12, 16  ;;  %9989 = vst [vmem:[#allocation3 + $0x10] sm:$0xf] %v9988_v15  ;;  %v2415_v6 = vadd.f32 %v19270_v38, %v2042_v11  ;;  %v19275_v29 = vld [vmem:[#allocation47_spill] sm:$0xff] }
 0x54b   : > { %19264 = vst [vmem:[#allocation117_spill] sm:$0xff] %v17857_v25  ;;  %v10396_v10 = vshll.u32 %v17857_v25, 16  ;;  %v10399_v49 = vshrl.u32 %v17857_v25, 16  ;;  %v3367_v15 = vadd.f32 %v19272_v13, %v19271_v26  ;;  %v4286_v60 = vadd.f32 %v19275_v29, %v19274_v3  ;;  %v8831_v13 = vpop.f32.mrf.mxu0 }
 0x54c   : > { %19265 = vst [vmem:[#allocation113_spill] sm:$0xff] %v17859_v45  ;;  %v10404_v43 = vshll.u32 %v17859_v45, 16  ;;  %v10407_v61 = vshrl.u32 %v17859_v45, 16  ;;  %v10412_v40 = vshll.u32 %v17866_v5, 16  ;;  %v2464_v42 = vadd.f32 %v19273_v33, %v2415_v6  ;;  %v19306_v45 = vld [vmem:[#allocation70_spill] sm:$0xff] }
 0x54d   : > { %19269 = vst [vmem:[#allocation114_spill] sm:$0xff] %v17866_v5  ;;  %v10398_v50 = vsel %vm17777_vm14, %v10391_v53, %v10396_v10  ;;  %v19278_v10 = vld [vmem:[#allocation78_spill] sm:$0xff]  ;;  %vm10682_vm11 = vcmask 1044480  }
 0x54e   : > { %9990 = vst.msk [vmem:[#allocation3 + $0x14] sm:$0x1] %vm430_vm8, %v9983_v58  ;;  %v10406_v36 = vsel %vm17777_vm14, %v10399_v49, %v10404_v43  ;;  %v10414_v23 = vsel %vm17777_vm14, %v10407_v61, %v10412_v40  ;;  %v9828_v58 = vadd.f32 %v9798_v14, %v8909_v54  ;;  %v3396_v35 = vadd.f32 %v3367_v15, %v2464_v42  ;;  %v19279_v49 = vld [vmem:[#allocation79_spill] sm:$0xff]  ;;  %v19281_v54 = vld [vmem:[#allocation108_spill] sm:$0xff]  ;;  %v8880_v15 = vpop.f32.mrf.mxu1 }
 0x54f   : > { %10607 = vst [vmem:[#allocation1 + $0x5] ss:$9 sm:$0xff] %v10398_v50  ;;  %v6124_v43 = vadd.f32 %v19279_v49, %v19278_v10  ;;  %v19280_v14 = vld [vmem:[#allocation107_spill] sm:$0xff]  ;;  %v8881_v27 = vadd.f32 %v8880_v15, %v8831_v13  ;;  %v489_v15 = vld [vmem:[#allocation3 + $0x24] sm:$0x2] }
 0x550   : > { %10610 = vst [vmem:[#allocation1 + $0x6] ss:$9 sm:$0xff] %v10406_v36  ;;  %v9846_v11 = vadd.f32 %v17674_v30, %v9828_v58  ;;  %v4315_v53 = vadd.f32 %v4286_v60, %v3396_v35  ;;  %v7043_v40 = vadd.f32 %v19281_v54, %v19280_v14  ;;  %v7962_v36 = vadd.f32 %v17553_v41, %v17551_v22  ;;  %v9750_v60 = vpop.f32.mrf.mxu2  ;;  %v9799_v35 = vpop.f32.mrf.mxu3 }
 0x551   : > { %10613 = vst [vmem:[#allocation1 + $0x7] ss:$9 sm:$0xff] %v10414_v23  ;;  %v10159_v61 = vld [vmem:[#allocation3 + $0x10] sm:$0xf]  ;;  %v9800_v14 = vadd.f32 %v9799_v35, %v9750_v60 }
 0x552   : > { %v5234_v38 = vadd.f32 %v5205_v1, %v4315_v53  ;;  %v9862_v6 = vmax.f32 %v9846_v11, 0.0  ;;  %v10183_v26 = vrot.slane %v10159_v61, 3 }
 0x554   : > { %v6153_v50 = vadd.f32 %v6124_v43, %v5234_v38  ;;  %v17898_v58 = vsel %vm226_vm2, %v10159_v61, %v10183_v26  ;;  %v10224_v33 = vsel %vm1200_vm4, %v10159_v61, %v10183_v26  ;;  %v17901_v42 = vpack.c.bf16 %v9862_v6, %v9862_v6 }
 0x555   : > { %19282 = vst [vmem:[#allocation122_spill] sm:$0xff] %v17898_v58  ;;  %v17903_v3 = vrot.slane %v10224_v33, 1  ;;  %v10227_v29 = vsel %vm19284_vm1, %v10159_v61, %v10183_v26  ;;  %v10230_v41 = vsel %vm19286_vm10, %v10159_v61, %v10183_v26  ;;  %v10430_v11 = vshrl.u32 %v17898_v58, 16  ;;  %v486_v26 = vld [vmem:[#allocation3 + $0x1c] sm:$0x2] }
 0x556   : > { %v7072_v23 = vadd.f32 %v7043_v40, %v6153_v50  ;;  %v17906_v22 = vrot.slane %v10227_v29, 2  ;;  %v17909_v1 = vrot.slane %v10230_v41, 3  ;;  %v18908_v38 = vrot.slane %v17901_v42, 6  ;;  %v492_v33 = vld [vmem:[#allocation3 + $0x2c] sm:$0x2] }
 0x557   : > { %19283 = vst [vmem:[#allocation115_spill] sm:$0xff] %v17903_v3  ;;  %v10435_v53 = vshll.u32 %v17903_v3, 16  ;;  %v10438_v10 = vshrl.u32 %v17903_v3, 16  ;;  %v487_v35 = vsel %vm17680_vm13, 0, %v486_v26  ;;  %v490_v41 = vsel %vm17680_vm13, 0, %v489_v15 }
 0x558   : > { %v7991_v20 = vadd.f32 %v7962_v36, %v7072_v23  ;;  %19285 = vst [vmem:[#allocation118_spill] sm:$0xff] %v17906_v22  ;;  %v10443_v49 = vshll.u32 %v17906_v22, 16  ;;  %v10446_v43 = vshrl.u32 %v17906_v22, 16  ;;  %v10451_v61 = vshll.u32 %v17909_v1, 16  ;;  %v17920_v40 = vld [vmem:[#allocation1] sm:$0xff] }
 0x559   : > { %19287 = vst [vmem:[#allocation125_spill] sm:$0xff] %v17909_v1  ;;  %v10437_v54 = vsel %vm17777_vm14, %v10430_v11, %v10435_v53  ;;  %v441_v36 = vld [vmem:[#allocation3 + $0x18] sm:$0x1]  ;;  %v10000_v23 = vrot.slane %v18908_v38, 4  ;;  %v510_v11 = vld [vmem:[#allocation3 + $0x5c] sm:$0x2] }
 0x55a   : > { %v8910_v6 = vadd.f32 %v8881_v27, %v7991_v20  ;;  %v10445_v50 = vsel %vm17777_vm14, %v10438_v10, %v10443_v49  ;;  %10620 = vst [vmem:[#allocation1 + $0x2] ss:$9 sm:$0xff] %v10437_v54  ;;  %v10453_v13 = vsel %vm17777_vm14, %v10446_v43, %v10451_v61  ;;  %v442_v60 = vsel %vm17640_vm9, 0, %v441_v36  ;;  %v495_v20 = vld [vmem:[#allocation3 + $0x34] sm:$0x2] }
 0x55b   : > { %10622 = vst [vmem:[#allocation1 + $0x3] ss:$9 sm:$0xff] %v10445_v50  ;;  %v507_v27 = vld [vmem:[#allocation3 + $0x54] sm:$0x2]  ;;  %v493_v53 = vsel %vm17680_vm13, 0, %v492_v33  ;;  %v10011_v49 = vshrl.u32 %v17901_v42, 16 }
 0x55c   : > { %10624 = vst [vmem:[#allocation1 + $0x4] ss:$9 sm:$0xff] %v10453_v13  ;;  %v9829_v29 = vadd.f32 %v9800_v14, %v8910_v6  ;;  %v513_v10 = vld [vmem:[#allocation3 + $0x64] sm:$0x2]  ;;  %v10014_v43 = vshll.u32 %v17901_v42, 16  ;;  %v496_v14 = vsel %vm17680_vm13, 0, %v495_v20  ;;  %v17950_v20 = vpop.f32.mrf.mxu0 }
 0x55d   : > { %10007 = vst.msk [vmem:[#allocation3 + $0x4c] sm:$0x1] %vm430_vm8, %v10000_v23  ;;  %v10286_v61 = vld [vmem:[#allocation3 + $0xc] sm:$0x3]  ;;  %v508_v6 = vsel %vm17680_vm13, 0, %v507_v27  ;;  %v511_v36 = vsel %vm17680_vm13, 0, %v510_v11  ;;  %v17952_v27 = vpop.f32.mrf.mxu1 }
 0x55e   : > { %443 = vst [vmem:[#allocation3 + $0x18] sm:$0x1] %v442_v60  ;;  %v9847_v54 = vadd.f32 %v17674_v30, %v9829_v29  ;;  %v516_v50 = vld [vmem:[#allocation3 + $0x6c] sm:$0x2]  ;;  %v10287_v26 = vld [vmem:[#allocation3 + $0x14] sm:$0x3]  ;;  %v8884_v12 = vadd.f32 %v17952_v27, %v17950_v20 }
 0x55f   : > { %488 = vst [vmem:[#allocation3 + $0x1c] sm:$0x2] %v487_v35  ;;  %v514_v13 = vsel %vm17680_vm13, 0, %v513_v10  ;;  %v10013_v15 = vrot.slane %v10011_v49, 6  ;;  %v10016_v23 = vrot.slane %v10014_v43, 7  ;;  %v517_v33 = vsel %vm17680_vm13, 0, %v516_v50 }
 0x560   : > { %491 = vst [vmem:[#allocation3 + $0x24] sm:$0x2] %v490_v41  ;;  %v9863_v29 = vmax.f32 %v9847_v54, 0.0  ;;  %v10298_v60 = vrot.slane %v10286_v61, 3  ;;  %v10299_v35 = vrot.slane %v10287_v26, 3  ;;  %v10415_v41 = vshrl.u32 %v17866_v5, 16 }
 0x561   : > { %494 = vst [vmem:[#allocation3 + $0x2c] sm:$0x2] %v493_v53  ;;  %v10454_v11 = vshrl.u32 %v17909_v1, 16  ;;  %vm10008_vm13 = vsmask.f32 5392  ;;  %v19305_v5 = vld [vmem:[#allocation45_spill] sm:$0xff]  ;;  %v8911_v27 = vadd.f32 %v8884_v12, %v17569_v52 }
 0x562   : > { %497 = vst [vmem:[#allocation3 + $0x34] sm:$0x2] %v496_v14  ;;  %v17956_v53 = vpack.c.bf16 %v9863_v29, %v9863_v29  ;;  %v10311_v10 = vsel %vm226_vm2, %v10286_v61, %v10298_v60  ;;  %v10312_v48 = vsel %vm1200_vm4, %v10286_v61, %v10298_v60  ;;  %v10317_v49 = vsel %vm226_vm2, %v10287_v26, %v10299_v35  ;;  %vm17965_vm15 = vmor %vm19288_vm12, %vm10008_vm13  ;;  %v19294_v61 = vld [vmem:[#allocation19_spill] sm:$0xff]  ;;  %v14358_v52 = vld [vmem:[%s18799_s2 + $0x18] sm:$0x30] }
 0x563   : > { %509 = vst [vmem:[#allocation3 + $0x54] sm:$0x2] %v508_v6  ;;  %v10318_v43 = vsel %vm1200_vm4, %v10287_v26, %v10299_v35  ;;  %v10017_v14 = vor.u32 %v10016_v23, %v10013_v15  ;;  %v10314_v50 = vrot.slane %v10312_v48, 1  ;;  %v10458_v1 = vshll.u32 %v10317_v49, 16 }
 0x564   : > { %512 = vst [vmem:[#allocation3 + $0x5c] sm:$0x2] %v511_v36  ;;  %v10020_v54 = vshrl.u32 %v17956_v53, 16  ;;  %v10023_v6 = vshll.u32 %v17956_v53, 16  ;;  %v10320_v36 = vrot.slane %v10318_v43, 1  ;;  %v10461_v23 = vshrl.u32 %v10317_v49, 16  ;;  %v9753_v49 = vpop.f32.mrf.mxu2 }
 0x565   : > { %515 = vst [vmem:[#allocation3 + $0x64] sm:$0x2] %v514_v13  ;;  %v10419_v13 = vshll.u32 %v10311_v10, 16  ;;  %v10427_v15 = vshll.u32 %v10314_v50, 16  ;;  %v10018_v35 = vrot.slane %v10017_v14, 4  ;;  %v10460_v43 = vsel %vm17777_vm14, %v10454_v11, %v10458_v1  ;;  %v9802_v14 = vpop.f32.mrf.mxu3  ;;  %v8836_v1 = vpop.f32.mrf.mxu0 }
 0x566   : > { %518 = vst [vmem:[#allocation3 + $0x6c] sm:$0x2] %v517_v33  ;;  %v10022_v29 = vrot.slane %v10020_v54, 6  ;;  %v10025_v38 = vrot.slane %v10023_v6, 7  ;;  %v10422_v33 = vshrl.u32 %v10311_v10, 16  ;;  %v10466_v60 = vshll.u32 %v10320_v36, 16  ;;  %v8885_v11 = vpop.f32.mrf.mxu1 }
 0x567   : > { %v10421_v26 = vsel %vm17777_vm14, %v10415_v41, %v10419_v13  ;;  %v10032_v48 = vld [vmem:[#allocation3 + $0x18] sm:$0xf]  ;;  %10626 = vst [vmem:[#allocation1 + $0x5] ss:$9 sm:$0xff] %v10460_v43  ;;  %v462_v50 = vld [vmem:[#allocation3 + $0x50] sm:$0x1]  ;;  %v4296_v25 = vadd.f32 %v19306_v45, %v19305_v5  ;;  %v9803_v39 = vadd.f32 %v9802_v14, %v9753_v49 }
 0x568   : > { %v10026_v22 = vor.u32 %v10025_v38, %v10022_v29  ;;  %10616 = vst [vmem:[#allocation1] ss:$9 sm:$0xff] %v10421_v26  ;;  %v10429_v10 = vsel %vm17777_vm14, %v10422_v33, %v10427_v15  ;;  %v10468_v54 = vsel %vm17777_vm14, %v10461_v23, %v10466_v60  ;;  %v19291_v36 = vld [vmem:[#allocation15_spill] sm:$0xff]  ;;  %v19292_v13 = vld [vmem:[#allocation16_spill] sm:$0xff]  ;;  %v19293_v33 = vld [vmem:[#allocation18_spill] sm:$0xff]  ;;  %v463_v60 = vsel %vm17640_vm9, 0, %v462_v50 }
 0x569   : > { %10618 = vst [vmem:[#allocation1 + $0x1] ss:$9 sm:$0xff] %v10429_v10  ;;  %v2047_v29 = vadd.f32 %v19292_v13, %v19291_v36  ;;  %v2052_v26 = vadd.f32 %v19294_v61, %v19293_v33  ;;  %v19297_v10 = vld [vmem:[#allocation56_spill] sm:$0xff]  ;;  %v19300_v13 = vld [vmem:[#allocation61_spill] sm:$0xff]  ;;  %v9830_v12 = vadd.f32 %v9803_v39, %v8911_v27  ;;  %vm10683_vm1 = vcmask 1045504  }
 0x56a   : > { %v10027_v41 = vsel %vm17965_vm15, %v10018_v35, %v10026_v22  ;;  %v10028_v6 = vrot.slane %v10026_v22, 4  ;;  %10628 = vst [vmem:[#allocation1 + $0x6] ss:$9 sm:$0xff] %v10468_v54  ;;  %v19295_v22 = vld [vmem:[#allocation33_spill] sm:$0xff]  ;;  %v19299_v36 = vld [vmem:[#allocation60_spill] sm:$0xff]  ;;  %v14403_v14 = vmov 65535  }
 0x56b   : > { %v10033_v38 = vsel %vm17699_vm3, %v10027_v41, %v10032_v48  ;;  %v2420_v15 = vadd.f32 %v19295_v22, %v2047_v29  ;;  %v19296_v35 = vld [vmem:[#allocation37_spill] sm:$0xff]  ;;  %v3377_v29 = vadd.f32 %v19300_v13, %v19299_v36  ;;  %464 = vst [vmem:[#allocation3 + $0x50] sm:$0x1] %v463_v60  ;;  %v19301_v22 = vld [vmem:[#allocation34_spill] sm:$0xff]  ;;  %vm19317_vm10 = vcmask 1044484  }
 0x56c   : > { %10034 = vst [vmem:[#allocation3 + $0x18] sm:$0xf] %v10033_v38  ;;  %v2425_v48 = vadd.f32 %v19296_v35, %v2052_v26  ;;  %v19298_v54 = vld [vmem:[#allocation57_spill] sm:$0xff]  ;;  %v19304_v36 = vld [vmem:[#allocation38_spill] sm:$0xff]  ;;  %vm18067_vm13 = vmor %vm226_vm2, %vm19317_vm10  ;;  %vm9993_vm12 = vcmask 1041408   ;;  %vm9994_vm15 = vcmask 1045508  }
 0x56d   : > { %10035 = vst.msk [vmem:[#allocation3 + $0x1c] sm:$0x1] %vm430_vm8, %v10028_v6  ;;  %v3372_v41 = vadd.f32 %v19298_v54, %v19297_v10  ;;  %v17997_v6 = vpop.f32.mrf.mxu2  ;;  %v17999_v38 = vpop.f32.mrf.mxu3  ;;  %v2469_v35 = vadd.f32 %v19301_v22, %v2420_v15  ;;  %v19302_v10 = vld [vmem:[#allocation50_spill] sm:$0xff]  ;;  %v19303_v54 = vld [vmem:[#allocation51_spill] sm:$0xff]  ;;  %vm19323_vm10 = vcmask 1042434  }
 0x56e   : > { %v8839_v33 = vpop.f32.mrf.mxu0  ;;  %v8888_v61 = vpop.f32.mrf.mxu1  ;;  %v4291_v3 = vadd.f32 %v19303_v54, %v19302_v10  ;;  %v2474_v13 = vadd.f32 %v19304_v36, %v2425_v48  ;;  %v19309_v10 = vld [vmem:[#allocation92_spill] sm:$0xff]  ;;  %v19311_v36 = vld [vmem:[#allocation87_spill] sm:$0xff] }
 0x56f   : > { %v3398_v18 = vadd.f32 %v3372_v41, %v2469_v35  ;;  %v6129_v45 = vadd.f32 %v19312_v2, %v19311_v36  ;;  %v19314_v41 = vld [vmem:[#allocation102_spill] sm:$0xff]  ;;  %v19315_v35 = vld [vmem:[#allocation127_spill] sm:$0xff]  ;;  %v13981_v2 = vld [vmem:[%s18799_s2 + $0x18] sm:$0xf]  ;;  %v7972_v36 = vadd.f32 %v17594_v37, %v17592_v63  ;;  %v8889_v39 = vadd.f32 %v8888_v61, %v8839_v33 }
 0x570   : > { %v3400_v22 = vadd.f32 %v3377_v29, %v2474_v13  ;;  %v6134_v29 = vadd.f32 %v19314_v41, %v19313_v47  ;;  %v19316_v13 = vld [vmem:[#allocation128_spill] sm:$0xff]  ;;  %v444_v47 = vld [vmem:[#allocation3 + $0x20] sm:$0x1]  ;;  %v465_v41 = vld [vmem:[#allocation3 + $0x58] sm:$0x1]  ;;  %v9805_v61 = vadd.f32 %v17999_v38, %v17997_v6  ;;  %v13938_v6 = vrot.slane %v17956_v53, 11 }
 0x571   : > { %v4317_v48 = vadd.f32 %v4291_v3, %v3398_v18  ;;  %v8913_v63 = vadd.f32 %v8889_v39, %v17588_v62  ;;  %v445_v33 = vsel %vm17640_vm9, 0, %v444_v47 }
 0x572   : > { %v4319_v20 = vadd.f32 %v4296_v25, %v3400_v22  ;;  %446 = vst [vmem:[#allocation3 + $0x20] sm:$0x1] %v445_v33 }
 0x573   : > { %v17987_v23 = vld [vmem:[#allocation3 + $0x18] sm:$0xf]  ;;  %v5236_v21 = vadd.f32 %v5210_v24, %v4317_v48  ;;  %v7053_v24 = vadd.f32 %v17493_v51, %v17491_v44  ;;  %v9848_v44 = vadd.f32 %v17674_v30, %v9830_v12 }
 0x574   : > { %v17993_v43 = vrot.slane %v17987_v23, 3 }
 0x575   : > { %v9758_v49 = vpop.f32.mrf.mxu2  ;;  %v9807_v18 = vpop.f32.mrf.mxu3  ;;  %v6155_v25 = vadd.f32 %v6129_v45, %v5236_v21  ;;  %v9864_v37 = vmax.f32 %v9848_v44, 0.0 }
 0x576   : > { %v18006_v50 = vsel %vm226_vm2, %v17987_v23, %v17993_v43  ;;  %v10239_v26 = vsel %vm1200_vm4, %v17987_v23, %v17993_v43  ;;  %v8841_v22 = vpop.f32.mrf.mxu0 }
 0x577   : > { %v18014_v58 = vrot.slane %v10239_v26, 1  ;;  %v10469_v60 = vshrl.u32 %v18006_v50, 16  ;;  %v19310_v26 = vld [vmem:[#allocation93_spill] sm:$0xff] }
 0x578   : > { %v5215_v54 = vadd.f32 %v19310_v26, %v19309_v10  ;;  %v7048_v10 = vadd.f32 %v19316_v13, %v19315_v35  ;;  %v8890_v26 = vpop.f32.mrf.mxu1  ;;  %v459_v13 = vld [vmem:[#allocation3 + $0x48] sm:$0x1] }
 0x579   : > { %v10474_v15 = vshll.u32 %v18014_v58, 16  ;;  %v8891_v27 = vadd.f32 %v8890_v26, %v8841_v22  ;;  %v460_v12 = vsel %vm17640_vm9, 0, %v459_v13  ;;  %v19322_v22 = vrot.slane %v17901_v42, 6  ;;  %v10066_v13 = vld [vmem:[#allocation3 + $0x20] sm:$0xf] }
 0x57a   : > { %v5238_v3 = vadd.f32 %v5215_v54, %v4319_v20  ;;  %v7074_v48 = vadd.f32 %v7048_v10, %v6155_v25  ;;  %v8886_v20 = vadd.f32 %v8885_v11, %v8836_v1  ;;  %v14357_v11 = vld [vmem:[%s18799_s2 + $0x10] sm:$0xff]  ;;  %v13937_v25 = vrot.slane %v17828_v16, 10  ;;  %461 = vst [vmem:[#allocation3 + $0x48] sm:$0x1] %v460_v12 }
 0x57b   : > { %v10476_v5 = vsel %vm17777_vm14, %v10469_v60, %v10474_v15  ;;  %v10684_v60 = vsel %vm10682_vm11, 4294967295, %v14403_v14  ;;  %v7967_v15 = vadd.f32 %v17573_v59, %v17571_v28  ;;  %vm18072_vm11 = vmor %vm9993_vm12, %vm9994_vm15  ;;  %v10477_v56 = vshrl.u32 %v18014_v58, 16 }
 0x57c   : > { %10630 = vst [vmem:[#allocation1 + $0x7] ss:$9 sm:$0xff] %v10476_v5  ;;  %v6157_v54 = vadd.f32 %v6134_v29, %v5238_v3  ;;  %v13982_v5 = vor.u32 %v14358_v52, %v13981_v2  ;;  %v18048_v45 = vsel %vm10683_vm1, %v10684_v60, 0  ;;  %v466_v3 = vsel %vm17640_vm9, 0, %v465_v41 }
 0x57d   : > { %v7993_v21 = vadd.f32 %v7967_v15, %v7074_v48  ;;  %v9760_v29 = vpop.f32.mrf.mxu2  ;;  %v9809_v35 = vpop.f32.mrf.mxu3  ;;  %v9880_v2 = vpack.c.bf16 %v9864_v37, %v9864_v37  ;;  %v9808_v52 = vadd.f32 %v9807_v18, %v9758_v49  ;;  %467 = vst [vmem:[#allocation3 + $0x58] sm:$0x1] %v466_v3  ;;  %v10047_v49 = vld [vmem:[#allocation3 + $0x50] sm:$0xf]  ;;  %vm10673_vm1 = vcmask 220160  }
 0x57e   : > { %v7076_v51 = vadd.f32 %v7053_v24, %v6157_v54  ;;  %v10687_v59 = vand.u32 %v13982_v5, %v18048_v45  ;;  %v9810_v62 = vadd.f32 %v9809_v35, %v9760_v29  ;;  %v9999_v26 = vsel %vm18072_vm11, %v13937_v25, %v19322_v22  ;;  %v19325_v22 = vld [vmem:[#allocation22_spill] sm:$0xff] }
 0x57f   : > { %v8912_v10 = vadd.f32 %v8886_v20, %v7993_v21  ;;  %v10041_v38 = vrot.slane %v9880_v2, 7  ;;  %v9832_v18 = vadd.f32 %v9808_v52, %v8913_v63 }
 0x580   : > { %v7995_v28 = vadd.f32 %v7972_v36, %v7076_v51  ;;  %10695 = vmatpush.bf16.msrb.mxu0 %v10687_v59  ;;  %v18107_v3 = vpop.f32.mrf.mxu1 }
 0x581   : > { %v9831_v14 = vadd.f32 %v9805_v61, %v8912_v10  ;;  %v10042_v53 = vsel %vm18067_vm13, %v13938_v6, %v10041_v38  ;;  %v10043_v54 = vrot.slane %v10041_v38, 4  ;;  %v9850_v48 = vadd.f32 %v17674_v30, %v9832_v18  ;;  %v10004_v41 = vld [vmem:[#allocation3 + $0x48] sm:$0xf]  ;;  %v18105_v61 = vpop.f32.mrf.mxu0 }
 0x582   : > { %v8914_v1 = vadd.f32 %v8891_v27, %v7995_v28  ;;  %v10048_v5 = vsel %vm17699_vm3, %v10042_v53, %v10047_v49  ;;  %v10005_v35 = vsel %vm17699_vm3, %v9999_v26, %v10004_v41  ;;  %vm19324_vm13 = vcmask 1043459   ;;  %v19326_v26 = vld [vmem:[#allocation25_spill] sm:$0xff] }
 0x583   : > { %v9849_v16 = vadd.f32 %v17674_v30, %v9831_v14  ;;  %10049 = vst [vmem:[#allocation3 + $0x50] sm:$0xf] %v10048_v5  ;;  %v9866_v42 = vmax.f32 %v9850_v48, 0.0  ;;  %v10245_v2 = vsel %vm19324_vm13, %v17987_v23, %v17993_v43  ;;  %v2057_v53 = vadd.f32 %v19326_v26, %v19325_v22  ;;  %vm19328_vm12 = vmmov %vm19324_vm13 }
 0x584   : > { %v9833_v60 = vadd.f32 %v9810_v62, %v8914_v1  ;;  %10696 = vmatpush.bf16.msrb.mxu0 %v14357_v11  ;;  %10050 = vst.msk [vmem:[#allocation3 + $0x54] sm:$0x1] %vm430_vm8, %v10043_v54  ;;  %v10071_v27 = vld [vmem:[#allocation3 + $0x58] sm:$0xf]  ;;  %v10242_v1 = vsel %vm19323_vm10, %v17987_v23, %v17993_v43  ;;  %v18116_v12 = vrot.slane %v10245_v2, 3 }
 0x585   : > { %v9865_v20 = vmax.f32 %v9849_v16, 0.0  ;;  %v9882_v51 = vpack.c.bf16 %v9866_v42, %v9866_v42  ;;  %10006 = vst [vmem:[#allocation3 + $0x48] sm:$0xf] %v10005_v35  ;;  %v18112_v52 = vrot.slane %v10242_v1, 2  ;;  %v18123_v38 = vpop.f32.mrf.mxu2  ;;  %v18125_v49 = vpop.f32.mrf.mxu3 }
 0x586   : > { %v9851_v36 = vadd.f32 %v17674_v30, %v9833_v60  ;;  %v10288_v30 = vld [vmem:[#allocation3 + $0x1c] sm:$0x3]  ;;  %v10490_v23 = vshll.u32 %v18116_v12, 16  ;;  %v10493_v18 = vshrl.u32 %v18116_v12, 16 }
 0x587   : > { %13983 = vmatmul.msk.bf16.vlgmr.msrb.gmra.mxu0 %vm10673_vm1, %v17920_v40  ;;  %v9881_v44 = vpack.c.bf16 %v9865_v20, %v9865_v20  ;;  %v10072_v28 = vsel %vm17699_vm3, %v9882_v51, %v10071_v27  ;;  %v10060_v29 = vshll.u32 %v9882_v51, 16  ;;  %v10300_v10 = vrot.slane %v10288_v30, 3  ;;  %v10631_v27 = vld [vmem:[#allocation1] sm:$0xff] }
 0x588   : > { %v9867_v39 = vmax.f32 %v9851_v36, 0.0  ;;  %10073 = vst [vmem:[#allocation3 + $0x58] sm:$0xf] %v10072_v28  ;;  %v10482_v24 = vshll.u32 %v18112_v52, 16  ;;  %v10485_v6 = vshrl.u32 %v18112_v52, 16  ;;  %v18134_v20 = vpop.f32.mrf.mxu1 }
 0x589   : > { %v10052_v47 = vshrl.u32 %v9881_v44, 16  ;;  %v10055_v40 = vshll.u32 %v9881_v44, 16  ;;  %v10324_v62 = vsel %vm1200_vm4, %v10288_v30, %v10300_v10  ;;  %v10323_v14 = vsel %vm226_vm2, %v10288_v30, %v10300_v10  ;;  %v18132_v5 = vpop.f32.mrf.mxu0 }
 0x58a   : > { %v18090_v21 = vpack.c.bf16 %v9867_v39, %v9867_v39  ;;  %v10326_v25 = vrot.slane %v10324_v62, 1  ;;  %v10484_v54 = vsel %vm17777_vm14, %v10477_v56, %v10482_v24  ;;  %v10497_v48 = vshll.u32 %v10323_v14, 16  ;;  %v19332_v62 = vld [vmem:[#allocation54_spill] sm:$0xff] }
 0x58b   : > { %v10054_v59 = vrot.slane %v10052_v47, 7  ;;  %v10500_v36 = vshrl.u32 %v10323_v14, 16  ;;  %v10492_v47 = vsel %vm17777_vm14, %v10485_v6, %v10490_v23  ;;  %10633 = vst [vmem:[#allocation1] ss:$9 sm:$0xff] %v10484_v54  ;;  %v19333_v23 = vld [vmem:[#allocation64_spill] sm:$0xff] }
 0x58c   : > { %10074 = vst.msk [vmem:[#allocation3 + $0x5c] sm:$0x1] %vm430_vm8, %v18090_v21  ;;  %v10505_v60 = vshll.u32 %v10326_v25, 16  ;;  %v10499_v35 = vsel %vm17777_vm14, %v10493_v18, %v10497_v48  ;;  %v19337_v48 = vld [vmem:[#allocation42_spill] sm:$0xff] }
 0x58d   : > { %v10057_v63 = vor.u32 %v10055_v40, %v10054_v59  ;;  %v10058_v37 = vrot.slane %v10054_v59, 4  ;;  %v19329_v59 = vld [vmem:[#allocation27_spill] sm:$0xff]  ;;  %v19330_v40 = vld [vmem:[#allocation28_spill] sm:$0xff]  ;;  %10635 = vst [vmem:[#allocation1 + $0x1] ss:$9 sm:$0xff] %v10492_v47  ;;  %v18177_v54 = vpop.f32.mrf.mxu3  ;;  %v19340_v47 = vld [vmem:[#allocation74_spill] sm:$0xff] }
 0x58e   : > { %10637 = vst [vmem:[#allocation1 + $0x2] ss:$9 sm:$0xff] %v10499_v35 }
 0x58f   : > { %v10067_v11 = vsel %vm17699_vm3, %v10057_v63, %v10066_v13  ;;  %v10062_v33 = vsel %vm17714_vm5, %v10058_v37, %v10060_v29  ;;  %vm19327_vm5 = vmmov %vm19323_vm10  ;;  %v2062_v29 = vadd.f32 %v19330_v40, %v19329_v59  ;;  %v10507_v13 = vsel %vm17777_vm14, %v10500_v36, %v10505_v60  ;;  %v19335_v60 = vld [vmem:[#allocation68_spill] sm:$0xff] }
 0x590   : > { %10068 = vst [vmem:[#allocation3 + $0x20] sm:$0xf] %v10067_v11  ;;  %v19341_v40 = vld [vmem:[#allocation84_spill] sm:$0xff] }
 0x591   : > { %10069 = vst.msk [vmem:[#allocation3 + $0x24] sm:$0x1] %vm430_vm8, %v10062_v33  ;;  %v19331_v33 = vld [vmem:[#allocation41_spill] sm:$0xff]  ;;  %v2435_v25 = vadd.f32 %v19332_v62, %v2062_v29 }
 0x592   : > { %v2430_v2 = vadd.f32 %v19331_v33, %v2057_v53  ;;  %10639 = vst [vmem:[#allocation1 + $0x3] ss:$9 sm:$0xff] %v10507_v13  ;;  %v18175_v53 = vpop.f32.mrf.mxu2  ;;  %v19342_v29 = vld [vmem:[#allocation85_spill] sm:$0xff]  ;;  %v19343_v33 = vld [vmem:[#allocation96_spill] sm:$0xff] }
 0x593   : > { %v4306_v35 = vadd.f32 %v19342_v29, %v19341_v40  ;;  %v7063_v40 = vadd.f32 %v17648_v4, %v17646_v57 }
 0x594   : > { %v2479_v36 = vadd.f32 %v19337_v48, %v2430_v2  ;;  %v19344_v2 = vld [vmem:[#allocation97_spill] sm:$0xff] }
 0x595   : > { %v5220_v62 = vadd.f32 %v19344_v2, %v19343_v33  ;;  %v19347_v48 = vld [vmem:[#allocation105_spill] sm:$0xff]  ;;  %v9817_v33 = vpop.f32.mrf.mxu3 }
 0x597   : > { %v10163_v43 = vld [vmem:[#allocation3 + $0x20] sm:$0xf]  ;;  %13984 = vmatmul.msk.bf16.gmra.mxu0 %vm10673_vm1, %v10631_v27  ;;  %v19339_v27 = vld [vmem:[#allocation73_spill] sm:$0xff] }
 0x598   : > { %v10187_v16 = vrot.slane %v10163_v43, 3  ;;  %v10289_v6 = vld [vmem:[#allocation3 + $0x24] sm:$0x3]  ;;  %v4301_v59 = vadd.f32 %v19340_v47, %v19339_v27 }
 0x59a   : > { %v18137_v42 = vsel %vm226_vm2, %v10163_v43, %v10187_v16  ;;  %v10254_v39 = vsel %vm1200_vm4, %v10163_v43, %v10187_v16  ;;  %v10257_v44 = vsel %vm19327_vm5, %v10163_v43, %v10187_v16  ;;  %v10260_v51 = vsel %vm19328_vm12, %v10163_v43, %v10187_v16  ;;  %v19334_v43 = vld [vmem:[#allocation65_spill] sm:$0xff] }
 0x59b   : > { %v18144_v41 = vrot.slane %v10254_v39, 1  ;;  %v18146_v30 = vrot.slane %v10257_v44, 2  ;;  %v18148_v28 = vrot.slane %v10260_v51, 3  ;;  %v10508_v10 = vshrl.u32 %v18137_v42, 16  ;;  %v19336_v16 = vld [vmem:[#allocation69_spill] sm:$0xff]  ;;  %v19338_v39 = vld [vmem:[#allocation55_spill] sm:$0xff] }
 0x59c   : > { %v3382_v18 = vadd.f32 %v19334_v43, %v19333_v23  ;;  %v3387_v22 = vadd.f32 %v19336_v16, %v19335_v60  ;;  %v2484_v44 = vadd.f32 %v19338_v39, %v2435_v25  ;;  %v10301_v51 = vrot.slane %v10289_v6, 3  ;;  %v19345_v25 = vld [vmem:[#allocation100_spill] sm:$0xff] }
 0x59d   : > { %v10513_v63 = vshll.u32 %v18144_v41, 16  ;;  %v10516_v37 = vshrl.u32 %v18144_v41, 16  ;;  %v10521_v1 = vshll.u32 %v18146_v30, 16  ;;  %v10524_v11 = vshrl.u32 %v18146_v30, 16 }
 0x59e   : > { %v10529_v56 = vshll.u32 %v18148_v28, 16  ;;  %v3402_v13 = vadd.f32 %v3382_v18, %v2479_v36  ;;  %v8894_v43 = vadd.f32 %v18107_v3, %v18105_v61  ;;  %v19348_v36 = vld [vmem:[#allocation106_spill] sm:$0xff]  ;;  %v9813_v3 = vadd.f32 %v18125_v49, %v18123_v38 }
 0x59f   : > { %v10515_v24 = vsel %vm17777_vm14, %v10508_v10, %v10513_v63  ;;  %v10523_v14 = vsel %vm17777_vm14, %v10516_v37, %v10521_v1  ;;  %v3404_v10 = vadd.f32 %v3387_v22, %v2484_v44  ;;  %v8849_v63 = vpop.f32.mrf.mxu0  ;;  %v8898_v37 = vpop.f32.mrf.mxu1  ;;  %v10329_v1 = vsel %vm226_vm2, %v10289_v6, %v10301_v51  ;;  %v19349_v44 = vld [vmem:[#allocation123_spill] sm:$0xff] }
 0x5a0   : > { %v10531_v26 = vsel %vm17777_vm14, %v10524_v11, %v10529_v56  ;;  %10641 = vst [vmem:[#allocation1 + $0x4] ss:$9 sm:$0xff] %v10515_v24  ;;  %v10330_v11 = vsel %vm1200_vm4, %v10289_v6, %v10301_v51  ;;  %v19346_v56 = vld [vmem:[#allocation101_spill] sm:$0xff]  ;;  %v10536_v23 = vshll.u32 %v10329_v1, 16  ;;  %v4321_v18 = vadd.f32 %v4301_v59, %v3402_v13  ;;  %v13993_v6 = vld [vmem:[%s18799_s2 + $0x8] sm:$0xf] }
 0x5a1   : > { %10643 = vst [vmem:[#allocation1 + $0x5] ss:$9 sm:$0xff] %v10523_v14  ;;  %v5225_v24 = vadd.f32 %v19346_v56, %v19345_v25  ;;  %v10532_v14 = vshrl.u32 %v18148_v28, 16  ;;  %v4323_v60 = vadd.f32 %v4306_v35, %v3404_v10  ;;  %v10332_v16 = vrot.slane %v10330_v11, 1  ;;  %v19350_v51 = vld [vmem:[#allocation124_spill] sm:$0xff]  ;;  %v9768_v11 = vpop.f32.mrf.mxu2 }
 0x5a2   : > { %10645 = vst [vmem:[#allocation1 + $0x6] ss:$9 sm:$0xff] %v10531_v26  ;;  %v14356_v26 = vld [vmem:[%s18799_s2 + $0x8] sm:$0x30]  ;;  %v6139_v39 = vadd.f32 %v19348_v36, %v19347_v48  ;;  %v6144_v61 = vadd.f32 %v19350_v51, %v19349_v44  ;;  %v5240_v27 = vadd.f32 %v5220_v62, %v4321_v18  ;;  %v7058_v59 = vadd.f32 %v17521_v0, %v17519_v55  ;;  %v447_v0 = vld [vmem:[#allocation3 + $0x28] sm:$0x1]  ;;  %v9819_v44 = vpop.f32.mrf.mxu3 }
 0x5a3   : > { %v10538_v22 = vsel %vm17777_vm14, %v10532_v14, %v10536_v23  ;;  %v5242_v47 = vadd.f32 %v5225_v24, %v4323_v60  ;;  %v8915_v29 = vadd.f32 %v8894_v43, %v17609_v7  ;;  %v13994_v35 = vor.u32 %v14356_v26, %v13993_v6  ;;  %v468_v56 = vld [vmem:[#allocation3 + $0x60] sm:$0x1]  ;;  %v450_v48 = vld [vmem:[#allocation3 + $0x30] sm:$0x1] }
 0x5a4   : > { %10647 = vst [vmem:[#allocation1 + $0x7] ss:$9 sm:$0xff] %v10538_v22  ;;  %v10544_v13 = vshll.u32 %v10332_v16, 16  ;;  %v10076_v10 = vshrl.u32 %v18090_v21, 16  ;;  %v6159_v2 = vadd.f32 %v6139_v39, %v5240_v27  ;;  %v10079_v38 = vshll.u32 %v18090_v21, 16 }
 0x5a5   : > { %v6161_v25 = vadd.f32 %v6144_v61, %v5242_v47  ;;  %v9834_v49 = vadd.f32 %v9813_v3, %v8915_v29  ;;  %v7977_v62 = vadd.f32 %v17615_v17, %v17613_v31  ;;  %v10539_v55 = vshrl.u32 %v10329_v1, 16 }
 0x5a6   : > { %v7078_v57 = vadd.f32 %v7058_v59, %v6159_v2  ;;  %v7982_v7 = vadd.f32 %v17657_v8, %v17655_v9  ;;  %v10778_v23 = vand.u32 %v13994_v35, %v18048_v45  ;;  %v8896_v43 = vadd.f32 %v18134_v20, %v18132_v5  ;;  %v14394_v9 = vld [vmem:[%s18801_s4] ss:$0 sm:$0xff] }
 0x5a7   : > { %v7080_v4 = vadd.f32 %v7063_v40, %v6161_v25  ;;  %v8851_v24 = vpop.f32.mrf.mxu0  ;;  %v8900_v14 = vpop.f32.mrf.mxu1  ;;  %v8899_v21 = vadd.f32 %v8898_v37, %v8849_v63  ;;  %v10546_v18 = vsel %vm17777_vm14, %v10539_v55, %v10544_v13  ;;  %v10078_v31 = vrot.slane %v10076_v10, 4  ;;  %v471_v10 = vld [vmem:[#allocation3 + $0x68] sm:$0x1] }
 0x5a8   : > { %10786 = vmatpush.bf16.msrb.mxu1 %v10778_v23  ;;  %v10081_v1 = vrot.slane %v10079_v38, 5  ;;  %v448_v60 = vsel %vm17640_vm9, 0, %v447_v0  ;;  %v9852_v8 = vadd.f32 %v14394_v9, %v9834_v49  ;;  %v469_v16 = vsel %vm17640_vm9, 0, %v468_v56 }
 0x5a9   : > { %v7997_v5 = vadd.f32 %v7977_v62, %v7078_v57  ;;  %v8901_v20 = vadd.f32 %v8900_v14, %v8851_v24  ;;  %449 = vst [vmem:[#allocation3 + $0x28] sm:$0x1] %v448_v60  ;;  %v7999_v63 = vadd.f32 %v7982_v7, %v7080_v4  ;;  %v8917_v6 = vadd.f32 %v8899_v21, %v17629_v19  ;;  %v9770_v39 = vpop.f32.mrf.mxu2 }
 0x5aa   : > { %v9868_v37 = vmax.f32 %v9852_v8, 0.0  ;;  %470 = vst [vmem:[#allocation3 + $0x60] sm:$0x1] %v469_v16  ;;  %v9815_v26 = vadd.f32 %v18177_v54, %v18175_v53  ;;  %v9818_v36 = vadd.f32 %v9817_v33, %v9768_v11  ;;  %v10082_v51 = vor.u32 %v10081_v1, %v10078_v31 }
 0x5ab   : > { %v10648_v17 = vld [vmem:[#allocation1] sm:$0xff]  ;;  %v8916_v22 = vadd.f32 %v8896_v43, %v7997_v5  ;;  %v451_v3 = vsel %vm17640_vm9, 0, %v450_v48  ;;  %v8918_v27 = vadd.f32 %v8901_v20, %v7999_v63  ;;  %v9820_v40 = vadd.f32 %v9819_v44, %v9770_v39 }
 0x5ac   : > { %13985 = vmatmul.msk.bf16.gmra.mxu0 %vm10673_vm1, %v10648_v17  ;;  %10650 = vst [vmem:[#allocation1] ss:$9 sm:$0xff] %v10546_v18  ;;  %v9884_v61 = vpack.c.bf16 %v9868_v37, %v9868_v37  ;;  %v9836_v59 = vadd.f32 %v9818_v36, %v8917_v6  ;;  %v10083_v54 = vrot.slane %v10082_v51, 4  ;;  %v472_v25 = vsel %vm17640_vm9, 0, %v471_v10 }
 0x5ad   : > { %v9835_v47 = vadd.f32 %v9815_v26, %v8916_v22  ;;  %452 = vst [vmem:[#allocation3 + $0x30] sm:$0x1] %v451_v3  ;;  %v9837_v53 = vadd.f32 %v9820_v40, %v8918_v27 }
 0x5ae   : > { %v10085_v29 = vshll.u32 %v9884_v61, 16  ;;  %v10089_v35 = vshrl.u32 %v9884_v61, 16  ;;  %v9854_v13 = vadd.f32 %v14394_v9, %v9836_v59  ;;  %473 = vst [vmem:[#allocation3 + $0x68] sm:$0x1] %v472_v25  ;;  %v13939_v23 = vrot.slane %v9884_v61, 9 }
 0x5af   : > { %v9853_v19 = vadd.f32 %v14394_v9, %v9835_v47  ;;  %v9855_v62 = vadd.f32 %v14394_v9, %v9837_v53 }
 0x5b0   : > { %v10087_v11 = vrot.slane %v10085_v29, 5  ;;  %v10091_v33 = vrot.slane %v10089_v35, 4  ;;  %v10097_v2 = vld [vmem:[#allocation3 + $0x28] sm:$0xf]  ;;  %v9870_v49 = vmax.f32 %v9854_v13, 0.0 }
 0x5b1   : > { %v9869_v38 = vmax.f32 %v9853_v19, 0.0  ;;  %v9871_v7 = vmax.f32 %v9855_v62, 0.0  ;;  %v10111_v34 = vld [vmem:[#allocation3 + $0x60] sm:$0xf] }
 0x5b2   : > { %v10088_v0 = vsel %vm17809_vm7, %v10083_v54, %v10087_v11  ;;  %v10092_v56 = vor.u32 %v10091_v33, %v10087_v11  ;;  %v9886_v14 = vpack.c.bf16 %v9870_v49, %v9870_v49  ;;  %vm19354_vm7 = vmmov %vm19328_vm12 }
 0x5b3   : > { %v10098_v57 = vsel %vm17699_vm3, %v10088_v0, %v10097_v2  ;;  %v9885_v4 = vpack.c.bf16 %v9869_v38, %v9869_v38  ;;  %v9887_v21 = vpack.c.bf16 %v9871_v7, %v9871_v7 }
 0x5b4   : > { %v10093_v24 = vrot.slane %v10092_v56, 4  ;;  %10099 = vst [vmem:[#allocation3 + $0x28] sm:$0xf] %v10098_v57  ;;  %v13940_v60 = vrot.slane %v9886_v14, 10  ;;  %v10125_v27 = vshrl.u32 %v9886_v14, 16  ;;  %v10128_v33 = vshll.u32 %v9886_v14, 16 }
 0x5b5   : > { %v10105_v43 = vrot.slane %v9885_v4, 5  ;;  %v10145_v9 = vrot.slane %v9887_v21, 6  ;;  %v10151_v8 = vld [vmem:[#allocation3 + $0x68] sm:$0xf]  ;;  %v10116_v48 = vshrl.u32 %v9885_v4, 16  ;;  %v10119_v3 = vshll.u32 %v9885_v4, 16 }
 0x5b6   : > { %10100 = vst.msk [vmem:[#allocation3 + $0x2c] sm:$0x1] %vm430_vm8, %v10093_v24  ;;  %v14355_v57 = vld [vmem:[%s18799_s2] sm:$0xff]  ;;  %v10127_v4 = vrot.slane %v10125_v27, 5  ;;  %v10130_v7 = vrot.slane %v10128_v33, 6 }
 0x5b7   : > { %v10106_v31 = vsel %vm17818_vm6, %v13939_v23, %v10105_v43  ;;  %v10107_v17 = vrot.slane %v10105_v43, 4  ;;  %v10146_v16 = vsel %vm18072_vm11, %v13940_v60, %v10145_v9  ;;  %vm19353_vm6 = vmmov %vm19327_vm5  ;;  %v10118_v0 = vrot.slane %v10116_v48, 5  ;;  %10787 = vmatpush.bf16.msrb.mxu1 %v14355_v57  ;;  %v10156_v23 = vld [vmem:[#allocation3 + $0x4] sm:$0x1]  ;;  %v10158_v48 = vld [vmem:[#allocation3 + $0xc] sm:$0x1] }
 0x5b8   : > { %v10112_v1 = vsel %vm17699_vm3, %v10106_v31, %v10111_v34  ;;  %v10152_v20 = vsel %vm17699_vm3, %v10146_v16, %v10151_v8  ;;  %v10121_v56 = vrot.slane %v10119_v3, 6  ;;  %v10131_v14 = vor.u32 %v10130_v7, %v10127_v4  ;;  %v10137_v34 = vld [vmem:[#allocation3 + $0x30] sm:$0xf]  ;;  %v19357_v8 = vld [vmem:[#allocation111_spill] sm:$0xff]  ;;  %v10809_v57 = vld [vmem:[#allocation3 + $0x3c] sm:$0x1] }
 0x5b9   : > { %10113 = vst [vmem:[#allocation3 + $0x60] sm:$0xf] %v10112_v1  ;;  %v10180_v1 = vrot.slane %v10156_v23, 3  ;;  %v19358_v16 = vld [vmem:[#allocation112_spill] sm:$0xff]  ;;  %v10182_v3 = vrot.slane %v10158_v48, 3 }
 0x5ba   : > { %10114 = vst.msk [vmem:[#allocation3 + $0x64] sm:$0x1] %vm430_vm8, %v10107_v17  ;;  %v10122_v24 = vor.u32 %v10121_v56, %v10118_v0  ;;  %v19356_v17 = vld [vmem:[#allocation110_spill] sm:$0xff]  ;;  %v10133_v60 = vrot.slane %v10131_v14, 4 }
 0x5bb   : > { %v10165_v5 = vld [vmem:[#allocation3 + $0x28] sm:$0xf]  ;;  %10153 = vst [vmem:[#allocation3 + $0x68] sm:$0xf] %v10152_v20  ;;  %v19359_v20 = vld [vmem:[#allocation5_spill] sm:$0xff] }
 0x5bc   : > { %v10189_v63 = vrot.slane %v10165_v5, 3  ;;  %v10123_v43 = vrot.slane %v10122_v24, 4  ;;  %10140 = vst.msk [vmem:[#allocation3 + $0x34] sm:$0x1] %vm430_vm8, %v10133_v60  ;;  %vm19369_vm8 = vmmov %vm19354_vm7  ;;  %v14071_v60 = vld [vmem:[%s18799_s2 + $0x48] sm:$0xf] }
 0x5bd   : > { %v10290_v37 = vld [vmem:[#allocation3 + $0x2c] sm:$0x3] }
 0x5be   : > { %v18254_v22 = vsel %vm226_vm2, %v10165_v5, %v10189_v63  ;;  %v10269_v6 = vsel %vm1200_vm4, %v10165_v5, %v10189_v63  ;;  %v10272_v26 = vsel %vm19353_vm6, %v10165_v5, %v10189_v63  ;;  %v10275_v15 = vsel %vm19354_vm7, %v10165_v5, %v10189_v63  ;;  %v19360_v63 = vld [vmem:[#allocation116_spill] sm:$0xff] }
 0x5bf   : > { %v18258_v36 = vrot.slane %v10269_v6, 1  ;;  %v18260_v39 = vrot.slane %v10272_v26, 2  ;;  %v10302_v44 = vrot.slane %v10290_v37, 3  ;;  %v18263_v51 = vrot.slane %v10275_v15, 3  ;;  %v14360_v6 = vld [vmem:[%s18799_s2 + $0x28] sm:$0x30] }
 0x5c0   : > { %v10547_v61 = vshrl.u32 %v18254_v22, 16  ;;  %v10132_v31 = vsel %vm17842_vm0, %v10123_v43, %v10131_v14  ;;  %v10205_v5 = vsel %vm226_vm2, %v10156_v23, %v10180_v1  ;;  %v19362_v26 = vld [vmem:[#allocation113_spill] sm:$0xff]  ;;  %v14055_v15 = vld [vmem:[%s18799_s2 + $0x38] sm:$0xf]  ;;  %v10833_v14 = vrot.slane %v10809_v57, 3  ;;  %v14361_v1 = vld [vmem:[%s18799_s2 + $0x30] sm:$0xff] }
 0x5c1   : > { %v10335_v47 = vsel %vm226_vm2, %v10290_v37, %v10302_v44  ;;  %v10336_v59 = vsel %vm1200_vm4, %v10290_v37, %v10302_v44  ;;  %v10552_v40 = vshll.u32 %v18258_v36, 16  ;;  %v10555_v29 = vshrl.u32 %v18258_v36, 16  ;;  %v19361_v37 = vld [vmem:[#allocation117_spill] sm:$0xff]  ;;  %v14362_v44 = vld [vmem:[%s18799_s2 + $0x38] sm:$0x30]  ;;  %vm19371_vm0 = vmmov %vm19354_vm7 }
 0x5c2   : > { %v10338_v35 = vrot.slane %v10336_v59, 1  ;;  %v10560_v19 = vshll.u32 %v18260_v39, 16  ;;  %v10563_v13 = vshrl.u32 %v18260_v39, 16  ;;  %v10568_v10 = vshll.u32 %v18263_v51, 16  ;;  %vm19373_vm11 = vmmov %vm19371_vm0 }
 0x5c3   : > { %v10554_v53 = vsel %vm17777_vm14, %v10547_v61, %v10552_v40  ;;  %v10571_v54 = vshrl.u32 %v18263_v51, 16  ;;  %v10575_v11 = vshll.u32 %v10335_v47, 16  ;;  %v10578_v38 = vshrl.u32 %v10335_v47, 16  ;;  %v10160_v47 = vld [vmem:[#allocation3 + $0x14] sm:$0x1]  ;;  %vm19375_vm13 = vmmov %vm19371_vm0 }
 0x5c4   : > { %v10562_v2 = vsel %vm17777_vm14, %v10555_v29, %v10560_v19  ;;  %v10570_v25 = vsel %vm17777_vm14, %v10563_v13, %v10568_v10  ;;  %v10583_v49 = vshll.u32 %v10338_v35, 16  ;;  %10652 = vst [vmem:[#allocation1 + $0x1] ss:$9 sm:$0xff] %v10554_v53  ;;  %v10138_v9 = vsel %vm17699_vm3, %v10132_v31, %v10137_v34  ;;  %v19363_v19 = vld [vmem:[#allocation114_spill] sm:$0xff]  ;;  %v14359_v10 = vld [vmem:[%s18799_s2 + $0x20] sm:$0xff]  ;;  %vm19368_vm3 = vmmov %vm19327_vm5 }
 0x5c5   : > { %v10577_v62 = vsel %vm17777_vm14, %v10571_v54, %v10575_v11  ;;  %10654 = vst [vmem:[#allocation1 + $0x2] ss:$9 sm:$0xff] %v10562_v2  ;;  %v14010_v61 = vor.u32 %v14360_v6, %v14009_v46  ;;  %v14056_v27 = vor.u32 %v14362_v44, %v14055_v15  ;;  %v10220_v29 = vsel %vm226_vm2, %v10158_v48, %v10182_v3  ;;  %v19364_v53 = vld [vmem:[#allocation122_spill] sm:$0xff]  ;;  %v19365_v54 = vld [vmem:[#allocation115_spill] sm:$0xff]  ;;  %v19367_v2 = vld [vmem:[#allocation125_spill] sm:$0xff] }
 0x5c6   : > { %v10585_v55 = vsel %vm17777_vm14, %v10578_v38, %v10583_v49  ;;  %10656 = vst [vmem:[#allocation1 + $0x3] ss:$9 sm:$0xff] %v10570_v25  ;;  %v10184_v13 = vrot.slane %v10160_v47, 3  ;;  %v19366_v11 = vld [vmem:[#allocation118_spill] sm:$0xff]  ;;  %v10162_v25 = vld [vmem:[#allocation3 + $0x1c] sm:$0x1]  ;;  %vm19370_vm9 = vmmov %vm19368_vm3 }
 0x5c7   : > { %10658 = vst [vmem:[#allocation1 + $0x4] ss:$9 sm:$0xff] %v10577_v62  ;;  %v11018_v59 = vand.u32 %v14010_v61, %v18048_v45  ;;  %v11529_v35 = vand.u32 %v14056_v27, %v18048_v45  ;;  %v10186_v38 = vrot.slane %v10162_v25, 3  ;;  %v10814_v15 = vld [vmem:[#allocation3 + $0x50] sm:$0xf]  ;;  %vm19372_vm15 = vmmov %vm19368_vm3 }
 0x5c8   : > { %10660 = vst [vmem:[#allocation1 + $0x5] ss:$9 sm:$0xff] %v10585_v55  ;;  %v10235_v33 = vsel %vm226_vm2, %v10160_v47, %v10184_v13  ;;  %vm19374_vm10 = vmmov %vm19368_vm3 }
 0x5c9   : > { %10139 = vst [vmem:[#allocation3 + $0x30] sm:$0xf] %v10138_v9  ;;  %11026 = vmatpush.bf16.msrb.mxu2 %v11018_v59  ;;  %11537 = vmatpush.bf16.msrb.mxu3 %v11529_v35  ;;  %v10250_v62 = vsel %vm226_vm2, %v10162_v25, %v10186_v38  ;;  %v10812_v9 = vld [vmem:[#allocation3 + $0x48] sm:$0xf]  ;;  %vm19376_vm5 = vmmov %vm19368_vm3 }
 0x5ca   : > { %vm19377_vm12 = vmmov %vm19371_vm0 }
 0x5cb   : > { %vm19378_vm6 = vmmov %vm19368_vm3 }
 0x5cc   : > { %vm19379_vm7 = vmmov %vm19371_vm0 }
 0x5cd   : > { %11027 = vmatpush.bf16.msrb.mxu2 %v14359_v10  ;;  %11538 = vmatpush.bf16.msrb.mxu3 %v14361_v1 }
 0x5cf   : > { %v10661_v21 = vld [vmem:[#allocation1] sm:$0xff] }
 0x5d0   : > { %13986 = vmatmul.msk.bf16.gmra.mxu0 %vm10673_vm1, %v10661_v21  ;;  %10717 = vst [vmem:[#allocation1] ss:$9 sm:$0xff] %v19356_v17  ;;  %v10858_v21 = vsel %vm226_vm2, %v10809_v57, %v10833_v14  ;;  %v11055_v57 = vld [vmem:[#allocation3 + $0x38] sm:$0xf] }
 0x5d1   : > { %10719 = vst [vmem:[#allocation1 + $0x1] ss:$9 sm:$0xff] %v19357_v8  ;;  %v14364_v8 = vld [vmem:[%s18799_s2 + $0x48] sm:$0x30] }
 0x5d2   : > { %10721 = vst [vmem:[#allocation1 + $0x2] ss:$9 sm:$0xff] %v19358_v16  ;;  %v14072_v16 = vor.u32 %v14364_v8, %v14071_v60 }
 0x5d3   : > { %10723 = vst [vmem:[#allocation1 + $0x3] ss:$9 sm:$0xff] %v19359_v20  ;;  %v10836_v20 = vrot.slane %v10812_v9, 3 }
 0x5d4   : > { %10725 = vst [vmem:[#allocation1 + $0x4] ss:$9 sm:$0xff] %v10205_v5  ;;  %v10811_v5 = vld [vmem:[#allocation3 + $0x44] sm:$0x1] }
 0x5d5   : > { %10727 = vst [vmem:[#allocation1 + $0x5] ss:$9 sm:$0xff] %v19360_v63  ;;  %v11776_v63 = vand.u32 %v14072_v16, %v18048_v45  ;;  %v10835_v46 = vrot.slane %v10811_v5, 3  ;;  %v10877_v48 = vsel %vm1200_vm4, %v10812_v9, %v10836_v20  ;;  %v10880_v44 = vsel %vm19372_vm15, %v10812_v9, %v10836_v20  ;;  %vm19382_vm15 = vmmov %vm19368_vm3 }
 0x5d6   : > { %10729 = vst [vmem:[#allocation1 + $0x6] ss:$9 sm:$0xff] %v19361_v37  ;;  %v10883_v27 = vsel %vm19373_vm11, %v10812_v9, %v10836_v20  ;;  %v10876_v59 = vsel %vm226_vm2, %v10812_v9, %v10836_v20  ;;  %v10882_v35 = vrot.slane %v10880_v44, 2  ;;  %vm19383_vm11 = vmmov %vm19371_vm0 }
 0x5d7   : > { %10731 = vst [vmem:[#allocation1 + $0x7] ss:$9 sm:$0xff] %v19362_v26  ;;  %11784 = vmatpush.bf16.msra.mxu0 %v11776_v63  ;;  %v10813_v26 = vld [vmem:[#allocation3 + $0x4c] sm:$0x1]  ;;  %v10873_v3 = vsel %vm226_vm2, %v10811_v5, %v10835_v46  ;;  %v14366_v46 = vld [vmem:[%s18799_s2 + $0x58] sm:$0x30] }
 0x5d8   : > { %v10837_v47 = vrot.slane %v10813_v26, 3 }
 0x5da   : > { %v10888_v13 = vsel %vm226_vm2, %v10813_v26, %v10837_v47 }
 0x5de   : > { %v10732_v40 = vld [vmem:[#allocation1] sm:$0xff] }
 0x5df   : > { %13995 = vmatmul.msk.bf16.vlgmr.msrb.gmra.mxu1 %vm10673_vm1, %v10732_v40  ;;  %10733 = vst [vmem:[#allocation1] ss:$9 sm:$0xff] %v19363_v19  ;;  %v10879_v40 = vrot.slane %v10877_v48, 1  ;;  %v10885_v19 = vrot.slane %v10883_v27, 3 }
 0x5e0   : > { %10734 = vst [vmem:[#allocation1 + $0x1] ss:$9 sm:$0xff] %v10220_v29  ;;  %v10838_v29 = vrot.slane %v10814_v15, 3 }
 0x5e1   : > { %10735 = vst [vmem:[#allocation1 + $0x2] ss:$9 sm:$0xff] %v19364_v53  ;;  %v10816_v53 = vld [vmem:[#allocation3 + $0x58] sm:$0xf] }
 0x5e2   : > { %10736 = vst [vmem:[#allocation1 + $0x3] ss:$9 sm:$0xff] %v19365_v54  ;;  %v10891_v10 = vsel %vm226_vm2, %v10814_v15, %v10838_v29  ;;  %v10815_v54 = vld [vmem:[#allocation3 + $0x54] sm:$0x1]  ;;  %v10898_v25 = vsel %vm19375_vm13, %v10814_v15, %v10838_v29  ;;  %vm19385_vm13 = vmmov %vm19371_vm0 }
 0x5e3   : > { %10737 = vst [vmem:[#allocation1 + $0x4] ss:$9 sm:$0xff] %v19366_v11  ;;  %v10892_v11 = vsel %vm1200_vm4, %v10814_v15, %v10838_v29  ;;  %v10839_v38 = vrot.slane %v10815_v54, 3 }
 0x5e4   : > { %10738 = vst [vmem:[#allocation1 + $0x5] ss:$9 sm:$0xff] %v19367_v2  ;;  %v10840_v2 = vrot.slane %v10816_v53, 3 }
 0x5e5   : > { %10739 = vst [vmem:[#allocation1 + $0x6] ss:$9 sm:$0xff] %v10235_v33  ;;  %v10895_v33 = vsel %vm19374_vm10, %v10814_v15, %v10838_v29  ;;  %vm19384_vm10 = vmmov %vm19368_vm3 }
 0x5e6   : > { %10740 = vst [vmem:[#allocation1 + $0x7] ss:$9 sm:$0xff] %v18006_v50  ;;  %v10164_v50 = vld [vmem:[#allocation3 + $0x24] sm:$0x1] }
 0x5e7   : > { %v10188_v55 = vrot.slane %v10164_v50, 3 }
 0x5e9   : > { %v10265_v0 = vsel %vm226_vm2, %v10164_v50, %v10188_v55  ;;  %v10900_v55 = vrot.slane %v10898_v25, 3 }
 0x5ed   : > { %v10741_v49 = vld [vmem:[#allocation1] sm:$0xff] }
 0x5ee   : > { %10742 = vst [vmem:[#allocation1] ss:$9 sm:$0xff] %v18014_v58  ;;  %v10166_v58 = vld [vmem:[#allocation3 + $0x2c] sm:$0x1] }
 0x5ef   : > { %13996 = vmatmul.msk.bf16.gmra.mxu1 %vm10673_vm1, %v10741_v49  ;;  %10743 = vst [vmem:[#allocation1 + $0x1] ss:$9 sm:$0xff] %v18112_v52  ;;  %v10190_v52 = vrot.slane %v10166_v58, 3  ;;  %v10894_v49 = vrot.slane %v10892_v11, 1 }
 0x5f0   : > { %10744 = vst [vmem:[#allocation1 + $0x2] ss:$9 sm:$0xff] %v18116_v12  ;;  %v10808_v12 = vld [vmem:[#allocation3 + $0x38] sm:$0xf] }
 0x5f1   : > { %10745 = vst [vmem:[#allocation1 + $0x3] ss:$9 sm:$0xff] %v10250_v62  ;;  %v10897_v62 = vrot.slane %v10895_v33, 2 }
 0x5f2   : > { %10746 = vst [vmem:[#allocation1 + $0x4] ss:$9 sm:$0xff] %v18137_v42  ;;  %v10280_v42 = vsel %vm226_vm2, %v10166_v58, %v10190_v52  ;;  %v10907_v58 = vsel %vm1200_vm4, %v10816_v53, %v10840_v2  ;;  %v10913_v52 = vsel %vm19377_vm12, %v10816_v53, %v10840_v2  ;;  %vm19387_vm12 = vmmov %vm19371_vm0 }
 0x5f3   : > { %10747 = vst [vmem:[#allocation1 + $0x5] ss:$9 sm:$0xff] %v18144_v41  ;;  %v10832_v41 = vrot.slane %v10808_v12, 3 }
 0x5f4   : > { %10748 = vst [vmem:[#allocation1 + $0x6] ss:$9 sm:$0xff] %v18146_v30  ;;  %v10810_v30 = vld [vmem:[#allocation3 + $0x40] sm:$0xf] }
 0x5f5   : > { %10749 = vst [vmem:[#allocation1 + $0x7] ss:$9 sm:$0xff] %v18148_v28  ;;  %v10847_v28 = vsel %vm1200_vm4, %v10808_v12, %v10832_v41  ;;  %v10850_v4 = vsel %vm19368_vm3, %v10808_v12, %v10832_v41  ;;  %v10853_v7 = vsel %vm19369_vm8, %v10808_v12, %v10832_v41  ;;  %vm19380_vm8 = vmmov %vm19371_vm0 }
 0x5f6   : > { %v10849_v24 = vrot.slane %v10847_v28, 1  ;;  %v10852_v23 = vrot.slane %v10850_v4, 2  ;;  %v10855_v43 = vrot.slane %v10853_v7, 3  ;;  %v10818_v28 = vld [vmem:[#allocation3 + $0x60] sm:$0xf]  ;;  %v11079_v7 = vrot.slane %v11055_v57, 3 }
 0x5f7   : > { %v10817_v4 = vld [vmem:[#allocation3 + $0x5c] sm:$0x1] }
 0x5f8   : > { %v11097_v60 = vsel %vm19368_vm3, %v11055_v57, %v11079_v7  ;;  %v11100_v5 = vsel %vm19380_vm8, %v11055_v57, %v11079_v7  ;;  %v11093_v27 = vsel %vm226_vm2, %v11055_v57, %v11079_v7  ;;  %vm19390_vm8 = vmmov %vm19371_vm0 }
 0x5f9   : > { %v11102_v15 = vrot.slane %v11100_v5, 3  ;;  %v11199_v11 = vshrl.u32 %v11093_v27, 16 }
 0x5fc   : > { %v10750_v56 = vld [vmem:[#allocation1] sm:$0xff] }
 0x5fd   : > { %10751 = vst [vmem:[#allocation1] ss:$9 sm:$0xff] %v10265_v0  ;;  %v10910_v0 = vsel %vm19376_vm5, %v10816_v53, %v10840_v2  ;;  %vm19386_vm5 = vmmov %vm19368_vm3 }
 0x5fe   : > { %10752 = vst [vmem:[#allocation1 + $0x1] ss:$9 sm:$0xff] %v18254_v22  ;;  %v10834_v22 = vrot.slane %v10810_v30, 3 }
 0x5ff   : > { %10753 = vst [vmem:[#allocation1 + $0x2] ss:$9 sm:$0xff] %v18258_v36  ;;  %13997 = vmatmul.msk.bf16.gmra.mxu1 %vm10673_vm1, %v10750_v56  ;;  %v10846_v36 = vsel %vm226_vm2, %v10808_v12, %v10832_v41  ;;  %v10903_v56 = vsel %vm226_vm2, %v10815_v54, %v10839_v38  ;;  %v10906_v12 = vsel %vm226_vm2, %v10816_v53, %v10840_v2  ;;  %v10912_v41 = vrot.slane %v10910_v0, 2  ;;  %v11058_v2 = vld [vmem:[#allocation3 + $0x44] sm:$0x3] }
 0x600   : > { %10754 = vst [vmem:[#allocation1 + $0x3] ss:$9 sm:$0xff] %v18260_v39  ;;  %v10865_v34 = vsel %vm19370_vm9, %v10810_v30, %v10834_v22  ;;  %v10861_v18 = vsel %vm226_vm2, %v10810_v30, %v10834_v22  ;;  %v10868_v37 = vsel %vm19371_vm0, %v10810_v30, %v10834_v22  ;;  %vm19381_vm9 = vmmov %vm19368_vm3  ;;  %v11220_v53 = vshll.u32 %v11102_v15, 16 }
 0x601   : > { %10755 = vst [vmem:[#allocation1 + $0x4] ss:$9 sm:$0xff] %v18263_v51  ;;  %v10862_v51 = vsel %vm1200_vm4, %v10810_v30, %v10834_v22  ;;  %v10867_v17 = vrot.slane %v10865_v34, 2  ;;  %v10870_v6 = vrot.slane %v10868_v37, 3  ;;  %v10915_v30 = vrot.slane %v10913_v52, 3 }
 0x602   : > { %10756 = vst [vmem:[#allocation1 + $0x5] ss:$9 sm:$0xff] %v10280_v42  ;;  %v10864_v31 = vrot.slane %v10862_v51, 1  ;;  %v10909_v42 = vrot.slane %v10907_v58, 1  ;;  %v10842_v22 = vrot.slane %v10818_v28, 3 }
 0x603   : > { %v11057_v51 = vld [vmem:[#allocation3 + $0x40] sm:$0xf]  ;;  %v14117_v37 = vld [vmem:[%s18799_s2 + $0x58] sm:$0xf] }
 0x604   : > { %v10922_v14 = vsel %vm1200_vm4, %v10818_v28, %v10842_v22  ;;  %v11081_v20 = vrot.slane %v11057_v51, 3  ;;  %v14118_v48 = vor.u32 %v14366_v46, %v14117_v37 }
 0x605   : > { %v10924_v1 = vrot.slane %v10922_v14, 1  ;;  %v11061_v14 = vld [vmem:[#allocation3 + $0x50] sm:$0xf] }
 0x606   : > { %v11111_v33 = vsel %vm226_vm2, %v11057_v51, %v11081_v20 }
 0x607   : > { %v11238_v52 = vshrl.u32 %v11111_v33, 16 }
 0x609   : > { %v10757_v39 = vld [vmem:[#allocation1] sm:$0xff] }
 0x60a   : > { %10939 = vst [vmem:[#allocation1] ss:$9 sm:$0xff] %v10846_v36  ;;  %v10841_v36 = vrot.slane %v10817_v4, 3 }
 0x60b   : > { %10942 = vst [vmem:[#allocation1 + $0x1] ss:$9 sm:$0xff] %v10849_v24  ;;  %v10819_v24 = vld [vmem:[#allocation3 + $0x64] sm:$0x1] }
 0x60c   : > { %10945 = vst [vmem:[#allocation1 + $0x2] ss:$9 sm:$0xff] %v10852_v23  ;;  %v10925_v23 = vsel %vm19378_vm6, %v10818_v28, %v10842_v22  ;;  %v10918_v34 = vsel %vm226_vm2, %v10817_v4, %v10841_v36  ;;  %vm19388_vm6 = vmmov %vm19368_vm3 }
 0x60d   : > { %10948 = vst [vmem:[#allocation1 + $0x3] ss:$9 sm:$0xff] %v10855_v43  ;;  %v11094_v43 = vsel %vm1200_vm4, %v11055_v57, %v11079_v7  ;;  %v10927_v8 = vrot.slane %v10925_v23, 2  ;;  %v11060_v7 = vld [vmem:[#allocation3 + $0x4c] sm:$0x3] }
 0x60e   : > { %10950 = vst [vmem:[#allocation1 + $0x4] ss:$9 sm:$0xff] %v10858_v21  ;;  %v10928_v21 = vsel %vm19379_vm7, %v10818_v28, %v10842_v22  ;;  %v11096_v16 = vrot.slane %v11094_v43, 1  ;;  %vm19389_vm7 = vmmov %vm19371_vm0 }
 0x60f   : > { %10952 = vst [vmem:[#allocation1 + $0x5] ss:$9 sm:$0xff] %v10861_v18  ;;  %13998 = vmatmul.msk.bf16.gmra.mxu1 %vm10673_vm1, %v10757_v39  ;;  %v11056_v39 = vld [vmem:[#allocation3 + $0x3c] sm:$0x3]  ;;  %v10930_v63 = vrot.slane %v10928_v21, 3 }
 0x610   : > { %10955 = vst [vmem:[#allocation1 + $0x6] ss:$9 sm:$0xff] %v10864_v31  ;;  %v10843_v31 = vrot.slane %v10819_v24, 3  ;;  %v11080_v9 = vrot.slane %v11056_v39, 3  ;;  %v11204_v47 = vshll.u32 %v11096_v16, 16  ;;  %v14363_v21 = vld [vmem:[%s18799_s2 + $0x40] sm:$0xff] }
 0x611   : > { %10958 = vst [vmem:[#allocation1 + $0x7] ss:$9 sm:$0xff] %v10867_v17  ;;  %v10921_v17 = vsel %vm226_vm2, %v10818_v28, %v10842_v22  ;;  %11785 = vmatpush.bf16.msra.mxu0 %v14363_v21 }
 0x612   : > { %v10933_v26 = vsel %vm226_vm2, %v10819_v24, %v10843_v31  ;;  %v11106_v44 = vsel %vm1200_vm4, %v11056_v39, %v11080_v9  ;;  %v11085_v31 = vrot.slane %v11061_v14, 3 }
 0x614   : > { %v11148_v37 = vsel %vm1200_vm4, %v11061_v14, %v11085_v31 }
 0x615   : > { %v11150_v27 = vrot.slane %v11148_v37, 1 }
 0x618   : > { %v10959_v61 = vld [vmem:[#allocation1] sm:$0xff] }
 0x619   : > { %14011 = vmatmul.msk.bf16.vlgmr.msrb.gmra.mxu2 %vm10673_vm1, %v10959_v61  ;;  %10961 = vst [vmem:[#allocation1] ss:$9 sm:$0xff] %v10870_v6  ;;  %v11099_v6 = vrot.slane %v11097_v60, 2  ;;  %v11112_v61 = vsel %vm1200_vm4, %v11057_v51, %v11081_v20 }
 0x61a   : > { %10962 = vst [vmem:[#allocation1 + $0x1] ss:$9 sm:$0xff] %v10873_v3  ;;  %v12287_v3 = vand.u32 %v14118_v48, %v18048_v45  ;;  %v11114_v54 = vrot.slane %v11112_v61, 1 }
 0x61b   : > { %10963 = vst [vmem:[#allocation1 + $0x2] ss:$9 sm:$0xff] %v10876_v59  ;;  %v11207_v59 = vshrl.u32 %v11096_v16, 16  ;;  %v11212_v29 = vshll.u32 %v11099_v6, 16 }
 0x61c   : > { %10965 = vst [vmem:[#allocation1 + $0x3] ss:$9 sm:$0xff] %v10879_v40  ;;  %v11115_v40 = vsel %vm19381_vm9, %v11057_v51, %v11081_v20  ;;  %12295 = vmatpush.bf16.msra.mxu1 %v12287_v3  ;;  %vm19391_vm9 = vmmov %vm19368_vm3 }
 0x61d   : > { %10967 = vst [vmem:[#allocation1 + $0x4] ss:$9 sm:$0xff] %v10882_v35  ;;  %v11118_v35 = vsel %vm19371_vm0, %v11057_v51, %v11081_v20  ;;  %v11117_v45 = vrot.slane %v11115_v40, 2  ;;  %v11084_v51 = vrot.slane %v11060_v7, 3 }
 0x61e   : > { %10969 = vst [vmem:[#allocation1 + $0x5] ss:$9 sm:$0xff] %v10885_v19  ;;  %v11105_v19 = vsel %vm226_vm2, %v11056_v39, %v11080_v9  ;;  %v11120_v25 = vrot.slane %v11118_v35, 3  ;;  %v18428_v9 = vpop.f32.mrf.mxu0 }
 0x61f   : > { %10970 = vst [vmem:[#allocation1 + $0x6] ss:$9 sm:$0xff] %v10888_v13  ;;  %v11108_v13 = vrot.slane %v11106_v44, 1  ;;  %v11227_v38 = vshll.u32 %v11105_v19, 16  ;;  %v11230_v28 = vshrl.u32 %v11105_v19, 16  ;;  %v11254_v4 = vshrl.u32 %v11117_v45, 16 }
 0x620   : > { %10971 = vst [vmem:[#allocation1 + $0x7] ss:$9 sm:$0xff] %v10891_v10  ;;  %v11215_v10 = vshrl.u32 %v11099_v6, 16  ;;  %v11259_v22 = vshll.u32 %v11120_v25, 16  ;;  %v11142_v5 = vsel %vm1200_vm4, %v11060_v7, %v11084_v51  ;;  %v11141_v48 = vsel %vm226_vm2, %v11060_v7, %v11084_v51  ;;  %v11064_v7 = vld [vmem:[#allocation3 + $0x5c] sm:$0x3] }
 0x621   : > { %v11235_v58 = vshll.u32 %v11108_v13, 16  ;;  %v11305_v33 = vshll.u32 %v11141_v48, 16 }
 0x623   : > { %v11237_v24 = vsel %vm17777_vm14, %v11230_v28, %v11235_v58  ;;  %v11308_v58 = vshrl.u32 %v11141_v48, 16 }
 0x627   : > { %v10972_v50 = vld [vmem:[#allocation1] sm:$0xff] }
 0x628   : > { %10974 = vst [vmem:[#allocation1] ss:$9 sm:$0xff] %v10894_v49  ;;  %v11059_v49 = vld [vmem:[#allocation3 + $0x48] sm:$0xf] }
 0x629   : > { %14012 = vmatmul.msk.bf16.gmra.mxu2 %vm10673_vm1, %v10972_v50  ;;  %10976 = vst [vmem:[#allocation1 + $0x1] ss:$9 sm:$0xff] %v10897_v62  ;;  %v11206_v62 = vsel %vm17777_vm14, %v11199_v11, %v11204_v47  ;;  %v11214_v50 = vsel %vm17777_vm14, %v11207_v59, %v11212_v29  ;;  %v11083_v57 = vrot.slane %v11059_v49, 3  ;;  %v11062_v29 = vld [vmem:[#allocation3 + $0x54] sm:$0x3] }
 0x62a   : > { %10978 = vst [vmem:[#allocation1 + $0x2] ss:$9 sm:$0xff] %v10900_v55  ;;  %v11223_v55 = vshrl.u32 %v11102_v15, 16  ;;  %v11144_v15 = vrot.slane %v11142_v5, 1 }
 0x62b   : > { %10979 = vst [vmem:[#allocation1 + $0x3] ss:$9 sm:$0xff] %v10903_v56  ;;  %v11222_v56 = vsel %vm17777_vm14, %v11215_v10, %v11220_v53  ;;  %v11136_v60 = vsel %vm19383_vm11, %v11059_v49, %v11083_v57  ;;  %vm19393_vm11 = vmmov %vm19371_vm0 }
 0x62c   : > { %10980 = vst [vmem:[#allocation1 + $0x4] ss:$9 sm:$0xff] %v10906_v12  ;;  %v11243_v12 = vshll.u32 %v11114_v54, 16  ;;  %v11229_v36 = vsel %vm17777_vm14, %v11223_v55, %v11227_v38  ;;  %v11138_v46 = vrot.slane %v11136_v60, 3  ;;  %v11086_v38 = vrot.slane %v11062_v29, 3  ;;  %v18446_v55 = vpop.f32.mrf.mxu0 }
 0x62d   : > { %10982 = vst [vmem:[#allocation1 + $0x5] ss:$9 sm:$0xff] %v10909_v42  ;;  %v11082_v42 = vrot.slane %v11058_v2, 3 }
 0x62e   : > { %10984 = vst [vmem:[#allocation1 + $0x6] ss:$9 sm:$0xff] %v10912_v41  ;;  %v11246_v41 = vshrl.u32 %v11114_v54, 16  ;;  %v11245_v39 = vsel %vm17777_vm14, %v11238_v52, %v11243_v12  ;;  %v11298_v13 = vshll.u32 %v11138_v46, 16  ;;  %v11063_v54 = vld [vmem:[#allocation3 + $0x58] sm:$0xf] }
 0x62f   : > { %10986 = vst [vmem:[#allocation1 + $0x7] ss:$9 sm:$0xff] %v10915_v30  ;;  %v11251_v30 = vshll.u32 %v11117_v45, 16  ;;  %v11124_v23 = vsel %vm1200_vm4, %v11058_v2, %v11082_v42  ;;  %v11123_v16 = vsel %vm226_vm2, %v11058_v2, %v11082_v42  ;;  %v11301_v11 = vshrl.u32 %v11138_v46, 16 }
 0x630   : > { %v11266_v44 = vshll.u32 %v11123_v16, 16  ;;  %v11269_v3 = vshrl.u32 %v11123_v16, 16  ;;  %v11313_v45 = vshll.u32 %v11144_v15, 16  ;;  %v11147_v2 = vsel %vm226_vm2, %v11061_v14, %v11085_v31  ;;  %v11065_v16 = vld [vmem:[#allocation3 + $0x60] sm:$0xf] }
 0x631   : > { %v11253_v43 = vsel %vm17777_vm14, %v11246_v41, %v11251_v30  ;;  %v11316_v12 = vshrl.u32 %v11147_v2, 16  ;;  %v11307_v42 = vsel %vm17777_vm14, %v11301_v11, %v11305_v33 }
 0x632   : > { %v11315_v41 = vsel %vm17777_vm14, %v11308_v58, %v11313_v45 }
 0x636   : > { %v10987_v18 = vld [vmem:[#allocation1] sm:$0xff] }
 0x637   : > { %10988 = vst [vmem:[#allocation1] ss:$9 sm:$0xff] %v10918_v34  ;;  %v11130_v34 = vsel %vm1200_vm4, %v11059_v49, %v11083_v57 }
 0x638   : > { %10989 = vst [vmem:[#allocation1 + $0x1] ss:$9 sm:$0xff] %v10921_v17  ;;  %v11133_v17 = vsel %vm19382_vm15, %v11059_v49, %v11083_v57  ;;  %vm19392_vm15 = vmmov %vm19368_vm3 }
 0x639   : > { %10991 = vst [vmem:[#allocation1 + $0x2] ss:$9 sm:$0xff] %v10924_v1  ;;  %14013 = vmatmul.msk.bf16.gmra.mxu2 %vm10673_vm1, %v10987_v18  ;;  %v11261_v18 = vsel %vm17777_vm14, %v11254_v4, %v11259_v22  ;;  %v11126_v1 = vrot.slane %v11124_v23, 1  ;;  %v11135_v20 = vrot.slane %v11133_v17, 2 }
 0x63a   : > { %10993 = vst [vmem:[#allocation1 + $0x3] ss:$9 sm:$0xff] %v10927_v8  ;;  %v11132_v8 = vrot.slane %v11130_v34, 1 }
 0x63b   : > { %10995 = vst [vmem:[#allocation1 + $0x4] ss:$9 sm:$0xff] %v10930_v63  ;;  %v11262_v63 = vshrl.u32 %v11120_v25, 16  ;;  %v11274_v6 = vshll.u32 %v11126_v1, 16  ;;  %v11290_v59 = vshll.u32 %v11135_v20, 16  ;;  %v11293_v19 = vshrl.u32 %v11135_v20, 16 }
 0x63c   : > { %10996 = vst [vmem:[#allocation1 + $0x5] ss:$9 sm:$0xff] %v10933_v26  ;;  %v11129_v26 = vsel %vm226_vm2, %v11059_v49, %v11083_v57  ;;  %v11282_v61 = vshll.u32 %v11132_v8, 16  ;;  %v11285_v47 = vshrl.u32 %v11132_v8, 16  ;;  %v11151_v49 = vsel %vm19384_vm10, %v11061_v14, %v11085_v31  ;;  %vm19394_vm10 = vmmov %vm19368_vm3 }
 0x63d   : > { %v11268_v40 = vsel %vm17777_vm14, %v11262_v63, %v11266_v44  ;;  %v11277_v35 = vshrl.u32 %v11129_v26, 16  ;;  %v11276_v53 = vsel %vm17777_vm14, %v11269_v3, %v11274_v6  ;;  %v11300_v52 = vsel %vm17777_vm14, %v11293_v19, %v11298_v13 }
 0x63e   : > { %v11153_v30 = vrot.slane %v11151_v49, 2  ;;  %v11160_v57 = vsel %vm1200_vm4, %v11062_v29, %v11086_v38  ;;  %v11089_v3 = vrot.slane %v11065_v16, 3 }
 0x63f   : > { %v11284_v25 = vsel %vm17777_vm14, %v11277_v35, %v11282_v61 }
 0x640   : > { %v11329_v23 = vshll.u32 %v11153_v30, 16  ;;  %v11332_v51 = vshrl.u32 %v11153_v30, 16  ;;  %v11184_v11 = vsel %vm1200_vm4, %v11065_v16, %v11089_v3  ;;  %v11187_v45 = vsel %vm19388_vm6, %v11065_v16, %v11089_v3  ;;  %vm19398_vm6 = vmmov %vm19368_vm3 }
 0x641   : > { %v11190_v49 = vsel %vm19389_vm7, %v11065_v16, %v11089_v3  ;;  %vm19399_vm7 = vmmov %vm19371_vm0 }
 0x643   : > { %v10997_v0 = vld [vmem:[#allocation1] sm:$0xff] }
 0x644   : > { %11439 = vst [vmem:[#allocation1] ss:$9 sm:$0xff] %v11206_v62  ;;  %v11321_v62 = vshll.u32 %v11150_v27, 16 }
 0x645   : > { %11442 = vst [vmem:[#allocation1 + $0x1] ss:$9 sm:$0xff] %v11214_v50  ;;  %v11292_v50 = vsel %vm17777_vm14, %v11285_v47, %v11290_v59 }
 0x646   : > { %11445 = vst [vmem:[#allocation1 + $0x2] ss:$9 sm:$0xff] %v11222_v56  ;;  %v11087_v56 = vrot.slane %v11063_v54, 3  ;;  %v11323_v4 = vsel %vm17777_vm14, %v11316_v12, %v11321_v62  ;;  %v11186_v62 = vrot.slane %v11184_v11, 1 }
 0x647   : > { %11448 = vst [vmem:[#allocation1 + $0x3] ss:$9 sm:$0xff] %v11229_v36  ;;  %v11159_v36 = vsel %vm226_vm2, %v11062_v29, %v11086_v38 }
 0x648   : > { %11451 = vst [vmem:[#allocation1 + $0x4] ss:$9 sm:$0xff] %v11237_v24  ;;  %v11166_v22 = vsel %vm1200_vm4, %v11063_v54, %v11087_v56  ;;  %v11169_v24 = vsel %vm19386_vm5, %v11063_v54, %v11087_v56  ;;  %v11165_v60 = vsel %vm226_vm2, %v11063_v54, %v11087_v56  ;;  %v11344_v5 = vshll.u32 %v11159_v36, 16  ;;  %vm19396_vm5 = vmmov %vm19368_vm3 }
 0x649   : > { %11454 = vst [vmem:[#allocation1 + $0x5] ss:$9 sm:$0xff] %v11245_v39  ;;  %14014 = vmatmul.msk.bf16.gmra.mxu2 %vm10673_vm1, %v10997_v0  ;;  %v11154_v0 = vsel %vm19385_vm13, %v11061_v14, %v11085_v31  ;;  %v11162_v14 = vrot.slane %v11160_v57, 1  ;;  %v11324_v39 = vshrl.u32 %v11150_v27, 16  ;;  %v11168_v21 = vrot.slane %v11166_v22, 1  ;;  %v18462_v31 = vpop.f32.mrf.mxu0  ;;  %vm19395_vm13 = vmmov %vm19371_vm0 }
 0x64a   : > { %11457 = vst [vmem:[#allocation1 + $0x6] ss:$9 sm:$0xff] %v11253_v43  ;;  %v11156_v28 = vrot.slane %v11154_v0, 3  ;;  %v11172_v43 = vsel %vm19387_vm12, %v11063_v54, %v11087_v56  ;;  %v11171_v17 = vrot.slane %v11169_v24, 2  ;;  %v11347_v20 = vshrl.u32 %v11159_v36, 16  ;;  %vm19397_vm12 = vmmov %vm19371_vm0 }
 0x64b   : > { %11460 = vst [vmem:[#allocation1 + $0x7] ss:$9 sm:$0xff] %v11261_v18  ;;  %v11088_v18 = vrot.slane %v11064_v7, 3  ;;  %v11174_v8 = vrot.slane %v11172_v43, 3  ;;  %v11352_v63 = vshll.u32 %v11162_v14, 16  ;;  %v11331_v37 = vsel %vm17777_vm14, %v11324_v39, %v11329_v23 }
 0x64c   : > { %v11337_v34 = vshll.u32 %v11156_v28, 16  ;;  %v11340_v1 = vshrl.u32 %v11156_v28, 16  ;;  %v11360_v6 = vshll.u32 %v11168_v21, 16  ;;  %v11355_v15 = vshrl.u32 %v11165_v60, 16  ;;  %v14365_v60 = vld [vmem:[%s18799_s2 + $0x50] sm:$0xff] }
 0x64d   : > { %v11177_v26 = vsel %vm226_vm2, %v11064_v7, %v11088_v18  ;;  %v11363_v44 = vshrl.u32 %v11168_v21, 16  ;;  %v11368_v61 = vshll.u32 %v11171_v17, 16  ;;  %v11371_v47 = vshrl.u32 %v11171_v17, 16  ;;  %v11566_v21 = vld [vmem:[#allocation3 + $0x8] sm:$0xf]  ;;  %12296 = vmatpush.bf16.msra.mxu1 %v14365_v60 }
 0x64e   : > { %v11339_v46 = vsel %vm17777_vm14, %v11332_v51, %v11337_v34  ;;  %v11346_v27 = vsel %vm17777_vm14, %v11340_v1, %v11344_v5  ;;  %v11376_v59 = vshll.u32 %v11174_v8, 16  ;;  %v11354_v29 = vsel %vm17777_vm14, %v11347_v20, %v11352_v63  ;;  %v11568_v5 = vld [vmem:[#allocation3 + $0x10] sm:$0xf]  ;;  %v11567_v20 = vld [vmem:[#allocation3 + $0xc] sm:$0x1] }
 0x64f   : > { %v11383_v35 = vshll.u32 %v11177_v26, 16  ;;  %v11362_v19 = vsel %vm17777_vm14, %v11355_v15, %v11360_v6  ;;  %v11178_v13 = vsel %vm1200_vm4, %v11064_v7, %v11088_v18  ;;  %v11192_v0 = vrot.slane %v11190_v49, 3 }
 0x650   : > { %v11378_v33 = vsel %vm17777_vm14, %v11371_v47, %v11376_v59  ;;  %v11402_v30 = vshrl.u32 %v11186_v62, 16 }
 0x651   : > { %v18484_v2 = vpop.f32.mrf.mxu0  ;;  %v11415_v7 = vshll.u32 %v11192_v0, 16  ;;  %v11418_v24 = vshrl.u32 %v11192_v0, 16 }
 0x652   : > { %v11461_v10 = vld [vmem:[#allocation1] sm:$0xff] }
 0x653   : > { %14057 = vmatmul.msk.bf16.vlgmr.msrb.gmra.mxu3 %vm10673_vm1, %v11461_v10  ;;  %11463 = vst [vmem:[#allocation1] ss:$9 sm:$0xff] %v11268_v40  ;;  %v11066_v40 = vld [vmem:[#allocation3 + $0x64] sm:$0x3]  ;;  %v11370_v10 = vsel %vm17777_vm14, %v11363_v44, %v11368_v61 }
 0x654   : > { %11465 = vst [vmem:[#allocation1 + $0x1] ss:$9 sm:$0xff] %v11276_v53  ;;  %v11379_v53 = vshrl.u32 %v11174_v8, 16  ;;  %v11090_v54 = vrot.slane %v11066_v40, 3 }
 0x655   : > { %11467 = vst [vmem:[#allocation1 + $0x2] ss:$9 sm:$0xff] %v11284_v25  ;;  %v11180_v25 = vrot.slane %v11178_v13, 1 }
 0x656   : > { %11469 = vst [vmem:[#allocation1 + $0x3] ss:$9 sm:$0xff] %v11292_v50  ;;  %v11385_v38 = vsel %vm17777_vm14, %v11379_v53, %v11383_v35  ;;  %v11189_v50 = vrot.slane %v11187_v45, 2  ;;  %v11196_v58 = vsel %vm1200_vm4, %v11066_v40, %v11090_v54  ;;  %v11195_v57 = vsel %vm226_vm2, %v11066_v40, %v11090_v54  ;;  %v11569_v53 = vld [vmem:[#allocation3 + $0x14] sm:$0x1] }
 0x657   : > { %11471 = vst [vmem:[#allocation1 + $0x4] ss:$9 sm:$0xff] %v11300_v52  ;;  %v11391_v56 = vshll.u32 %v11180_v25, 16  ;;  %v11183_v52 = vsel %vm226_vm2, %v11065_v16, %v11089_v3  ;;  %v11198_v12 = vrot.slane %v11196_v58, 1  ;;  %v11422_v34 = vshll.u32 %v11195_v57, 16 }
 0x658   : > { %11473 = vst [vmem:[#allocation1 + $0x5] ss:$9 sm:$0xff] %v11307_v42  ;;  %v11399_v42 = vshll.u32 %v11186_v62, 16  ;;  %v11407_v28 = vshll.u32 %v11189_v50, 16  ;;  %v11410_v22 = vshrl.u32 %v11189_v50, 16  ;;  %v11425_v17 = vshrl.u32 %v11195_v57, 16 }
 0x659   : > { %11475 = vst [vmem:[#allocation1 + $0x6] ss:$9 sm:$0xff] %v11315_v41  ;;  %v11386_v41 = vshrl.u32 %v11177_v26, 16  ;;  %v11430_v23 = vshll.u32 %v11198_v12, 16  ;;  %v18496_v43 = vpop.f32.mrf.mxu0  ;;  %v11424_v1 = vsel %vm17777_vm14, %v11418_v24, %v11422_v34  ;;  %v11590_v16 = vrot.slane %v11566_v21, 3 }
 0x65a   : > { %11477 = vst [vmem:[#allocation1 + $0x7] ss:$9 sm:$0xff] %v11323_v4  ;;  %v11394_v4 = vshrl.u32 %v11183_v52, 16  ;;  %v11409_v51 = vsel %vm17777_vm14, %v11402_v30, %v11407_v28  ;;  %v11417_v18 = vsel %vm17777_vm14, %v11410_v22, %v11415_v7  ;;  %v11571_v25 = vld [vmem:[#allocation3 + $0x1c] sm:$0x1] }
 0x65b   : > { %v11393_v36 = vsel %vm17777_vm14, %v11386_v41, %v11391_v56  ;;  %v11432_v8 = vsel %vm17777_vm14, %v11425_v17, %v11430_v23  ;;  %v11605_v63 = vsel %vm1200_vm4, %v11566_v21, %v11590_v16  ;;  %v11611_v26 = vsel %vm19390_vm8, %v11566_v21, %v11590_v16  ;;  %v11572_v50 = vld [vmem:[#allocation3 + $0x20] sm:$0xf]  ;;  %v11574_v22 = vld [vmem:[#allocation3 + $0x28] sm:$0xf]  ;;  %vm19400_vm8 = vmmov %vm19371_vm0 }
 0x65c   : > { %v11401_v39 = vsel %vm17777_vm14, %v11394_v4, %v11399_v42  ;;  %v11604_v15 = vsel %vm226_vm2, %v11566_v21, %v11590_v16  ;;  %v11607_v44 = vrot.slane %v11605_v63, 1  ;;  %v11595_v52 = vrot.slane %v11571_v25, 3 }
 0x65d   : > { %v11596_v30 = vrot.slane %v11572_v50, 3 }
 0x65e   : > { %v11646_v57 = vsel %vm226_vm2, %v11571_v25, %v11595_v52 }
 0x65f   : > { %v11649_v4 = vsel %vm226_vm2, %v11572_v50, %v11596_v30  ;;  %v11650_v7 = vsel %vm1200_vm4, %v11572_v50, %v11596_v30  ;;  %v11653_v24 = vsel %vm19394_vm10, %v11572_v50, %v11596_v30  ;;  %vm19404_vm10 = vmmov %vm19368_vm3 }
 0x660   : > { %v11652_v23 = vrot.slane %v11650_v7, 1  ;;  %v11655_v34 = vrot.slane %v11653_v24, 2 }
 0x661   : > { %v11478_v48 = vld [vmem:[#allocation1] sm:$0xff]  ;;  %v18512_v6 = vpop.f32.mrf.mxu0 }
 0x662   : > { %11480 = vst [vmem:[#allocation1] ss:$9 sm:$0xff] %v11331_v37  ;;  %v11608_v37 = vsel %vm19368_vm3, %v11566_v21, %v11590_v16 }
 0x663   : > { %14058 = vmatmul.msk.bf16.gmra.mxu3 %vm10673_vm1, %v11478_v48  ;;  %11482 = vst [vmem:[#allocation1 + $0x1] ss:$9 sm:$0xff] %v11339_v46  ;;  %v11592_v46 = vrot.slane %v11568_v5, 3  ;;  %v11591_v48 = vrot.slane %v11567_v20, 3  ;;  %v11610_v3 = vrot.slane %v11608_v37, 2 }
 0x664   : > { %11484 = vst [vmem:[#allocation1 + $0x2] ss:$9 sm:$0xff] %v11346_v27  ;;  %v11613_v27 = vrot.slane %v11611_v26, 3  ;;  %v11576_v37 = vld [vmem:[#allocation3 + $0x30] sm:$0xf] }
 0x665   : > { %11486 = vst [vmem:[#allocation1 + $0x3] ss:$9 sm:$0xff] %v11354_v29  ;;  %v11620_v47 = vsel %vm1200_vm4, %v11568_v5, %v11592_v46  ;;  %v11623_v59 = vsel %vm19391_vm9, %v11568_v5, %v11592_v46  ;;  %v11616_v40 = vsel %vm226_vm2, %v11567_v20, %v11591_v48  ;;  %v11619_v29 = vsel %vm226_vm2, %v11568_v5, %v11592_v46  ;;  %v11813_v26 = vld [vmem:[#allocation3 + $0x8] sm:$0xf]  ;;  %vm19401_vm9 = vmmov %vm19368_vm3 }
 0x666   : > { %11488 = vst [vmem:[#allocation1 + $0x4] ss:$9 sm:$0xff] %v11362_v19  ;;  %v11622_v35 = vrot.slane %v11620_v47, 1  ;;  %v11625_v19 = vrot.slane %v11623_v59, 2  ;;  %v11626_v11 = vsel %vm19371_vm0, %v11568_v5, %v11592_v46  ;;  %v11575_v46 = vld [vmem:[#allocation3 + $0x2c] sm:$0x1] }
 0x667   : > { %11490 = vst [vmem:[#allocation1 + $0x5] ss:$9 sm:$0xff] %v11370_v10  ;;  %v11570_v10 = vld [vmem:[#allocation3 + $0x18] sm:$0xf]  ;;  %v11628_v45 = vrot.slane %v11626_v11, 3  ;;  %v11600_v48 = vrot.slane %v11576_v37, 3 }
 0x668   : > { %11492 = vst [vmem:[#allocation1 + $0x6] ss:$9 sm:$0xff] %v11378_v33  ;;  %v11594_v54 = vrot.slane %v11570_v10, 3  ;;  %v11593_v33 = vrot.slane %v11569_v53, 3  ;;  %v11814_v47 = vld [vmem:[#allocation3 + $0xc] sm:$0x3] }
 0x669   : > { %11494 = vst [vmem:[#allocation1 + $0x7] ss:$9 sm:$0xff] %v11385_v38  ;;  %v18521_v13 = vpop.f32.mrf.mxu0  ;;  %v11683_v59 = vsel %vm19398_vm6, %v11576_v37, %v11600_v48  ;;  %vm19408_vm6 = vmmov %vm19368_vm3 }
 0x66a   : > { %v11635_v38 = vsel %vm1200_vm4, %v11570_v10, %v11594_v54  ;;  %v11638_v62 = vsel %vm19392_vm15, %v11570_v10, %v11594_v54  ;;  %v11631_v0 = vsel %vm226_vm2, %v11569_v53, %v11593_v33  ;;  %v11641_v56 = vsel %vm19393_vm11, %v11570_v10, %v11594_v54  ;;  %vm19402_vm15 = vmmov %vm19368_vm3 }
 0x66b   : > { %v11634_v12 = vsel %vm226_vm2, %v11570_v10, %v11594_v54  ;;  %v11637_v42 = vrot.slane %v11635_v38, 1  ;;  %v11640_v41 = vrot.slane %v11638_v62, 2  ;;  %v11643_v28 = vrot.slane %v11641_v56, 3  ;;  %vm19403_vm11 = vmmov %vm19371_vm0 }
 0x66c   : > { %v11679_v54 = vsel %vm226_vm2, %v11576_v37, %v11600_v48  ;;  %v11685_v25 = vrot.slane %v11683_v59, 2 }
 0x670   : > { %v11495_v14 = vld [vmem:[#allocation1] sm:$0xff] }
 0x671   : > { %11497 = vst [vmem:[#allocation1] ss:$9 sm:$0xff] %v11393_v36  ;;  %v10715_v49 = vpop.f32.mrf.mxu0  ;;  %v11573_v36 = vld [vmem:[#allocation3 + $0x24] sm:$0x1] }
 0x672   : > { %11499 = vst [vmem:[#allocation1 + $0x1] ss:$9 sm:$0xff] %v11401_v39  ;;  %v11656_v39 = vsel %vm19395_vm13, %v11572_v50, %v11596_v30  ;;  %vm19405_vm13 = vmmov %vm19371_vm0 }
 0x673   : > { %11501 = vst [vmem:[#allocation1 + $0x2] ss:$9 sm:$0xff] %v11409_v51  ;;  %14059 = vmatmul.msk.bf16.gmra.mxu3 %vm10673_vm1, %v11495_v14  ;;  %v11598_v14 = vrot.slane %v11574_v22, 3  ;;  %v11597_v51 = vrot.slane %v11573_v36, 3 }
 0x674   : > { %11503 = vst [vmem:[#allocation1 + $0x3] ss:$9 sm:$0xff] %v11417_v18  ;;  %v11658_v18 = vrot.slane %v11656_v39, 3 }
 0x675   : > { %11505 = vst [vmem:[#allocation1 + $0x4] ss:$9 sm:$0xff] %v11424_v1  ;;  %v11665_v17 = vsel %vm1200_vm4, %v11574_v22, %v11598_v14  ;;  %v11668_v1 = vsel %vm19396_vm5, %v11574_v22, %v11598_v14  ;;  %v11661_v60 = vsel %vm226_vm2, %v11573_v36, %v11597_v51  ;;  %v11664_v16 = vsel %vm226_vm2, %v11574_v22, %v11598_v14  ;;  %vm19406_vm5 = vmmov %vm19368_vm3 }
 0x676   : > { %11507 = vst [vmem:[#allocation1 + $0x5] ss:$9 sm:$0xff] %v11432_v8  ;;  %v11671_v8 = vsel %vm19397_vm12, %v11574_v22, %v11598_v14  ;;  %v11667_v5 = vrot.slane %v11665_v17, 1  ;;  %v11670_v20 = vrot.slane %v11668_v1, 2  ;;  %vm19407_vm12 = vmmov %vm19371_vm0 }
 0x677   : > { %v11673_v63 = vrot.slane %v11671_v8, 3 }
 0x67d   : > { %v11508_v61 = vld [vmem:[#allocation1] sm:$0xff] }
 0x67e   : > { %11697 = vst [vmem:[#allocation1] ss:$9 sm:$0xff] %v11604_v15  ;;  %v18541_v15 = vpop.f32.mrf.mxu1 }
 0x67f   : > { %11700 = vst [vmem:[#allocation1 + $0x1] ss:$9 sm:$0xff] %v11607_v44  ;;  %v11599_v44 = vrot.slane %v11575_v46, 3 }
 0x680   : > { %11703 = vst [vmem:[#allocation1 + $0x2] ss:$9 sm:$0xff] %v11610_v3  ;;  %v11577_v3 = vld [vmem:[#allocation3 + $0x34] sm:$0x1] }
 0x681   : > { %11706 = vst [vmem:[#allocation1 + $0x3] ss:$9 sm:$0xff] %v11613_v27  ;;  %v11680_v27 = vsel %vm1200_vm4, %v11576_v37, %v11600_v48  ;;  %v11601_v53 = vrot.slane %v11577_v3, 3 }
 0x682   : > { %11708 = vst [vmem:[#allocation1 + $0x4] ss:$9 sm:$0xff] %v11616_v40  ;;  %v11815_v40 = vld [vmem:[#allocation3 + $0x10] sm:$0xf]  ;;  %v11682_v11 = vrot.slane %v11680_v27, 1 }
 0x683   : > { %11710 = vst [vmem:[#allocation1 + $0x5] ss:$9 sm:$0xff] %v11619_v29  ;;  %14060 = vmatmul.msk.bf16.gmra.mxu3 %vm10673_vm1, %v11508_v61  ;;  %v11837_v61 = vrot.slane %v11813_v26, 3  ;;  %v11676_v29 = vsel %vm226_vm2, %v11575_v46, %v11599_v44  ;;  %v11839_v49 = vrot.slane %v11815_v40, 3  ;;  %v11691_v56 = vsel %vm226_vm2, %v11577_v3, %v11601_v53 }
 0x684   : > { %11713 = vst [vmem:[#allocation1 + $0x6] ss:$9 sm:$0xff] %v11622_v35  ;;  %v11686_v35 = vsel %vm19399_vm7, %v11576_v37, %v11600_v48  ;;  %vm19409_vm7 = vmmov %vm19371_vm0 }
 0x685   : > { %11716 = vst [vmem:[#allocation1 + $0x7] ss:$9 sm:$0xff] %v11625_v19  ;;  %v11852_v10 = vsel %vm1200_vm4, %v11813_v26, %v11837_v61  ;;  %v11855_v33 = vsel %vm19368_vm3, %v11813_v26, %v11837_v61  ;;  %v11858_v38 = vsel %vm19400_vm8, %v11813_v26, %v11837_v61  ;;  %v11688_v62 = vrot.slane %v11686_v35, 3 }
 0x686   : > { %v11854_v50 = vrot.slane %v11852_v10, 1  ;;  %v11860_v52 = vrot.slane %v11858_v38, 3  ;;  %v11876_v22 = vsel %vm19371_vm0, %v11815_v40, %v11839_v49  ;;  %v11869_v17 = vsel %vm226_vm2, %v11815_v40, %v11839_v49 }
 0x687   : > { %v11878_v1 = vrot.slane %v11876_v22, 3  ;;  %v11996_v44 = vshrl.u32 %v11869_v17, 16 }
 0x688   : > { %v11962_v30 = vshll.u32 %v11854_v50, 16  ;;  %v11978_v14 = vshll.u32 %v11860_v52, 16 }
 0x689   : > { %v12017_v59 = vshll.u32 %v11878_v1, 16 }
 0x68c   : > { %v11717_v58 = vld [vmem:[#allocation1] sm:$0xff] }
 0x68d   : > { %14073 = vmatmul.msk.bf16.vlgmr.msra.gmra.mxu0 %vm10673_vm1, %v11717_v58  ;;  %11719 = vst [vmem:[#allocation1] ss:$9 sm:$0xff] %v11628_v45  ;;  %v11838_v45 = vrot.slane %v11814_v47, 3  ;;  %v18552_v58 = vpop.f32.mrf.mxu1 }
 0x68e   : > { %11720 = vst [vmem:[#allocation1 + $0x1] ss:$9 sm:$0xff] %v11631_v0  ;;  %v11857_v0 = vrot.slane %v11855_v33, 2 }
 0x68f   : > { %11721 = vst [vmem:[#allocation1 + $0x2] ss:$9 sm:$0xff] %v11634_v12  ;;  %v11864_v12 = vsel %vm1200_vm4, %v11814_v47, %v11838_v45  ;;  %v11863_v7 = vsel %vm226_vm2, %v11814_v47, %v11838_v45 }
 0x690   : > { %11723 = vst [vmem:[#allocation1 + $0x3] ss:$9 sm:$0xff] %v11637_v42  ;;  %v11870_v42 = vsel %vm1200_vm4, %v11815_v40, %v11839_v49  ;;  %v11866_v36 = vrot.slane %v11864_v12, 1  ;;  %v11973_v24 = vshrl.u32 %v11857_v0, 16  ;;  %v11988_v27 = vshrl.u32 %v11863_v7, 16 }
 0x691   : > { %11725 = vst [vmem:[#allocation1 + $0x4] ss:$9 sm:$0xff] %v11640_v41  ;;  %v11851_v41 = vsel %vm226_vm2, %v11813_v26, %v11837_v61  ;;  %v11872_v39 = vrot.slane %v11870_v42, 1  ;;  %v12020_v42 = vshrl.u32 %v11878_v1, 16 }
 0x692   : > { %11727 = vst [vmem:[#allocation1 + $0x5] ss:$9 sm:$0xff] %v11643_v28  ;;  %v11965_v28 = vshrl.u32 %v11854_v50, 16  ;;  %v11980_v37 = vsel %vm17777_vm14, %v11973_v24, %v11978_v14 }
 0x693   : > { %11728 = vst [vmem:[#allocation1 + $0x6] ss:$9 sm:$0xff] %v11646_v57  ;;  %v11873_v57 = vsel %vm19401_vm9, %v11815_v40, %v11839_v49  ;;  %v12001_v46 = vshll.u32 %v11872_v39, 16  ;;  %v12004_v61 = vshrl.u32 %v11872_v39, 16  ;;  %v11818_v40 = vld [vmem:[#allocation3 + $0x1c] sm:$0x3] }
 0x694   : > { %11729 = vst [vmem:[#allocation1 + $0x7] ss:$9 sm:$0xff] %v11649_v4  ;;  %v11970_v4 = vshll.u32 %v11857_v0, 16  ;;  %v11875_v51 = vrot.slane %v11873_v57, 2  ;;  %v11842_v33 = vrot.slane %v11818_v40, 3 }
 0x695   : > { %v18562_v8 = vpop.f32.mrf.mxu1  ;;  %v12003_v10 = vsel %vm17777_vm14, %v11996_v44, %v12001_v46 }
 0x696   : > { %v12009_v3 = vshll.u32 %v11875_v51, 16  ;;  %v12012_v47 = vshrl.u32 %v11875_v51, 16  ;;  %v11900_v12 = vsel %vm1200_vm4, %v11818_v40, %v11842_v33 }
 0x69b   : > { %v11730_v21 = vld [vmem:[#allocation1] sm:$0xff] }
 0x69c   : > { %11732 = vst [vmem:[#allocation1] ss:$9 sm:$0xff] %v11652_v23  ;;  %v11957_v23 = vshrl.u32 %v11851_v41, 16 }
 0x69d   : > { %14074 = vmatmul.msk.bf16.gmra.mxu0 %vm10673_vm1, %v11730_v21  ;;  %11734 = vst [vmem:[#allocation1 + $0x1] ss:$9 sm:$0xff] %v11655_v34  ;;  %v11816_v34 = vld [vmem:[#allocation3 + $0x14] sm:$0x3]  ;;  %v11817_v21 = vld [vmem:[#allocation3 + $0x18] sm:$0xf]  ;;  %v18584_v49 = vpop.f32.mrf.mxu1 }
 0x69e   : > { %11736 = vst [vmem:[#allocation1 + $0x2] ss:$9 sm:$0xff] %v11658_v18  ;;  %v11981_v18 = vshrl.u32 %v11860_v52, 16  ;;  %v11840_v26 = vrot.slane %v11816_v34, 3  ;;  %v11841_v48 = vrot.slane %v11817_v21, 3 }
 0x69f   : > { %11737 = vst [vmem:[#allocation1 + $0x3] ss:$9 sm:$0xff] %v11661_v60  ;;  %v11985_v60 = vshll.u32 %v11863_v7, 16  ;;  %v11899_v7 = vsel %vm226_vm2, %v11818_v40, %v11842_v33 }
 0x6a0   : > { %11738 = vst [vmem:[#allocation1 + $0x4] ss:$9 sm:$0xff] %v11664_v16  ;;  %v11964_v16 = vsel %vm17777_vm14, %v11957_v23, %v11962_v30  ;;  %v11882_v53 = vsel %vm1200_vm4, %v11816_v34, %v11840_v26  ;;  %v11891_v45 = vsel %vm19402_vm15, %v11817_v21, %v11841_v48  ;;  %v11894_v0 = vsel %vm19403_vm11, %v11817_v21, %v11841_v48 }
 0x6a1   : > { %11740 = vst [vmem:[#allocation1 + $0x5] ss:$9 sm:$0xff] %v11667_v5  ;;  %v11972_v5 = vsel %vm17777_vm14, %v11965_v28, %v11970_v4  ;;  %v11893_v52 = vrot.slane %v11891_v45, 2  ;;  %v11887_v41 = vsel %vm226_vm2, %v11817_v21, %v11841_v48  ;;  %v11896_v30 = vrot.slane %v11894_v0, 3  ;;  %v11822_v45 = vld [vmem:[#allocation3 + $0x2c] sm:$0x3] }
 0x6a2   : > { %11742 = vst [vmem:[#allocation1 + $0x6] ss:$9 sm:$0xff] %v11670_v20  ;;  %v11993_v20 = vshll.u32 %v11866_v36, 16  ;;  %v11902_v36 = vrot.slane %v11900_v12, 1  ;;  %v12035_v23 = vshrl.u32 %v11887_v41, 16  ;;  %v12066_v40 = vshrl.u32 %v11899_v7, 16 }
 0x6a3   : > { %11744 = vst [vmem:[#allocation1 + $0x7] ss:$9 sm:$0xff] %v11673_v63  ;;  %v12048_v14 = vshll.u32 %v11893_v52, 16  ;;  %v12056_v17 = vshll.u32 %v11896_v30, 16 }
 0x6a4   : > { %v11995_v35 = vsel %vm17777_vm14, %v11988_v27, %v11993_v20  ;;  %v12059_v20 = vshrl.u32 %v11896_v30, 16  ;;  %v11846_v30 = vrot.slane %v11822_v45, 3 }
 0x6aa   : > { %v11745_v19 = vld [vmem:[#allocation1] sm:$0xff] }
 0x6ab   : > { %11746 = vst [vmem:[#allocation1] ss:$9 sm:$0xff] %v11676_v29  ;;  %v11987_v29 = vsel %vm17777_vm14, %v11981_v18, %v11985_v60  ;;  %v12051_v18 = vshrl.u32 %v11893_v52, 16  ;;  %v18594_v60 = vpop.f32.mrf.mxu1 }
 0x6ac   : > { %11747 = vst [vmem:[#allocation1 + $0x1] ss:$9 sm:$0xff] %v11679_v54  ;;  %v11888_v54 = vsel %vm1200_vm4, %v11817_v21, %v11841_v48  ;;  %v11820_v21 = vld [vmem:[#allocation3 + $0x24] sm:$0x3] }
 0x6ad   : > { %11749 = vst [vmem:[#allocation1 + $0x2] ss:$9 sm:$0xff] %v11682_v11  ;;  %14075 = vmatmul.msk.bf16.gmra.mxu0 %vm10673_vm1, %v11745_v19  ;;  %v11819_v19 = vld [vmem:[#allocation3 + $0x20] sm:$0xf]  ;;  %v12011_v11 = vsel %vm17777_vm14, %v12004_v61, %v12009_v3  ;;  %v11890_v50 = vrot.slane %v11888_v54, 1  ;;  %v11844_v27 = vrot.slane %v11820_v21, 3 }
 0x6ae   : > { %11751 = vst [vmem:[#allocation1 + $0x3] ss:$9 sm:$0xff] %v11685_v25  ;;  %v12019_v25 = vsel %vm17777_vm14, %v12012_v47, %v12017_v59  ;;  %v11843_v38 = vrot.slane %v11819_v19, 3  ;;  %v10790_v47 = vadd.f32 %v18541_v15, %v18428_v9  ;;  %v12058_v59 = vsel %vm17777_vm14, %v12051_v18, %v12056_v17 }
 0x6af   : > { %11753 = vst [vmem:[#allocation1 + $0x4] ss:$9 sm:$0xff] %v11688_v62  ;;  %v11884_v62 = vrot.slane %v11882_v53, 1  ;;  %v12040_v22 = vshll.u32 %v11890_v50, 16  ;;  %v12043_v24 = vshrl.u32 %v11890_v50, 16  ;;  %v11918_v15 = vsel %vm1200_vm4, %v11820_v21, %v11844_v27 }
 0x6b0   : > { %11754 = vst [vmem:[#allocation1 + $0x5] ss:$9 sm:$0xff] %v11691_v56  ;;  %v11881_v56 = vsel %vm226_vm2, %v11816_v34, %v11840_v26  ;;  %v11906_v28 = vsel %vm1200_vm4, %v11819_v19, %v11843_v38  ;;  %v12071_v26 = vshll.u32 %v11902_v36, 16  ;;  %v11905_v48 = vsel %vm226_vm2, %v11819_v19, %v11843_v38 }
 0x6b1   : > { %v12024_v57 = vshll.u32 %v11881_v56, 16  ;;  %v12032_v4 = vshll.u32 %v11884_v62, 16  ;;  %v12027_v39 = vshrl.u32 %v11881_v56, 16  ;;  %v11908_v51 = vrot.slane %v11906_v28, 1 }
 0x6b2   : > { %v12050_v46 = vsel %vm17777_vm14, %v12043_v24, %v12048_v14  ;;  %v11909_v44 = vsel %vm19404_vm10, %v11819_v19, %v11843_v38  ;;  %v11912_v61 = vsel %vm19405_vm13, %v11819_v19, %v11843_v38  ;;  %v12074_v54 = vshrl.u32 %v11905_v48, 16  ;;  %v11823_v14 = vld [vmem:[#allocation3 + $0x30] sm:$0xf]  ;;  %v11824_v48 = vld [vmem:[#allocation3 + $0x34] sm:$0x3] }
 0x6b3   : > { %v12026_v34 = vsel %vm17777_vm14, %v12020_v42, %v12024_v57  ;;  %v12079_v3 = vshll.u32 %v11908_v51, 16  ;;  %v11911_v53 = vrot.slane %v11909_v44, 2  ;;  %v11914_v33 = vrot.slane %v11912_v61, 3  ;;  %v18618_v38 = vpop.f32.mrf.mxu1 }
 0x6b4   : > { %v12082_v62 = vshrl.u32 %v11908_v51, 16  ;;  %v11917_v12 = vsel %vm226_vm2, %v11820_v21, %v11844_v27  ;;  %v11920_v42 = vrot.slane %v11918_v15, 1  ;;  %v10792_v57 = vadd.f32 %v18552_v58, %v18446_v55 }
 0x6b5   : > { %v12081_v9 = vsel %vm17777_vm14, %v12074_v54, %v12079_v3  ;;  %v12087_v50 = vshll.u32 %v11911_v53, 16  ;;  %v12090_v0 = vshrl.u32 %v11911_v53, 16  ;;  %v12095_v52 = vshll.u32 %v11914_v33, 16 }
 0x6b6   : > { %v12098_v18 = vshrl.u32 %v11914_v33, 16  ;;  %v12105_v17 = vshrl.u32 %v11917_v12, 16  ;;  %v18631_v21 = vsel %vm226_vm2, %v11822_v45, %v11846_v30 }
 0x6b7   : > { %v11755_v63 = vld [vmem:[#allocation1] sm:$0xff]  ;;  %v12097_v51 = vsel %vm17777_vm14, %v12090_v0, %v12095_v52  ;;  %v12141_v27 = vshll.u32 %v18631_v21, 16  ;;  %v12144_v52 = vshrl.u32 %v18631_v21, 16 }
 0x6b8   : > { %12197 = vst [vmem:[#allocation1] ss:$9 sm:$0xff] %v11964_v16  ;;  %v12034_v16 = vsel %vm17777_vm14, %v12027_v39, %v12032_v4 }
 0x6b9   : > { %12200 = vst [vmem:[#allocation1 + $0x1] ss:$9 sm:$0xff] %v11972_v5  ;;  %v12042_v5 = vsel %vm17777_vm14, %v12035_v23, %v12040_v22  ;;  %v12089_v23 = vsel %vm17777_vm14, %v12082_v62, %v12087_v50 }
 0x6ba   : > { %12203 = vst [vmem:[#allocation1 + $0x2] ss:$9 sm:$0xff] %v11980_v37  ;;  %v11821_v37 = vld [vmem:[#allocation3 + $0x28] sm:$0xf] }
 0x6bb   : > { %12206 = vst [vmem:[#allocation1 + $0x3] ss:$9 sm:$0xff] %v11987_v29  ;;  %v11845_v29 = vrot.slane %v11821_v37, 3 }
 0x6bc   : > { %12209 = vst [vmem:[#allocation1 + $0x4] ss:$9 sm:$0xff] %v11995_v35  ;;  %v11029_v35 = vpop.f32.mrf.mxu2 }
 0x6bd   : > { %12212 = vst [vmem:[#allocation1 + $0x5] ss:$9 sm:$0xff] %v12003_v10  ;;  %14076 = vmatmul.msk.bf16.gmra.mxu0 %vm10673_vm1, %v11755_v63  ;;  %v12063_v63 = vshll.u32 %v11899_v7, 16  ;;  %v11048_v19 = vadd.f32 %v11029_v35, %v10790_v47  ;;  %v11927_v56 = vsel %vm19406_vm5, %v11821_v37, %v11845_v29  ;;  %v11930_v41 = vsel %vm19407_vm12, %v11821_v37, %v11845_v29 }
 0x6be   : > { %12215 = vst [vmem:[#allocation1 + $0x6] ss:$9 sm:$0xff] %v12011_v11  ;;  %v12073_v11 = vsel %vm17777_vm14, %v12066_v40, %v12071_v26  ;;  %v11929_v4 = vrot.slane %v11927_v56, 2  ;;  %v12102_v7 = vshll.u32 %v11917_v12, 16  ;;  %v11923_v36 = vsel %vm226_vm2, %v11821_v37, %v11845_v29 }
 0x6bf   : > { %12218 = vst [vmem:[#allocation1 + $0x7] ss:$9 sm:$0xff] %v12019_v25  ;;  %v12065_v10 = vsel %vm17777_vm14, %v12059_v20, %v12063_v63  ;;  %v11924_v25 = vsel %vm1200_vm4, %v11821_v37, %v11845_v29  ;;  %v11932_v24 = vrot.slane %v11930_v41, 3  ;;  %v11847_v20 = vrot.slane %v11823_v14, 3  ;;  %v18633_v63 = vpop.f32.mrf.mxu1 }
 0x6c0   : > { %v11926_v28 = vrot.slane %v11924_v25, 1  ;;  %v12104_v37 = vsel %vm17777_vm14, %v12098_v18, %v12102_v7  ;;  %v10795_v29 = vadd.f32 %v18562_v8, %v18462_v31 }
 0x6c1   : > { %v12134_v26 = vshll.u32 %v11932_v24, 16  ;;  %v12137_v3 = vshrl.u32 %v11932_v24, 16  ;;  %v11942_v53 = vsel %vm1200_vm4, %v11823_v14, %v11847_v20  ;;  %v11948_v8 = vsel %vm19409_vm7, %v11823_v14, %v11847_v20  ;;  %v14133_v24 = vld [vmem:[%s18800_s3 + $0x18] sm:$0xf] }
 0x6c2   : > { %v12118_v55 = vshll.u32 %v11926_v28, 16  ;;  %v11944_v15 = vrot.slane %v11942_v53, 1  ;;  %v11950_v0 = vrot.slane %v11948_v8, 3 }
 0x6c3   : > { %v12143_v31 = vsel %vm17777_vm14, %v12137_v3, %v12141_v27  ;;  %v14142_v3 = vld [vmem:[%s18800_s3 + $0x8] sm:$0xf]  ;;  %v14368_v27 = vld [vmem:[%s18800_s3 + $0x8] sm:$0x70] }
 0x6c4   : > { %v11031_v22 = vpop.f32.mrf.mxu2 }
 0x6c5   : > { %v11049_v39 = vadd.f32 %v11031_v22, %v10792_v57  ;;  %v10797_v57 = vadd.f32 %v18584_v49, %v18484_v2  ;;  %v12160_v22 = vshrl.u32 %v11944_v15, 16  ;;  %v12176_v49 = vshrl.u32 %v11950_v0, 16 }
 0x6c6   : > { %v12219_v1 = vld [vmem:[#allocation1] sm:$0xff] }
 0x6c7   : > { %14119 = vmatmul.msk.bf16.vlgmr.msra.gmra.mxu1 %vm10673_vm1, %v12219_v1  ;;  %12221 = vst [vmem:[#allocation1] ss:$9 sm:$0xff] %v12026_v34  ;;  %v12110_v34 = vshll.u32 %v11920_v42, 16  ;;  %v12113_v1 = vshrl.u32 %v11923_v36, 16  ;;  %v10806_v50 = vpop.f32.mrf.mxu1 }
 0x6c8   : > { %12223 = vst [vmem:[#allocation1 + $0x1] ss:$9 sm:$0xff] %v12034_v16  ;;  %v12121_v16 = vshrl.u32 %v11926_v28, 16  ;;  %v12157_v28 = vshll.u32 %v11944_v15, 16 }
 0x6c9   : > { %12225 = vst [vmem:[#allocation1 + $0x2] ss:$9 sm:$0xff] %v12042_v5  ;;  %v12126_v5 = vshll.u32 %v11929_v4, 16  ;;  %v12112_v61 = vsel %vm17777_vm14, %v12105_v17, %v12110_v34  ;;  %v12120_v40 = vsel %vm17777_vm14, %v12113_v1, %v12118_v55 }
 0x6ca   : > { %12227 = vst [vmem:[#allocation1 + $0x3] ss:$9 sm:$0xff] %v12050_v46  ;;  %v12129_v46 = vshrl.u32 %v11929_v4, 16 }
 0x6cb   : > { %12229 = vst [vmem:[#allocation1 + $0x4] ss:$9 sm:$0xff] %v12058_v59  ;;  %v11936_v59 = vsel %vm1200_vm4, %v11822_v45, %v11846_v30  ;;  %v12128_v35 = vsel %vm17777_vm14, %v12121_v16, %v12126_v5  ;;  %v11941_v45 = vsel %vm226_vm2, %v11823_v14, %v11847_v20 }
 0x6cc   : > { %12231 = vst [vmem:[#allocation1 + $0x5] ss:$9 sm:$0xff] %v12065_v10  ;;  %v11848_v10 = vrot.slane %v11824_v48, 3  ;;  %v11034_v54 = vpop.f32.mrf.mxu2  ;;  %v12152_v30 = vshrl.u32 %v11941_v45, 16 }
 0x6cd   : > { %12233 = vst [vmem:[#allocation1 + $0x6] ss:$9 sm:$0xff] %v12073_v11  ;;  %v11945_v11 = vsel %vm19408_vm6, %v11823_v14, %v11847_v20  ;;  %v11050_v33 = vadd.f32 %v11034_v54, %v10795_v29  ;;  %v14370_v14 = vld [vmem:[%s18800_s3 + $0x18] sm:$0x70] }
 0x6ce   : > { %12235 = vst [vmem:[#allocation1 + $0x7] ss:$9 sm:$0xff] %v12081_v9  ;;  %v11938_v9 = vrot.slane %v11936_v59, 1  ;;  %v11947_v25 = vrot.slane %v11945_v11, 2  ;;  %v11954_v62 = vsel %vm1200_vm4, %v11824_v48, %v11848_v10  ;;  %v11953_v4 = vsel %vm226_vm2, %v11824_v48, %v11848_v10 }
 0x6cf   : > { %v11956_v41 = vrot.slane %v11954_v62, 1  ;;  %v14134_v34 = vor.u32 %v14370_v14, %v14133_v24  ;;  %vm12377_vm2 = vcmask 1046528   ;;  %v12159_v17 = vsel %vm17777_vm14, %v12152_v30, %v12157_v28 }
 0x6d0   : > { %v12149_v12 = vshll.u32 %v11938_v9, 16  ;;  %v12165_v7 = vshll.u32 %v11947_v25, 16  ;;  %v12180_v1 = vshll.u32 %v11953_v4, 16  ;;  %v12183_v5 = vshrl.u32 %v11953_v4, 16 }
 0x6d1   : > { %v12188_v21 = vshll.u32 %v11956_v41, 16  ;;  %v12379_v55 = vsel %vm12377_vm2, %v14134_v34, 0  ;;  %v10800_v48 = vadd.f32 %v18594_v60, %v18496_v43  ;;  %v14143_v59 = vor.u32 %v14368_v27, %v14142_v3  ;;  %v14374_v27 = vld [vmem:[%s18800_s3 + $0x8] sm:$0x70] }
 0x6d2   : > { %v12151_v2 = vsel %vm17777_vm14, %v12144_v52, %v12149_v12  ;;  %12387 = vmatpush.bf16.msra.mxu2 %v12379_v55  ;;  %v10802_v43 = vadd.f32 %v18618_v38, %v18512_v6  ;;  %v14369_v6 = vld [vmem:[%s18800_s3 + $0x10] sm:$0xff]  ;;  %v14367_v52 = vld [vmem:[%s18800_s3] sm:$0xff]  ;;  %vm12373_vm4 = vcmask 244736  }
 0x6d4   : > { %v11036_v36 = vpop.f32.mrf.mxu2 }
 0x6d5   : > { %v12236_v58 = vld [vmem:[#allocation1] sm:$0xff] }
 0x6d6   : > { %12238 = vst [vmem:[#allocation1] ss:$9 sm:$0xff] %v12089_v23  ;;  %v11540_v44 = vpop.f32.mrf.mxu3  ;;  %v12173_v23 = vshll.u32 %v11950_v0, 16  ;;  %12388 = vmatpush.bf16.msra.mxu2 %v14369_v6 }
 0x6d7   : > { %14120 = vmatmul.msk.bf16.gmra.mxu1 %vm10673_vm1, %v12236_v58  ;;  %12240 = vst [vmem:[#allocation1 + $0x1] ss:$9 sm:$0xff] %v12097_v51  ;;  %v18641_v47 = vadd.f32 %v11540_v44, %v11048_v19  ;;  %v12136_v19 = vsel %vm17777_vm14, %v12129_v46, %v12134_v26  ;;  %v11051_v51 = vadd.f32 %v11036_v36, %v10797_v57  ;;  %v14372_v36 = vld [vmem:[%s18800_s3 + $0x28] sm:$0x70] }
 0x6d8   : > { %12242 = vst [vmem:[#allocation1 + $0x2] ss:$9 sm:$0xff] %v12104_v37  ;;  %v12167_v58 = vsel %vm17777_vm14, %v12160_v22, %v12165_v7  ;;  %v12182_v37 = vsel %vm17777_vm14, %v12176_v49, %v12180_v1  ;;  %v12190_v26 = vsel %vm17777_vm14, %v12183_v5, %v12188_v21  ;;  %v14155_v7 = vld [vmem:[%s18800_s3 + $0x28] sm:$0xf]  ;;  %v14376_v21 = vld [vmem:[%s18800_s3 + $0x18] sm:$0x70] }
 0x6d9   : > { %12244 = vst [vmem:[#allocation1 + $0x3] ss:$9 sm:$0xff] %v12112_v61  ;;  %v14156_v24 = vor.u32 %v14372_v36, %v14155_v7 }
 0x6da   : > { %12246 = vst [vmem:[#allocation1 + $0x4] ss:$9 sm:$0xff] %v12120_v40  ;;  %v12413_v40 = vsel %vm12377_vm2, %v14143_v59, 0 }
 0x6db   : > { %12248 = vst [vmem:[#allocation1 + $0x5] ss:$9 sm:$0xff] %v12128_v35  ;;  %12421 = vmatpush.bf16.msra.mxu3 %v12413_v40 }
 0x6dc   : > { %12250 = vst [vmem:[#allocation1 + $0x6] ss:$9 sm:$0xff] %v12136_v19  ;;  %v11039_v44 = vpop.f32.mrf.mxu2  ;;  %v10805_v19 = vadd.f32 %v18633_v63, %v18521_v13 }
 0x6dd   : > { %12252 = vst [vmem:[#allocation1 + $0x7] ss:$9 sm:$0xff] %v12143_v31  ;;  %v11052_v61 = vadd.f32 %v11039_v44, %v10800_v48  ;;  %v14375_v48 = vld [vmem:[%s18800_s3 + $0x10] sm:$0xff] }
 0x6de   : > { %v11542_v56 = vpop.f32.mrf.mxu3 }
 0x6df   : > { %v18660_v42 = vadd.f32 %v11542_v56, %v11049_v39  ;;  %v12168_v39 = vshrl.u32 %v11947_v25, 16  ;;  %12422 = vmatpush.bf16.msra.mxu3 %v14367_v52 }
 0x6e1   : > { %v12175_v16 = vsel %vm17777_vm14, %v12168_v39, %v12173_v23  ;;  %v12453_v23 = vsel %vm12377_vm2, %v14156_v24, 0  ;;  %vm12478_vm14 = vcmask 238592  }
 0x6e2   : > { %12461 = vmatpush.bf16.msrb.mxu2 %v12453_v23 }
 0x6e4   : > { %v12253_v18 = vld [vmem:[#allocation1] sm:$0xff]  ;;  %v11041_v60 = vpop.f32.mrf.mxu2 }
 0x6e5   : > { %12255 = vst [vmem:[#allocation1] ss:$9 sm:$0xff] %v12151_v2  ;;  %v11053_v35 = vadd.f32 %v11041_v60, %v10802_v43 }
 0x6e6   : > { %12257 = vst [vmem:[#allocation1 + $0x1] ss:$9 sm:$0xff] %v12159_v17  ;;  %v11545_v20 = vpop.f32.mrf.mxu3  ;;  %v14168_v17 = vld [vmem:[%s18800_s3 + $0x18] sm:$0xf] }
 0x6e7   : > { %14121 = vmatmul.msk.bf16.gmra.mxu1 %vm10673_vm1, %v12253_v18  ;;  %12259 = vst [vmem:[#allocation1 + $0x2] ss:$9 sm:$0xff] %v12167_v58  ;;  %v18683_v46 = vadd.f32 %v11545_v20, %v11050_v33  ;;  %v14169_v55 = vor.u32 %v14376_v21, %v14168_v17 }
 0x6e8   : > { %12261 = vst [vmem:[#allocation1 + $0x3] ss:$9 sm:$0xff] %v12175_v16 }
 0x6e9   : > { %12263 = vst [vmem:[#allocation1 + $0x4] ss:$9 sm:$0xff] %v12182_v37  ;;  %v12507_v5 = vsel %vm12377_vm2, %v14169_v55, 0 }
 0x6ea   : > { %12265 = vst [vmem:[#allocation1 + $0x5] ss:$9 sm:$0xff] %v12190_v26  ;;  %12515 = vmatpush.bf16.msrb.mxu3 %v12507_v5 }
 0x6ec   : > { %v11044_v11 = vpop.f32.mrf.mxu2 }
 0x6ed   : > { %v11054_v33 = vadd.f32 %v11044_v11, %v10805_v19 }
 0x6ee   : > { %v11547_v32 = vpop.f32.mrf.mxu3  ;;  %12516 = vmatpush.bf16.msrb.mxu3 %v14375_v48 }
 0x6ef   : > { %v11562_v29 = vadd.f32 %v11547_v32, %v11051_v51 }
 0x6f1   : > { %v12266_v10 = vld [vmem:[#allocation1] sm:$0xff] }
 0x6f4   : > { %v11046_v8 = vpop.f32.mrf.mxu2 }
 0x6f6   : > { %v11550_v53 = vpop.f32.mrf.mxu3 }
 0x6f7   : > { %14122 = vmatmul.msk.bf16.gmra.mxu1 %vm10673_vm1, %v12266_v10  ;;  %v18699_v54 = vadd.f32 %v11550_v53, %v11052_v61  ;;  %v14190_v10 = vld [vmem:[%s18800_s3 + $0x28] sm:$0xf]  ;;  %v14378_v53 = vld [vmem:[%s18800_s3 + $0x28] sm:$0x70] }
 0x6f8   : > { %v14191_v19 = vor.u32 %v14378_v53, %v14190_v10 }
 0x6fe   : > { %v11552_v9 = vpop.f32.mrf.mxu3 }
 0x6ff   : > { %v11564_v31 = vadd.f32 %v11552_v9, %v11053_v35 }
 0x706   : > { %v11555_v38 = vpop.f32.mrf.mxu3 }
 0x707   : > { %v18706_v15 = vadd.f32 %v11555_v38, %v11054_v33  ;;  %v14377_v38 = vld [vmem:[%s18800_s3 + $0x20] sm:$0xff] }
 0x70a   : > { %v11787_v45 = vpop.f32.mrf.mxu0 }
 0x70b   : > { %v11806_v25 = vadd.f32 %v11787_v45, %v18641_v47  ;;  %v18719_v47 = vld [vmem:[%s18801_s4 + $0x1] ss:$0 sm:$0xff] }
 0x70e   : > { %v11557_v62 = vpop.f32.mrf.mxu3 }
 0x712   : > { %v11789_v50 = vpop.f32.mrf.mxu0 }
 0x713   : > { %v11807_v14 = vadd.f32 %v11789_v50, %v18660_v42  ;;  %v14371_v42 = vld [vmem:[%s18800_s3 + $0x20] sm:$0xff] }
 0x714   : > { %12462 = vmatpush.bf16.msrb.mxu2 %v14371_v42 }
 0x71a   : > { %v11792_v0 = vpop.f32.mrf.mxu0 }
 0x71b   : > { %v11808_v58 = vadd.f32 %v11792_v0, %v18683_v46  ;;  %v14177_v46 = vld [vmem:[%s18800_s3 + $0x8] sm:$0xf] }
 0x71c   : > { %v14178_v43 = vor.u32 %v14374_v27, %v14177_v46 }
 0x71e   : > { %v12535_v9 = vsel %vm12377_vm2, %v14178_v43, 0 }
 0x722   : > { %v11794_v13 = vpop.f32.mrf.mxu0 }
 0x723   : > { %v11809_v63 = vadd.f32 %v11794_v13, %v11562_v29 }
 0x72a   : > { %v11797_v56 = vpop.f32.mrf.mxu0 }
 0x72b   : > { %v11810_v8 = vadd.f32 %v11797_v56, %v18699_v54 }
 0x732   : > { %v11799_v12 = vpop.f32.mrf.mxu0 }
 0x733   : > { %v18712_v41 = vadd.f32 %v11799_v12, %v11564_v31  ;;  %v12575_v31 = vsel %vm12377_vm2, %v14191_v19, 0 }
 0x73a   : > { %v18714_v30 = vpop.f32.mrf.mxu0 }
 0x73b   : > { %v11812_v7 = vadd.f32 %v18714_v30, %v18706_v15 }
 0x742   : > { %v11804_v28 = vpop.f32.mrf.mxu0 }
 0x744   : > { %v12298_v57 = vpop.f32.mrf.mxu1 }
 0x745   : > { %v12317_v4 = vadd.f32 %v12298_v57, %v11806_v25  ;;  %v14373_v25 = vld [vmem:[%s18800_s3] sm:$0xff] }
 0x747   : > { %v12326_v22 = vadd.f32 %v18719_v47, %v12317_v4 }
 0x749   : > { %v12333_v51 = vmax.f32 %v12326_v22, 0.0 }
 0x74b   : > { %v12340_v49 = vpack.c.bf16 %v12333_v51, %v12333_v51 }
 0x74c   : > { %v12300_v39 = vpop.f32.mrf.mxu1 }
 0x74d   : > { %v12318_v34 = vadd.f32 %v12300_v39, %v11807_v14  ;;  %v12396_v20 = vunpack.c.l.b16 %v12340_v49 }
 0x74f   : > { %v12327_v2 = vadd.f32 %v18719_v47, %v12318_v34 }
 0x751   : > { %v12334_v18 = vmax.f32 %v12327_v2, 0.0 }
 0x753   : > { %v12341_v1 = vpack.c.bf16 %v12334_v18, %v12334_v18 }
 0x754   : > { %v12303_v16 = vpop.f32.mrf.mxu1 }
 0x755   : > { %v12358_v37 = vunpack.c.l.b16 %v12341_v1  ;;  %v12319_v26 = vadd.f32 %v12303_v16, %v11808_v58 }
 0x757   : > { %v12397_v44 = vpack.c.b16 %v12358_v37, %v12396_v20  ;;  %v12328_v61 = vadd.f32 %v18719_v47, %v12319_v26 }
 0x759   : > { %v12335_v3 = vmax.f32 %v12328_v61, 0.0  ;;  %14144 = vmatmul.msk.bf16.vlgmr.msra.gmra.mxu3 %vm12373_vm4, %v12397_v44 }
 0x75a   : > { %12583 = vmatpush.bf16.msra.mxu3 %v12575_v31 }
 0x75b   : > { %v12342_v59 = vpack.c.bf16 %v12335_v3, %v12335_v3 }
 0x75c   : > { %v12305_v40 = vpop.f32.mrf.mxu1 }
 0x75d   : > { %v12359_v32 = vunpack.c.l.b16 %v12342_v59  ;;  %v12320_v29 = vadd.f32 %v12305_v40, %v11809_v63  ;;  %v14393_v59 = vld [vmem:[%s18801_s4 + $0x2] ss:$0 sm:$0xff] }
 0x75e   : > { %12584 = vmatpush.bf16.msra.mxu3 %v14377_v38 }
 0x75f   : > { %v12360_v60 = vpack.c.b16 %v12359_v32, %v12358_v37  ;;  %v12329_v35 = vadd.f32 %v18719_v47, %v12320_v29 }
 0x761   : > { %v12361_v11 = vrot.slane %v12360_v60, 1  ;;  %v12336_v33 = vmax.f32 %v12329_v35, 0.0 }
 0x763   : > { %v12343_v6 = vpack.c.bf16 %v12336_v33, %v12336_v33  ;;  %14135 = vmatmul.msk.bf16.vlgmr.msra.gmra.mxu2 %vm12373_vm4, %v12361_v11 }
 0x764   : > { %v12308_v45 = vpop.f32.mrf.mxu1  ;;  %12543 = vmatpush.bf16.msra.mxu2 %v12535_v9 }
 0x765   : > { %v12435_v62 = vunpack.c.l.b16 %v12343_v6  ;;  %v12321_v50 = vadd.f32 %v12308_v45, %v11810_v8 }
 0x767   : > { %v12436_v0 = vpack.c.b16 %v12435_v62, %v12359_v32  ;;  %v12330_v13 = vadd.f32 %v18719_v47, %v12321_v50 }
 0x768   : > { %12544 = vmatpush.bf16.msra.mxu2 %v14373_v25 }
 0x769   : > { %v12337_v54 = vmax.f32 %v12330_v13, 0.0  ;;  %v12437_v57 = vrot.slane %v12436_v0, 2 }
 0x76b   : > { %v12344_v63 = vpack.c.bf16 %v12337_v54, %v12337_v54 }
 0x76c   : > { %v12310_v56 = vpop.f32.mrf.mxu1 }
 0x76d   : > { %v12489_v52 = vunpack.c.l.b16 %v12344_v63  ;;  %v12322_v12 = vadd.f32 %v12310_v56, %v18712_v41 }
 0x76f   : > { %v12490_v28 = vpack.c.b16 %v12489_v52, %v12435_v62  ;;  %v12331_v22 = vadd.f32 %v18719_v47, %v12322_v12 }
 0x771   : > { %v12491_v4 = vrot.slane %v12490_v28, 3  ;;  %v12338_v24 = vmax.f32 %v12331_v22, 0.0 }
 0x773   : > { %14157 = vmatmul.msk.bf16.vlgmr.msrb.gmra.mxu2 %vm12373_vm4, %v12437_v57  ;;  %14170 = vmatmul.msk.bf16.vlgmr.msrb.gmra.mxu3 %vm12373_vm4, %v12491_v4  ;;  %v12345_v23 = vpack.c.bf16 %v12338_v24, %v12338_v24 }
 0x774   : > { %v12313_v36 = vpop.f32.mrf.mxu1 }
 0x775   : > { %v12323_v14 = vadd.f32 %v12313_v36, %v11812_v7  ;;  %v12557_v2 = vunpack.c.l.b16 %v12345_v23 }
 0x777   : > { %v12332_v39 = vadd.f32 %v18719_v47, %v12323_v14  ;;  %v14392_v47 = vld [vmem:[%s18801_s4 + $0x2] ss:$0 sm:$0xff] }
 0x779   : > { %v12339_v41 = vmax.f32 %v12332_v39, 0.0 }
 0x77b   : > { %v12346_v51 = vpack.c.bf16 %v12339_v41, %v12339_v41 }
 0x77c   : > { %v12315_v34 = vpop.f32.mrf.mxu1 }
 0x77d   : > { %v12558_v49 = vunpack.c.l.b16 %v12346_v51 }
 0x77f   : > { %v12559_v18 = vpack.c.b16 %v12558_v49, %v12557_v2 }
 0x783   : > { %14179 = vmatmul.msk.bf16.vlgmr.msra.gmra.mxu2 %vm12373_vm4, %v12437_v57  ;;  %14192 = vmatmul.msk.bf16.vlgmr.msra.gmra.mxu3 %vm12373_vm4, %v12559_v18 }
 0x7dc   : > { %v12424_v15 = vpop.f32.mrf.mxu3 }
 0x7e4   : > { %v12426_v17 = vpop.f32.mrf.mxu3 }
 0x7e6   : > { %v12390_v30 = vpop.f32.mrf.mxu2 }
 0x7e7   : > { %v12425_v42 = vadd.f32 %v12424_v15, %v12390_v30 }
 0x7ee   : > { %v12392_v21 = vpop.f32.mrf.mxu2 }
 0x7ef   : > { %v12427_v20 = vadd.f32 %v12426_v17, %v12392_v21 }
 0x7f6   : > { %v12464_v55 = vpop.f32.mrf.mxu2  ;;  %v12518_v58 = vpop.f32.mrf.mxu3 }
 0x7f7   : > { %v12469_v1 = vadd.f32 %v12464_v55, %v12425_v42 }
 0x7f9   : > { %v12473_v16 = vadd.f32 %v14392_v47, %v12469_v1 }
 0x7fb   : > { %v12475_v5 = vmax.f32 %v12473_v16, 0.0 }
 0x7fd   : > { %12477 = vst.msk [vmem:[%s224_s26] sm:$0xff] %vm12373_vm4, %v12475_v5 }
 0x7fe   : > { %v12466_v37 = vpop.f32.mrf.mxu2  ;;  %v12520_v26 = vpop.f32.mrf.mxu3 }
 0x7ff   : > { %v12470_v48 = vadd.f32 %v12466_v37, %v12427_v20 }
 0x801   : > { %v12474_v44 = vadd.f32 %v14392_v47, %v12470_v48 }
 0x803   : > { %v12476_v61 = vmax.f32 %v12474_v44, 0.0 }
 0x805   : > { %12479 = vst.msk [vmem:[%s224_s26 + $0x8] sm:$0x3] %vm12478_vm14, %v12476_v61 }
 0x806   : > { %v12546_v3 = vpop.f32.mrf.mxu2  ;;  %v12586_v46 = vpop.f32.mrf.mxu3 }
 0x807   : > { %v12547_v27 = vadd.f32 %v12546_v3, %v12518_v58 }
 0x809   : > { %v12591_v40 = vadd.f32 %v12586_v46, %v12547_v27 }
 0x80b   : > { %v12595_v32 = vadd.f32 %v14393_v59, %v12591_v40 }
 0x80d   : > { %v12597_v29 = vmax.f32 %v12595_v32, 0.0 }
 0x80e   : > { %v12548_v43 = vpop.f32.mrf.mxu2  ;;  %v12588_v35 = vpop.f32.mrf.mxu3 }
 0x80f   : > { %12599 = vst.msk [vmem:[%s224_s26 + $0xa] sm:$0xff] %vm12373_vm4, %v12597_v29  ;;  %v12549_v60 = vadd.f32 %v12548_v43, %v12520_v26 }
 0x811   : > { %v12592_v10 = vadd.f32 %v12588_v35, %v12549_v60 }
 0x813   : > { %v12596_v53 = vadd.f32 %v14393_v59, %v12592_v10 }
 0x815   : > { %v12598_v19 = vmax.f32 %v12596_v53, 0.0 }
 0x817   : > { %12600 = vst.msk [vmem:[%s224_s26 + $0x12] sm:$0x3] %vm12478_vm14, %v12598_v19 }
 0x818 PF: > { %s15_s18 = sadd.s32 1, %s14401_s18  }
 0x819   : > { %p12_p4 = scmp.ge.s32.totalorder %s15_s18, 4  }
 0x81b   :  { %14 = sbr.rel (!%p12_p4) target bundleno = 1 (0x1), region = 271 }

</bundles_post_ra>
